<compile_context>
chip_gen: v7x
topology: tpu7x:2x2x1
jax: 0.10.0
libtpu: 0.0.40
codegen_flags: <defaults>
</compile_context>

<pallas_src>
import functools
import math

import jax
import jax.numpy as jnp
from jax.experimental import pallas as pl
from jax.experimental.pallas import tpu as pltpu

_BN_EPS = 1e-5
_WEIGHT_DTYPE = jnp.bfloat16
_VMEM_LIMIT_BYTES = 48 * 1024 * 1024   # under v7x's 64 MiB physical VMEM per core


# ----------------------------------------------------------------------------------
# Fused forward kernel
# ----------------------------------------------------------------------------------
@functools.lru_cache(maxsize=None)
def _make_vae_forward_kernel(n_enc, n_dec):
    """Builds the fused forward kernel for a given encoder/decoder depth.

    Input-ref order:
        x, eps,
        dim_reduction:  w, b, scale, shift      (Linear -> ReLU -> BN affine)
        encoder blocks: (w, b) * n_enc          (BN folded into Linear, then ReLU)
        fc_mu|fc_var:   w, b                    (concatenated along out features)
        decoder blocks: (w, b) * n_dec          (BN folded into Linear, then ReLU)
        dim_expansion:  w, b, scale, shift      (Linear -> ReLU -> BN affine)
                        w, b                    (final Linear)
    Output refs: x_recon, mu_logvar
    """

    def kernel(*refs):
        it = iter(refs)
        x_ref, eps_ref = next(it), next(it)
        w_dr, b_dr, s_dr, t_dr = next(it), next(it), next(it), next(it)
        enc = [(next(it), next(it)) for _ in range(n_enc)]
        w_mv, b_mv = next(it), next(it)
        dec = [(next(it), next(it)) for _ in range(n_dec)]
        w_x1, b_x1, s_x1, t_x1 = next(it), next(it), next(it), next(it)
        w_x2, b_x2 = next(it), next(it)
        xrec_ref, muvar_ref = next(it), next(it)

        def linear(h, w_ref, b_ref):
            # bf16 x bf16 MXU matmul, f32 accumulate, f32 epilogue.
            return jnp.dot(h.astype(w_ref.dtype), w_ref[...],
                           preferred_element_type=jnp.float32) + b_ref[...]

        # --- encode -------------------------------------------------------------
        h = x_ref[...].astype(jnp.float32)
        # dim_reduction: Linear -> ReLU -> BatchNorm(eval affine)   [Dropout = id]
        h = linear(h, w_dr, b_dr)
        h = jnp.maximum(h, 0.0) * s_dr[...] + t_dr[...]
        # encoder blocks: Linear(BN folded) -> ReLU                 [Dropout = id]
        for w_ref, b_ref in enc:
            h = jnp.maximum(linear(h, w_ref, b_ref), 0.0)
        # fc_mu / fc_var as one concatenated matmul.
        muvar = linear(h, w_mv, b_mv)
        muvar_ref[...] = muvar.astype(muvar_ref.dtype)

        # --- reparameterize -------------------------------------------------------
        latent = eps_ref.shape[-1]
        mu = muvar[:, :latent]
        log_var = muvar[:, latent:]
        z = mu + eps_ref[...] * jnp.exp(0.5 * log_var)

        # --- decode ---------------------------------------------------------------
        h = z
        for w_ref, b_ref in dec:
            h = jnp.maximum(linear(h, w_ref, b_ref), 0.0)
        # dim_expansion: Linear -> ReLU -> BN affine -> Linear
        h = linear(h, w_x1, b_x1)
        h = jnp.maximum(h, 0.0) * s_x1[...] + t_x1[...]
        h = linear(h, w_x2, b_x2)
        xrec_ref[...] = h.astype(xrec_ref.dtype)

    return kernel


def vibe_encoder_forward(params, x, eps):
    """x: (B, input_dim) f32, eps: (B, latent_dim) f32 -> (x_recon, mu, log_var)."""
    n_enc = len(params["encoder"])
    n_dec = len(params["decoder"])
    B, input_dim = x.shape
    two_latent = params["fc_muvar"][0].shape[-1]

    args = [x, eps]
    args += list(params["dim_reduction"])
    for w, b in params["encoder"]:
        args += [w, b]
    args += list(params["fc_muvar"])
    for w, b in params["decoder"]:
        args += [w, b]
    args += list(params["dim_exp1"])
    args += list(params["dim_exp2"])

    x_recon, mu_logvar = pl.pallas_call(
        _make_vae_forward_kernel(n_enc, n_dec),
        out_shape=(
            jax.ShapeDtypeStruct((B, input_dim), jnp.float32),
            jax.ShapeDtypeStruct((B, two_latent), jnp.float32),
        ),
        compiler_params=pltpu.CompilerParams(vmem_limit_bytes=_VMEM_LIMIT_BYTES),
    )(*args)

    latent = two_latent // 2
    return x_recon, mu_logvar[:, :latent], mu_logvar[:, latent:]


# ----------------------------------------------------------------------------------
# Deterministic parameter initialization (matches PyTorch fresh-module shapes).
# Linear weights are stored (in_features, out_features) so the kernel computes
# y = x @ W + b directly on the MXU.
# ----------------------------------------------------------------------------------
def _init_linear(key, fan_in, fan_out):
    kw, kb = jax.random.split(key)
    bound = 1.0 / math.sqrt(fan_in)
    w = jax.random.uniform(kw, (fan_in, fan_out), jnp.float32, -bound, bound)
    b = jax.random.uniform(kb, (1, fan_out), jnp.float32, -bound, bound)
    return w, b


def _bn_eval_affine(n):
    # fresh BatchNorm1d (eval): gamma=1, beta=0, running_mean=0, running_var=1
    scale = jnp.full((1, n), 1.0 / math.sqrt(1.0 + _BN_EPS), jnp.float32)
    shift = jnp.zeros((1, n), jnp.float32)
    return scale, shift


def _linear_relu_bn(key, fan_in, fan_out):
    # Linear -> ReLU -> BN(eval): keep the post-ReLU affine explicit.
    w, b = _init_linear(key, fan_in, fan_out)
    s, t = _bn_eval_affine(fan_out)
    return w.astype(_WEIGHT_DTYPE), b, s, t


def _linear_bn_folded(key, fan_in, fan_out):
    # Linear -> BN(eval) -> ReLU: fold the BN affine into the linear (in f32), then cast.
    w, b = _init_linear(key, fan_in, fan_out)
    s, t = _bn_eval_affine(fan_out)
    return (w * s).astype(_WEIGHT_DTYPE), b * s + t


def _linear_plain(key, fan_in, fan_out):
    w, b = _init_linear(key, fan_in, fan_out)
    return w.astype(_WEIGHT_DTYPE), b


def init_vibe_encoder_params(key, input_dim, hidden_dims, latent_dim, reduce_dim=2048):
    keys = iter(jax.random.split(key, 2 * len(hidden_dims) + 5))
    params = {}

    # dim_reduction: Linear(input_dim, 2048) -> ReLU -> BN -> Dropout
    params["dim_reduction"] = _linear_relu_bn(next(keys), input_dim, reduce_dim)

    # encoder blocks: Linear -> BN -> ReLU -> Dropout
    enc, prev = [], reduce_dim
    for h in hidden_dims:
        enc.append(_linear_bn_folded(next(keys), prev, h))
        prev = h
    params["encoder"] = enc

    # fc_mu / fc_var share the same input -> concatenate along output features.
    w_mu, b_mu = _init_linear(next(keys), hidden_dims[-1], latent_dim)
    w_var, b_var = _init_linear(next(keys), hidden_dims[-1], latent_dim)
    params["fc_muvar"] = (
        jnp.concatenate([w_mu, w_var], axis=1).astype(_WEIGHT_DTYPE),
        jnp.concatenate([b_mu, b_var], axis=1),
    )

    # decoder blocks: Linear -> BN -> ReLU -> Dropout
    dec, prev = [], latent_dim
    for h in reversed(hidden_dims):
        dec.append(_linear_bn_folded(next(keys), prev, h))
        prev = h
    params["decoder"] = dec

    # dim_expansion: Linear(hidden_dims[0], 2048) -> ReLU -> BN -> Dropout -> Linear(2048, input_dim)
    params["dim_exp1"] = _linear_relu_bn(next(keys), hidden_dims[0], reduce_dim)
    params["dim_exp2"] = _linear_plain(next(keys), reduce_dim, input_dim)

    return params


if __name__ == "__main__":
    # Small shapes consistent with the module's forward (input_dim / hidden / latent
    # are constructor parameters; the 2048 reduction width is hardcoded in the module).
    B = 8
    INPUT_DIM = 512
    HIDDEN_DIMS = [256, 128, 64]
    LATENT_DIM = 32

    root = jax.random.PRNGKey(0)
    k_param, k_x, k_eps = jax.random.split(root, 3)

    params = init_vibe_encoder_params(k_param, INPUT_DIM, HIDDEN_DIMS, LATENT_DIM)
    x = jax.random.normal(k_x, (B, INPUT_DIM), jnp.float32)
    eps = jax.random.normal(k_eps, (B, LATENT_DIM), jnp.float32)

    fwd = jax.jit(vibe_encoder_forward)
    x_recon, mu, log_var = fwd(params, x, eps)
    jax.block_until_ready((x_recon, mu, log_var))

    assert x_recon.shape == (B, INPUT_DIM)
    assert mu.shape == (B, LATENT_DIM)
    assert log_var.shape == (B, LATENT_DIM)
    assert (jnp.all(jnp.isfinite(x_recon)) and jnp.all(jnp.isfinite(mu))
            and jnp.all(jnp.isfinite(log_var)))

    print("KERNEL_OK")
</pallas_src>

<mosaic_0001>
module attributes {stable_mosaic.version = 11 : i64} {
  func.func @kernel(%arg0: memref<8x512xf32, #tpu.memory_space<vmem>>, %arg1: memref<8x32xf32, #tpu.memory_space<vmem>>, %arg2: memref<512x2048xbf16, #tpu.memory_space<vmem>>, %arg3: memref<1x2048xf32, #tpu.memory_space<vmem>>, %arg4: memref<1x2048xf32, #tpu.memory_space<vmem>>, %arg5: memref<1x2048xf32, #tpu.memory_space<vmem>>, %arg6: memref<2048x256xbf16, #tpu.memory_space<vmem>>, %arg7: memref<1x256xf32, #tpu.memory_space<vmem>>, %arg8: memref<256x128xbf16, #tpu.memory_space<vmem>>, %arg9: memref<1x128xf32, #tpu.memory_space<vmem>>, %arg10: memref<128x64xbf16, #tpu.memory_space<vmem>>, %arg11: memref<1x64xf32, #tpu.memory_space<vmem>>, %arg12: memref<64x64xbf16, #tpu.memory_space<vmem>>, %arg13: memref<1x64xf32, #tpu.memory_space<vmem>>, %arg14: memref<32x64xbf16, #tpu.memory_space<vmem>>, %arg15: memref<1x64xf32, #tpu.memory_space<vmem>>, %arg16: memref<64x128xbf16, #tpu.memory_space<vmem>>, %arg17: memref<1x128xf32, #tpu.memory_space<vmem>>, %arg18: memref<128x256xbf16, #tpu.memory_space<vmem>>, %arg19: memref<1x256xf32, #tpu.memory_space<vmem>>, %arg20: memref<256x2048xbf16, #tpu.memory_space<vmem>>, %arg21: memref<1x2048xf32, #tpu.memory_space<vmem>>, %arg22: memref<1x2048xf32, #tpu.memory_space<vmem>>, %arg23: memref<1x2048xf32, #tpu.memory_space<vmem>>, %arg24: memref<2048x512xbf16, #tpu.memory_space<vmem>>, %arg25: memref<1x512xf32, #tpu.memory_space<vmem>>, %arg26: memref<8x512xf32, #tpu.memory_space<vmem>>, %arg27: memref<8x64xf32, #tpu.memory_space<vmem>>) attributes {dimension_semantics = [], scalar_prefetch = 0 : i64, scratch_operands = 0 : i64, tpu.core_type = #tpu.core_type<tc>} {
    %c0 = arith.constant 0 : index
    %c0_0 = arith.constant 0 : index
    %0 = vector.load %arg0[%c0, %c0_0] : memref<8x512xf32, #tpu.memory_space<vmem>>, vector<8x512xf32>
    %1 = arith.truncf %0 : vector<8x512xf32> to vector<8x512xbf16>
    %c0_1 = arith.constant 0 : index
    %c0_2 = arith.constant 0 : index
    %2 = vector.load %arg2[%c0_1, %c0_2] : memref<512x2048xbf16, #tpu.memory_space<vmem>>, vector<512x2048xbf16>
    %cst = arith.constant dense<0.000000e+00> : vector<8x2048xf32>
    %3 = tpu.matmul %1, %2, %cst {dimension_numbers = #tpu.dot_dimension_numbers<[1], [0], [0], [1], [0, 0, 1, 1], [], []>} : vector<8x512xbf16>, vector<512x2048xbf16>, vector<8x2048xf32> -> vector<8x2048xf32>
    %c0_3 = arith.constant 0 : index
    %c0_4 = arith.constant 0 : index
    %4 = vector.load %arg3[%c0_3, %c0_4] : memref<1x2048xf32, #tpu.memory_space<vmem>>, vector<1x2048xf32>
    %5 = vector.broadcast %4 : vector<1x2048xf32> to vector<8x2048xf32>
    %6 = arith.addf %3, %5 : vector<8x2048xf32>
    %cst_5 = arith.constant 0.000000e+00 : f32
    %7 = vector.broadcast %cst_5 : f32 to vector<8x2048xf32>
    %8 = arith.maximumf %6, %7 : vector<8x2048xf32>
    %c0_6 = arith.constant 0 : index
    %c0_7 = arith.constant 0 : index
    %9 = vector.load %arg4[%c0_6, %c0_7] : memref<1x2048xf32, #tpu.memory_space<vmem>>, vector<1x2048xf32>
    %10 = vector.broadcast %9 : vector<1x2048xf32> to vector<8x2048xf32>
    %11 = arith.mulf %8, %10 : vector<8x2048xf32>
    %c0_8 = arith.constant 0 : index
    %c0_9 = arith.constant 0 : index
    %12 = vector.load %arg5[%c0_8, %c0_9] : memref<1x2048xf32, #tpu.memory_space<vmem>>, vector<1x2048xf32>
    %13 = vector.broadcast %12 : vector<1x2048xf32> to vector<8x2048xf32>
    %14 = arith.addf %11, %13 : vector<8x2048xf32>
    %15 = arith.truncf %14 : vector<8x2048xf32> to vector<8x2048xbf16>
    %c0_10 = arith.constant 0 : index
    %c0_11 = arith.constant 0 : index
    %16 = vector.load %arg6[%c0_10, %c0_11] : memref<2048x256xbf16, #tpu.memory_space<vmem>>, vector<2048x256xbf16>
    %cst_12 = arith.constant dense<0.000000e+00> : vector<8x256xf32>
    %17 = tpu.matmul %15, %16, %cst_12 {dimension_numbers = #tpu.dot_dimension_numbers<[1], [0], [0], [1], [0, 0, 1, 1], [], []>} : vector<8x2048xbf16>, vector<2048x256xbf16>, vector<8x256xf32> -> vector<8x256xf32>
    %c0_13 = arith.constant 0 : index
    %c0_14 = arith.constant 0 : index
    %18 = vector.load %arg7[%c0_13, %c0_14] : memref<1x256xf32, #tpu.memory_space<vmem>>, vector<1x256xf32>
    %19 = vector.broadcast %18 : vector<1x256xf32> to vector<8x256xf32>
    %20 = arith.addf %17, %19 : vector<8x256xf32>
    %cst_15 = arith.constant 0.000000e+00 : f32
    %21 = vector.broadcast %cst_15 : f32 to vector<8x256xf32>
    %22 = arith.maximumf %20, %21 : vector<8x256xf32>
    %23 = arith.truncf %22 : vector<8x256xf32> to vector<8x256xbf16>
    %c0_16 = arith.constant 0 : index
    %c0_17 = arith.constant 0 : index
    %24 = vector.load %arg8[%c0_16, %c0_17] : memref<256x128xbf16, #tpu.memory_space<vmem>>, vector<256x128xbf16>
    %cst_18 = arith.constant dense<0.000000e+00> : vector<8x128xf32>
    %25 = tpu.matmul %23, %24, %cst_18 {dimension_numbers = #tpu.dot_dimension_numbers<[1], [0], [0], [1], [0, 0, 1, 1], [], []>} : vector<8x256xbf16>, vector<256x128xbf16>, vector<8x128xf32> -> vector<8x128xf32>
    %c0_19 = arith.constant 0 : index
    %c0_20 = arith.constant 0 : index
    %26 = vector.load %arg9[%c0_19, %c0_20] : memref<1x128xf32, #tpu.memory_space<vmem>>, vector<1x128xf32>
    %27 = vector.broadcast %26 : vector<1x128xf32> to vector<8x128xf32>
    %28 = arith.addf %25, %27 : vector<8x128xf32>
    %cst_21 = arith.constant 0.000000e+00 : f32
    %29 = vector.broadcast %cst_21 : f32 to vector<8x128xf32>
    %30 = arith.maximumf %28, %29 : vector<8x128xf32>
    %31 = arith.truncf %30 : vector<8x128xf32> to vector<8x128xbf16>
    %c0_22 = arith.constant 0 : index
    %c0_23 = arith.constant 0 : index
    %32 = vector.load %arg10[%c0_22, %c0_23] : memref<128x64xbf16, #tpu.memory_space<vmem>>, vector<128x64xbf16>
    %cst_24 = arith.constant dense<0.000000e+00> : vector<8x64xf32>
    %33 = tpu.matmul %31, %32, %cst_24 {dimension_numbers = #tpu.dot_dimension_numbers<[1], [0], [0], [1], [0, 0, 1, 1], [], []>} : vector<8x128xbf16>, vector<128x64xbf16>, vector<8x64xf32> -> vector<8x64xf32>
    %c0_25 = arith.constant 0 : index
    %c0_26 = arith.constant 0 : index
    %34 = vector.load %arg11[%c0_25, %c0_26] : memref<1x64xf32, #tpu.memory_space<vmem>>, vector<1x64xf32>
    %35 = vector.broadcast %34 : vector<1x64xf32> to vector<8x64xf32>
    %36 = arith.addf %33, %35 : vector<8x64xf32>
    %cst_27 = arith.constant 0.000000e+00 : f32
    %37 = vector.broadcast %cst_27 : f32 to vector<8x64xf32>
    %38 = arith.maximumf %36, %37 : vector<8x64xf32>
    %39 = arith.truncf %38 : vector<8x64xf32> to vector<8x64xbf16>
    %c0_28 = arith.constant 0 : index
    %c0_29 = arith.constant 0 : index
    %40 = vector.load %arg12[%c0_28, %c0_29] : memref<64x64xbf16, #tpu.memory_space<vmem>>, vector<64x64xbf16>
    %cst_30 = arith.constant dense<0.000000e+00> : vector<8x64xf32>
    %41 = tpu.matmul %39, %40, %cst_30 {dimension_numbers = #tpu.dot_dimension_numbers<[1], [0], [0], [1], [0, 0, 1, 1], [], []>} : vector<8x64xbf16>, vector<64x64xbf16>, vector<8x64xf32> -> vector<8x64xf32>
    %c0_31 = arith.constant 0 : index
    %c0_32 = arith.constant 0 : index
    %42 = vector.load %arg13[%c0_31, %c0_32] : memref<1x64xf32, #tpu.memory_space<vmem>>, vector<1x64xf32>
    %43 = vector.broadcast %42 : vector<1x64xf32> to vector<8x64xf32>
    %44 = arith.addf %41, %43 : vector<8x64xf32>
    %c0_33 = arith.constant 0 : index
    %c0_34 = arith.constant 0 : index
    %45 = vector.load %arg27[%c0_33, %c0_34] : memref<8x64xf32, #tpu.memory_space<vmem>>, vector<8x64xf32>
    tpu.vector_store %arg27[%c0_33, %c0_34], %44 {strides = array<i32>} : memref<8x64xf32, #tpu.memory_space<vmem>>, vector<8x64xf32>,
    %46 = vector.extract_strided_slice %44 {offsets = [0, 0], sizes = [8, 32], strides = [1, 1]} : vector<8x64xf32> to vector<8x32xf32>
    %47 = vector.extract_strided_slice %44 {offsets = [0, 32], sizes = [8, 32], strides = [1, 1]} : vector<8x64xf32> to vector<8x32xf32>
    %c0_35 = arith.constant 0 : index
    %c0_36 = arith.constant 0 : index
    %48 = vector.load %arg1[%c0_35, %c0_36] : memref<8x32xf32, #tpu.memory_space<vmem>>, vector<8x32xf32>
    %cst_37 = arith.constant 5.000000e-01 : f32
    %49 = vector.broadcast %cst_37 : f32 to vector<8x32xf32>
    %50 = arith.mulf %49, %47 : vector<8x32xf32>
    %51 = math.exp %50 : vector<8x32xf32>
    %52 = arith.mulf %48, %51 : vector<8x32xf32>
    %53 = arith.addf %46, %52 : vector<8x32xf32>
    %54 = arith.truncf %53 : vector<8x32xf32> to vector<8x32xbf16>
    %c0_38 = arith.constant 0 : index
    %c0_39 = arith.constant 0 : index
    %55 = vector.load %arg14[%c0_38, %c0_39] : memref<32x64xbf16, #tpu.memory_space<vmem>>, vector<32x64xbf16>
    %cst_40 = arith.constant dense<0.000000e+00> : vector<8x64xf32>
    %56 = tpu.matmul %54, %55, %cst_40 {dimension_numbers = #tpu.dot_dimension_numbers<[1], [0], [0], [1], [0, 0, 1, 1], [], []>} : vector<8x32xbf16>, vector<32x64xbf16>, vector<8x64xf32> -> vector<8x64xf32>
    %c0_41 = arith.constant 0 : index
    %c0_42 = arith.constant 0 : index
    %57 = vector.load %arg15[%c0_41, %c0_42] : memref<1x64xf32, #tpu.memory_space<vmem>>, vector<1x64xf32>
    %58 = vector.broadcast %57 : vector<1x64xf32> to vector<8x64xf32>
    %59 = arith.addf %56, %58 : vector<8x64xf32>
    %cst_43 = arith.constant 0.000000e+00 : f32
    %60 = vector.broadcast %cst_43 : f32 to vector<8x64xf32>
    %61 = arith.maximumf %59, %60 : vector<8x64xf32>
    %62 = arith.truncf %61 : vector<8x64xf32> to vector<8x64xbf16>
    %c0_44 = arith.constant 0 : index
    %c0_45 = arith.constant 0 : index
    %63 = vector.load %arg16[%c0_44, %c0_45] : memref<64x128xbf16, #tpu.memory_space<vmem>>, vector<64x128xbf16>
    %cst_46 = arith.constant dense<0.000000e+00> : vector<8x128xf32>
    %64 = tpu.matmul %62, %63, %cst_46 {dimension_numbers = #tpu.dot_dimension_numbers<[1], [0], [0], [1], [0, 0, 1, 1], [], []>} : vector<8x64xbf16>, vector<64x128xbf16>, vector<8x128xf32> -> vector<8x128xf32>
    %c0_47 = arith.constant 0 : index
    %c0_48 = arith.constant 0 : index
    %65 = vector.load %arg17[%c0_47, %c0_48] : memref<1x128xf32, #tpu.memory_space<vmem>>, vector<1x128xf32>
    %66 = vector.broadcast %65 : vector<1x128xf32> to vector<8x128xf32>
    %67 = arith.addf %64, %66 : vector<8x128xf32>
    %cst_49 = arith.constant 0.000000e+00 : f32
    %68 = vector.broadcast %cst_49 : f32 to vector<8x128xf32>
    %69 = arith.maximumf %67, %68 : vector<8x128xf32>
    %70 = arith.truncf %69 : vector<8x128xf32> to vector<8x128xbf16>
    %c0_50 = arith.constant 0 : index
    %c0_51 = arith.constant 0 : index
    %71 = vector.load %arg18[%c0_50, %c0_51] : memref<128x256xbf16, #tpu.memory_space<vmem>>, vector<128x256xbf16>
    %cst_52 = arith.constant dense<0.000000e+00> : vector<8x256xf32>
    %72 = tpu.matmul %70, %71, %cst_52 {dimension_numbers = #tpu.dot_dimension_numbers<[1], [0], [0], [1], [0, 0, 1, 1], [], []>} : vector<8x128xbf16>, vector<128x256xbf16>, vector<8x256xf32> -> vector<8x256xf32>
    %c0_53 = arith.constant 0 : index
    %c0_54 = arith.constant 0 : index
    %73 = vector.load %arg19[%c0_53, %c0_54] : memref<1x256xf32, #tpu.memory_space<vmem>>, vector<1x256xf32>
    %74 = vector.broadcast %73 : vector<1x256xf32> to vector<8x256xf32>
    %75 = arith.addf %72, %74 : vector<8x256xf32>
    %cst_55 = arith.constant 0.000000e+00 : f32
    %76 = vector.broadcast %cst_55 : f32 to vector<8x256xf32>
    %77 = arith.maximumf %75, %76 : vector<8x256xf32>
    %78 = arith.truncf %77 : vector<8x256xf32> to vector<8x256xbf16>
    %c0_56 = arith.constant 0 : index
    %c0_57 = arith.constant 0 : index
    %79 = vector.load %arg20[%c0_56, %c0_57] : memref<256x2048xbf16, #tpu.memory_space<vmem>>, vector<256x2048xbf16>
    %cst_58 = arith.constant dense<0.000000e+00> : vector<8x2048xf32>
    %80 = tpu.matmul %78, %79, %cst_58 {dimension_numbers = #tpu.dot_dimension_numbers<[1], [0], [0], [1], [0, 0, 1, 1], [], []>} : vector<8x256xbf16>, vector<256x2048xbf16>, vector<8x2048xf32> -> vector<8x2048xf32>
    %c0_59 = arith.constant 0 : index
    %c0_60 = arith.constant 0 : index
    %81 = vector.load %arg21[%c0_59, %c0_60] : memref<1x2048xf32, #tpu.memory_space<vmem>>, vector<1x2048xf32>
    %82 = vector.broadcast %81 : vector<1x2048xf32> to vector<8x2048xf32>
    %83 = arith.addf %80, %82 : vector<8x2048xf32>
    %cst_61 = arith.constant 0.000000e+00 : f32
    %84 = vector.broadcast %cst_61 : f32 to vector<8x2048xf32>
    %85 = arith.maximumf %83, %84 : vector<8x2048xf32>
    %c0_62 = arith.constant 0 : index
    %c0_63 = arith.constant 0 : index
    %86 = vector.load %arg22[%c0_62, %c0_63] : memref<1x2048xf32, #tpu.memory_space<vmem>>, vector<1x2048xf32>
    %87 = vector.broadcast %86 : vector<1x2048xf32> to vector<8x2048xf32>
    %88 = arith.mulf %85, %87 : vector<8x2048xf32>
    %c0_64 = arith.constant 0 : index
    %c0_65 = arith.constant 0 : index
    %89 = vector.load %arg23[%c0_64, %c0_65] : memref<1x2048xf32, #tpu.memory_space<vmem>>, vector<1x2048xf32>
    %90 = vector.broadcast %89 : vector<1x2048xf32> to vector<8x2048xf32>
    %91 = arith.addf %88, %90 : vector<8x2048xf32>
    %92 = arith.truncf %91 : vector<8x2048xf32> to vector<8x2048xbf16>
    %c0_66 = arith.constant 0 : index
    %c0_67 = arith.constant 0 : index
    %93 = vector.load %arg24[%c0_66, %c0_67] : memref<2048x512xbf16, #tpu.memory_space<vmem>>, vector<2048x512xbf16>
    %cst_68 = arith.constant dense<0.000000e+00> : vector<8x512xf32>
    %94 = tpu.matmul %92, %93, %cst_68 {dimension_numbers = #tpu.dot_dimension_numbers<[1], [0], [0], [1], [0, 0, 1, 1], [], []>} : vector<8x2048xbf16>, vector<2048x512xbf16>, vector<8x512xf32> -> vector<8x512xf32>
    %c0_69 = arith.constant 0 : index
    %c0_70 = arith.constant 0 : index
    %95 = vector.load %arg25[%c0_69, %c0_70] : memref<1x512xf32, #tpu.memory_space<vmem>>, vector<1x512xf32>
    %96 = vector.broadcast %95 : vector<1x512xf32> to vector<8x512xf32>
    %97 = arith.addf %94, %96 : vector<8x512xf32>
    %c0_71 = arith.constant 0 : index
    %c0_72 = arith.constant 0 : index
    %98 = vector.load %arg26[%c0_71, %c0_72] : memref<8x512xf32, #tpu.memory_space<vmem>>, vector<8x512xf32>
    tpu.vector_store %arg26[%c0_71, %c0_72], %97 {strides = array<i32>} : memref<8x512xf32, #tpu.memory_space<vmem>>, vector<8x512xf32>,
    return
  }
}

</mosaic_0001>

<bundles_post_ra>
// kernel: vibe_encoder_forward.1
= control target key start
LH: loop header
LB: loop body
LE: loop exit
PB: predicated region body
PF: predicated region fallthrough
CT: control target
= control target key end

     0   :  { %s17666_s0 = inlined_call_operand.hbm [shape: f32[8,512], index: 0, kind: input, shape index: {}]   ;;  %s17667_s1 = inlined_call_operand.hbm [shape: f32[8,32], index: 1, kind: input, shape index: {}]   ;;  %s17668_s2 = inlined_call_operand.hbm [shape: bf16[512,2048], index: 2, kind: input, shape index: {}]   ;;  %s17669_s3 = inlined_call_operand.hbm [shape: f32[1,2048], index: 3, kind: input, shape index: {}]   ;;  %s17670_s4 = inlined_call_operand.hbm [shape: f32[1,2048], index: 4, kind: input, shape index: {}]   ;;  %s17671_s5 = inlined_call_operand.hbm [shape: f32[1,2048], index: 5, kind: input, shape index: {}]   ;;  %s17672_s6 = inlined_call_operand.hbm [shape: bf16[2048,256], index: 6, kind: input, shape index: {}]   ;;  %s17673_s7 = inlined_call_operand.hbm [shape: f32[1,256], index: 7, kind: input, shape index: {}]   ;;  %s17674_s8 = inlined_call_operand.hbm [shape: bf16[256,128], index: 8, kind: input, shape index: {}]   ;;  %s17675_s9 = inlined_call_operand.hbm [shape: f32[1,128], index: 9, kind: input, shape index: {}]   ;;  %s17676_s10 = inlined_call_operand.vmem [shape: bf16[128,64], index: 10, kind: input, shape index: {}]   ;;  %s17677_s11 = inlined_call_operand.hbm [shape: f32[1,64], index: 11, kind: input, shape index: {}]   ;;  %s17678_s12 = inlined_call_operand.hbm [shape: bf16[64,64], index: 12, kind: input, shape index: {}]   ;;  %s17679_s13 = inlined_call_operand.hbm [shape: f32[1,64], index: 13, kind: input, shape index: {}]   ;;  %s17680_s14 = inlined_call_operand.hbm [shape: bf16[32,64], index: 14, kind: input, shape index: {}]   ;;  %s17681_s15 = inlined_call_operand.hbm [shape: f32[1,64], index: 15, kind: input, shape index: {}]   ;;  %s17682_s16 = inlined_call_operand.hbm [shape: bf16[64,128], index: 16, kind: input, shape index: {}]   ;;  %s17683_s17 = inlined_call_operand.hbm [shape: f32[1,128], index: 17, kind: input, shape index: {}]   ;;  %s17684_s18 = inlined_call_operand.hbm [shape: bf16[128,256], index: 18, kind: input, shape index: {}]   ;;  %s17685_s19 = inlined_call_operand.hbm [shape: f32[1,256], index: 19, kind: input, shape index: {}]   ;;  %s17686_s20 = inlined_call_operand.hbm [shape: bf16[256,2048], index: 20, kind: input, shape index: {}]   ;;  %s17687_s21 = inlined_call_operand.hbm [shape: f32[1,2048], index: 21, kind: input, shape index: {}]   ;;  %s17688_s22 = inlined_call_operand.hbm [shape: f32[1,2048], index: 22, kind: input, shape index: {}]   ;;  %s17689_s23 = inlined_call_operand.hbm [shape: f32[1,2048], index: 23, kind: input, shape index: {}]   ;;  %s17690_s24 = inlined_call_operand.hbm [shape: bf16[2048,512], index: 24, kind: input, shape index: {}]   ;;  %s17691_s25 = inlined_call_operand.hbm [shape: f32[1,512], index: 25, kind: input, shape index: {}]   ;;  %s17692_s26 = inlined_call_operand.hbm [shape: f32[8,512], index: 26, kind: output, shape index: {0}]   ;;  %s17693_s27 = inlined_call_operand.vmem [shape: f32[8,64], index: 27, kind: output, shape index: {1}]  }
   0x1   :  { %17707 = sst [smem:[#allocation56_spill]] %s17666_s0 }
   0x2   :  { %17708 = sst [smem:[#allocation57_spill]] %s17667_s1 }
   0x3   :  { %17709 = sst [smem:[#allocation58_spill]] %s17668_s2 }
   0x4   :  { %17710 = sst [smem:[#allocation59_spill]] %s17669_s3 }
   0x5   :  { %17711 = sst [smem:[#allocation60_spill]] %s17670_s4 }
   0x6   :  { %17712 = sst [smem:[#allocation61_spill]] %s17671_s5 }
   0x7   :  { %17713 = sst [smem:[#allocation62_spill]] %s17672_s6 }
   0x8   :  { %17714 = sst [smem:[#allocation63_spill]] %s17673_s7 }
   0x9   :  { %17715 = sst [smem:[#allocation64_spill]] %s17674_s8 }
   0xa   :  { %17716 = sst [smem:[#allocation65_spill]] %s17675_s9 }
   0xb   :  { %17717 = sst [smem:[#allocation66_spill]] %s17676_s10 }
   0xc   :  { %17718 = sst [smem:[#allocation67_spill]] %s17677_s11 }
   0xd   :  { %17719 = sst [smem:[#allocation68_spill]] %s17692_s26 }
   0xe   :  { %33 = vsyncpa [#allocation3], 0 }
   0xf   :  { %34 = vsyncpa [#allocation6], 0 }
  0x10   :  { %35 = vsyncpa [#allocation9], 0 }
  0x11   :  { %36 = vsyncpa [#allocation12], 0 }
  0x12   :  { %37 = vsyncpa [#allocation15], 0 }
  0x13   :  { %38 = vsyncpa [#allocation18], 0 }
  0x14   :  { %39 = vsyncpa [#allocation21], 0 }
  0x15   :  { %40 = vsyncpa [#allocation24], 0 }
  0x16   :  { %41 = vsyncpa [#allocation27], 0 }
  0x17   :  { %42 = vsyncpa [#allocation30], 0 }
  0x18   :  { %43 = vsyncpa [#allocation33], 0 }
  0x19   :  { %44 = vsyncpa [#allocation36], 0 }
  0x1a   :  { %45 = vsyncpa [#allocation39], 0 }
  0x1b   :  { %46 = vsyncpa [#allocation4], 0  ;;  %s16664_s7 = smov [#allocation5]   ;;  %s16665_s8 = smov [#allocation8]  }
  0x1c   :  { %s63_s4 = sshll.u32 %s16664_s7, 4  ;;  %s85_s30 = sshll.u32 %s16665_s8, 4  ;;  %s64_s4 = int_to_ptr.vmem [resolvable:$true] %s63_s4  ;;  %s86_s30 = int_to_ptr.vmem [resolvable:$true] %s85_s30 }
  0x1d   :  { %s17720_s28 = sld [smem:[#allocation57_spill]] }
  0x23   :  { %s16064_s0 = scalar_lea.hbm %s17720_s28, 128 }
  0x24   :  { %p16065_p0 = scmp.ne.s32.totalorder %s17720_s28, %s16064_s0  ;;  %p16068_p1 = scmp.lt.u32.totalorder %s16064_s0, %s17720_s28 }
  0x26   :  { %p16070_p2 = pnand %p16068_p1, %p16065_p0 }
  0x28   :  { %16073 = shalt.err (!%p16070_p2)
}
  0x29   :  { %s16074_s11 = scalar_lea.vmem %s64_s4, 128  ;;  %p16079_p4 = scmp.lt.s32.totalorder %s64_s4, %s64_s4 }
  0x2a   :  { %p16075_p3 = scmp.ne.s32.totalorder %s64_s4, %s16074_s11  ;;  %p16080_p5 = scmp.lt.s32.totalorder %s16074_s11, %s16074_s11 }
  0x2c   :  { %p16081_p6 = por %p16080_p5, %p16079_p4 }
  0x2e   :  { %p16082_p7 = pnand %p16081_p6, %p16075_p3 }
  0x30   :  { %16085 = shalt.err (!%p16082_p7)
}
  0x31   :  { %66 = dma.hbm_to_vmem [thread:$0]  %s17720_s28, 128, %s64_s4, [#allocation6]  }
  0x32   :  { %s17721_s9 = sld [smem:[#allocation59_spill]] }
  0x38   :  { %s16086_s5 = scalar_lea.hbm %s17721_s9, 256 }
  0x39   :  { %p16087_p8 = scmp.ne.s32.totalorder %s17721_s9, %s16086_s5  ;;  %p16090_p9 = scmp.lt.u32.totalorder %s16086_s5, %s17721_s9 }
  0x3b   :  { %p16092_p10 = pnand %p16090_p9, %p16087_p8 }
  0x3d   :  { %16095 = shalt.err (!%p16092_p10)
}
  0x3e   :  { %s16096_s6 = scalar_lea.vmem %s86_s30, 256  ;;  %p16101_p12 = scmp.lt.s32.totalorder %s86_s30, %s86_s30 }
  0x3f   :  { %p16097_p11 = scmp.ne.s32.totalorder %s86_s30, %s16096_s6  ;;  %p16102_p13 = scmp.lt.s32.totalorder %s16096_s6, %s16096_s6 }
  0x41   :  { %p16103_p0 = por %p16102_p13, %p16101_p12 }
  0x43   :  { %p16104_p1 = pnand %p16103_p0, %p16097_p11 }
  0x45   :  { %16107 = shalt.err (!%p16104_p1)
}
  0x46   :  { %88 = dma.hbm_to_vmem [thread:$0]  %s17721_s9, 256, %s86_s30, [#allocation9]  }
  0x47   :  { %s16666_s11 = smov [#allocation11]   ;;  %s16667_s3 = smov [#allocation14]  }
  0x48   :  { %s105_s2 = sshll.u32 %s16666_s11, 4  ;;  %s127_s7 = sshll.u32 %s16667_s3, 4  ;;  %s106_s2 = int_to_ptr.vmem [resolvable:$true] %s105_s2  ;;  %s128_s7 = int_to_ptr.vmem [resolvable:$true] %s127_s7 }
  0x49   :  { %s17722_s10 = sld [smem:[#allocation61_spill]] }
  0x4f   :  { %s16108_s29 = scalar_lea.hbm %s17722_s10, 256 }
  0x50   :  { %p16109_p2 = scmp.ne.s32.totalorder %s17722_s10, %s16108_s29  ;;  %p16112_p3 = scmp.lt.u32.totalorder %s16108_s29, %s17722_s10 }
  0x52   :  { %p16114_p4 = pnand %p16112_p3, %p16109_p2 }
  0x54   :  { %16117 = shalt.err (!%p16114_p4)
}
  0x55   :  { %s16118_s30 = scalar_lea.vmem %s106_s2, 256  ;;  %p16123_p6 = scmp.lt.s32.totalorder %s106_s2, %s106_s2 }
  0x56   :  { %p16119_p5 = scmp.ne.s32.totalorder %s106_s2, %s16118_s30  ;;  %p16124_p7 = scmp.lt.s32.totalorder %s16118_s30, %s16118_s30 }
  0x58   :  { %p16125_p8 = por %p16124_p7, %p16123_p6 }
  0x5a   :  { %p16126_p9 = pnand %p16125_p8, %p16119_p5 }
  0x5c   :  { %16129 = shalt.err (!%p16126_p9)
}
  0x5d   :  { %108 = dma.hbm_to_vmem [thread:$0]  %s17722_s10, 256, %s106_s2, [#allocation12]  }
  0x5e   :  { %s17723_s3 = sld [smem:[#allocation63_spill]] }
  0x64   :  { %s16130_s8 = scalar_lea.hbm %s17723_s3, 32 }
  0x65   :  { %p16131_p10 = scmp.ne.s32.totalorder %s17723_s3, %s16130_s8  ;;  %p16134_p11 = scmp.lt.u32.totalorder %s16130_s8, %s17723_s3 }
  0x67   :  { %p16136_p12 = pnand %p16134_p11, %p16131_p10 }
  0x69   :  { %16139 = shalt.err (!%p16136_p12)
}
  0x6a   :  { %s16140_s1 = scalar_lea.vmem %s128_s7, 32  ;;  %p16145_p0 = scmp.lt.s32.totalorder %s128_s7, %s128_s7 }
  0x6b   :  { %p16141_p13 = scmp.ne.s32.totalorder %s128_s7, %s16140_s1  ;;  %p16146_p1 = scmp.lt.s32.totalorder %s16140_s1, %s16140_s1 }
  0x6d   :  { %p16147_p2 = por %p16146_p1, %p16145_p0 }
  0x6f   :  { %p16148_p3 = pnand %p16147_p2, %p16141_p13 }
  0x71   :  { %16151 = shalt.err (!%p16148_p3)
}
  0x72   :  { %130 = dma.hbm_to_vmem [thread:$0]  %s17723_s3, 32, %s128_s7, [#allocation15]  }
  0x73   :  { %s16668_s6 = smov [#allocation17]   ;;  %s17724_s28 = sld [smem:[#allocation65_spill]] }
  0x74   :  { %s149_s30 = sshll.u32 %s16668_s6, 4  ;;  %s150_s30 = int_to_ptr.vmem [resolvable:$true] %s149_s30 }
  0x79   :  { %s16152_s11 = scalar_lea.hbm %s17724_s28, 16 }
  0x7a   :  { %p16153_p4 = scmp.ne.s32.totalorder %s17724_s28, %s16152_s11  ;;  %p16156_p5 = scmp.lt.u32.totalorder %s16152_s11, %s17724_s28 }
  0x7c   :  { %p16158_p6 = pnand %p16156_p5, %p16153_p4 }
  0x7e   :  { %16161 = shalt.err (!%p16158_p6)
}
  0x7f   :  { %s16162_s0 = scalar_lea.vmem %s150_s30, 16  ;;  %s16166_s7 = scalar_lea.vmem %s150_s30, 32 }
  0x80   :  { %p16163_p7 = scmp.ne.s32.totalorder %s150_s30, %s16162_s0  ;;  %p16167_p8 = scmp.lt.s32.totalorder %s150_s30, %s150_s30 }
  0x81   :  { %p16168_p9 = scmp.lt.s32.totalorder %s16166_s7, %s16162_s0 }
  0x83   :  { %p16169_p10 = por %p16168_p9, %p16167_p8 }
  0x85   :  { %p16170_p11 = pnand %p16169_p10, %p16163_p7 }
  0x87   :  { %16173 = shalt.err (!%p16170_p11)
}
  0x88   :  { %152 = dma.hbm_to_vmem [thread:$0]  %s17724_s28, 16, %s150_s30, [#allocation18]  }
  0x89   :  { %s16669_s2 = smov [#allocation20]   ;;  %s16670_s6 = smov [#allocation23]  }
  0x8a   :  { %s170_s10 = sshll.u32 %s16669_s2, 4  ;;  %s192_s9 = sshll.u32 %s16670_s6, 4  ;;  %s171_s10 = int_to_ptr.vmem [resolvable:$true] %s170_s10  ;;  %s193_s9 = int_to_ptr.vmem [resolvable:$true] %s192_s9 }
  0x8b   :  { %s16174_s8 = scalar_lea.hbm %s17678_s12, 512 }
  0x8c   :  { %p16175_p12 = scmp.ne.s32.totalorder %s17678_s12, %s16174_s8  ;;  %p16178_p13 = scmp.lt.u32.totalorder %s16174_s8, %s17678_s12 }
  0x8e   :  { %p16180_p0 = pnand %p16178_p13, %p16175_p12 }
  0x90   :  { %16183 = shalt.err (!%p16180_p0)
}
  0x91   :  { %s16184_s30 = scalar_lea.vmem %s171_s10, 512  ;;  %p16189_p2 = scmp.lt.s32.totalorder %s171_s10, %s171_s10 }
  0x92   :  { %p16185_p1 = scmp.ne.s32.totalorder %s171_s10, %s16184_s30  ;;  %p16190_p3 = scmp.lt.s32.totalorder %s16184_s30, %s16184_s30 }
  0x94   :  { %p16191_p4 = por %p16190_p3, %p16189_p2 }
  0x96   :  { %p16192_p5 = pnand %p16191_p4, %p16185_p1 }
  0x98   :  { %16195 = shalt.err (!%p16192_p5)
}
  0x99   :  { %s16671_s28 = smov 64   ;;  %s16672_s7 = smov 4  }
  0x9a   :  { %176 = dma.hbm_to_vmem [thread:$0]  %s17678_s12, 512, %s171_s10, [#allocation21], %s16671_s28, %s16671_s28, %s16672_s7  }
  0x9b   :  { %s16196_s4 = scalar_lea.hbm %s17680_s14, 256 }
  0x9c   :  { %p16197_p6 = scmp.ne.s32.totalorder %s17680_s14, %s16196_s4  ;;  %p16200_p7 = scmp.lt.u32.totalorder %s16196_s4, %s17680_s14 }
  0x9e   :  { %p16202_p8 = pnand %p16200_p7, %p16197_p6 }
  0xa0   :  { %16205 = shalt.err (!%p16202_p8)
}
  0xa1   :  { %s16206_s29 = scalar_lea.vmem %s193_s9, 256  ;;  %p16211_p10 = scmp.lt.s32.totalorder %s193_s9, %s193_s9 }
  0xa2   :  { %p16207_p9 = scmp.ne.s32.totalorder %s193_s9, %s16206_s29  ;;  %p16212_p11 = scmp.lt.s32.totalorder %s16206_s29, %s16206_s29 }
  0xa4   :  { %p16213_p12 = por %p16212_p11, %p16211_p10 }
  0xa6   :  { %p16214_p13 = pnand %p16213_p12, %p16207_p9 }
  0xa8   :  { %16217 = shalt.err (!%p16214_p13)
}
  0xa9   :  { %198 = dma.hbm_to_vmem [thread:$0]  %s17680_s14, 256, %s193_s9, [#allocation24], %s16671_s28, %s16671_s28, %s16672_s7  }
  0xaa   :  { %s16673_s0 = smov [#allocation26]   ;;  %s16218_s2 = scalar_lea.hbm %s17682_s16, 512 }
  0xab   :  { %s214_s30 = sshll.u32 %s16673_s0, 4  ;;  %p16219_p0 = scmp.ne.s32.totalorder %s17682_s16, %s16218_s2  ;;  %s215_s30 = int_to_ptr.vmem [resolvable:$true] %s214_s30 }
  0xac   :  { %p16222_p1 = scmp.lt.u32.totalorder %s16218_s2, %s17682_s16 }
  0xae   :  { %p16224_p2 = pnand %p16222_p1, %p16219_p0 }
  0xb0   :  { %16227 = shalt.err (!%p16224_p2)
}
  0xb1   :  { %s16228_s5 = scalar_lea.vmem %s215_s30, 512  ;;  %p16233_p4 = scmp.lt.s32.totalorder %s215_s30, %s215_s30 }
  0xb2   :  { %p16229_p3 = scmp.ne.s32.totalorder %s215_s30, %s16228_s5  ;;  %p16234_p5 = scmp.lt.s32.totalorder %s16228_s5, %s16228_s5 }
  0xb4   :  { %p16235_p6 = por %p16234_p5, %p16233_p4 }
  0xb6   :  { %p16236_p7 = pnand %p16235_p6, %p16229_p3 }
  0xb8   :  { %16239 = shalt.err (!%p16236_p7)
}
  0xb9   :  { %220 = dma.hbm_to_vmem [thread:$0]  %s17682_s16, 512, %s215_s30, [#allocation27], %s16671_s28, %s16671_s28, %s16672_s7  }
  0xba   :  { %s16674_s26 = smov [#allocation29]   ;;  %s16675_s12 = smov [#allocation32]  }
  0xbb   :  { %s236_s29 = sshll.u32 %s16674_s26, 4  ;;  %s258_s10 = sshll.u32 %s16675_s12, 4  ;;  %s237_s29 = int_to_ptr.vmem [resolvable:$true] %s236_s29  ;;  %s259_s10 = int_to_ptr.vmem [resolvable:$true] %s258_s10 }
  0xbc   :  { %s16240_s1 = scalar_lea.hbm %s17684_s18, 2048 }
  0xbd   :  { %p16241_p8 = scmp.ne.s32.totalorder %s17684_s18, %s16240_s1  ;;  %p16244_p9 = scmp.lt.u32.totalorder %s16240_s1, %s17684_s18 }
  0xbf   :  { %p16246_p10 = pnand %p16244_p9, %p16241_p8 }
  0xc1   :  { %16249 = shalt.err (!%p16246_p10)
}
  0xc2   :  { %s16250_s16 = scalar_lea.vmem %s237_s29, 2048  ;;  %p16255_p12 = scmp.lt.s32.totalorder %s237_s29, %s237_s29 }
  0xc3   :  { %p16251_p11 = scmp.ne.s32.totalorder %s237_s29, %s16250_s16  ;;  %p16256_p13 = scmp.lt.s32.totalorder %s16250_s16, %s16250_s16 }
  0xc5   :  { %p16257_p0 = por %p16256_p13, %p16255_p12 }
  0xc7   :  { %p16258_p1 = pnand %p16257_p0, %p16251_p11 }
  0xc9   :  { %16261 = shalt.err (!%p16258_p1)
}
  0xca   :  { %s16676_s30 = smov 128   ;;  %s16677_s8 = smov 8  }
  0xcb   :  { %242 = dma.hbm_to_vmem [thread:$0]  %s17684_s18, 2048, %s237_s29, [#allocation30], %s16676_s30, %s16676_s30, %s16677_s8  }
  0xcc   :  { %s16262_s12 = scalar_lea.hbm %s17686_s20, 32768 }
  0xcd   :  { %p16263_p2 = scmp.ne.s32.totalorder %s17686_s20, %s16262_s12  ;;  %p16266_p3 = scmp.lt.u32.totalorder %s16262_s12, %s17686_s20 }
  0xcf   :  { %p16268_p4 = pnand %p16266_p3, %p16263_p2 }
  0xd1   :  { %16271 = shalt.err (!%p16268_p4)
}
  0xd2   :  { %s16272_s6 = scalar_lea.vmem %s259_s10, 32768  ;;  %p16277_p6 = scmp.lt.s32.totalorder %s259_s10, %s259_s10 }
  0xd3   :  { %p16273_p5 = scmp.ne.s32.totalorder %s259_s10, %s16272_s6  ;;  %p16278_p7 = scmp.lt.s32.totalorder %s16272_s6, %s16272_s6 }
  0xd5   :  { %p16279_p8 = por %p16278_p7, %p16277_p6 }
  0xd7   :  { %p16280_p9 = pnand %p16279_p8, %p16273_p5 }
  0xd9   :  { %16283 = shalt.err (!%p16280_p9)
}
  0xda   :  { %s16678_s18 = smov 1024   ;;  %s16679_s11 = smov [#allocation35]  }
  0xdb   :  { %264 = dma.hbm_to_vmem [thread:$0]  %s17686_s20, 32768, %s259_s10, [#allocation33], %s16678_s18, %s16678_s18, %s16671_s28  }
  0xdc   :  { %s281_s16 = sshll.u32 %s16679_s11, 4  ;;  %s16680_s5 = smov [#allocation38]   ;;  %s282_s16 = int_to_ptr.vmem [resolvable:$true] %s281_s16 }
  0xdd   :  { %s300_s14 = sshll.u32 %s16680_s5, 4  ;;  %s16284_s12 = scalar_lea.hbm %s17688_s22, 256  ;;  %s301_s14 = int_to_ptr.vmem [resolvable:$true] %s300_s14 }
  0xde   :  { %p16285_p10 = scmp.ne.s32.totalorder %s17688_s22, %s16284_s12  ;;  %p16288_p11 = scmp.lt.u32.totalorder %s16284_s12, %s17688_s22 }
  0xe0   :  { %p16290_p12 = pnand %p16288_p11, %p16285_p10 }
  0xe2   :  { %16293 = shalt.err (!%p16290_p12)
}
  0xe3   :  { %s16294_s20 = scalar_lea.vmem %s282_s16, 256  ;;  %p16299_p0 = scmp.lt.s32.totalorder %s282_s16, %s282_s16 }
  0xe4   :  { %p16295_p13 = scmp.ne.s32.totalorder %s282_s16, %s16294_s20  ;;  %p16300_p1 = scmp.lt.s32.totalorder %s16294_s20, %s16294_s20 }
  0xe6   :  { %p16301_p2 = por %p16300_p1, %p16299_p0 }
  0xe8   :  { %p16302_p3 = pnand %p16301_p2, %p16295_p13 }
  0xea   :  { %16305 = shalt.err (!%p16302_p3)
}
  0xeb   :  { %284 = dma.hbm_to_vmem [thread:$0]  %s17688_s22, 256, %s282_s16, [#allocation36]  }
  0xec   :  { %s16306_s11 = scalar_lea.hbm %s17690_s24, 65536 }
  0xed   :  { %p16307_p4 = scmp.ne.s32.totalorder %s17690_s24, %s16306_s11  ;;  %p16310_p5 = scmp.lt.u32.totalorder %s16306_s11, %s17690_s24 }
  0xef   :  { %p16312_p6 = pnand %p16310_p5, %p16307_p4 }
  0xf1   :  { %16315 = shalt.err (!%p16312_p6)
}
  0xf2   :  { %s16316_s0 = scalar_lea.vmem %s301_s14, 65536  ;;  %p16321_p8 = scmp.lt.s32.totalorder %s301_s14, %s301_s14 }
  0xf3   :  { %p16317_p7 = scmp.ne.s32.totalorder %s301_s14, %s16316_s0  ;;  %p16322_p9 = scmp.lt.s32.totalorder %s16316_s0, %s16316_s0 }
  0xf5   :  { %p16323_p10 = por %p16322_p9, %p16321_p8 }
  0xf7   :  { %p16324_p11 = pnand %p16323_p10, %p16317_p7 }
  0xf9   :  { %16327 = shalt.err (!%p16324_p11)
}
  0xfa   :  { %s16681_s22 = smov 256   ;;  %s16682_s16 = smov 16  }
  0xfb   :  { %306 = dma.hbm_to_vmem [thread:$0]  %s17690_s24, 65536, %s301_s14, [#allocation39], %s16681_s22, %s16681_s22, %s16682_s16  }
  0xfc   :  { %s16683_s2 = smov [#allocation2]   ;;  %s16684_s10 = smov [#allocation7]  }
  0xfd   :  { %s53_s20 = sshll.u32 %s16683_s2, 4  ;;  %s72_s6 = sshll.u32 %s16684_s10, 4  ;;  %s54_s20 = int_to_ptr.vmem [resolvable:$true] %s53_s20  ;;  %s73_s6 = int_to_ptr.vmem [resolvable:$true] %s72_s6 }
  0xfe   :  { %s17725_s11 = sld [smem:[#allocation56_spill]] }
 0x104   :  { %s16328_s5 = scalar_lea.hbm %s17725_s11, 512 }
 0x105   :  { %p16329_p12 = scmp.ne.s32.totalorder %s17725_s11, %s16328_s5  ;;  %p16332_p13 = scmp.lt.u32.totalorder %s16328_s5, %s17725_s11 }
 0x107   :  { %p16334_p0 = pnand %p16332_p13, %p16329_p12 }
 0x109   :  { %16337 = shalt.err (!%p16334_p0)
}
 0x10a   :  { %s16338_s24 = scalar_lea.vmem %s54_s20, 512  ;;  %p16343_p2 = scmp.lt.s32.totalorder %s54_s20, %s54_s20 }
 0x10b   :  { %p16339_p1 = scmp.ne.s32.totalorder %s54_s20, %s16338_s24  ;;  %p16344_p3 = scmp.lt.s32.totalorder %s16338_s24, %s16338_s24 }
 0x10d   :  { %p16345_p4 = por %p16344_p3, %p16343_p2 }
 0x10f   :  { %p16346_p5 = pnand %p16345_p4, %p16339_p1 }
 0x111   :  { %16349 = shalt.err (!%p16346_p5)
}
 0x112   :  { %56 = dma.hbm_to_vmem [thread:$0]  %s17725_s11, 512, %s54_s20, [#allocation3]  }
 0x113   :  { %s17726_s1 = sld [smem:[#allocation58_spill]] }
 0x119   :  { %s16350_s2 = scalar_lea.hbm %s17726_s1, 65536 }
 0x11a   :  { %p16351_p6 = scmp.ne.s32.totalorder %s17726_s1, %s16350_s2  ;;  %p16354_p7 = scmp.lt.u32.totalorder %s16350_s2, %s17726_s1 }
 0x11c   :  { %p16356_p8 = pnand %p16354_p7, %p16351_p6 }
 0x11e   :  { %16359 = shalt.err (!%p16356_p8)
}
 0x11f   :  { %s16360_s9 = scalar_lea.vmem %s73_s6, 65536  ;;  %p16365_p10 = scmp.lt.s32.totalorder %s73_s6, %s73_s6 }
 0x120   :  { %p16361_p9 = scmp.ne.s32.totalorder %s73_s6, %s16360_s9  ;;  %p16366_p11 = scmp.lt.s32.totalorder %s16360_s9, %s16360_s9 }
 0x122   :  { %p16367_p12 = por %p16366_p11, %p16365_p10 }
 0x124   :  { %p16368_p13 = pnand %p16367_p12, %p16361_p9 }
 0x126   :  { %16371 = shalt.err (!%p16368_p13)
}
 0x127   :  { %78 = dma.hbm_to_vmem [thread:$0]  %s17726_s1, 65536, %s73_s6, [#allocation6], %s16678_s18, %s16678_s18, %s16671_s28  }
 0x128   :  { %s16685_s26 = smov [#allocation10]   ;;  %s16686_s0 = smov [#allocation13]  }
 0x129   :  { %s95_s12 = sshll.u32 %s16685_s26, 4  ;;  %s114_s24 = sshll.u32 %s16686_s0, 4  ;;  %s96_s12 = int_to_ptr.vmem [resolvable:$true] %s95_s12  ;;  %s115_s24 = int_to_ptr.vmem [resolvable:$true] %s114_s24 }
 0x12a   :  { %s17727_s16 = sld [smem:[#allocation60_spill]] }
 0x130   :  { %s16372_s3 = scalar_lea.hbm %s17727_s16, 256 }
 0x131   :  { %p16373_p0 = scmp.ne.s32.totalorder %s17727_s16, %s16372_s3  ;;  %p16376_p1 = scmp.lt.u32.totalorder %s16372_s3, %s17727_s16 }
 0x133   :  { %p16378_p2 = pnand %p16376_p1, %p16373_p0 }
 0x135   :  { %16381 = shalt.err (!%p16378_p2)
}
 0x136   :  { %s16382_s18 = scalar_lea.vmem %s96_s12, 256  ;;  %p16387_p4 = scmp.lt.s32.totalorder %s96_s12, %s96_s12 }
 0x137   :  { %p16383_p3 = scmp.ne.s32.totalorder %s96_s12, %s16382_s18  ;;  %p16388_p5 = scmp.lt.s32.totalorder %s16382_s18, %s16382_s18 }
 0x139   :  { %p16389_p6 = por %p16388_p5, %p16387_p4 }
 0x13b   :  { %p16390_p7 = pnand %p16389_p6, %p16383_p3 }
 0x13d   :  { %16393 = shalt.err (!%p16390_p7)
}
 0x13e   :  { %98 = dma.hbm_to_vmem [thread:$0]  %s17727_s16, 256, %s96_s12, [#allocation9]  }
 0x13f   :  { %s17728_s20 = sld [smem:[#allocation62_spill]] }
 0x145   :  { %s16394_s11 = scalar_lea.hbm %s17728_s20, 32768 }
 0x146   :  { %p16395_p8 = scmp.ne.s32.totalorder %s17728_s20, %s16394_s11  ;;  %p16398_p9 = scmp.lt.u32.totalorder %s16394_s11, %s17728_s20 }
 0x148   :  { %p16400_p10 = pnand %p16398_p9, %p16395_p8 }
 0x14a   :  { %16403 = shalt.err (!%p16400_p10)
}
 0x14b   :  { %s16404_s3 = scalar_lea.vmem %s115_s24, 32768  ;;  %p16409_p12 = scmp.lt.s32.totalorder %s115_s24, %s115_s24 }
 0x14c   :  { %p16405_p11 = scmp.ne.s32.totalorder %s115_s24, %s16404_s3  ;;  %p16410_p13 = scmp.lt.s32.totalorder %s16404_s3, %s16404_s3 }
 0x14e   :  { %p16411_p0 = por %p16410_p13, %p16409_p12 }
 0x150   :  { %p16412_p1 = pnand %p16411_p0, %p16405_p11 }
 0x152   :  { %16415 = shalt.err (!%p16412_p1)
}
 0x153   :  { %120 = dma.hbm_to_vmem [thread:$0]  %s17728_s20, 32768, %s115_s24, [#allocation12], %s16676_s30, %s16676_s30, %s16677_s8  }
 0x154   :  { %s16687_s2 = smov [#allocation16]   ;;  %s16688_s29 = smov [#allocation19]  }
 0x155   :  { %s136_s10 = sshll.u32 %s16687_s2, 4  ;;  %s161_s4 = sshll.u32 %s16688_s29, 4  ;;  %s137_s10 = int_to_ptr.vmem [resolvable:$true] %s136_s10  ;;  %s162_s4 = int_to_ptr.vmem [resolvable:$true] %s161_s4 }
 0x156   :  { %s17729_s1 = sld [smem:[#allocation64_spill]] }
 0x15c   :  { %s16416_s5 = scalar_lea.hbm %s17729_s1, 2048 }
 0x15d   :  { %p16417_p2 = scmp.ne.s32.totalorder %s17729_s1, %s16416_s5  ;;  %p16420_p3 = scmp.lt.u32.totalorder %s16416_s5, %s17729_s1 }
 0x15f   :  { %p16422_p4 = pnand %p16420_p3, %p16417_p2 }
 0x161   :  { %16425 = shalt.err (!%p16422_p4)
}
 0x162   :  { %s16426_s30 = scalar_lea.vmem %s137_s10, 2048  ;;  %p16431_p6 = scmp.lt.s32.totalorder %s137_s10, %s137_s10 }
 0x163   :  { %p16427_p5 = scmp.ne.s32.totalorder %s137_s10, %s16426_s30  ;;  %p16432_p7 = scmp.lt.s32.totalorder %s16426_s30, %s16426_s30 }
 0x165   :  { %p16433_p8 = por %p16432_p7, %p16431_p6 }
 0x167   :  { %p16434_p9 = pnand %p16433_p8, %p16427_p5 }
 0x169   :  { %16437 = shalt.err (!%p16434_p9)
}
 0x16a   :  { %142 = dma.hbm_to_vmem [thread:$0]  %s17729_s1, 2048, %s137_s10, [#allocation15], %s16671_s28, %s16671_s28, %s16672_s7  }
 0x16b   :  { %s17730_s22 = sld [smem:[#allocation67_spill]] }
 0x171   :  { %s16438_s3 = scalar_lea.hbm %s17730_s22, 16 }
 0x172   :  { %p16439_p10 = scmp.ne.s32.totalorder %s17730_s22, %s16438_s3  ;;  %p16442_p11 = scmp.lt.u32.totalorder %s16438_s3, %s17730_s22 }
 0x174   :  { %p16444_p12 = pnand %p16442_p11, %p16439_p10 }
 0x176   :  { %16447 = shalt.err (!%p16444_p12)
}
 0x177   :  { %s16448_s18 = scalar_lea.vmem %s162_s4, 16  ;;  %s16452_s6 = scalar_lea.vmem %s162_s4, 32 }
 0x178   :  { %p16449_p13 = scmp.ne.s32.totalorder %s162_s4, %s16448_s18  ;;  %p16453_p0 = scmp.lt.s32.totalorder %s162_s4, %s162_s4 }
 0x179   :  { %p16454_p1 = scmp.lt.s32.totalorder %s16452_s6, %s16448_s18 }
 0x17b   :  { %p16455_p2 = por %p16454_p1, %p16453_p0 }
 0x17d   :  { %p16456_p3 = pnand %p16455_p2, %p16449_p13 }
 0x17f   :  { %16459 = shalt.err (!%p16456_p3)
}
 0x180   :  { %164 = dma.hbm_to_vmem [thread:$0]  %s17730_s22, 16, %s162_s4, [#allocation18]  }
 0x181   :  { %s16689_s10 = smov [#allocation22]   ;;  %s16690_s5 = smov [#allocation25]  }
 0x182   :  { %s183_s1 = sshll.u32 %s16689_s10, 4  ;;  %s205_s9 = sshll.u32 %s16690_s5, 4  ;;  %s184_s1 = int_to_ptr.vmem [resolvable:$true] %s183_s1  ;;  %s206_s9 = int_to_ptr.vmem [resolvable:$true] %s205_s9 }
 0x183   :  { %s16460_s0 = scalar_lea.hbm %s17679_s13, 16 }
 0x184   :  { %p16461_p4 = scmp.ne.s32.totalorder %s17679_s13, %s16460_s0  ;;  %p16464_p5 = scmp.lt.u32.totalorder %s16460_s0, %s17679_s13 }
 0x186   :  { %p16466_p6 = pnand %p16464_p5, %p16461_p4 }
 0x188   :  { %16469 = shalt.err (!%p16466_p6)
}
 0x189   :  { %s16470_s4 = scalar_lea.vmem %s184_s1, 16  ;;  %s16474_s14 = scalar_lea.vmem %s184_s1, 32 }
 0x18a   :  { %p16471_p7 = scmp.ne.s32.totalorder %s184_s1, %s16470_s4  ;;  %p16475_p8 = scmp.lt.s32.totalorder %s184_s1, %s184_s1 }
 0x18b   :  { %p16476_p9 = scmp.lt.s32.totalorder %s16474_s14, %s16470_s4 }
 0x18d   :  { %p16477_p10 = por %p16476_p9, %p16475_p8 }
 0x18f   :  { %p16478_p11 = pnand %p16477_p10, %p16471_p7 }
 0x191   :  { %16481 = shalt.err (!%p16478_p11)
}
 0x192   :  { %186 = dma.hbm_to_vmem [thread:$0]  %s17679_s13, 16, %s184_s1, [#allocation21]  }
 0x193   :  { %s16482_s2 = scalar_lea.hbm %s17681_s15, 16 }
 0x194   :  { %p16483_p12 = scmp.ne.s32.totalorder %s17681_s15, %s16482_s2  ;;  %p16486_p13 = scmp.lt.u32.totalorder %s16482_s2, %s17681_s15 }
 0x196   :  { %p16488_p0 = pnand %p16486_p13, %p16483_p12 }
 0x198   :  { %16491 = shalt.err (!%p16488_p0)
}
 0x199   :  { %s16492_s7 = scalar_lea.vmem %s206_s9, 16  ;;  %s16496_s10 = scalar_lea.vmem %s206_s9, 32 }
 0x19a   :  { %p16493_p1 = scmp.ne.s32.totalorder %s206_s9, %s16492_s7  ;;  %p16497_p2 = scmp.lt.s32.totalorder %s206_s9, %s206_s9 }
 0x19b   :  { %p16498_p3 = scmp.lt.s32.totalorder %s16496_s10, %s16492_s7 }
 0x19d   :  { %p16499_p4 = por %p16498_p3, %p16497_p2 }
 0x19f   :  { %p16500_p5 = pnand %p16499_p4, %p16493_p1 }
 0x1a1   :  { %16503 = shalt.err (!%p16500_p5)
}
 0x1a2   :  { %208 = dma.hbm_to_vmem [thread:$0]  %s17681_s15, 16, %s206_s9, [#allocation24]  }
 0x1a3   :  { %s16691_s5 = smov [#allocation28]   ;;  %s16692_s26 = smov [#allocation31]  }
 0x1a4   :  { %s227_s11 = sshll.u32 %s16691_s5, 4  ;;  %s249_s0 = sshll.u32 %s16692_s26, 4  ;;  %s228_s11 = int_to_ptr.vmem [resolvable:$true] %s227_s11  ;;  %s250_s0 = int_to_ptr.vmem [resolvable:$true] %s249_s0 }
 0x1a5   :  { %s16504_s24 = scalar_lea.hbm %s17683_s17, 16 }
 0x1a6   :  { %p16505_p6 = scmp.ne.s32.totalorder %s17683_s17, %s16504_s24  ;;  %p16508_p7 = scmp.lt.u32.totalorder %s16504_s24, %s17683_s17 }
 0x1a8   :  { %p16510_p8 = pnand %p16508_p7, %p16505_p6 }
 0x1aa   :  { %16513 = shalt.err (!%p16510_p8)
}
 0x1ab   :  { %s16514_s15 = scalar_lea.vmem %s228_s11, 16  ;;  %s16518_s9 = scalar_lea.vmem %s228_s11, 32 }
 0x1ac   :  { %p16515_p9 = scmp.ne.s32.totalorder %s228_s11, %s16514_s15  ;;  %p16519_p10 = scmp.lt.s32.totalorder %s228_s11, %s228_s11 }
 0x1ad   :  { %p16520_p11 = scmp.lt.s32.totalorder %s16518_s9, %s16514_s15 }
 0x1af   :  { %p16521_p12 = por %p16520_p11, %p16519_p10 }
 0x1b1   :  { %p16522_p13 = pnand %p16521_p12, %p16515_p9 }
 0x1b3   :  { %16525 = shalt.err (!%p16522_p13)
}
 0x1b4   :  { %230 = dma.hbm_to_vmem [thread:$0]  %s17683_s17, 16, %s228_s11, [#allocation27]  }
 0x1b5   :  { %s16526_s29 = scalar_lea.hbm %s17685_s19, 32 }
 0x1b6   :  { %p16527_p0 = scmp.ne.s32.totalorder %s17685_s19, %s16526_s29  ;;  %p16530_p1 = scmp.lt.u32.totalorder %s16526_s29, %s17685_s19 }
 0x1b8   :  { %p16532_p2 = pnand %p16530_p1, %p16527_p0 }
 0x1ba   :  { %16535 = shalt.err (!%p16532_p2)
}
 0x1bb   :  { %s16536_s10 = scalar_lea.vmem %s250_s0, 32  ;;  %p16541_p4 = scmp.lt.s32.totalorder %s250_s0, %s250_s0 }
 0x1bc   :  { %p16537_p3 = scmp.ne.s32.totalorder %s250_s0, %s16536_s10  ;;  %p16542_p5 = scmp.lt.s32.totalorder %s16536_s10, %s16536_s10 }
 0x1be   :  { %p16543_p6 = por %p16542_p5, %p16541_p4 }
 0x1c0   :  { %p16544_p7 = pnand %p16543_p6, %p16537_p3 }
 0x1c2   :  { %16547 = shalt.err (!%p16544_p7)
}
 0x1c3   :  { %252 = dma.hbm_to_vmem [thread:$0]  %s17685_s19, 32, %s250_s0, [#allocation30]  }
 0x1c4   :  { %s16693_s1 = smov [#allocation34]   ;;  %s16694_s11 = smov [#allocation37]  }
 0x1c5   :  { %s271_s5 = sshll.u32 %s16693_s1, 4  ;;  %s291_s26 = sshll.u32 %s16694_s11, 4  ;;  %s272_s5 = int_to_ptr.vmem [resolvable:$true] %s271_s5  ;;  %s292_s26 = int_to_ptr.vmem [resolvable:$true] %s291_s26 }
 0x1c6   :  { %s16548_s24 = scalar_lea.hbm %s17687_s21, 256 }
 0x1c7   :  { %p16549_p8 = scmp.ne.s32.totalorder %s17687_s21, %s16548_s24  ;;  %p16552_p9 = scmp.lt.u32.totalorder %s16548_s24, %s17687_s21 }
 0x1c9   :  { %p16554_p10 = pnand %p16552_p9, %p16549_p8 }
 0x1cb   :  { %16557 = shalt.err (!%p16554_p10)
}
 0x1cc   :  { %s16558_s19 = scalar_lea.vmem %s272_s5, 256  ;;  %p16563_p12 = scmp.lt.s32.totalorder %s272_s5, %s272_s5 }
 0x1cd   :  { %p16559_p11 = scmp.ne.s32.totalorder %s272_s5, %s16558_s19  ;;  %p16564_p13 = scmp.lt.s32.totalorder %s16558_s19, %s16558_s19 }
 0x1cf   :  { %p16565_p0 = por %p16564_p13, %p16563_p12 }
 0x1d1   :  { %p16566_p1 = pnand %p16565_p0, %p16559_p11 }
 0x1d3   :  { %16569 = shalt.err (!%p16566_p1)
}
 0x1d4   :  { %274 = dma.hbm_to_vmem [thread:$0]  %s17687_s21, 256, %s272_s5, [#allocation33]  }
 0x1d5   :  { %s16570_s12 = scalar_lea.hbm %s17689_s23, 256 }
 0x1d6   :  { %p16571_p2 = scmp.ne.s32.totalorder %s17689_s23, %s16570_s12  ;;  %p16574_p3 = scmp.lt.u32.totalorder %s16570_s12, %s17689_s23 }
 0x1d8   :  { %p16576_p4 = pnand %p16574_p3, %p16571_p2 }
 0x1da   :  { %16579 = shalt.err (!%p16576_p4)
}
 0x1db   :  { %s16580_s6 = scalar_lea.vmem %s292_s26, 256  ;;  %p16585_p6 = scmp.lt.s32.totalorder %s292_s26, %s292_s26 }
 0x1dc   :  { %p16581_p5 = scmp.ne.s32.totalorder %s292_s26, %s16580_s6  ;;  %p16586_p7 = scmp.lt.s32.totalorder %s16580_s6, %s16580_s6 }
 0x1de   :  { %p16587_p8 = por %p16586_p7, %p16585_p6 }
 0x1e0   :  { %p16588_p9 = pnand %p16587_p8, %p16581_p5 }
 0x1e2   :  { %16591 = shalt.err (!%p16588_p9)
}
 0x1e3   :  { %294 = dma.hbm_to_vmem [thread:$0]  %s17689_s23, 256, %s292_s26, [#allocation36]  }
 0x1e4   :  { %s16695_s7 = smov [#allocation40]   ;;  %s16592_s1 = scalar_lea.hbm %s17691_s25, 64 }
 0x1e5   :  { %s313_s10 = sshll.u32 %s16695_s7, 4  ;;  %p16593_p10 = scmp.ne.s32.totalorder %s17691_s25, %s16592_s1  ;;  %s314_s10 = int_to_ptr.vmem [resolvable:$true] %s313_s10 }
 0x1e6   :  { %p16596_p11 = scmp.lt.u32.totalorder %s16592_s1, %s17691_s25 }
 0x1e8   :  { %p16598_p12 = pnand %p16596_p11, %p16593_p10 }
 0x1ea   :  { %16601 = shalt.err (!%p16598_p12)
}
 0x1eb   :  { %s16602_s24 = scalar_lea.vmem %s314_s10, 64  ;;  %p16607_p0 = scmp.lt.s32.totalorder %s314_s10, %s314_s10 }
 0x1ec   :  { %p16603_p13 = scmp.ne.s32.totalorder %s314_s10, %s16602_s24  ;;  %p16608_p1 = scmp.lt.s32.totalorder %s16602_s24, %s16602_s24 }
 0x1ee   :  { %p16609_p2 = por %p16608_p1, %p16607_p0 }
 0x1f0   :  { %p16610_p3 = pnand %p16609_p2, %p16603_p13 }
 0x1f2   :  { %16613 = shalt.err (!%p16610_p3)
}
 0x1f3   :  { %316 = dma.hbm_to_vmem [thread:$0]  %s17691_s25, 64, %s314_s10, [#allocation39]  }
 0x1f4   :  { %16636 = dma.done.wait [#allocation3], 512  }
 0x1f5   :  { %16637 = vsyncadd [#allocation3], 4294966784 }
 0x1f6   :  { %16638 = dma.done.wait [#allocation6], 65664  }
 0x1f7   :  { %16639 = vsyncadd [#allocation6], 4294901632 }
 0x1f8   :  { %16640 = dma.done.wait [#allocation9], 512  }
 0x1f9   :  { %16641 = vsyncadd [#allocation9], 4294966784 }
 0x1fa   :  { %16642 = dma.done.wait [#allocation12], 33024  }
 0x1fb   :  { %16643 = vsyncadd [#allocation12], 4294934272 }
 0x1fc   :  { %16644 = dma.done.wait [#allocation15], 2080  }
 0x1fd   :  { %16645 = vsyncadd [#allocation15], 4294965216 }
 0x1fe   :  { %16646 = dma.done.wait [#allocation18], 32  }
 0x1ff   :  { %16647 = vsyncadd [#allocation18], 4294967264 }
 0x200   :  { %16648 = dma.done.wait [#allocation21], 528  }
 0x201   :  { %16649 = vsyncadd [#allocation21], 4294966768 }
 0x202   :  { %16650 = dma.done.wait [#allocation24], 272  }
 0x203   :  { %16651 = vsyncadd [#allocation24], 4294967024 }
 0x204   :  { %16652 = dma.done.wait [#allocation27], 528  }
 0x205   :  { %16653 = vsyncadd [#allocation27], 4294966768 }
 0x206   :  { %16654 = dma.done.wait [#allocation30], 2080  }
 0x207   :  { %16655 = vsyncadd [#allocation30], 4294965216 }
 0x208   :  { %16656 = dma.done.wait [#allocation33], 33024  }
 0x209   :  { %16657 = vsyncadd [#allocation33], 4294934272 }
 0x20a   :  { %16658 = dma.done.wait [#allocation36], 512  }
 0x20b   :  { %16659 = vsyncadd [#allocation36], 4294966784 }
 0x20c   :  { %16660 = dma.done.wait [#allocation39], 65600  }
 0x20d   :  { %16661 = vsyncadd [#allocation39], 4294901696  ;;  %v401_v0 = vld [vmem:[#allocation7] sm:$0xff]  ;;  %s17731_s4 = sld [smem:[#allocation66_spill]]  ;;  %vm16697_vm0 = vmmov 0   ;;  %vm6654_vm1 = vcmask 523264  }
 0x20e   :  { %v409_v1 = vld [vmem:[#allocation7 + $0x40] sm:$0xff]  ;;  %s16698_s10 = smov 96   ;;  %vm6733_vm2 = vcmask 261120  }
 0x20f   :  { %v417_v2 = vld [vmem:[#allocation7 + $0x80] sm:$0xff]  ;;  %v12982_v3 = vcombine.high %v401_v0, %v409_v1  ;;  %v12981_v4 = vcombine.low %v401_v0, %v409_v1 }
 0x210   :  { %v425_v5 = vld [vmem:[#allocation7 + $0xc0] sm:$0xff] }
 0x211   :  { %v12998_v6 = vcombine.high %v417_v2, %v425_v5  ;;  %v433_v7 = vld [vmem:[#allocation7 + $0x100] sm:$0xff]  ;;  %3557 = vmatprep.subr.bf16.mxu0 %v12982_v3  ;;  %v12997_v9 = vcombine.low %v417_v2, %v425_v5  ;;  %v393_v3 = vld [vmem:[#allocation2] sm:$0xff] }
 0x212   :  { %v441_v8 = vld [vmem:[#allocation7 + $0x140] sm:$0xff]  ;;  %3558 = vmatpush1.bf16.msra.mxu0 %v12981_v4 }
 0x213   :  { %3559 = vmatprep.subr.bf16.mxu0 %v12998_v6  ;;  %v13014_v10 = vcombine.high %v433_v7, %v441_v8  ;;  %v449_v11 = vld [vmem:[#allocation7 + $0x180] sm:$0xff]  ;;  %v13013_v13 = vcombine.low %v433_v7, %v441_v8  ;;  %v396_v7 = vld [vmem:[#allocation2 + $0x18] sm:$0xff] }
 0x214   :  { %v457_v12 = vld [vmem:[#allocation7 + $0x1c0] sm:$0xff] }
 0x215   :  { %v13030_v14 = vcombine.high %v449_v11, %v457_v12  ;;  %v465_v15 = vld [vmem:[#allocation7 + $0x200] sm:$0xff]  ;;  %v13029_v19 = vcombine.low %v449_v11, %v457_v12 }
 0x216   :  { %3560 = vmatpush1.bf16.msra.mxu0 %v12997_v9  ;;  %v473_v16 = vld [vmem:[#allocation7 + $0x240] sm:$0xff]  ;;  %v17169_v9 = vpack.c.bf16 %v393_v3, %v393_v3 }
 0x217   :  { %3561 = vmatprep.subr.bf16.mxu0 %v13014_v10  ;;  %v394_v17 = vld [vmem:[#allocation2 + $0x8] sm:$0xff]  ;;  %v13046_v20 = vcombine.high %v465_v15, %v473_v16  ;;  %v13045_v23 = vcombine.low %v465_v15, %v473_v16 }
 0x218   :  { %v17165_v18 = vpack.c.bf16 %v394_v17, %v394_v17  ;;  %v481_v21 = vld [vmem:[#allocation7 + $0x280] sm:$0xff] }
 0x219   :  { %v489_v22 = vld [vmem:[#allocation7 + $0x2c0] sm:$0xff] }
 0x21a   :  { %3562 = vmatpush1.bf16.msra.mxu0 %v13013_v13  ;;  %3589 = vmatprep.mubr.bf16.mxu0 %v17165_v18  ;;  %v13062_v24 = vcombine.high %v481_v21, %v489_v22  ;;  %v497_v25 = vld [vmem:[#allocation7 + $0x300] sm:$0xff]  ;;  %v13061_v27 = vcombine.low %v481_v21, %v489_v22  ;;  %v17171_v13 = vpack.c.bf16 %v396_v7, %v396_v7 }
 0x21b   :  { %3563 = vmatprep.subr.bf16.mxu0 %v13030_v14  ;;  %3671 = vmatprep.mubr.bf16.mxu1 %v17165_v18  ;;  %v505_v26 = vld [vmem:[#allocation7 + $0x340] sm:$0xff] }
 0x21c   :  { %v13078_v28 = vcombine.high %v497_v25, %v505_v26  ;;  %v513_v29 = vld [vmem:[#allocation7 + $0x380] sm:$0xff]  ;;  %v13077_v31 = vcombine.low %v497_v25, %v505_v26 }
 0x21d   :  { %v521_v30 = vld [vmem:[#allocation7 + $0x3c0] sm:$0xff] }
 0x21e   :  { %3564 = vmatpush1.bf16.msra.mxu0 %v13029_v19  ;;  %v13094_v32 = vcombine.high %v513_v29, %v521_v30  ;;  %v529_v33 = vld [vmem:[#allocation7 + $0x400] sm:$0xff]  ;;  %v13093_v35 = vcombine.low %v513_v29, %v521_v30 }
 0x21f   :  { %3565 = vmatprep.subr.bf16.mxu0 %v13046_v20  ;;  %v537_v34 = vld [vmem:[#allocation7 + $0x440] sm:$0xff] }
 0x220   :  { %v545_v36 = vld [vmem:[#allocation7 + $0x480] sm:$0xff]  ;;  %v13110_v38 = vcombine.high %v529_v33, %v537_v34  ;;  %v13109_v39 = vcombine.low %v529_v33, %v537_v34 }
 0x221   :  { %v553_v37 = vld [vmem:[#allocation7 + $0x4c0] sm:$0xff] }
 0x222   :  { %3566 = vmatpush1.bf16.msra.mxu0 %v13045_v23  ;;  %v561_v40 = vld [vmem:[#allocation7 + $0x500] sm:$0xff]  ;;  %v13126_v42 = vcombine.high %v545_v36, %v553_v37  ;;  %v13125_v43 = vcombine.low %v545_v36, %v553_v37 }
 0x223   :  { %3567 = vmatprep.subr.bf16.mxu0 %v13062_v24  ;;  %v569_v41 = vld [vmem:[#allocation7 + $0x540] sm:$0xff] }
 0x224   :  { %v577_v44 = vld [vmem:[#allocation7 + $0x580] sm:$0xff]  ;;  %v13142_v46 = vcombine.high %v561_v40, %v569_v41  ;;  %v13141_v47 = vcombine.low %v561_v40, %v569_v41 }
 0x225   :  { %v585_v45 = vld [vmem:[#allocation7 + $0x5c0] sm:$0xff] }
 0x226   :  { %3568 = vmatpush1.bf16.msra.mxu0 %v13061_v27  ;;  %v593_v48 = vld [vmem:[#allocation7 + $0x600] sm:$0xff]  ;;  %v13158_v50 = vcombine.high %v577_v44, %v585_v45  ;;  %v13157_v51 = vcombine.low %v577_v44, %v585_v45  ;;  %v402_v44 = vld [vmem:[#allocation7 + $0x8] sm:$0xff] }
 0x227   :  { %3569 = vmatprep.subr.bf16.mxu0 %v13078_v28  ;;  %v601_v49 = vld [vmem:[#allocation7 + $0x640] sm:$0xff]  ;;  %v410_v45 = vld [vmem:[#allocation7 + $0x48] sm:$0xff] }
 0x228   :  { %v609_v52 = vld [vmem:[#allocation7 + $0x680] sm:$0xff]  ;;  %v13174_v54 = vcombine.high %v593_v48, %v601_v49  ;;  %v13173_v55 = vcombine.low %v593_v48, %v601_v49 }
 0x229   :  { %v617_v53 = vld [vmem:[#allocation7 + $0x6c0] sm:$0xff] }
 0x22a   :  { %3570 = vmatpush1.bf16.msra.mxu0 %v13077_v31  ;;  %v625_v56 = vld [vmem:[#allocation7 + $0x700] sm:$0xff]  ;;  %v13190_v58 = vcombine.high %v609_v52, %v617_v53  ;;  %v13189_v59 = vcombine.low %v609_v52, %v617_v53  ;;  %v418_v52 = vld [vmem:[#allocation7 + $0x88] sm:$0xff] }
 0x22b   :  { %3571 = vmatprep.subr.bf16.mxu0 %v13094_v32  ;;  %v633_v57 = vld [vmem:[#allocation7 + $0x740] sm:$0xff]  ;;  %v426_v53 = vld [vmem:[#allocation7 + $0xc8] sm:$0xff] }
 0x22c   :  { %v641_v60 = vld [vmem:[#allocation7 + $0x780] sm:$0xff]  ;;  %v13206_v62 = vcombine.high %v625_v56, %v633_v57  ;;  %v13205_v63 = vcombine.low %v625_v56, %v633_v57 }
 0x22d   :  { %v649_v61 = vld [vmem:[#allocation7 + $0x7c0] sm:$0xff] }
 0x22e   :  { %3572 = vmatpush1.bf16.msra.mxu0 %v13093_v35  ;;  %v657_v0 = vld [vmem:[#allocation7 + $0x800] sm:$0xff]  ;;  %v13222_v2 = vcombine.high %v641_v60, %v649_v61  ;;  %v13221_v4 = vcombine.low %v641_v60, %v649_v61  ;;  %v434_v60 = vld [vmem:[#allocation7 + $0x108] sm:$0xff] }
 0x22f   :  { %3573 = vmatprep.subr.bf16.mxu0 %v13110_v38  ;;  %v665_v1 = vld [vmem:[#allocation7 + $0x840] sm:$0xff]  ;;  %v442_v61 = vld [vmem:[#allocation7 + $0x148] sm:$0xff] }
 0x230   :  { %v673_v5 = vld [vmem:[#allocation7 + $0x880] sm:$0xff]  ;;  %v13238_v8 = vcombine.high %v657_v0, %v665_v1  ;;  %v13237_v10 = vcombine.low %v657_v0, %v665_v1 }
 0x231   :  { %v681_v6 = vld [vmem:[#allocation7 + $0x8c0] sm:$0xff] }
 0x232   :  { %3574 = vmatpush1.bf16.msra.mxu0 %v13109_v39  ;;  %v689_v11 = vld [vmem:[#allocation7 + $0x900] sm:$0xff]  ;;  %v13254_v14 = vcombine.high %v673_v5, %v681_v6  ;;  %v13253_v15 = vcombine.low %v673_v5, %v681_v6  ;;  %v458_v5 = vld [vmem:[#allocation7 + $0x1c8] sm:$0xff] }
 0x233   :  { %3575 = vmatprep.subr.bf16.mxu0 %v13126_v42  ;;  %v697_v12 = vld [vmem:[#allocation7 + $0x940] sm:$0xff] }
 0x234   :  { %v705_v16 = vld [vmem:[#allocation7 + $0x980] sm:$0xff]  ;;  %v13270_v19 = vcombine.high %v689_v11, %v697_v12  ;;  %v13269_v20 = vcombine.low %v689_v11, %v697_v12 }
 0x235   :  { %v713_v17 = vld [vmem:[#allocation7 + $0x9c0] sm:$0xff] }
 0x236   :  { %3576 = vmatpush1.bf16.msra.mxu0 %v13125_v43  ;;  %v721_v21 = vld [vmem:[#allocation7 + $0xa00] sm:$0xff]  ;;  %v13286_v23 = vcombine.high %v705_v16, %v713_v17  ;;  %v13285_v24 = vcombine.low %v705_v16, %v713_v17 }
 0x237   :  { %3577 = vmatprep.subr.bf16.mxu0 %v13142_v46  ;;  %v729_v22 = vld [vmem:[#allocation7 + $0xa40] sm:$0xff]  ;;  %v12984_v46 = vcombine.high %v402_v44, %v410_v45 }
 0x238   :  { %v737_v25 = vld [vmem:[#allocation7 + $0xa80] sm:$0xff]  ;;  %v13302_v27 = vcombine.high %v721_v21, %v729_v22  ;;  %v13301_v28 = vcombine.low %v721_v21, %v729_v22 }
 0x239   :  { %v745_v26 = vld [vmem:[#allocation7 + $0xac0] sm:$0xff]  ;;  %3639 = vmatprep.subr.bf16.mxu1 %v12984_v46 }
 0x23a   :  { %3578 = vmatpush1.bf16.msra.mxu0 %v13141_v47  ;;  %v753_v29 = vld [vmem:[#allocation7 + $0xb00] sm:$0xff]  ;;  %v13318_v31 = vcombine.high %v737_v25, %v745_v26  ;;  %v13317_v32 = vcombine.low %v737_v25, %v745_v26 }
 0x23b   :  { %3579 = vmatprep.subr.bf16.mxu0 %v13158_v50  ;;  %v761_v30 = vld [vmem:[#allocation7 + $0xb40] sm:$0xff]  ;;  %v12983_v50 = vcombine.low %v402_v44, %v410_v45  ;;  %v419_v44 = vld [vmem:[#allocation7 + $0x90] sm:$0xff] }
 0x23c   :  { %v769_v33 = vld [vmem:[#allocation7 + $0xb80] sm:$0xff]  ;;  %v13334_v35 = vcombine.high %v753_v29, %v761_v30  ;;  %v13333_v36 = vcombine.low %v753_v29, %v761_v30  ;;  %v427_v45 = vld [vmem:[#allocation7 + $0xd0] sm:$0xff] }
 0x23d   :  { %v777_v34 = vld [vmem:[#allocation7 + $0xbc0] sm:$0xff]  ;;  %3640 = vmatpush1.bf16.msra.mxu1 %v12983_v50 }
 0x23e   :  { %3580 = vmatpush1.bf16.msra.mxu0 %v13157_v51  ;;  %v785_v37 = vld [vmem:[#allocation7 + $0xc00] sm:$0xff]  ;;  %v13350_v39 = vcombine.high %v769_v33, %v777_v34  ;;  %v13349_v40 = vcombine.low %v769_v33, %v777_v34 }
 0x23f   :  { %3581 = vmatprep.subr.bf16.mxu0 %v13174_v54  ;;  %v793_v38 = vld [vmem:[#allocation7 + $0xc40] sm:$0xff]  ;;  %v13000_v54 = vcombine.high %v418_v52, %v426_v53 }
 0x240   :  { %v801_v41 = vld [vmem:[#allocation7 + $0xc80] sm:$0xff]  ;;  %v13366_v43 = vcombine.high %v785_v37, %v793_v38  ;;  %v13365_v47 = vcombine.low %v785_v37, %v793_v38 }
 0x241   :  { %v809_v42 = vld [vmem:[#allocation7 + $0xcc0] sm:$0xff]  ;;  %3641 = vmatprep.subr.bf16.mxu1 %v13000_v54  ;;  %v443_v54 = vld [vmem:[#allocation7 + $0x150] sm:$0xff] }
 0x242   :  { %3582 = vmatpush1.bf16.msra.mxu0 %v13173_v55  ;;  %v817_v48 = vld [vmem:[#allocation7 + $0xd00] sm:$0xff]  ;;  %v13382_v51 = vcombine.high %v801_v41, %v809_v42  ;;  %v13381_v55 = vcombine.low %v801_v41, %v809_v42  ;;  %v522_v41 = vld [vmem:[#allocation7 + $0x3c8] sm:$0xff] }
 0x243   :  { %3583 = vmatprep.subr.bf16.mxu0 %v13190_v58  ;;  %v825_v49 = vld [vmem:[#allocation7 + $0xd40] sm:$0xff]  ;;  %v12999_v58 = vcombine.low %v418_v52, %v426_v53  ;;  %v435_v53 = vld [vmem:[#allocation7 + $0x110] sm:$0xff] }
 0x244   :  { %v833_v56 = vld [vmem:[#allocation7 + $0xd80] sm:$0xff] }
 0x245   :  { %v841_v57 = vld [vmem:[#allocation7 + $0xdc0] sm:$0xff]  ;;  %3642 = vmatpush1.bf16.msra.mxu1 %v12999_v58  ;;  %v554_v58 = vld [vmem:[#allocation7 + $0x4c8] sm:$0xff] }
 0x246   :  { %3584 = vmatpush1.bf16.msra.mxu0 %v13189_v59  ;;  %v13398_v59 = vcombine.high %v817_v48, %v825_v49  ;;  %v849_v0 = vld [vmem:[#allocation7 + $0xe00] sm:$0xff]  ;;  %v13414_v3 = vcombine.high %v833_v56, %v841_v57  ;;  %v13413_v7 = vcombine.low %v833_v56, %v841_v57  ;;  %v13002_v56 = vcombine.high %v419_v44, %v427_v45  ;;  %v546_v57 = vld [vmem:[#allocation7 + $0x488] sm:$0xff] }
 0x247   :  { %3585 = vmatprep.subr.bf16.mxu0 %v13206_v62  ;;  %v13016_v62 = vcombine.high %v434_v60, %v442_v61  ;;  %v857_v1 = vld [vmem:[#allocation7 + $0xe40] sm:$0xff] }
 0x248   :  { %v13430_v12 = vcombine.high %v849_v0, %v857_v1  ;;  %v13429_v17 = vcombine.low %v849_v0, %v857_v1  ;;  %v13018_v0 = vcombine.high %v435_v53, %v443_v54  ;;  %v562_v1 = vld [vmem:[#allocation7 + $0x508] sm:$0xff] }
 0x249   :  { %3643 = vmatprep.subr.bf16.mxu1 %v13016_v62  ;;  %v459_v62 = vld [vmem:[#allocation7 + $0x1d0] sm:$0xff] }
 0x24a   :  { %3586 = vmatpush1.bf16.msra.mxu0 %v13205_v63  ;;  %v13397_v63 = vcombine.low %v817_v48, %v825_v49  ;;  %v530_v48 = vld [vmem:[#allocation7 + $0x408] sm:$0xff] }
 0x24b   :  { %3587 = vmatprep.subr.bf16.mxu0 %v13222_v2  ;;  %v13015_v2 = vcombine.low %v434_v60, %v442_v61  ;;  %v538_v49 = vld [vmem:[#allocation7 + $0x448] sm:$0xff]  ;;  %v13001_v60 = vcombine.low %v419_v44, %v427_v45  ;;  %v451_v61 = vld [vmem:[#allocation7 + $0x190] sm:$0xff] }
 0x24c   :  { %v642_v44 = vld [vmem:[#allocation7 + $0x788] sm:$0xff] }
 0x24d   :  { %3644 = vmatpush1.bf16.msra.mxu1 %v13015_v2  ;;  %v570_v2 = vld [vmem:[#allocation7 + $0x548] sm:$0xff] }
 0x24e   :  { %3588 = vmatpush1.bf16.msra.mxu0 %v13221_v4  ;;  %v450_v4 = vld [vmem:[#allocation7 + $0x188] sm:$0xff] }
 0x24f   :  { %3598 = vmatprep.subr.bf16.mxu0 %v13238_v8  ;;  %v13032_v6 = vcombine.high %v450_v4, %v458_v5  ;;  %v865_v8 = vld [vmem:[#allocation7 + $0xe80] sm:$0xff]  ;;  %v13031_v11 = vcombine.low %v450_v4, %v458_v5  ;;  %v13017_v4 = vcombine.low %v435_v53, %v443_v54  ;;  %v467_v5 = vld [vmem:[#allocation7 + $0x210] sm:$0xff]  ;;  %v650_v45 = vld [vmem:[#allocation7 + $0x7c8] sm:$0xff] }
 0x250   :  { %v658_v53 = vld [vmem:[#allocation7 + $0x808] sm:$0xff] }
 0x251   :  { %3590 = vmatmul.mubr.bf16.vlgmr.msra.gmra.mrb[0].mxu0 %v17169_v9  ;;  %3645 = vmatprep.subr.bf16.mxu1 %v13032_v6  ;;  %v475_v6 = vld [vmem:[#allocation7 + $0x250] sm:$0xff]  ;;  %v666_v54 = vld [vmem:[#allocation7 + $0x848] sm:$0xff] }
 0x252   :  { %3599 = vmatpush1.bf16.msra.mxu0 %v13237_v10  ;;  %3630 = vmatprep.mubr.bf16.mxu0 %v17171_v13  ;;  %v873_v10 = vld [vmem:[#allocation7 + $0xec0] sm:$0xff] }
 0x253   :  { %3600 = vmatprep.subr.bf16.mxu0 %v13254_v14  ;;  %3646 = vmatpush1.bf16.msra.mxu1 %v13031_v11  ;;  %v466_v14 = vld [vmem:[#allocation7 + $0x208] sm:$0xff]  ;;  %v13446_v22 = vcombine.high %v865_v8, %v873_v10  ;;  %v13445_v26 = vcombine.low %v865_v8, %v873_v10  ;;  %v13034_v8 = vcombine.high %v451_v61, %v459_v62 }
 0x254   :  { %v578_v10 = vld [vmem:[#allocation7 + $0x588] sm:$0xff] }
 0x255   :  { %v586_v11 = vld [vmem:[#allocation7 + $0x5c8] sm:$0xff] }
 0x256   :  { %3601 = vmatpush1.bf16.msra.mxu0 %v13253_v15  ;;  %v474_v15 = vld [vmem:[#allocation7 + $0x248] sm:$0xff] }
 0x257   :  { %3602 = vmatprep.subr.bf16.mxu0 %v13270_v19  ;;  %v13048_v16 = vcombine.high %v466_v14, %v474_v15  ;;  %v881_v19 = vld [vmem:[#allocation7 + $0xf00] sm:$0xff]  ;;  %v13047_v21 = vcombine.low %v466_v14, %v474_v15  ;;  %v13033_v14 = vcombine.low %v451_v61, %v459_v62  ;;  %v483_v15 = vld [vmem:[#allocation7 + $0x290] sm:$0xff]  ;;  %v674_v61 = vld [vmem:[#allocation7 + $0x888] sm:$0xff] }
 0x258   :  { %v682_v62 = vld [vmem:[#allocation7 + $0x8c8] sm:$0xff] }
 0x259   :  { %3647 = vmatprep.subr.bf16.mxu1 %v13048_v16  ;;  %v491_v16 = vld [vmem:[#allocation7 + $0x2d0] sm:$0xff] }
 0x25a   :  { %3603 = vmatpush1.bf16.msra.mxu0 %v13269_v20  ;;  %v889_v20 = vld [vmem:[#allocation7 + $0xf40] sm:$0xff]  ;;  %3648 = vmatpush1.bf16.msra.mxu1 %v13047_v21  ;;  %v602_v21 = vld [vmem:[#allocation7 + $0x648] sm:$0xff] }
 0x25b   :  { %3604 = vmatprep.subr.bf16.mxu0 %v13286_v23  ;;  %v482_v23 = vld [vmem:[#allocation7 + $0x288] sm:$0xff]  ;;  %v13462_v30 = vcombine.high %v881_v19, %v889_v20  ;;  %v13461_v34 = vcombine.low %v881_v19, %v889_v20  ;;  %v13050_v19 = vcombine.high %v467_v5, %v475_v6 }
 0x25c   :  { %v594_v20 = vld [vmem:[#allocation7 + $0x608] sm:$0xff] }
 0x25e   :  { %3605 = vmatpush1.bf16.msra.mxu0 %v13285_v24  ;;  %v490_v24 = vld [vmem:[#allocation7 + $0x2c8] sm:$0xff] }
 0x25f   :  { %3606 = vmatprep.subr.bf16.mxu0 %v13302_v27  ;;  %v13064_v25 = vcombine.high %v482_v23, %v490_v24  ;;  %v897_v27 = vld [vmem:[#allocation7 + $0xf80] sm:$0xff]  ;;  %v13063_v29 = vcombine.low %v482_v23, %v490_v24  ;;  %v13049_v23 = vcombine.low %v467_v5, %v475_v6  ;;  %v499_v24 = vld [vmem:[#allocation7 + $0x310] sm:$0xff]  ;;  %v690_v5 = vld [vmem:[#allocation7 + $0x908] sm:$0xff] }
 0x260   :  { %v698_v6 = vld [vmem:[#allocation7 + $0x948] sm:$0xff] }
 0x261   :  { %3649 = vmatprep.subr.bf16.mxu1 %v13064_v25  ;;  %v507_v25 = vld [vmem:[#allocation7 + $0x350] sm:$0xff] }
 0x262   :  { %3607 = vmatpush1.bf16.msra.mxu0 %v13301_v28  ;;  %v905_v28 = vld [vmem:[#allocation7 + $0xfc0] sm:$0xff]  ;;  %3650 = vmatpush1.bf16.msra.mxu1 %v13063_v29  ;;  %v618_v29 = vld [vmem:[#allocation7 + $0x6c8] sm:$0xff] }
 0x263   :  { %3608 = vmatprep.subr.bf16.mxu0 %v13318_v31  ;;  %v498_v31 = vld [vmem:[#allocation7 + $0x308] sm:$0xff]  ;;  %v13478_v38 = vcombine.high %v897_v27, %v905_v28 }
 0x266   :  { %3609 = vmatpush1.bf16.msra.mxu0 %v13317_v32  ;;  %v506_v32 = vld [vmem:[#allocation7 + $0x348] sm:$0xff] }
 0x267   :  { %3610 = vmatprep.subr.bf16.mxu0 %v13334_v35  ;;  %v13080_v33 = vcombine.high %v498_v31, %v506_v32  ;;  %v403_v35 = vld [vmem:[#allocation7 + $0x10] sm:$0xff]  ;;  %v13079_v37 = vcombine.low %v498_v31, %v506_v32  ;;  %v13065_v31 = vcombine.low %v483_v15, %v491_v16 }
 0x268   :  { %v515_v32 = vld [vmem:[#allocation7 + $0x390] sm:$0xff] }
 0x269   :  { %3651 = vmatprep.subr.bf16.mxu1 %v13080_v33  ;;  %v523_v33 = vld [vmem:[#allocation7 + $0x3d0] sm:$0xff] }
 0x26a   :  { %3611 = vmatpush1.bf16.msra.mxu0 %v13333_v36  ;;  %v411_v36 = vld [vmem:[#allocation7 + $0x50] sm:$0xff]  ;;  %3652 = vmatpush1.bf16.msra.mxu1 %v13079_v37  ;;  %v634_v37 = vld [vmem:[#allocation7 + $0x748] sm:$0xff] }
 0x26b   :  { %3612 = vmatprep.subr.bf16.mxu0 %v13350_v39  ;;  %v395_v39 = vld [vmem:[#allocation2 + $0x10] sm:$0xff]  ;;  %v12985_v52 = vcombine.low %v403_v35, %v411_v36 }
 0x26c   :  { %v17175_v50 = vpack.c.bf16 %v395_v39, %v395_v39  ;;  %v13081_v39 = vcombine.low %v499_v24, %v507_v25 }
 0x26e   :  { %3613 = vmatpush1.bf16.msra.mxu0 %v13349_v40  ;;  %v514_v40 = vld [vmem:[#allocation7 + $0x388] sm:$0xff] }
 0x26f   :  { %3614 = vmatprep.subr.bf16.mxu0 %v13366_v43  ;;  %v13096_v42 = vcombine.high %v514_v40, %v522_v41  ;;  %v13477_v43 = vcombine.low %v897_v27, %v905_v28  ;;  %v13095_v46 = vcombine.low %v514_v40, %v522_v41  ;;  %v13066_v27 = vcombine.high %v483_v15, %v491_v16  ;;  %v610_v28 = vld [vmem:[#allocation7 + $0x688] sm:$0xff]  ;;  %v531_v40 = vld [vmem:[#allocation7 + $0x410] sm:$0xff] }
 0x270   :  { %v539_v41 = vld [vmem:[#allocation7 + $0x450] sm:$0xff]  ;;  %v706_v15 = vld [vmem:[#allocation7 + $0x988] sm:$0xff] }
 0x271   :  { %3653 = vmatprep.subr.bf16.mxu1 %v13096_v42  ;;  %v714_v16 = vld [vmem:[#allocation7 + $0x9c8] sm:$0xff] }
 0x272   :  { %3615 = vmatpush1.bf16.msra.mxu0 %v13365_v47  ;;  %v12986_v47 = vcombine.high %v403_v35, %v411_v36  ;;  %3654 = vmatpush1.bf16.msra.mxu1 %v13095_v46  ;;  %v13082_v35 = vcombine.high %v499_v24, %v507_v25  ;;  %v626_v36 = vld [vmem:[#allocation7 + $0x708] sm:$0xff]  ;;  %v13224_v46 = vcombine.high %v642_v44, %v650_v45 }
 0x273   :  { %3616 = vmatprep.subr.bf16.mxu0 %v13382_v51  ;;  %v13112_v51 = vcombine.high %v530_v48, %v538_v49  ;;  %v13207_v42 = vcombine.low %v626_v36, %v634_v37  ;;  %v722_v24 = vld [vmem:[#allocation7 + $0xa08] sm:$0xff] }
 0x274   :  { %v730_v25 = vld [vmem:[#allocation7 + $0xa48] sm:$0xff] }
 0x275   :  { %3655 = vmatprep.subr.bf16.mxu1 %v13112_v51  ;;  %v13223_v51 = vcombine.low %v642_v44, %v650_v45  ;;  %v659_v44 = vld [vmem:[#allocation7 + $0x810] sm:$0xff] }
 0x276   :  { %3617 = vmatpush1.bf16.msra.mxu0 %v13381_v55  ;;  %v13111_v55 = vcombine.low %v530_v48, %v538_v49  ;;  %v547_v48 = vld [vmem:[#allocation7 + $0x490] sm:$0xff] }
 0x277   :  { %3618 = vmatprep.subr.bf16.mxu0 %v13398_v59  ;;  %v13128_v59 = vcombine.high %v546_v57, %v554_v58  ;;  %v555_v49 = vld [vmem:[#allocation7 + $0x4d0] sm:$0xff] }
 0x278   :  { %3656 = vmatpush1.bf16.msra.mxu1 %v13111_v55  ;;  %v13240_v55 = vcombine.high %v658_v53, %v666_v54  ;;  %v667_v45 = vld [vmem:[#allocation7 + $0x850] sm:$0xff] }
 0x279   :  { %3657 = vmatprep.subr.bf16.mxu1 %v13128_v59  ;;  %v13239_v59 = vcombine.low %v658_v53, %v666_v54  ;;  %v675_v53 = vld [vmem:[#allocation7 + $0x890] sm:$0xff] }
 0x27a   :  { %3619 = vmatpush1.bf16.msra.mxu0 %v13397_v63  ;;  %v13127_v63 = vcombine.low %v546_v57, %v554_v58  ;;  %v563_v57 = vld [vmem:[#allocation7 + $0x510] sm:$0xff] }
 0x27b   :  { %3620 = vmatprep.subr.bf16.mxu0 %v13414_v3  ;;  %v13144_v3 = vcombine.high %v562_v1, %v570_v2  ;;  %v571_v58 = vld [vmem:[#allocation7 + $0x550] sm:$0xff] }
 0x27c   :  { %3658 = vmatpush1.bf16.msra.mxu1 %v13127_v63  ;;  %v13256_v63 = vcombine.high %v674_v61, %v682_v62  ;;  %v683_v54 = vld [vmem:[#allocation7 + $0x8d0] sm:$0xff] }
 0x27d   :  { %3659 = vmatprep.subr.bf16.mxu1 %v13144_v3  ;;  %v13255_v3 = vcombine.low %v674_v61, %v682_v62  ;;  %v691_v61 = vld [vmem:[#allocation7 + $0x910] sm:$0xff] }
 0x27e   :  { %3621 = vmatpush1.bf16.msra.mxu0 %v13413_v7  ;;  %v13143_v7 = vcombine.low %v562_v1, %v570_v2  ;;  %v579_v1 = vld [vmem:[#allocation7 + $0x590] sm:$0xff] }
 0x27f   :  { %3622 = vmatprep.subr.bf16.mxu0 %v13430_v12  ;;  %v13160_v12 = vcombine.high %v578_v10, %v586_v11  ;;  %v587_v2 = vld [vmem:[#allocation7 + $0x5d0] sm:$0xff] }
 0x280   :  { %3660 = vmatpush1.bf16.msra.mxu1 %v13143_v7  ;;  %v13272_v7 = vcombine.high %v690_v5, %v698_v6  ;;  %v699_v62 = vld [vmem:[#allocation7 + $0x950] sm:$0xff] }
 0x281   :  { %3661 = vmatprep.subr.bf16.mxu1 %v13160_v12  ;;  %v13271_v12 = vcombine.low %v690_v5, %v698_v6  ;;  %v707_v5 = vld [vmem:[#allocation7 + $0x990] sm:$0xff] }
 0x282   :  { %3623 = vmatpush1.bf16.msra.mxu0 %v13429_v17  ;;  %v13159_v17 = vcombine.low %v578_v10, %v586_v11  ;;  %v595_v10 = vld [vmem:[#allocation7 + $0x610] sm:$0xff] }
 0x283   :  { %3624 = vmatprep.subr.bf16.mxu0 %v13446_v22  ;;  %v13176_v22 = vcombine.high %v594_v20, %v602_v21  ;;  %v603_v11 = vld [vmem:[#allocation7 + $0x650] sm:$0xff] }
 0x284   :  { %3662 = vmatpush1.bf16.msra.mxu1 %v13159_v17  ;;  %v13288_v17 = vcombine.high %v706_v15, %v714_v16  ;;  %v715_v6 = vld [vmem:[#allocation7 + $0x9d0] sm:$0xff] }
 0x285   :  { %3663 = vmatprep.subr.bf16.mxu1 %v13176_v22  ;;  %v13287_v22 = vcombine.low %v706_v15, %v714_v16  ;;  %v723_v15 = vld [vmem:[#allocation7 + $0xa10] sm:$0xff] }
 0x286   :  { %3625 = vmatpush1.bf16.msra.mxu0 %v13445_v26  ;;  %v13175_v26 = vcombine.low %v594_v20, %v602_v21  ;;  %v611_v20 = vld [vmem:[#allocation7 + $0x690] sm:$0xff] }
 0x287   :  { %3626 = vmatprep.subr.bf16.mxu0 %v13462_v30  ;;  %v13192_v30 = vcombine.high %v610_v28, %v618_v29  ;;  %v619_v21 = vld [vmem:[#allocation7 + $0x6d0] sm:$0xff] }
 0x288   :  { %3664 = vmatpush1.bf16.msra.mxu1 %v13175_v26  ;;  %v13304_v26 = vcombine.high %v722_v24, %v730_v25  ;;  %v731_v16 = vld [vmem:[#allocation7 + $0xa50] sm:$0xff] }
 0x289   :  { %3665 = vmatprep.subr.bf16.mxu1 %v13192_v30  ;;  %v13303_v30 = vcombine.low %v722_v24, %v730_v25  ;;  %v739_v24 = vld [vmem:[#allocation7 + $0xa90] sm:$0xff] }
 0x28a   :  { %3627 = vmatpush1.bf16.msra.mxu0 %v13461_v34  ;;  %v13191_v34 = vcombine.low %v610_v28, %v618_v29  ;;  %v627_v28 = vld [vmem:[#allocation7 + $0x710] sm:$0xff] }
 0x28b   :  { %3628 = vmatprep.subr.bf16.mxu0 %v13478_v38  ;;  %v13208_v38 = vcombine.high %v626_v36, %v634_v37  ;;  %v635_v29 = vld [vmem:[#allocation7 + $0x750] sm:$0xff] }
 0x28c   :  { %3666 = vmatpush1.bf16.msra.mxu1 %v13191_v34  ;;  %v643_v36 = vld [vmem:[#allocation7 + $0x790] sm:$0xff] }
 0x28d   :  { %3667 = vmatprep.subr.bf16.mxu1 %v13208_v38  ;;  %v651_v37 = vld [vmem:[#allocation7 + $0x7d0] sm:$0xff] }
 0x28e   :  { %3629 = vmatpush1.bf16.msra.mxu0 %v13477_v43  ;;  %v13098_v43 = vcombine.high %v515_v32, %v523_v33  ;;  %v747_v25 = vld [vmem:[#allocation7 + $0xad0] sm:$0xff] }
 0x28f   :  { %3721 = vmatprep.subr.bf16.mxu0 %v12986_v47  ;;  %v13097_v47 = vcombine.low %v515_v32, %v523_v33  ;;  %v738_v32 = vld [vmem:[#allocation7 + $0xa88] sm:$0xff] }
 0x290   :  { %3668 = vmatpush1.bf16.msra.mxu1 %v13207_v42  ;;  %v746_v33 = vld [vmem:[#allocation7 + $0xac8] sm:$0xff] }
 0x291   :  { %3631 = vmatmul.mubr.bf16.vlgmr.msra.gmra.mrb[0].mxu0 %v17175_v50  ;;  %3669 = vmatprep.subr.bf16.mxu1 %v13224_v46  ;;  %v13320_v34 = vcombine.high %v738_v32, %v746_v33  ;;  %v13319_v38 = vcombine.low %v738_v32, %v746_v33  ;;  %v755_v32 = vld [vmem:[#allocation7 + $0xb10] sm:$0xff] }
 0x292   :  { %3722 = vmatpush1.bf16.msra.mxu0 %v12985_v52  ;;  %3753 = vmatprep.mubr.bf16.mxu0 %v17165_v18  ;;  %v13114_v52 = vcombine.high %v531_v40, %v539_v41  ;;  %v763_v33 = vld [vmem:[#allocation7 + $0xb50] sm:$0xff] }
 0x293   :  { %3723 = vmatprep.subr.bf16.mxu0 %v13002_v56  ;;  %v13113_v56 = vcombine.low %v531_v40, %v539_v41  ;;  %v754_v40 = vld [vmem:[#allocation7 + $0xb08] sm:$0xff] }
 0x294   :  { %3670 = vmatpush1.bf16.msra.mxu1 %v13223_v51  ;;  %v762_v41 = vld [vmem:[#allocation7 + $0xb48] sm:$0xff] }
 0x295   :  { %3680 = vmatprep.subr.bf16.mxu1 %v13240_v55  ;;  %v13336_v42 = vcombine.high %v754_v40, %v762_v41  ;;  %v13335_v46 = vcombine.low %v754_v40, %v762_v41  ;;  %v771_v40 = vld [vmem:[#allocation7 + $0xb90] sm:$0xff] }
 0x296   :  { %3724 = vmatpush1.bf16.msra.mxu0 %v13001_v60  ;;  %v13130_v60 = vcombine.high %v547_v48, %v555_v49  ;;  %v779_v41 = vld [vmem:[#allocation7 + $0xbd0] sm:$0xff] }
 0x297   :  { %3725 = vmatprep.subr.bf16.mxu0 %v13018_v0  ;;  %3672 = vmatmul.mubr.bf16.vlgmr.msra.gmra.mrb[0].mxu1 %v17169_v9  ;;  %v13129_v0 = vcombine.low %v547_v48, %v555_v49  ;;  %v770_v48 = vld [vmem:[#allocation7 + $0xb88] sm:$0xff] }
 0x298   :  { %3681 = vmatpush1.bf16.msra.mxu1 %v13239_v59  ;;  %3712 = vmatprep.mubr.bf16.mxu1 %v17171_v13  ;;  %v778_v49 = vld [vmem:[#allocation7 + $0xbc8] sm:$0xff] }
 0x299   :  { %3682 = vmatprep.subr.bf16.mxu1 %v13256_v63  ;;  %v13352_v51 = vcombine.high %v770_v48, %v778_v49  ;;  %v13351_v55 = vcombine.low %v770_v48, %v778_v49  ;;  %v787_v48 = vld [vmem:[#allocation7 + $0xc10] sm:$0xff] }
 0x29a   :  { %3726 = vmatpush1.bf16.msra.mxu0 %v13017_v4  ;;  %v13146_v4 = vcombine.high %v563_v57, %v571_v58 }
 0x29b   :  { %3727 = vmatprep.subr.bf16.mxu0 %v13034_v8  ;;  %v13145_v8 = vcombine.low %v563_v57, %v571_v58  ;;  %v786_v57 = vld [vmem:[#allocation7 + $0xc08] sm:$0xff] }
 0x29c   :  { %3683 = vmatpush1.bf16.msra.mxu1 %v13255_v3  ;;  %v794_v58 = vld [vmem:[#allocation7 + $0xc48] sm:$0xff] }
 0x29d   :  { %3684 = vmatprep.subr.bf16.mxu1 %v13272_v7  ;;  %v13368_v59 = vcombine.high %v786_v57, %v794_v58  ;;  %v13367_v63 = vcombine.low %v786_v57, %v794_v58  ;;  %v803_v57 = vld [vmem:[#allocation7 + $0xc90] sm:$0xff] }
 0x29e   :  { %3728 = vmatpush1.bf16.msra.mxu0 %v13033_v14  ;;  %v13162_v14 = vcombine.high %v579_v1, %v587_v2  ;;  %v811_v58 = vld [vmem:[#allocation7 + $0xcd0] sm:$0xff] }
 0x29f   :  { %3729 = vmatprep.subr.bf16.mxu0 %v13050_v19  ;;  %v13161_v19 = vcombine.low %v579_v1, %v587_v2  ;;  %v802_v1 = vld [vmem:[#allocation7 + $0xc88] sm:$0xff] }
 0x2a0   :  { %3685 = vmatpush1.bf16.msra.mxu1 %v13271_v12  ;;  %v810_v2 = vld [vmem:[#allocation7 + $0xcc8] sm:$0xff] }
 0x2a1   :  { %3686 = vmatprep.subr.bf16.mxu1 %v13288_v17  ;;  %v13384_v3 = vcombine.high %v802_v1, %v810_v2  ;;  %v13383_v7 = vcombine.low %v802_v1, %v810_v2  ;;  %v819_v1 = vld [vmem:[#allocation7 + $0xd10] sm:$0xff] }
 0x2a2   :  { %3730 = vmatpush1.bf16.msra.mxu0 %v13049_v23  ;;  %v13178_v23 = vcombine.high %v595_v10, %v603_v11  ;;  %v827_v2 = vld [vmem:[#allocation7 + $0xd50] sm:$0xff] }
 0x2a3   :  { %3731 = vmatprep.subr.bf16.mxu0 %v13066_v27  ;;  %v13177_v27 = vcombine.low %v595_v10, %v603_v11  ;;  %v818_v10 = vld [vmem:[#allocation7 + $0xd08] sm:$0xff] }
 0x2a4   :  { %3687 = vmatpush1.bf16.msra.mxu1 %v13287_v22  ;;  %v826_v11 = vld [vmem:[#allocation7 + $0xd48] sm:$0xff] }
 0x2a5   :  { %3688 = vmatprep.subr.bf16.mxu1 %v13304_v26  ;;  %v13400_v12 = vcombine.high %v818_v10, %v826_v11  ;;  %v13399_v17 = vcombine.low %v818_v10, %v826_v11  ;;  %v835_v10 = vld [vmem:[#allocation7 + $0xd90] sm:$0xff] }
 0x2a6   :  { %3732 = vmatpush1.bf16.msra.mxu0 %v13065_v31  ;;  %v13194_v31 = vcombine.high %v611_v20, %v619_v21  ;;  %v843_v11 = vld [vmem:[#allocation7 + $0xdd0] sm:$0xff] }
 0x2a7   :  { %3733 = vmatprep.subr.bf16.mxu0 %v13082_v35  ;;  %v13193_v35 = vcombine.low %v611_v20, %v619_v21  ;;  %v834_v20 = vld [vmem:[#allocation7 + $0xd88] sm:$0xff] }
 0x2a8   :  { %3689 = vmatpush1.bf16.msra.mxu1 %v13303_v30  ;;  %v842_v21 = vld [vmem:[#allocation7 + $0xdc8] sm:$0xff] }
 0x2a9   :  { %3690 = vmatprep.subr.bf16.mxu1 %v13320_v34  ;;  %v13416_v22 = vcombine.high %v834_v20, %v842_v21  ;;  %v13415_v26 = vcombine.low %v834_v20, %v842_v21  ;;  %v851_v20 = vld [vmem:[#allocation7 + $0xe10] sm:$0xff] }
 0x2aa   :  { %3734 = vmatpush1.bf16.msra.mxu0 %v13081_v39  ;;  %v13210_v39 = vcombine.high %v627_v28, %v635_v29  ;;  %v859_v21 = vld [vmem:[#allocation7 + $0xe50] sm:$0xff] }
 0x2ab   :  { %3735 = vmatprep.subr.bf16.mxu0 %v13098_v43  ;;  %v13209_v43 = vcombine.low %v627_v28, %v635_v29  ;;  %v850_v28 = vld [vmem:[#allocation7 + $0xe08] sm:$0xff] }
 0x2ac   :  { %3691 = vmatpush1.bf16.msra.mxu1 %v13319_v38  ;;  %v858_v29 = vld [vmem:[#allocation7 + $0xe48] sm:$0xff] }
 0x2ad   :  { %3692 = vmatprep.subr.bf16.mxu1 %v13336_v42  ;;  %v13432_v30 = vcombine.high %v850_v28, %v858_v29  ;;  %v13431_v34 = vcombine.low %v850_v28, %v858_v29  ;;  %v867_v28 = vld [vmem:[#allocation7 + $0xe90] sm:$0xff] }
 0x2ae   :  { %3736 = vmatpush1.bf16.msra.mxu0 %v13097_v47  ;;  %v13226_v47 = vcombine.high %v643_v36, %v651_v37  ;;  %v875_v29 = vld [vmem:[#allocation7 + $0xed0] sm:$0xff] }
 0x2af   :  { %3737 = vmatprep.subr.bf16.mxu0 %v13114_v52  ;;  %v13225_v52 = vcombine.low %v643_v36, %v651_v37  ;;  %v866_v36 = vld [vmem:[#allocation7 + $0xe88] sm:$0xff] }
 0x2b0   :  { %3693 = vmatpush1.bf16.msra.mxu1 %v13335_v46  ;;  %v874_v37 = vld [vmem:[#allocation7 + $0xec8] sm:$0xff] }
 0x2b1   :  { %3694 = vmatprep.subr.bf16.mxu1 %v13352_v51  ;;  %v13448_v38 = vcombine.high %v866_v36, %v874_v37  ;;  %v13447_v42 = vcombine.low %v866_v36, %v874_v37  ;;  %v13354_v51 = vcombine.high %v771_v40, %v779_v41  ;;  %v883_v36 = vld [vmem:[#allocation7 + $0xf10] sm:$0xff] }
 0x2b2   :  { %3738 = vmatpush1.bf16.msra.mxu0 %v13113_v56  ;;  %v13242_v56 = vcombine.high %v659_v44, %v667_v45  ;;  %v891_v37 = vld [vmem:[#allocation7 + $0xf50] sm:$0xff] }
 0x2b3   :  { %3739 = vmatprep.subr.bf16.mxu0 %v13130_v60  ;;  %v13241_v60 = vcombine.low %v659_v44, %v667_v45  ;;  %v882_v44 = vld [vmem:[#allocation7 + $0xf08] sm:$0xff] }
 0x2b4   :  { %3695 = vmatpush1.bf16.msra.mxu1 %v13351_v55  ;;  %v890_v45 = vld [vmem:[#allocation7 + $0xf48] sm:$0xff] }
 0x2b5   :  { %3696 = vmatprep.subr.bf16.mxu1 %v13368_v59  ;;  %v13464_v46 = vcombine.high %v882_v44, %v890_v45  ;;  %v13463_v49 = vcombine.low %v882_v44, %v890_v45  ;;  %v899_v44 = vld [vmem:[#allocation7 + $0xf90] sm:$0xff] }
 0x2b6   :  { %3740 = vmatpush1.bf16.msra.mxu0 %v13129_v0  ;;  %v13258_v0 = vcombine.high %v675_v53, %v683_v54  ;;  %v907_v45 = vld [vmem:[#allocation7 + $0xfd0] sm:$0xff] }
 0x2b7   :  { %3741 = vmatprep.subr.bf16.mxu0 %v13146_v4  ;;  %v13257_v4 = vcombine.low %v675_v53, %v683_v54  ;;  %v898_v53 = vld [vmem:[#allocation7 + $0xf88] sm:$0xff] }
 0x2b8   :  { %3697 = vmatpush1.bf16.msra.mxu1 %v13367_v63  ;;  %v906_v54 = vld [vmem:[#allocation7 + $0xfc8] sm:$0xff] }
 0x2b9   :  { %3698 = vmatprep.subr.bf16.mxu1 %v13384_v3  ;;  %v13480_v55 = vcombine.high %v898_v53, %v906_v54  ;;  %v13479_v59 = vcombine.low %v898_v53, %v906_v54  ;;  %v405_v53 = vld [vmem:[#allocation7 + $0x20] sm:$0xff] }
 0x2ba   :  { %3742 = vmatpush1.bf16.msra.mxu0 %v13145_v8  ;;  %v13274_v8 = vcombine.high %v691_v61, %v699_v62  ;;  %v413_v54 = vld [vmem:[#allocation7 + $0x60] sm:$0xff] }
 0x2bb   :  { %3743 = vmatprep.subr.bf16.mxu0 %v13162_v14  ;;  %v13273_v14 = vcombine.low %v691_v61, %v699_v62  ;;  %v404_v61 = vld [vmem:[#allocation7 + $0x18] sm:$0xff] }
 0x2bc   :  { %3699 = vmatpush1.bf16.msra.mxu1 %v13383_v7  ;;  %v412_v62 = vld [vmem:[#allocation7 + $0x58] sm:$0xff] }
 0x2bd   :  { %3700 = vmatprep.subr.bf16.mxu1 %v13400_v12  ;;  %v12988_v63 = vcombine.high %v404_v61, %v412_v62  ;;  %v12987_v3 = vcombine.low %v404_v61, %v412_v62  ;;  %v421_v61 = vld [vmem:[#allocation7 + $0xa0] sm:$0xff] }
 0x2be   :  { %3744 = vmatpush1.bf16.msra.mxu0 %v13161_v19  ;;  %v13290_v19 = vcombine.high %v707_v5, %v715_v6  ;;  %v429_v62 = vld [vmem:[#allocation7 + $0xe0] sm:$0xff] }
 0x2bf   :  { %3745 = vmatprep.subr.bf16.mxu0 %v13178_v23  ;;  %v13289_v23 = vcombine.low %v707_v5, %v715_v6  ;;  %v420_v5 = vld [vmem:[#allocation7 + $0x98] sm:$0xff] }
 0x2c0   :  { %3701 = vmatpush1.bf16.msra.mxu1 %v13399_v17  ;;  %v428_v6 = vld [vmem:[#allocation7 + $0xd8] sm:$0xff] }
 0x2c1   :  { %3702 = vmatprep.subr.bf16.mxu1 %v13416_v22  ;;  %v13004_v7 = vcombine.high %v420_v5, %v428_v6  ;;  %v13003_v12 = vcombine.low %v420_v5, %v428_v6  ;;  %v437_v5 = vld [vmem:[#allocation7 + $0x120] sm:$0xff] }
 0x2c2   :  { %3746 = vmatpush1.bf16.msra.mxu0 %v13177_v27  ;;  %v13306_v27 = vcombine.high %v723_v15, %v731_v16  ;;  %v445_v6 = vld [vmem:[#allocation7 + $0x160] sm:$0xff] }
 0x2c3   :  { %3747 = vmatprep.subr.bf16.mxu0 %v13194_v31  ;;  %v13305_v31 = vcombine.low %v723_v15, %v731_v16  ;;  %v436_v15 = vld [vmem:[#allocation7 + $0x118] sm:$0xff] }
 0x2c4   :  { %3703 = vmatpush1.bf16.msra.mxu1 %v13415_v26  ;;  %v444_v16 = vld [vmem:[#allocation7 + $0x158] sm:$0xff] }
 0x2c5   :  { %3704 = vmatprep.subr.bf16.mxu1 %v13432_v30  ;;  %v13020_v17 = vcombine.high %v436_v15, %v444_v16  ;;  %v13019_v22 = vcombine.low %v436_v15, %v444_v16  ;;  %v453_v15 = vld [vmem:[#allocation7 + $0x1a0] sm:$0xff] }
 0x2c6   :  { %3748 = vmatpush1.bf16.msra.mxu0 %v13193_v35  ;;  %v13322_v35 = vcombine.high %v739_v24, %v747_v25  ;;  %v461_v16 = vld [vmem:[#allocation7 + $0x1e0] sm:$0xff] }
 0x2c7   :  { %3749 = vmatprep.subr.bf16.mxu0 %v13210_v39  ;;  %v13321_v39 = vcombine.low %v739_v24, %v747_v25  ;;  %v452_v24 = vld [vmem:[#allocation7 + $0x198] sm:$0xff] }
 0x2c8   :  { %3705 = vmatpush1.bf16.msra.mxu1 %v13431_v34  ;;  %v460_v25 = vld [vmem:[#allocation7 + $0x1d8] sm:$0xff] }
 0x2c9   :  { %3706 = vmatprep.subr.bf16.mxu1 %v13448_v38  ;;  %v13036_v26 = vcombine.high %v452_v24, %v460_v25  ;;  %v13035_v30 = vcombine.low %v452_v24, %v460_v25  ;;  %v469_v24 = vld [vmem:[#allocation7 + $0x220] sm:$0xff] }
 0x2ca   :  { %3750 = vmatpush1.bf16.msra.mxu0 %v13209_v43  ;;  %v13338_v43 = vcombine.high %v755_v32, %v763_v33  ;;  %v477_v25 = vld [vmem:[#allocation7 + $0x260] sm:$0xff] }
 0x2cb   :  { %3751 = vmatprep.subr.bf16.mxu0 %v13226_v47  ;;  %v13337_v47 = vcombine.low %v755_v32, %v763_v33  ;;  %v468_v32 = vld [vmem:[#allocation7 + $0x218] sm:$0xff] }
 0x2cc   :  { %3707 = vmatpush1.bf16.msra.mxu1 %v13447_v42  ;;  %v476_v33 = vld [vmem:[#allocation7 + $0x258] sm:$0xff] }
 0x2cd   :  { %3708 = vmatprep.subr.bf16.mxu1 %v13464_v46  ;;  %v13052_v34 = vcombine.high %v468_v32, %v476_v33  ;;  %v13051_v38 = vcombine.low %v468_v32, %v476_v33  ;;  %v485_v32 = vld [vmem:[#allocation7 + $0x2a0] sm:$0xff] }
 0x2ce   :  { %3752 = vmatpush1.bf16.msra.mxu0 %v13225_v52  ;;  %v795_v52 = vld [vmem:[#allocation7 + $0xc50] sm:$0xff]  ;;  %v493_v33 = vld [vmem:[#allocation7 + $0x2e0] sm:$0xff] }
 0x2cf   :  { %3762 = vmatprep.subr.bf16.mxu0 %v13242_v56  ;;  %v13353_v56 = vcombine.low %v771_v40, %v779_v41  ;;  %v484_v40 = vld [vmem:[#allocation7 + $0x298] sm:$0xff] }
 0x2d0   :  { %3709 = vmatpush1.bf16.msra.mxu1 %v13463_v49  ;;  %v492_v41 = vld [vmem:[#allocation7 + $0x2d8] sm:$0xff] }
 0x2d1   :  { %3754 = vmatmul.mubr.bf16.vlgmr.msra.gmra.mrb[4].mxu0 %v17169_v9  ;;  %3710 = vmatprep.subr.bf16.mxu1 %v13480_v55  ;;  %v13068_v42 = vcombine.high %v484_v40, %v492_v41  ;;  %v13067_v46 = vcombine.low %v484_v40, %v492_v41  ;;  %v508_v49 = vld [vmem:[#allocation7 + $0x358] sm:$0xff]  ;;  %v501_v40 = vld [vmem:[#allocation7 + $0x320] sm:$0xff] }
 0x2d2   :  { %3763 = vmatpush1.bf16.msra.mxu0 %v13241_v60  ;;  %3794 = vmatprep.mubr.bf16.mxu0 %v17171_v13  ;;  %v13370_v60 = vcombine.high %v787_v48, %v795_v52  ;;  %v509_v41 = vld [vmem:[#allocation7 + $0x360] sm:$0xff] }
 0x2d3   :  { %3764 = vmatprep.subr.bf16.mxu0 %v13258_v0  ;;  %v13369_v0 = vcombine.low %v787_v48, %v795_v52  ;;  %v500_v48 = vld [vmem:[#allocation7 + $0x318] sm:$0xff]  ;;  %v13465_v52 = vcombine.low %v883_v36, %v891_v37 }
 0x2d4   :  { %3711 = vmatpush1.bf16.msra.mxu1 %v13479_v59  ;;  %v13083_v55 = vcombine.low %v500_v48, %v508_v49 }
 0x2d5   :  { %3803 = vmatprep.subr.bf16.mxu1 %v12988_v63 }
 0x2d6   :  { %3765 = vmatpush1.bf16.msra.mxu0 %v13257_v4  ;;  %v13386_v4 = vcombine.high %v803_v57, %v811_v58 }
 0x2d7   :  { %3766 = vmatprep.subr.bf16.mxu0 %v13274_v8  ;;  %3713 = vmatmul.mubr.bf16.vlgmr.msra.gmra.mrb[0].mxu1 %v17175_v50  ;;  %v13385_v8 = vcombine.low %v803_v57, %v811_v58  ;;  %v516_v57 = vld [vmem:[#allocation7 + $0x398] sm:$0xff] }
 0x2d8   :  { %3804 = vmatpush1.bf16.msra.mxu1 %v12987_v3  ;;  %3835 = vmatprep.mubr.bf16.mxu1 %v17165_v18  ;;  %v524_v58 = vld [vmem:[#allocation7 + $0x3d8] sm:$0xff] }
 0x2d9   :  { %3805 = vmatprep.subr.bf16.mxu1 %v13004_v7  ;;  %v13100_v59 = vcombine.high %v516_v57, %v524_v58  ;;  %v13099_v63 = vcombine.low %v516_v57, %v524_v58  ;;  %v533_v57 = vld [vmem:[#allocation7 + $0x420] sm:$0xff] }
 0x2da   :  { %3767 = vmatpush1.bf16.msra.mxu0 %v13273_v14  ;;  %v13402_v14 = vcombine.high %v819_v1, %v827_v2  ;;  %v541_v58 = vld [vmem:[#allocation7 + $0x460] sm:$0xff] }
 0x2db   :  { %3768 = vmatprep.subr.bf16.mxu0 %v13290_v19  ;;  %v13401_v19 = vcombine.low %v819_v1, %v827_v2  ;;  %v532_v1 = vld [vmem:[#allocation7 + $0x418] sm:$0xff] }
 0x2dc   :  { %3806 = vmatpush1.bf16.msra.mxu1 %v13003_v12  ;;  %v540_v2 = vld [vmem:[#allocation7 + $0x458] sm:$0xff] }
 0x2dd   :  { %3807 = vmatprep.subr.bf16.mxu1 %v13020_v17  ;;  %v13116_v3 = vcombine.high %v532_v1, %v540_v2  ;;  %v13115_v7 = vcombine.low %v532_v1, %v540_v2  ;;  %v549_v1 = vld [vmem:[#allocation7 + $0x4a0] sm:$0xff] }
 0x2de   :  { %3769 = vmatpush1.bf16.msra.mxu0 %v13289_v23  ;;  %v13418_v23 = vcombine.high %v835_v10, %v843_v11  ;;  %v557_v2 = vld [vmem:[#allocation7 + $0x4e0] sm:$0xff] }
 0x2df   :  { %3770 = vmatprep.subr.bf16.mxu0 %v13306_v27  ;;  %v13417_v27 = vcombine.low %v835_v10, %v843_v11  ;;  %v548_v10 = vld [vmem:[#allocation7 + $0x498] sm:$0xff] }
 0x2e0   :  { %3808 = vmatpush1.bf16.msra.mxu1 %v13019_v22  ;;  %v556_v11 = vld [vmem:[#allocation7 + $0x4d8] sm:$0xff] }
 0x2e1   :  { %3809 = vmatprep.subr.bf16.mxu1 %v13036_v26  ;;  %v13132_v12 = vcombine.high %v548_v10, %v556_v11  ;;  %v13131_v17 = vcombine.low %v548_v10, %v556_v11  ;;  %v565_v10 = vld [vmem:[#allocation7 + $0x520] sm:$0xff] }
 0x2e2   :  { %3771 = vmatpush1.bf16.msra.mxu0 %v13305_v31  ;;  %v13434_v31 = vcombine.high %v851_v20, %v859_v21  ;;  %v573_v11 = vld [vmem:[#allocation7 + $0x560] sm:$0xff] }
 0x2e3   :  { %3772 = vmatprep.subr.bf16.mxu0 %v13322_v35  ;;  %v13433_v35 = vcombine.low %v851_v20, %v859_v21  ;;  %v564_v20 = vld [vmem:[#allocation7 + $0x518] sm:$0xff] }
 0x2e4   :  { %3810 = vmatpush1.bf16.msra.mxu1 %v13035_v30  ;;  %v572_v21 = vld [vmem:[#allocation7 + $0x558] sm:$0xff] }
 0x2e5   :  { %3811 = vmatprep.subr.bf16.mxu1 %v13052_v34  ;;  %v13148_v22 = vcombine.high %v564_v20, %v572_v21  ;;  %v13147_v26 = vcombine.low %v564_v20, %v572_v21  ;;  %v581_v20 = vld [vmem:[#allocation7 + $0x5a0] sm:$0xff] }
 0x2e6   :  { %3773 = vmatpush1.bf16.msra.mxu0 %v13321_v39  ;;  %v13450_v39 = vcombine.high %v867_v28, %v875_v29  ;;  %v589_v21 = vld [vmem:[#allocation7 + $0x5e0] sm:$0xff] }
 0x2e7   :  { %3774 = vmatprep.subr.bf16.mxu0 %v13338_v43  ;;  %v13449_v43 = vcombine.low %v867_v28, %v875_v29  ;;  %v580_v28 = vld [vmem:[#allocation7 + $0x598] sm:$0xff] }
 0x2e8   :  { %3812 = vmatpush1.bf16.msra.mxu1 %v13051_v38  ;;  %v588_v29 = vld [vmem:[#allocation7 + $0x5d8] sm:$0xff] }
 0x2e9   :  { %3813 = vmatprep.subr.bf16.mxu1 %v13068_v42  ;;  %v13164_v30 = vcombine.high %v580_v28, %v588_v29  ;;  %v13163_v34 = vcombine.low %v580_v28, %v588_v29  ;;  %v597_v28 = vld [vmem:[#allocation7 + $0x620] sm:$0xff] }
 0x2ea   :  { %3775 = vmatpush1.bf16.msra.mxu0 %v13337_v47  ;;  %v13466_v47 = vcombine.high %v883_v36, %v891_v37  ;;  %v596_v36 = vld [vmem:[#allocation7 + $0x618] sm:$0xff]  ;;  %v605_v29 = vld [vmem:[#allocation7 + $0x660] sm:$0xff] }
 0x2eb   :  { %3776 = vmatprep.subr.bf16.mxu0 %v13354_v51  ;;  %v13084_v51 = vcombine.high %v500_v48, %v508_v49  ;;  %v604_v37 = vld [vmem:[#allocation7 + $0x658] sm:$0xff]  ;;  %v517_v48 = vld [vmem:[#allocation7 + $0x3a0] sm:$0xff] }
 0x2ec   :  { %3814 = vmatpush1.bf16.msra.mxu1 %v13067_v46  ;;  %v13180_v38 = vcombine.high %v596_v36, %v604_v37  ;;  %v13179_v42 = vcombine.low %v596_v36, %v604_v37  ;;  %v525_v49 = vld [vmem:[#allocation7 + $0x3e0] sm:$0xff] }
 0x2ed   :  { %3815 = vmatprep.subr.bf16.mxu1 %v13084_v51  ;;  %v613_v36 = vld [vmem:[#allocation7 + $0x6a0] sm:$0xff] }
 0x2ee   :  { %3777 = vmatpush1.bf16.msra.mxu0 %v13353_v56  ;;  %v13482_v56 = vcombine.high %v899_v44, %v907_v45  ;;  %v621_v37 = vld [vmem:[#allocation7 + $0x6e0] sm:$0xff] }
 0x2ef   :  { %3778 = vmatprep.subr.bf16.mxu0 %v13370_v60  ;;  %v13481_v60 = vcombine.low %v899_v44, %v907_v45  ;;  %v612_v44 = vld [vmem:[#allocation7 + $0x698] sm:$0xff] }
 0x2f0   :  { %3816 = vmatpush1.bf16.msra.mxu1 %v13083_v55  ;;  %v620_v45 = vld [vmem:[#allocation7 + $0x6d8] sm:$0xff] }
 0x2f1   :  { %3817 = vmatprep.subr.bf16.mxu1 %v13100_v59  ;;  %v13196_v46 = vcombine.high %v612_v44, %v620_v45  ;;  %v13195_v51 = vcombine.low %v612_v44, %v620_v45  ;;  %v629_v44 = vld [vmem:[#allocation7 + $0x720] sm:$0xff] }
 0x2f2   :  { %3779 = vmatpush1.bf16.msra.mxu0 %v13369_v0  ;;  %v12990_v0 = vcombine.high %v405_v53, %v413_v54  ;;  %v637_v45 = vld [vmem:[#allocation7 + $0x760] sm:$0xff] }
 0x2f3   :  { %3780 = vmatprep.subr.bf16.mxu0 %v13386_v4  ;;  %v12989_v4 = vcombine.low %v405_v53, %v413_v54  ;;  %v628_v53 = vld [vmem:[#allocation7 + $0x718] sm:$0xff] }
 0x2f4   :  { %3818 = vmatpush1.bf16.msra.mxu1 %v13099_v63  ;;  %v636_v54 = vld [vmem:[#allocation7 + $0x758] sm:$0xff] }
 0x2f5   :  { %3819 = vmatprep.subr.bf16.mxu1 %v13116_v3  ;;  %v13212_v55 = vcombine.high %v628_v53, %v636_v54  ;;  %v13211_v59 = vcombine.low %v628_v53, %v636_v54  ;;  %v645_v53 = vld [vmem:[#allocation7 + $0x7a0] sm:$0xff] }
 0x2f6   :  { %3781 = vmatpush1.bf16.msra.mxu0 %v13385_v8  ;;  %v13006_v8 = vcombine.high %v421_v61, %v429_v62  ;;  %v653_v54 = vld [vmem:[#allocation7 + $0x7e0] sm:$0xff] }
 0x2f7   :  { %3782 = vmatprep.subr.bf16.mxu0 %v13402_v14  ;;  %v13005_v14 = vcombine.low %v421_v61, %v429_v62  ;;  %v644_v61 = vld [vmem:[#allocation7 + $0x798] sm:$0xff] }
 0x2f8   :  { %3820 = vmatpush1.bf16.msra.mxu1 %v13115_v7  ;;  %v652_v62 = vld [vmem:[#allocation7 + $0x7d8] sm:$0xff] }
 0x2f9   :  { %3821 = vmatprep.subr.bf16.mxu1 %v13132_v12  ;;  %v13228_v63 = vcombine.high %v644_v61, %v652_v62  ;;  %v13227_v3 = vcombine.low %v644_v61, %v652_v62  ;;  %v661_v61 = vld [vmem:[#allocation7 + $0x820] sm:$0xff] }
 0x2fa   :  { %3783 = vmatpush1.bf16.msra.mxu0 %v13401_v19  ;;  %v13022_v19 = vcombine.high %v437_v5, %v445_v6  ;;  %v669_v62 = vld [vmem:[#allocation7 + $0x860] sm:$0xff] }
 0x2fb   :  { %3784 = vmatprep.subr.bf16.mxu0 %v13418_v23  ;;  %v13021_v23 = vcombine.low %v437_v5, %v445_v6  ;;  %v660_v5 = vld [vmem:[#allocation7 + $0x818] sm:$0xff] }
 0x2fc   :  { %3822 = vmatpush1.bf16.msra.mxu1 %v13131_v17  ;;  %v668_v6 = vld [vmem:[#allocation7 + $0x858] sm:$0xff] }
 0x2fd   :  { %3823 = vmatprep.subr.bf16.mxu1 %v13148_v22  ;;  %v13244_v7 = vcombine.high %v660_v5, %v668_v6  ;;  %v13243_v12 = vcombine.low %v660_v5, %v668_v6  ;;  %v677_v5 = vld [vmem:[#allocation7 + $0x8a0] sm:$0xff] }
 0x2fe   :  { %3785 = vmatpush1.bf16.msra.mxu0 %v13417_v27  ;;  %v13038_v27 = vcombine.high %v453_v15, %v461_v16  ;;  %v685_v6 = vld [vmem:[#allocation7 + $0x8e0] sm:$0xff] }
 0x2ff   :  { %3786 = vmatprep.subr.bf16.mxu0 %v13434_v31  ;;  %v13037_v31 = vcombine.low %v453_v15, %v461_v16  ;;  %v676_v15 = vld [vmem:[#allocation7 + $0x898] sm:$0xff] }
 0x300   :  { %3824 = vmatpush1.bf16.msra.mxu1 %v13147_v26  ;;  %v684_v16 = vld [vmem:[#allocation7 + $0x8d8] sm:$0xff] }
 0x301   :  { %3825 = vmatprep.subr.bf16.mxu1 %v13164_v30  ;;  %v13260_v17 = vcombine.high %v676_v15, %v684_v16  ;;  %v13259_v22 = vcombine.low %v676_v15, %v684_v16  ;;  %v693_v15 = vld [vmem:[#allocation7 + $0x920] sm:$0xff] }
 0x302   :  { %3787 = vmatpush1.bf16.msra.mxu0 %v13433_v35  ;;  %v13054_v35 = vcombine.high %v469_v24, %v477_v25  ;;  %v701_v16 = vld [vmem:[#allocation7 + $0x960] sm:$0xff] }
 0x303   :  { %3788 = vmatprep.subr.bf16.mxu0 %v13450_v39  ;;  %v13053_v39 = vcombine.low %v469_v24, %v477_v25  ;;  %v692_v24 = vld [vmem:[#allocation7 + $0x918] sm:$0xff] }
 0x304   :  { %3826 = vmatpush1.bf16.msra.mxu1 %v13163_v34  ;;  %v700_v25 = vld [vmem:[#allocation7 + $0x958] sm:$0xff] }
 0x305   :  { %3827 = vmatprep.subr.bf16.mxu1 %v13180_v38  ;;  %v13276_v26 = vcombine.high %v692_v24, %v700_v25  ;;  %v13275_v30 = vcombine.low %v692_v24, %v700_v25  ;;  %v709_v24 = vld [vmem:[#allocation7 + $0x9a0] sm:$0xff] }
 0x306   :  { %3789 = vmatpush1.bf16.msra.mxu0 %v13449_v43  ;;  %v13070_v43 = vcombine.high %v485_v32, %v493_v33  ;;  %v717_v25 = vld [vmem:[#allocation7 + $0x9e0] sm:$0xff] }
 0x307   :  { %3790 = vmatprep.subr.bf16.mxu0 %v13466_v47  ;;  %v13069_v47 = vcombine.low %v485_v32, %v493_v33  ;;  %v708_v32 = vld [vmem:[#allocation7 + $0x998] sm:$0xff] }
 0x308   :  { %3828 = vmatpush1.bf16.msra.mxu1 %v13179_v42  ;;  %v716_v33 = vld [vmem:[#allocation7 + $0x9d8] sm:$0xff] }
 0x309   :  { %3829 = vmatprep.subr.bf16.mxu1 %v13196_v46  ;;  %v13292_v34 = vcombine.high %v708_v32, %v716_v33  ;;  %v13291_v38 = vcombine.low %v708_v32, %v716_v33  ;;  %v725_v32 = vld [vmem:[#allocation7 + $0xa20] sm:$0xff] }
 0x30a   :  { %3791 = vmatpush1.bf16.msra.mxu0 %v13465_v52  ;;  %v13086_v52 = vcombine.high %v501_v40, %v509_v41  ;;  %v733_v33 = vld [vmem:[#allocation7 + $0xa60] sm:$0xff] }
 0x30b   :  { %3792 = vmatprep.subr.bf16.mxu0 %v13482_v56  ;;  %v13085_v56 = vcombine.low %v501_v40, %v509_v41  ;;  %v724_v40 = vld [vmem:[#allocation7 + $0xa18] sm:$0xff] }
 0x30c   :  { %3830 = vmatpush1.bf16.msra.mxu1 %v13195_v51  ;;  %v732_v41 = vld [vmem:[#allocation7 + $0xa58] sm:$0xff] }
 0x30d   :  { %3831 = vmatprep.subr.bf16.mxu1 %v13212_v55  ;;  %v13308_v42 = vcombine.high %v724_v40, %v732_v41  ;;  %v13307_v46 = vcombine.low %v724_v40, %v732_v41  ;;  %v741_v40 = vld [vmem:[#allocation7 + $0xaa0] sm:$0xff] }
 0x30e   :  { %3793 = vmatpush1.bf16.msra.mxu0 %v13481_v60  ;;  %v13102_v60 = vcombine.high %v517_v48, %v525_v49  ;;  %v749_v41 = vld [vmem:[#allocation7 + $0xae0] sm:$0xff] }
 0x30f   :  { %3885 = vmatprep.subr.bf16.mxu0 %v12990_v0  ;;  %v13101_v0 = vcombine.low %v517_v48, %v525_v49  ;;  %v740_v48 = vld [vmem:[#allocation7 + $0xa98] sm:$0xff] }
 0x310   :  { %3832 = vmatpush1.bf16.msra.mxu1 %v13211_v59  ;;  %v748_v49 = vld [vmem:[#allocation7 + $0xad8] sm:$0xff] }
 0x311   :  { %3795 = vmatmul.mubr.bf16.vlgmr.msra.gmra.mrb[4].mxu0 %v17175_v50  ;;  %3833 = vmatprep.subr.bf16.mxu1 %v13228_v63  ;;  %v13324_v51 = vcombine.high %v740_v48, %v748_v49  ;;  %v13323_v55 = vcombine.low %v740_v48, %v748_v49  ;;  %v757_v48 = vld [vmem:[#allocation7 + $0xb20] sm:$0xff] }
 0x312   :  { %3886 = vmatpush1.bf16.msra.mxu0 %v12989_v4  ;;  %3917 = vmatprep.mubr.bf16.mxu0 %v17165_v18  ;;  %v13118_v4 = vcombine.high %v533_v57, %v541_v58  ;;  %v765_v49 = vld [vmem:[#allocation7 + $0xb60] sm:$0xff] }
 0x313   :  { %3887 = vmatprep.subr.bf16.mxu0 %v13006_v8  ;;  %v13117_v8 = vcombine.low %v533_v57, %v541_v58  ;;  %v756_v57 = vld [vmem:[#allocation7 + $0xb18] sm:$0xff] }
 0x314   :  { %3834 = vmatpush1.bf16.msra.mxu1 %v13227_v3  ;;  %v764_v58 = vld [vmem:[#allocation7 + $0xb58] sm:$0xff] }
 0x315   :  { %3844 = vmatprep.subr.bf16.mxu1 %v13244_v7  ;;  %v13340_v59 = vcombine.high %v756_v57, %v764_v58  ;;  %v13339_v63 = vcombine.low %v756_v57, %v764_v58  ;;  %v773_v57 = vld [vmem:[#allocation7 + $0xba0] sm:$0xff] }
 0x316   :  { %3888 = vmatpush1.bf16.msra.mxu0 %v13005_v14  ;;  %v13134_v14 = vcombine.high %v549_v1, %v557_v2  ;;  %v781_v58 = vld [vmem:[#allocation7 + $0xbe0] sm:$0xff] }
 0x317   :  { %3889 = vmatprep.subr.bf16.mxu0 %v13022_v19  ;;  %3836 = vmatmul.mubr.bf16.vlgmr.msra.gmra.mrb[4].mxu1 %v17169_v9  ;;  %v13133_v19 = vcombine.low %v549_v1, %v557_v2  ;;  %v772_v1 = vld [vmem:[#allocation7 + $0xb98] sm:$0xff] }
 0x318   :  { %3845 = vmatpush1.bf16.msra.mxu1 %v13243_v12  ;;  %3876 = vmatprep.mubr.bf16.mxu1 %v17171_v13  ;;  %v780_v2 = vld [vmem:[#allocation7 + $0xbd8] sm:$0xff] }
 0x319   :  { %3846 = vmatprep.subr.bf16.mxu1 %v13260_v17  ;;  %v13356_v3 = vcombine.high %v772_v1, %v780_v2  ;;  %v13355_v7 = vcombine.low %v772_v1, %v780_v2 }
 0x31a   :  { %3890 = vmatpush1.bf16.msra.mxu0 %v13021_v23  ;;  %v13150_v23 = vcombine.high %v565_v10, %v573_v11 }
 0x31b   :  { %3891 = vmatprep.subr.bf16.mxu0 %v13038_v27  ;;  %v13149_v27 = vcombine.low %v565_v10, %v573_v11  ;;  %v788_v10 = vld [vmem:[#allocation7 + $0xc18] sm:$0xff] }
 0x31c   :  { %3847 = vmatpush1.bf16.msra.mxu1 %v13259_v22  ;;  %v796_v11 = vld [vmem:[#allocation7 + $0xc58] sm:$0xff] }
 0x31d   :  { %3848 = vmatprep.subr.bf16.mxu1 %v13276_v26  ;;  %v13372_v12 = vcombine.high %v788_v10, %v796_v11  ;;  %v13371_v17 = vcombine.low %v788_v10, %v796_v11  ;;  %v900_v10 = vld [vmem:[#allocation7 + $0xf98] sm:$0xff] }
 0x31e   :  { %3892 = vmatpush1.bf16.msra.mxu0 %v13037_v31  ;;  %v13166_v31 = vcombine.high %v581_v20, %v589_v21  ;;  %v908_v11 = vld [vmem:[#allocation7 + $0xfd8] sm:$0xff] }
 0x31f   :  { %3893 = vmatprep.subr.bf16.mxu0 %v13054_v35  ;;  %v13165_v35 = vcombine.low %v581_v20, %v589_v21  ;;  %v804_v20 = vld [vmem:[#allocation7 + $0xc98] sm:$0xff] }
 0x320   :  { %3849 = vmatpush1.bf16.msra.mxu1 %v13275_v30  ;;  %v812_v21 = vld [vmem:[#allocation7 + $0xcd8] sm:$0xff] }
 0x321   :  { %3850 = vmatprep.subr.bf16.mxu1 %v13292_v34  ;;  %v13388_v22 = vcombine.high %v804_v20, %v812_v21  ;;  %v13387_v26 = vcombine.low %v804_v20, %v812_v21  ;;  %v406_v20 = vld [vmem:[#allocation7 + $0x28] sm:$0xff] }
 0x322   :  { %3894 = vmatpush1.bf16.msra.mxu0 %v13053_v39  ;;  %v13182_v39 = vcombine.high %v597_v28, %v605_v29  ;;  %v414_v21 = vld [vmem:[#allocation7 + $0x68] sm:$0xff] }
 0x323   :  { %3895 = vmatprep.subr.bf16.mxu0 %v13070_v43  ;;  %v13181_v43 = vcombine.low %v597_v28, %v605_v29  ;;  %v820_v28 = vld [vmem:[#allocation7 + $0xd18] sm:$0xff] }
 0x324   :  { %3851 = vmatpush1.bf16.msra.mxu1 %v13291_v38  ;;  %v828_v29 = vld [vmem:[#allocation7 + $0xd58] sm:$0xff] }
 0x325   :  { %3852 = vmatprep.subr.bf16.mxu1 %v13308_v42  ;;  %v13404_v30 = vcombine.high %v820_v28, %v828_v29  ;;  %v13403_v34 = vcombine.low %v820_v28, %v828_v29  ;;  %v422_v28 = vld [vmem:[#allocation7 + $0xa8] sm:$0xff] }
 0x326   :  { %3896 = vmatpush1.bf16.msra.mxu0 %v13069_v47  ;;  %v13198_v47 = vcombine.high %v613_v36, %v621_v37  ;;  %v430_v29 = vld [vmem:[#allocation7 + $0xe8] sm:$0xff] }
 0x327   :  { %3897 = vmatprep.subr.bf16.mxu0 %v13086_v52  ;;  %v13197_v52 = vcombine.low %v613_v36, %v621_v37  ;;  %v836_v36 = vld [vmem:[#allocation7 + $0xd98] sm:$0xff] }
 0x328   :  { %3853 = vmatpush1.bf16.msra.mxu1 %v13307_v46  ;;  %v844_v37 = vld [vmem:[#allocation7 + $0xdd8] sm:$0xff] }
 0x329   :  { %3854 = vmatprep.subr.bf16.mxu1 %v13324_v51  ;;  %v13420_v38 = vcombine.high %v836_v36, %v844_v37  ;;  %v13419_v42 = vcombine.low %v836_v36, %v844_v37  ;;  %v438_v36 = vld [vmem:[#allocation7 + $0x128] sm:$0xff] }
 0x32a   :  { %3898 = vmatpush1.bf16.msra.mxu0 %v13085_v56  ;;  %v13214_v56 = vcombine.high %v629_v44, %v637_v45  ;;  %v446_v37 = vld [vmem:[#allocation7 + $0x168] sm:$0xff] }
 0x32b   :  { %3899 = vmatprep.subr.bf16.mxu0 %v13102_v60  ;;  %v13213_v60 = vcombine.low %v629_v44, %v637_v45  ;;  %v852_v44 = vld [vmem:[#allocation7 + $0xe18] sm:$0xff] }
 0x32c   :  { %3855 = vmatpush1.bf16.msra.mxu1 %v13323_v55  ;;  %v860_v45 = vld [vmem:[#allocation7 + $0xe58] sm:$0xff] }
 0x32d   :  { %3856 = vmatprep.subr.bf16.mxu1 %v13340_v59  ;;  %v13436_v46 = vcombine.high %v852_v44, %v860_v45  ;;  %v13435_v51 = vcombine.low %v852_v44, %v860_v45  ;;  %v454_v44 = vld [vmem:[#allocation7 + $0x1a8] sm:$0xff] }
 0x32e   :  { %3900 = vmatpush1.bf16.msra.mxu0 %v13101_v0  ;;  %v13230_v0 = vcombine.high %v645_v53, %v653_v54  ;;  %v462_v45 = vld [vmem:[#allocation7 + $0x1e8] sm:$0xff] }
 0x32f   :  { %3901 = vmatprep.subr.bf16.mxu0 %v13118_v4  ;;  %v13229_v4 = vcombine.low %v645_v53, %v653_v54  ;;  %v868_v53 = vld [vmem:[#allocation7 + $0xe98] sm:$0xff] }
 0x330   :  { %3857 = vmatpush1.bf16.msra.mxu1 %v13339_v63  ;;  %v876_v54 = vld [vmem:[#allocation7 + $0xed8] sm:$0xff] }
 0x331   :  { %3858 = vmatprep.subr.bf16.mxu1 %v13356_v3  ;;  %v13452_v55 = vcombine.high %v868_v53, %v876_v54  ;;  %v13451_v59 = vcombine.low %v868_v53, %v876_v54  ;;  %v892_v63 = vld [vmem:[#allocation7 + $0xf58] sm:$0xff]  ;;  %v13341_v3 = vcombine.low %v757_v48, %v765_v49  ;;  %v470_v53 = vld [vmem:[#allocation7 + $0x228] sm:$0xff] }
 0x332   :  { %3902 = vmatpush1.bf16.msra.mxu0 %v13117_v8  ;;  %v13246_v8 = vcombine.high %v661_v61, %v669_v62  ;;  %v478_v54 = vld [vmem:[#allocation7 + $0x268] sm:$0xff] }
 0x333   :  { %3903 = vmatprep.subr.bf16.mxu0 %v13134_v14  ;;  %v13245_v14 = vcombine.low %v661_v61, %v669_v62  ;;  %v884_v62 = vld [vmem:[#allocation7 + $0xf18] sm:$0xff] }
 0x334   :  { %3859 = vmatpush1.bf16.msra.mxu1 %v13355_v7  ;;  %v13468_v1 = vcombine.high %v884_v62, %v892_v63 }
 0x335   :  { %3860 = vmatprep.subr.bf16.mxu1 %v13372_v12  ;;  %v13484_v12 = vcombine.high %v900_v10, %v908_v11 }
 0x336   :  { %3904 = vmatpush1.bf16.msra.mxu0 %v13133_v19  ;;  %v13262_v19 = vcombine.high %v677_v5, %v685_v6 }
 0x337   :  { %3905 = vmatprep.subr.bf16.mxu0 %v13150_v23  ;;  %v13261_v23 = vcombine.low %v677_v5, %v685_v6  ;;  %v797_v5 = vld [vmem:[#allocation7 + $0xc60] sm:$0xff]  ;;  %v13467_v6 = vcombine.low %v884_v62, %v892_v63  ;;  %v486_v62 = vld [vmem:[#allocation7 + $0x2a8] sm:$0xff] }
 0x338   :  { %3861 = vmatpush1.bf16.msra.mxu1 %v13371_v17  ;;  %v13483_v17 = vcombine.low %v900_v10, %v908_v11  ;;  %v494_v63 = vld [vmem:[#allocation7 + $0x2e8] sm:$0xff] }
 0x339   :  { %3862 = vmatprep.subr.bf16.mxu1 %v13388_v22  ;;  %v12992_v22 = vcombine.high %v406_v20, %v414_v21 }
 0x33a   :  { %3906 = vmatpush1.bf16.msra.mxu0 %v13149_v27  ;;  %v13278_v27 = vcombine.high %v693_v15, %v701_v16 }
 0x33b   :  { %3907 = vmatprep.subr.bf16.mxu0 %v13166_v31  ;;  %v13277_v31 = vcombine.low %v693_v15, %v701_v16  ;;  %v805_v15 = vld [vmem:[#allocation7 + $0xca0] sm:$0xff] }
 0x33c   :  { %3863 = vmatpush1.bf16.msra.mxu1 %v13387_v26  ;;  %v813_v16 = vld [vmem:[#allocation7 + $0xce0] sm:$0xff]  ;;  %v12991_v26 = vcombine.low %v406_v20, %v414_v21 }
 0x33d   :  { %3864 = vmatprep.subr.bf16.mxu1 %v13404_v30  ;;  %v13008_v30 = vcombine.high %v422_v28, %v430_v29 }
 0x33e   :  { %3908 = vmatpush1.bf16.msra.mxu0 %v13165_v35  ;;  %v13294_v35 = vcombine.high %v709_v24, %v717_v25 }
 0x33f   :  { %3909 = vmatprep.subr.bf16.mxu0 %v13182_v39  ;;  %v13293_v39 = vcombine.low %v709_v24, %v717_v25  ;;  %v821_v24 = vld [vmem:[#allocation7 + $0xd20] sm:$0xff] }
 0x340   :  { %3865 = vmatpush1.bf16.msra.mxu1 %v13403_v34  ;;  %v829_v25 = vld [vmem:[#allocation7 + $0xd60] sm:$0xff]  ;;  %v13007_v34 = vcombine.low %v422_v28, %v430_v29 }
 0x341   :  { %3866 = vmatprep.subr.bf16.mxu1 %v13420_v38  ;;  %v13024_v38 = vcombine.high %v438_v36, %v446_v37 }
 0x342   :  { %3910 = vmatpush1.bf16.msra.mxu0 %v13181_v43  ;;  %v13310_v43 = vcombine.high %v725_v32, %v733_v33 }
 0x343   :  { %3911 = vmatprep.subr.bf16.mxu0 %v13198_v47  ;;  %v13309_v47 = vcombine.low %v725_v32, %v733_v33  ;;  %v837_v32 = vld [vmem:[#allocation7 + $0xda0] sm:$0xff] }
 0x344   :  { %3867 = vmatpush1.bf16.msra.mxu1 %v13419_v42  ;;  %v845_v33 = vld [vmem:[#allocation7 + $0xde0] sm:$0xff]  ;;  %v13023_v42 = vcombine.low %v438_v36, %v446_v37 }
 0x345   :  { %3868 = vmatprep.subr.bf16.mxu1 %v13436_v46  ;;  %v13040_v46 = vcombine.high %v454_v44, %v462_v45 }
 0x346   :  { %3912 = vmatpush1.bf16.msra.mxu0 %v13197_v52  ;;  %v13326_v52 = vcombine.high %v741_v40, %v749_v41 }
 0x347   :  { %3913 = vmatprep.subr.bf16.mxu0 %v13214_v56  ;;  %v13325_v56 = vcombine.low %v741_v40, %v749_v41  ;;  %v853_v40 = vld [vmem:[#allocation7 + $0xe20] sm:$0xff] }
 0x348   :  { %3869 = vmatpush1.bf16.msra.mxu1 %v13435_v51  ;;  %v861_v41 = vld [vmem:[#allocation7 + $0xe60] sm:$0xff]  ;;  %v13039_v51 = vcombine.low %v454_v44, %v462_v45 }
 0x349   :  { %3870 = vmatprep.subr.bf16.mxu1 %v13452_v55  ;;  %v13056_v55 = vcombine.high %v470_v53, %v478_v54 }
 0x34a   :  { %3914 = vmatpush1.bf16.msra.mxu0 %v13213_v60  ;;  %v13342_v60 = vcombine.high %v757_v48, %v765_v49  ;;  %v869_v48 = vld [vmem:[#allocation7 + $0xea0] sm:$0xff] }
 0x34b   :  { %3915 = vmatprep.subr.bf16.mxu0 %v13230_v0  ;;  %v877_v49 = vld [vmem:[#allocation7 + $0xee0] sm:$0xff] }
 0x34c   :  { %3871 = vmatpush1.bf16.msra.mxu1 %v13451_v59  ;;  %v13055_v59 = vcombine.low %v470_v53, %v478_v54 }
 0x34d   :  { %3872 = vmatprep.subr.bf16.mxu1 %v13468_v1  ;;  %v13072_v1 = vcombine.high %v486_v62, %v494_v63 }
 0x34e   :  { %3916 = vmatpush1.bf16.msra.mxu0 %v13229_v4  ;;  %v789_v4 = vld [vmem:[#allocation7 + $0xc20] sm:$0xff] }
 0x34f   :  { %3926 = vmatprep.subr.bf16.mxu0 %v13246_v8  ;;  %v13358_v8 = vcombine.high %v773_v57, %v781_v58 }
 0x350   :  { %3873 = vmatpush1.bf16.msra.mxu1 %v13467_v6 }
 0x351   :  { %3918 = vmatmul.mubr.bf16.vlgmr.msra.gmra.mrb[8].mxu0 %v17169_v9  ;;  %3874 = vmatprep.subr.bf16.mxu1 %v13484_v12  ;;  %v407_v12 = vld [vmem:[#allocation7 + $0x30] sm:$0xff] }
 0x352   :  { %3927 = vmatpush1.bf16.msra.mxu0 %v13245_v14  ;;  %3958 = vmatprep.mubr.bf16.mxu0 %v17171_v13  ;;  %v13357_v14 = vcombine.low %v773_v57, %v781_v58  ;;  %v885_v57 = vld [vmem:[#allocation7 + $0xf20] sm:$0xff] }
 0x353   :  { %3928 = vmatprep.subr.bf16.mxu0 %v13262_v19  ;;  %v13374_v19 = vcombine.high %v789_v4, %v797_v5  ;;  %v893_v58 = vld [vmem:[#allocation7 + $0xf60] sm:$0xff] }
 0x354   :  { %3875 = vmatpush1.bf16.msra.mxu1 %v13483_v17  ;;  %v13470_v6 = vcombine.high %v885_v57, %v893_v58  ;;  %v13469_v11 = vcombine.low %v885_v57, %v893_v58  ;;  %v518_v17 = vld [vmem:[#allocation7 + $0x3a8] sm:$0xff] }
 0x355   :  { %3967 = vmatprep.subr.bf16.mxu1 %v12992_v22  ;;  %v423_v22 = vld [vmem:[#allocation7 + $0xb0] sm:$0xff] }
 0x356   :  { %3929 = vmatpush1.bf16.msra.mxu0 %v13261_v23  ;;  %v13373_v23 = vcombine.low %v789_v4, %v797_v5  ;;  %v909_v4 = vld [vmem:[#allocation7 + $0xfe0] sm:$0xff]  ;;  %v13071_v5 = vcombine.low %v486_v62, %v494_v63 }
 0x357   :  { %3930 = vmatprep.subr.bf16.mxu0 %v13278_v27  ;;  %v13390_v27 = vcombine.high %v805_v15, %v813_v16  ;;  %3877 = vmatmul.mubr.bf16.vlgmr.msra.gmra.mrb[4].mxu1 %v17175_v50 }
 0x358   :  { %3968 = vmatpush1.bf16.msra.mxu1 %v12991_v26  ;;  %3999 = vmatprep.mubr.bf16.mxu1 %v17165_v18  ;;  %v534_v26 = vld [vmem:[#allocation7 + $0x428] sm:$0xff] }
 0x359   :  { %3969 = vmatprep.subr.bf16.mxu1 %v13008_v30 }
 0x35a   :  { %3931 = vmatpush1.bf16.msra.mxu0 %v13277_v31  ;;  %v13389_v31 = vcombine.low %v805_v15, %v813_v16 }
 0x35b   :  { %3932 = vmatprep.subr.bf16.mxu0 %v13294_v35  ;;  %v13406_v35 = vcombine.high %v821_v24, %v829_v25 }
 0x35c   :  { %3970 = vmatpush1.bf16.msra.mxu1 %v13007_v34  ;;  %v550_v34 = vld [vmem:[#allocation7 + $0x4a8] sm:$0xff] }
 0x35d   :  { %3971 = vmatprep.subr.bf16.mxu1 %v13024_v38  ;;  %v455_v38 = vld [vmem:[#allocation7 + $0x1b0] sm:$0xff] }
 0x35e   :  { %3933 = vmatpush1.bf16.msra.mxu0 %v13293_v39  ;;  %v13405_v39 = vcombine.low %v821_v24, %v829_v25 }
 0x35f   :  { %3934 = vmatprep.subr.bf16.mxu0 %v13310_v43  ;;  %v13422_v43 = vcombine.high %v837_v32, %v845_v33 }
 0x360   :  { %3972 = vmatpush1.bf16.msra.mxu1 %v13023_v42  ;;  %v566_v42 = vld [vmem:[#allocation7 + $0x528] sm:$0xff] }
 0x361   :  { %3973 = vmatprep.subr.bf16.mxu1 %v13040_v46  ;;  %v471_v46 = vld [vmem:[#allocation7 + $0x230] sm:$0xff] }
 0x362   :  { %3935 = vmatpush1.bf16.msra.mxu0 %v13309_v47  ;;  %v13421_v47 = vcombine.low %v837_v32, %v845_v33  ;;  %v439_v32 = vld [vmem:[#allocation7 + $0x130] sm:$0xff] }
 0x363   :  { %3936 = vmatprep.subr.bf16.mxu0 %v13326_v52  ;;  %v13438_v52 = vcombine.high %v853_v40, %v861_v41  ;;  %v447_v33 = vld [vmem:[#allocation7 + $0x170] sm:$0xff] }
 0x364   :  { %v17191_v61 = vpop.f32.mrb[0].mxu0  ;;  %3974 = vmatpush1.bf16.msra.mxu1 %v13039_v51  ;;  %v13025_v45 = vcombine.low %v439_v32, %v447_v33  ;;  %v582_v51 = vld [vmem:[#allocation7 + $0x5a8] sm:$0xff] }
 0x365   :  { %v17193_v0 = vpop.f32.mrb[1].mxu0  ;;  %3975 = vmatprep.subr.bf16.mxu1 %v13056_v55  ;;  %v487_v55 = vld [vmem:[#allocation7 + $0x2b0] sm:$0xff] }
 0x366   :  { %v3636_v2 = vpop.f32.mrb[2].mxu0  ;;  %3937 = vmatpush1.bf16.msra.mxu0 %v13325_v56  ;;  %v13437_v56 = vcombine.low %v853_v40, %v861_v41  ;;  %v13026_v41 = vcombine.high %v439_v32, %v447_v33  ;;  %v662_v32 = vld [vmem:[#allocation7 + $0x828] sm:$0xff] }
 0x367   :  { %v3637_v7 = vpop.f32.mrb[3].mxu0  ;;  %3938 = vmatprep.subr.bf16.mxu0 %v13342_v60  ;;  %v13454_v60 = vcombine.high %v869_v48, %v877_v49  ;;  %v13453_v2 = vcombine.low %v869_v48, %v877_v49  ;;  %v670_v33 = vld [vmem:[#allocation7 + $0x868] sm:$0xff] }
 0x368   :  { %3976 = vmatpush1.bf16.msra.mxu1 %v13055_v59  ;;  %v502_v7 = vld [vmem:[#allocation7 + $0x328] sm:$0xff] }
 0x369   :  { %3977 = vmatprep.subr.bf16.mxu1 %v13072_v1  ;;  %v598_v59 = vld [vmem:[#allocation7 + $0x628] sm:$0xff]  ;;  %v503_v1 = vld [vmem:[#allocation7 + $0x330] sm:$0xff] }
 0x36a   :  { %3939 = vmatpush1.bf16.msra.mxu0 %v13341_v3  ;;  %v901_v3 = vld [vmem:[#allocation7 + $0xfa0] sm:$0xff] }
 0x36b   :  { %3940 = vmatprep.subr.bf16.mxu0 %v13358_v8  ;;  %v510_v8 = vld [vmem:[#allocation7 + $0x368] sm:$0xff]  ;;  %v13486_v16 = vcombine.high %v901_v3, %v909_v4  ;;  %v13485_v21 = vcombine.low %v901_v3, %v909_v4 }
 0x36c   :  { %3978 = vmatpush1.bf16.msra.mxu1 %v13071_v5  ;;  %v13088_v10 = vcombine.high %v502_v7, %v510_v8  ;;  %v13087_v15 = vcombine.low %v502_v7, %v510_v8  ;;  %v614_v5 = vld [vmem:[#allocation7 + $0x6a8] sm:$0xff] }
 0x36e   :  { %3941 = vmatpush1.bf16.msra.mxu0 %v13357_v14  ;;  %v415_v14 = vld [vmem:[#allocation7 + $0x70] sm:$0xff]  ;;  %3979 = vmatprep.subr.bf16.mxu1 %v13088_v10 }
 0x36f   :  { %3942 = vmatprep.subr.bf16.mxu0 %v13374_v19  ;;  %v526_v19 = vld [vmem:[#allocation7 + $0x3e8] sm:$0xff]  ;;  %v12994_v25 = vcombine.high %v407_v12, %v415_v14  ;;  %v12993_v29 = vcombine.low %v407_v12, %v415_v14  ;;  %v519_v10 = vld [vmem:[#allocation7 + $0x3b0] sm:$0xff] }
 0x370   :  { %3980 = vmatpush1.bf16.msra.mxu1 %v13087_v15  ;;  %v13104_v20 = vcombine.high %v518_v17, %v526_v19  ;;  %v13103_v24 = vcombine.low %v518_v17, %v526_v19  ;;  %v630_v15 = vld [vmem:[#allocation7 + $0x728] sm:$0xff] }
 0x372   :  { %3943 = vmatpush1.bf16.msra.mxu0 %v13373_v23  ;;  %v431_v23 = vld [vmem:[#allocation7 + $0xf0] sm:$0xff]  ;;  %3981 = vmatprep.subr.bf16.mxu1 %v13104_v20 }
 0x373   :  { %3944 = vmatprep.subr.bf16.mxu0 %v13390_v27  ;;  %v542_v27 = vld [vmem:[#allocation7 + $0x468] sm:$0xff]  ;;  %v13009_v37 = vcombine.low %v423_v22, %v431_v23  ;;  %v535_v20 = vld [vmem:[#allocation7 + $0x430] sm:$0xff] }
 0x374   :  { %3982 = vmatpush1.bf16.msra.mxu1 %v13103_v24  ;;  %v13120_v28 = vcombine.high %v534_v26, %v542_v27  ;;  %v13119_v30 = vcombine.low %v534_v26, %v542_v27  ;;  %v646_v24 = vld [vmem:[#allocation7 + $0x7a8] sm:$0xff] }
 0x376   :  { %3945 = vmatpush1.bf16.msra.mxu0 %v13389_v31  ;;  %v13010_v31 = vcombine.high %v423_v22, %v431_v23  ;;  %3983 = vmatprep.subr.bf16.mxu1 %v13120_v28  ;;  %v551_v28 = vld [vmem:[#allocation7 + $0x4b0] sm:$0xff] }
 0x377   :  { %3946 = vmatprep.subr.bf16.mxu0 %v13406_v35  ;;  %v558_v35 = vld [vmem:[#allocation7 + $0x4e8] sm:$0xff] }
 0x378   :  { %3984 = vmatpush1.bf16.msra.mxu1 %v13119_v30  ;;  %v13136_v36 = vcombine.high %v550_v34, %v558_v35  ;;  %v13135_v40 = vcombine.low %v550_v34, %v558_v35  ;;  %v13248_v34 = vcombine.high %v662_v32, %v670_v33 }
 0x37a   :  { %3947 = vmatpush1.bf16.msra.mxu0 %v13405_v39  ;;  %v463_v39 = vld [vmem:[#allocation7 + $0x1f0] sm:$0xff]  ;;  %3985 = vmatprep.subr.bf16.mxu1 %v13136_v36 }
 0x37b   :  { %3948 = vmatprep.subr.bf16.mxu0 %v13422_v43  ;;  %v574_v43 = vld [vmem:[#allocation7 + $0x568] sm:$0xff]  ;;  %v13042_v49 = vcombine.high %v455_v38, %v463_v39  ;;  %v13041_v54 = vcombine.low %v455_v38, %v463_v39  ;;  %v567_v36 = vld [vmem:[#allocation7 + $0x530] sm:$0xff]  ;;  %v13247_v38 = vcombine.low %v662_v32, %v670_v33 }
 0x37c   :  { %3986 = vmatpush1.bf16.msra.mxu1 %v13135_v40  ;;  %v13152_v44 = vcombine.high %v566_v42, %v574_v43  ;;  %v13151_v48 = vcombine.low %v566_v42, %v574_v43  ;;  %v678_v40 = vld [vmem:[#allocation7 + $0x8a8] sm:$0xff]  ;;  %v663_v32 = vld [vmem:[#allocation7 + $0x830] sm:$0xff] }
 0x37d   :  { %v671_v33 = vld [vmem:[#allocation7 + $0x870] sm:$0xff] }
 0x37e   :  { %3949 = vmatpush1.bf16.msra.mxu0 %v13421_v47  ;;  %v479_v47 = vld [vmem:[#allocation7 + $0x270] sm:$0xff]  ;;  %3987 = vmatprep.subr.bf16.mxu1 %v13152_v44 }
 0x37f   :  { %3950 = vmatprep.subr.bf16.mxu0 %v13438_v52  ;;  %v590_v52 = vld [vmem:[#allocation7 + $0x5e8] sm:$0xff]  ;;  %v13058_v58 = vcombine.high %v471_v46, %v479_v47  ;;  %v13057_v63 = vcombine.low %v471_v46, %v479_v47  ;;  %v583_v44 = vld [vmem:[#allocation7 + $0x5b0] sm:$0xff] }
 0x380   :  { %3988 = vmatpush1.bf16.msra.mxu1 %v13151_v48  ;;  %v13168_v53 = vcombine.high %v582_v51, %v590_v52  ;;  %v13167_v57 = vcombine.low %v582_v51, %v590_v52  ;;  %v694_v48 = vld [vmem:[#allocation7 + $0x928] sm:$0xff] }
 0x382   :  { %3951 = vmatpush1.bf16.msra.mxu0 %v13437_v56  ;;  %v495_v56 = vld [vmem:[#allocation7 + $0x2f0] sm:$0xff]  ;;  %3989 = vmatprep.subr.bf16.mxu1 %v13168_v53 }
 0x383   :  { %3952 = vmatprep.subr.bf16.mxu0 %v13454_v60  ;;  %v606_v60 = vld [vmem:[#allocation7 + $0x668] sm:$0xff]  ;;  %v13074_v4 = vcombine.high %v487_v55, %v495_v56  ;;  %v13073_v8 = vcombine.low %v487_v55, %v495_v56  ;;  %v599_v53 = vld [vmem:[#allocation7 + $0x630] sm:$0xff] }
 0x384   :  { %3990 = vmatpush1.bf16.msra.mxu1 %v13167_v57  ;;  %v13184_v62 = vcombine.high %v598_v59, %v606_v60  ;;  %v13183_v3 = vcombine.low %v598_v59, %v606_v60  ;;  %v710_v57 = vld [vmem:[#allocation7 + $0x9a8] sm:$0xff] }
 0x386   :  { %3953 = vmatpush1.bf16.msra.mxu0 %v13453_v2  ;;  %v511_v2 = vld [vmem:[#allocation7 + $0x370] sm:$0xff]  ;;  %3991 = vmatprep.subr.bf16.mxu1 %v13184_v62 }
 0x387   :  { %3954 = vmatprep.subr.bf16.mxu0 %v13470_v6  ;;  %v622_v6 = vld [vmem:[#allocation7 + $0x6e8] sm:$0xff]  ;;  %v13090_v14 = vcombine.high %v503_v1, %v511_v2  ;;  %v13089_v19 = vcombine.low %v503_v1, %v511_v2  ;;  %v615_v62 = vld [vmem:[#allocation7 + $0x6b0] sm:$0xff] }
 0x388   :  { %3992 = vmatpush1.bf16.msra.mxu1 %v13183_v3  ;;  %v13200_v7 = vcombine.high %v614_v5, %v622_v6  ;;  %v13199_v12 = vcombine.low %v614_v5, %v622_v6  ;;  %v726_v3 = vld [vmem:[#allocation7 + $0xa28] sm:$0xff] }
 0x38a   :  { %3955 = vmatpush1.bf16.msra.mxu0 %v13469_v11  ;;  %v527_v11 = vld [vmem:[#allocation7 + $0x3f0] sm:$0xff]  ;;  %3993 = vmatprep.subr.bf16.mxu1 %v13200_v7 }
 0x38b   :  { %3956 = vmatprep.subr.bf16.mxu0 %v13486_v16  ;;  %v638_v16 = vld [vmem:[#allocation7 + $0x768] sm:$0xff]  ;;  %v13106_v23 = vcombine.high %v519_v10, %v527_v11  ;;  %v13105_v27 = vcombine.low %v519_v10, %v527_v11  ;;  %v631_v7 = vld [vmem:[#allocation7 + $0x730] sm:$0xff] }
 0x38c   :  { %3994 = vmatpush1.bf16.msra.mxu1 %v13199_v12  ;;  %v13216_v17 = vcombine.high %v630_v15, %v638_v16  ;;  %v13215_v22 = vcombine.low %v630_v15, %v638_v16  ;;  %v742_v12 = vld [vmem:[#allocation7 + $0xaa8] sm:$0xff] }
 0x38e   :  { %3957 = vmatpush1.bf16.msra.mxu0 %v13485_v21  ;;  %v543_v21 = vld [vmem:[#allocation7 + $0x470] sm:$0xff]  ;;  %3995 = vmatprep.subr.bf16.mxu1 %v13216_v17 }
 0x38f   :  { %4049 = vmatprep.subr.bf16.mxu0 %v12994_v25  ;;  %v654_v25 = vld [vmem:[#allocation7 + $0x7e8] sm:$0xff]  ;;  %v13121_v35 = vcombine.low %v535_v20, %v543_v21  ;;  %v647_v17 = vld [vmem:[#allocation7 + $0x7b0] sm:$0xff] }
 0x390   :  { %3996 = vmatpush1.bf16.msra.mxu1 %v13215_v22  ;;  %v13232_v26 = vcombine.high %v646_v24, %v654_v25  ;;  %v13231_v30 = vcombine.low %v646_v24, %v654_v25  ;;  %v758_v24 = vld [vmem:[#allocation7 + $0xb28] sm:$0xff] }
 0x391   :  { %3959 = vmatmul.mubr.bf16.vlgmr.msra.gmra.mrb[8].mxu0 %v17175_v50  ;;  %v766_v25 = vld [vmem:[#allocation7 + $0xb68] sm:$0xff] }
 0x392   :  { %4050 = vmatpush1.bf16.msra.mxu0 %v12993_v29  ;;  %4081 = vmatprep.mubr.bf16.mxu0 %v17165_v18  ;;  %v559_v29 = vld [vmem:[#allocation7 + $0x4f0] sm:$0xff] }
 0x393   :  { %4051 = vmatprep.subr.bf16.mxu0 %v13010_v31  ;;  %v13122_v31 = vcombine.high %v535_v20, %v543_v21  ;;  %3997 = vmatprep.subr.bf16.mxu1 %v13232_v26  ;;  %v13138_v39 = vcombine.high %v551_v28, %v559_v29  ;;  %v13137_v43 = vcombine.low %v551_v28, %v559_v29 }
 0x394   :  { %3998 = vmatpush1.bf16.msra.mxu1 %v13231_v30  ;;  %v13343_v30 = vcombine.low %v758_v24, %v766_v25 }
 0x395   :  { %4008 = vmatprep.subr.bf16.mxu1 %v13248_v34  ;;  %v774_v34 = vld [vmem:[#allocation7 + $0xba8] sm:$0xff] }
 0x396   :  { %4052 = vmatpush1.bf16.msra.mxu0 %v13009_v37  ;;  %v575_v37 = vld [vmem:[#allocation7 + $0x570] sm:$0xff] }
 0x397   :  { %4053 = vmatprep.subr.bf16.mxu0 %v13026_v41  ;;  %4000 = vmatmul.mubr.bf16.vlgmr.msra.gmra.mrb[8].mxu1 %v17169_v9  ;;  %v686_v41 = vld [vmem:[#allocation7 + $0x8e8] sm:$0xff]  ;;  %v13154_v47 = vcombine.high %v567_v36, %v575_v37  ;;  %v13153_v52 = vcombine.low %v567_v36, %v575_v37 }
 0x398   :  { %4009 = vmatpush1.bf16.msra.mxu1 %v13247_v38  ;;  %v13264_v42 = vcombine.high %v678_v40, %v686_v41  ;;  %4040 = vmatprep.mubr.bf16.mxu1 %v17171_v13  ;;  %v13263_v46 = vcombine.low %v678_v40, %v686_v41  ;;  %v679_v40 = vld [vmem:[#allocation7 + $0x8b0] sm:$0xff] }
 0x399   :  { %v687_v41 = vld [vmem:[#allocation7 + $0x8f0] sm:$0xff] }
 0x39a   :  { %4054 = vmatpush1.bf16.msra.mxu0 %v13025_v45  ;;  %v591_v45 = vld [vmem:[#allocation7 + $0x5f0] sm:$0xff]  ;;  %4010 = vmatprep.subr.bf16.mxu1 %v13264_v42  ;;  %v790_v42 = vld [vmem:[#allocation7 + $0xc28] sm:$0xff] }
 0x39b   :  { %4055 = vmatprep.subr.bf16.mxu0 %v13042_v49  ;;  %v702_v49 = vld [vmem:[#allocation7 + $0x968] sm:$0xff]  ;;  %v13170_v56 = vcombine.high %v583_v44, %v591_v45  ;;  %v13169_v60 = vcombine.low %v583_v44, %v591_v45  ;;  %v13249_v45 = vcombine.low %v663_v32, %v671_v33 }
 0x39c   :  { %4011 = vmatpush1.bf16.msra.mxu1 %v13263_v46  ;;  %v13280_v51 = vcombine.high %v694_v48, %v702_v49  ;;  %v13279_v55 = vcombine.low %v694_v48, %v702_v49  ;;  %v695_v48 = vld [vmem:[#allocation7 + $0x930] sm:$0xff] }
 0x39d   :  { %v703_v49 = vld [vmem:[#allocation7 + $0x970] sm:$0xff] }
 0x39e   :  { %4056 = vmatpush1.bf16.msra.mxu0 %v13041_v54  ;;  %v607_v54 = vld [vmem:[#allocation7 + $0x670] sm:$0xff]  ;;  %4012 = vmatprep.subr.bf16.mxu1 %v13280_v51  ;;  %v806_v51 = vld [vmem:[#allocation7 + $0xca8] sm:$0xff] }
 0x39f   :  { %4057 = vmatprep.subr.bf16.mxu0 %v13058_v58  ;;  %v718_v58 = vld [vmem:[#allocation7 + $0x9e8] sm:$0xff]  ;;  %v13186_v2 = vcombine.high %v599_v53, %v607_v54  ;;  %v13185_v6 = vcombine.low %v599_v53, %v607_v54  ;;  %v13265_v54 = vcombine.low %v679_v40, %v687_v41 }
 0x3a0   :  { %4013 = vmatpush1.bf16.msra.mxu1 %v13279_v55  ;;  %v13296_v59 = vcombine.high %v710_v57, %v718_v58  ;;  %v13295_v1 = vcombine.low %v710_v57, %v718_v58  ;;  %v711_v57 = vld [vmem:[#allocation7 + $0x9b0] sm:$0xff] }
 0x3a1   :  { %v719_v58 = vld [vmem:[#allocation7 + $0x9f0] sm:$0xff] }
 0x3a2   :  { %4058 = vmatpush1.bf16.msra.mxu0 %v13057_v63  ;;  %v623_v63 = vld [vmem:[#allocation7 + $0x6f0] sm:$0xff]  ;;  %4014 = vmatprep.subr.bf16.mxu1 %v13296_v59  ;;  %v822_v59 = vld [vmem:[#allocation7 + $0xd28] sm:$0xff] }
 0x3a3   :  { %4059 = vmatprep.subr.bf16.mxu0 %v13074_v4  ;;  %v734_v4 = vld [vmem:[#allocation7 + $0xa68] sm:$0xff]  ;;  %v13202_v11 = vcombine.high %v615_v62, %v623_v63  ;;  %v13201_v16 = vcombine.low %v615_v62, %v623_v63  ;;  %v13281_v63 = vcombine.low %v695_v48, %v703_v49 }
 0x3a4   :  { %4015 = vmatpush1.bf16.msra.mxu1 %v13295_v1  ;;  %v13312_v5 = vcombine.high %v726_v3, %v734_v4  ;;  %v13311_v10 = vcombine.low %v726_v3, %v734_v4  ;;  %v727_v3 = vld [vmem:[#allocation7 + $0xa30] sm:$0xff] }
 0x3a5   :  { %v735_v4 = vld [vmem:[#allocation7 + $0xa70] sm:$0xff] }
 0x3a6   :  { %4060 = vmatpush1.bf16.msra.mxu0 %v13073_v8  ;;  %v639_v8 = vld [vmem:[#allocation7 + $0x770] sm:$0xff]  ;;  %4016 = vmatprep.subr.bf16.mxu1 %v13312_v5  ;;  %v838_v5 = vld [vmem:[#allocation7 + $0xda8] sm:$0xff] }
 0x3a7   :  { %4061 = vmatprep.subr.bf16.mxu0 %v13090_v14  ;;  %v750_v14 = vld [vmem:[#allocation7 + $0xae8] sm:$0xff]  ;;  %v13218_v21 = vcombine.high %v631_v7, %v639_v8  ;;  %v13217_v28 = vcombine.low %v631_v7, %v639_v8  ;;  %v13297_v8 = vcombine.low %v711_v57, %v719_v58 }
 0x3a8   :  { %4017 = vmatpush1.bf16.msra.mxu1 %v13311_v10  ;;  %v13328_v15 = vcombine.high %v742_v12, %v750_v14  ;;  %v13327_v20 = vcombine.low %v742_v12, %v750_v14  ;;  %v743_v12 = vld [vmem:[#allocation7 + $0xab0] sm:$0xff] }
 0x3a9   :  { %v751_v14 = vld [vmem:[#allocation7 + $0xaf0] sm:$0xff] }
 0x3aa   :  { %4062 = vmatpush1.bf16.msra.mxu0 %v13089_v19  ;;  %v655_v19 = vld [vmem:[#allocation7 + $0x7f0] sm:$0xff]  ;;  %v17201_v22 = vpop.f32.mrb[0].mxu1  ;;  %4018 = vmatprep.subr.bf16.mxu1 %v13328_v15  ;;  %v854_v15 = vld [vmem:[#allocation7 + $0xe28] sm:$0xff] }
 0x3ab   :  { %4063 = vmatprep.subr.bf16.mxu0 %v13106_v23  ;;  %v17203_v23 = vpop.f32.mrb[1].mxu1  ;;  %v13233_v37 = vcombine.low %v647_v17, %v655_v19 }
 0x3ac   :  { %v3718_v26 = vpop.f32.mrb[2].mxu1  ;;  %4019 = vmatpush1.bf16.msra.mxu1 %v13327_v20 }
 0x3ad   :  { %v3719_v29 = vpop.f32.mrb[3].mxu1  ;;  %v870_v26 = vld [vmem:[#allocation7 + $0xea8] sm:$0xff] }
 0x3ae   :  { %4064 = vmatpush1.bf16.msra.mxu0 %v13105_v27  ;;  %v13344_v27 = vcombine.high %v758_v24, %v766_v25  ;;  %v759_v24 = vld [vmem:[#allocation7 + $0xb30] sm:$0xff]  ;;  %v13329_v29 = vcombine.low %v743_v12, %v751_v14 }
 0x3af   :  { %4065 = vmatprep.subr.bf16.mxu0 %v13122_v31  ;;  %v13234_v31 = vcombine.high %v647_v17, %v655_v19  ;;  %v13313_v19 = vcombine.low %v727_v3, %v735_v4  ;;  %v767_v25 = vld [vmem:[#allocation7 + $0xb70] sm:$0xff] }
 0x3b0   :  { %4020 = vmatprep.subr.bf16.mxu1 %v13344_v27  ;;  %v878_v27 = vld [vmem:[#allocation7 + $0xee8] sm:$0xff] }
 0x3b1   :  { %4021 = vmatpush1.bf16.msra.mxu1 %v13343_v30  ;;  %v13455_v30 = vcombine.low %v870_v26, %v878_v27 }
 0x3b2   :  { %4066 = vmatpush1.bf16.msra.mxu0 %v13121_v35  ;;  %v782_v35 = vld [vmem:[#allocation7 + $0xbe8] sm:$0xff] }
 0x3b3   :  { %4067 = vmatprep.subr.bf16.mxu0 %v13138_v39  ;;  %v13360_v36 = vcombine.high %v774_v34, %v782_v35  ;;  %v13359_v38 = vcombine.low %v774_v34, %v782_v35  ;;  %v13250_v39 = vcombine.high %v663_v32, %v671_v33  ;;  %v775_v32 = vld [vmem:[#allocation7 + $0xbb0] sm:$0xff]  ;;  %v886_v35 = vld [vmem:[#allocation7 + $0xf28] sm:$0xff] }
 0x3b4   :  { %v783_v34 = vld [vmem:[#allocation7 + $0xbf0] sm:$0xff] }
 0x3b5   :  { %4022 = vmatprep.subr.bf16.mxu1 %v13360_v36  ;;  %v894_v36 = vld [vmem:[#allocation7 + $0xf68] sm:$0xff] }
 0x3b6   :  { %4068 = vmatpush1.bf16.msra.mxu0 %v13137_v43  ;;  %v798_v43 = vld [vmem:[#allocation7 + $0xc68] sm:$0xff]  ;;  %4023 = vmatpush1.bf16.msra.mxu1 %v13359_v38  ;;  %v13472_v38 = vcombine.high %v886_v35, %v894_v36 }
 0x3b7   :  { %4069 = vmatprep.subr.bf16.mxu0 %v13154_v47  ;;  %v13376_v44 = vcombine.high %v790_v42, %v798_v43  ;;  %v13375_v46 = vcombine.low %v790_v42, %v798_v43  ;;  %v13266_v47 = vcombine.high %v679_v40, %v687_v41  ;;  %v13345_v40 = vcombine.low %v759_v24, %v767_v25 }
 0x3b8   :  { %v13471_v41 = vcombine.low %v886_v35, %v894_v36  ;;  %v13362_v43 = vcombine.high %v775_v32, %v783_v34  ;;  %v472_v35 = vld [vmem:[#allocation7 + $0x238] sm:$0xff] }
 0x3b9   :  { %4024 = vmatprep.subr.bf16.mxu1 %v13376_v44  ;;  %v791_v44 = vld [vmem:[#allocation7 + $0xc30] sm:$0xff]  ;;  %v480_v36 = vld [vmem:[#allocation7 + $0x278] sm:$0xff] }
 0x3ba   :  { %4070 = vmatpush1.bf16.msra.mxu0 %v13153_v52  ;;  %v814_v52 = vld [vmem:[#allocation7 + $0xce8] sm:$0xff]  ;;  %4025 = vmatpush1.bf16.msra.mxu1 %v13375_v46 }
 0x3bb   :  { %4071 = vmatprep.subr.bf16.mxu0 %v13170_v56  ;;  %v13392_v53 = vcombine.high %v806_v51, %v814_v52  ;;  %v13391_v55 = vcombine.low %v806_v51, %v814_v52  ;;  %v13282_v56 = vcombine.high %v695_v48, %v703_v49  ;;  %v902_v46 = vld [vmem:[#allocation7 + $0xfa8] sm:$0xff]  ;;  %v13361_v48 = vcombine.low %v775_v32, %v783_v34  ;;  %v879_v34 = vld [vmem:[#allocation7 + $0xef0] sm:$0xff] }
 0x3bd   :  { %4026 = vmatprep.subr.bf16.mxu1 %v13392_v53  ;;  %v807_v53 = vld [vmem:[#allocation7 + $0xcb0] sm:$0xff] }
 0x3be   :  { %4072 = vmatpush1.bf16.msra.mxu0 %v13169_v60  ;;  %v830_v60 = vld [vmem:[#allocation7 + $0xd68] sm:$0xff]  ;;  %4027 = vmatpush1.bf16.msra.mxu1 %v13391_v55  ;;  %v408_v55 = vld [vmem:[#allocation7 + $0x38] sm:$0xff] }
 0x3bf   :  { %4073 = vmatprep.subr.bf16.mxu0 %v13186_v2  ;;  %v13408_v62 = vcombine.high %v822_v59, %v830_v60  ;;  %v13407_v1 = vcombine.low %v822_v59, %v830_v60  ;;  %v13298_v2 = vcombine.high %v711_v57, %v719_v58 }
 0x3c1   :  { %4028 = vmatprep.subr.bf16.mxu1 %v13408_v62  ;;  %v823_v62 = vld [vmem:[#allocation7 + $0xd30] sm:$0xff] }
 0x3c2   :  { %4074 = vmatpush1.bf16.msra.mxu0 %v13185_v6  ;;  %v846_v6 = vld [vmem:[#allocation7 + $0xde8] sm:$0xff]  ;;  %4029 = vmatpush1.bf16.msra.mxu1 %v13407_v1  ;;  %v831_v1 = vld [vmem:[#allocation7 + $0xd70] sm:$0xff] }
 0x3c3   :  { %4075 = vmatprep.subr.bf16.mxu0 %v13202_v11  ;;  %v13424_v7 = vcombine.high %v838_v5, %v846_v6  ;;  %v13423_v10 = vcombine.low %v838_v5, %v846_v6  ;;  %v13314_v11 = vcombine.high %v727_v3, %v735_v4  ;;  %v432_v3 = vld [vmem:[#allocation7 + $0xf8] sm:$0xff] }
 0x3c5   :  { %4030 = vmatprep.subr.bf16.mxu1 %v13424_v7  ;;  %v13410_v7 = vcombine.high %v823_v62, %v831_v1 }
 0x3c6   :  { %4076 = vmatpush1.bf16.msra.mxu0 %v13201_v16  ;;  %v862_v16 = vld [vmem:[#allocation7 + $0xe68] sm:$0xff]  ;;  %4031 = vmatpush1.bf16.msra.mxu1 %v13423_v10 }
 0x3c7   :  { %4077 = vmatprep.subr.bf16.mxu0 %v13218_v21  ;;  %v13440_v17 = vcombine.high %v854_v15, %v862_v16  ;;  %v13439_v20 = vcombine.low %v854_v15, %v862_v16  ;;  %v13330_v21 = vcombine.high %v743_v12, %v751_v14  ;;  %v440_v12 = vld [vmem:[#allocation7 + $0x138] sm:$0xff]  ;;  %v13409_v16 = vcombine.low %v823_v62, %v831_v1 }
 0x3c8   :  { %v448_v14 = vld [vmem:[#allocation7 + $0x178] sm:$0xff] }
 0x3c9   :  { %4032 = vmatprep.subr.bf16.mxu1 %v13440_v17  ;;  %v13028_v15 = vcombine.high %v440_v12, %v448_v14  ;;  %v13027_v17 = vcombine.low %v440_v12, %v448_v14  ;;  %v536_v12 = vld [vmem:[#allocation7 + $0x438] sm:$0xff] }
 0x3ca   :  { %4078 = vmatpush1.bf16.msra.mxu0 %v13217_v28  ;;  %4033 = vmatpush1.bf16.msra.mxu1 %v13439_v20  ;;  %v13456_v28 = vcombine.high %v870_v26, %v878_v27  ;;  %v17218_v26 = vld [vmem:[#allocation8] sm:$0xff]  ;;  %v544_v14 = vld [vmem:[#allocation7 + $0x478] sm:$0xff] }
 0x3cb   :  { %4079 = vmatprep.subr.bf16.mxu0 %v13234_v31  ;;  %v13346_v31 = vcombine.high %v759_v24, %v767_v25  ;;  %v456_v24 = vld [vmem:[#allocation7 + $0x1b8] sm:$0xff] }
 0x3cc   :  { %4034 = vmatprep.subr.bf16.mxu1 %v13456_v28  ;;  %v464_v25 = vld [vmem:[#allocation7 + $0x1f8] sm:$0xff] }
 0x3cd   :  { %v13044_v27 = vcombine.high %v456_v24, %v464_v25 }
 0x3ce   :  { %4080 = vmatpush1.bf16.msra.mxu0 %v13233_v37  ;;  %4035 = vmatpush1.bf16.msra.mxu1 %v13455_v30 }
 0x3cf   :  { %4090 = vmatprep.subr.bf16.mxu0 %v13250_v39  ;;  %4036 = vmatprep.subr.bf16.mxu1 %v13472_v38  ;;  %v13060_v38 = vcombine.high %v472_v35, %v480_v36 }
 0x3d1   :  { %4082 = vmatmul.mubr.bf16.vlgmr.msra.gmra.mrb[12].mxu0 %v17169_v9 }
 0x3d2   :  { %4091 = vmatpush1.bf16.msra.mxu0 %v13249_v45  ;;  %4122 = vmatprep.mubr.bf16.mxu0 %v17171_v13  ;;  %v799_v45 = vld [vmem:[#allocation7 + $0xc70] sm:$0xff] }
 0x3d3   :  { %4092 = vmatprep.subr.bf16.mxu0 %v13266_v47  ;;  %4037 = vmatpush1.bf16.msra.mxu1 %v13471_v41  ;;  %v910_v47 = vld [vmem:[#allocation7 + $0xfe8] sm:$0xff]  ;;  %v13378_v52 = vcombine.high %v791_v44, %v799_v45  ;;  %v13377_v58 = vcombine.low %v791_v44, %v799_v45  ;;  %v895_v44 = vld [vmem:[#allocation7 + $0xf70] sm:$0xff]  ;;  %v488_v45 = vld [vmem:[#allocation7 + $0x2b8] sm:$0xff] }
 0x3d4   :  { %v13487_v49 = vcombine.low %v902_v46, %v910_v47  ;;  %v13488_v51 = vcombine.high %v902_v46, %v910_v47  ;;  %v496_v46 = vld [vmem:[#allocation7 + $0x2f8] sm:$0xff]  ;;  %v17223_v47 = vld [vmem:[#allocation10] sm:$0xff] }
 0x3d6   :  { %4093 = vmatpush1.bf16.msra.mxu0 %v13265_v54  ;;  %v815_v54 = vld [vmem:[#allocation7 + $0xcf0] sm:$0xff]  ;;  %4038 = vmatprep.subr.bf16.mxu1 %v13488_v51  ;;  %v13075_v51 = vcombine.low %v488_v45, %v496_v46 }
 0x3d7   :  { %4094 = vmatprep.subr.bf16.mxu0 %v13282_v56  ;;  %v416_v56 = vld [vmem:[#allocation7 + $0x78] sm:$0xff]  ;;  %4039 = vmatpush1.bf16.msra.mxu1 %v13487_v49  ;;  %v13394_v60 = vcombine.high %v807_v53, %v815_v54  ;;  %v13393_v5 = vcombine.low %v807_v53, %v815_v54  ;;  %v903_v53 = vld [vmem:[#allocation7 + $0xfb0] sm:$0xff] }
 0x3d8   :  { %v12996_v57 = vcombine.high %v408_v55, %v416_v56  ;;  %v12995_v59 = vcombine.low %v408_v55, %v416_v56  ;;  %v911_v56 = vld [vmem:[#allocation7 + $0xff0] sm:$0xff] }
 0x3da   :  { %4095 = vmatpush1.bf16.msra.mxu0 %v13281_v63  ;;  %4131 = vmatprep.subr.bf16.mxu1 %v12996_v57  ;;  %v917_v63 = vlaneseq  ;;  %v512_v57 = vld [vmem:[#allocation7 + $0x378] sm:$0xff] }
 0x3db   :  { %4096 = vmatprep.subr.bf16.mxu0 %v13298_v2  ;;  %4041 = vmatmul.mubr.bf16.vlgmr.msra.gmra.mrb[8].mxu1 %v17175_v50  ;;  %v424_v2 = vld [vmem:[#allocation7 + $0xb8] sm:$0xff] }
 0x3dc   :  { %4132 = vmatpush1.bf16.msra.mxu1 %v12995_v59  ;;  %v13012_v4 = vcombine.high %v424_v2, %v432_v3  ;;  %4163 = vmatprep.mubr.bf16.mxu1 %v17165_v18  ;;  %v13011_v6 = vcombine.low %v424_v2, %v432_v3  ;;  %v17213_v10 = vshrl.u32 %v917_v63, 7  ;;  %v855_v18 = vld [vmem:[#allocation7 + $0xe30] sm:$0xff]  ;;  %v13490_v63 = vcombine.high %v903_v53, %v911_v56  ;;  %v520_v3 = vld [vmem:[#allocation7 + $0x3b8] sm:$0xff] }
 0x3de   :  { %4097 = vmatpush1.bf16.msra.mxu0 %v13297_v8  ;;  %v839_v8 = vld [vmem:[#allocation7 + $0xdb0] sm:$0xff]  ;;  %4133 = vmatprep.subr.bf16.mxu1 %v13012_v4  ;;  %v17216_v20 = vsub.s32 1, %v17213_v10  ;;  %v528_v4 = vld [vmem:[#allocation7 + $0x3f8] sm:$0xff] }
 0x3df   :  { %4098 = vmatprep.subr.bf16.mxu0 %v13314_v11  ;;  %v847_v11 = vld [vmem:[#allocation7 + $0xdf0] sm:$0xff] }
 0x3e0   :  { %4134 = vmatpush1.bf16.msra.mxu1 %v13011_v6  ;;  %v13425_v28 = vcombine.low %v839_v8, %v847_v11  ;;  %v924_v32 = vrot.slane %v17218_v26, %v17216_v20  ;;  %v4240_v55 = vrot.slane %v17223_v47, %v17216_v20  ;;  %v13489_v6 = vcombine.low %v903_v53, %v911_v56  ;;  %v624_v53 = vld [vmem:[#allocation7 + $0x6f8] sm:$0xff] }
 0x3e1   :  { %4135 = vmatprep.subr.bf16.mxu1 %v13028_v15  ;;  %v13124_v15 = vcombine.high %v536_v12, %v544_v14 }
 0x3e2   :  { %4099 = vmatpush1.bf16.msra.mxu0 %v13313_v19  ;;  %v13426_v19 = vcombine.high %v839_v8, %v847_v11  ;;  %v14848_v8 = vld [vmem:[#allocation13 + $0x4] ss:$8 sps:$4 sm:$0xff]  }
 0x3e3   :  { %4100 = vmatprep.subr.bf16.mxu0 %v13330_v21  ;;  %v863_v21 = vld [vmem:[#allocation7 + $0xe70] sm:$0xff] }
 0x3e4   :  { %v17207_v33 = vpop.f32.mrb[4].mxu0  ;;  %4136 = vmatpush1.bf16.msra.mxu1 %v13027_v17  ;;  %v13442_v30 = vcombine.high %v855_v18, %v863_v21  ;;  %v13123_v17 = vcombine.low %v536_v12, %v544_v14  ;;  %v14870_v14 = vld [vmem:[#allocation13 + $0x80] ss:$8 sps:$4 sm:$0xff]  }
 0x3e5   :  { %v17209_v37 = vpop.f32.mrb[5].mxu0  ;;  %4137 = vmatprep.subr.bf16.mxu1 %v13044_v27  ;;  %v14849_v27 = vld [vmem:[#allocation13 + $0x10] ss:$8 sps:$4 sm:$0xff]  }
 0x3e6   :  { %v3800_v39 = vpop.f32.mrb[6].mxu0  ;;  %4101 = vmatpush1.bf16.msra.mxu0 %v13329_v29  ;;  %v13043_v29 = vcombine.low %v456_v24, %v464_v25  ;;  %v560_v24 = vld [vmem:[#allocation7 + $0x4f8] sm:$0xff] }
 0x3e7   :  { %v3801_v42 = vpop.f32.mrb[7].mxu0  ;;  %4102 = vmatprep.subr.bf16.mxu0 %v13346_v31  ;;  %v871_v31 = vld [vmem:[#allocation7 + $0xeb0] sm:$0xff]  ;;  %v13441_v39 = vcombine.low %v855_v18, %v863_v21  ;;  %v552_v21 = vld [vmem:[#allocation7 + $0x4b8] sm:$0xff] }
 0x3e8   :  { %4138 = vmatpush1.bf16.msra.mxu1 %v13043_v29  ;;  %v13458_v41 = vcombine.high %v871_v31, %v879_v34  ;;  %v887_v42 = vld [vmem:[#allocation7 + $0xf30] sm:$0xff]  ;;  %v13457_v49 = vcombine.low %v871_v31, %v879_v34  ;;  %v13140_v25 = vcombine.high %v552_v21, %v560_v24  ;;  %v576_v31 = vld [vmem:[#allocation7 + $0x578] sm:$0xff] }
 0x3e9   :  { %4139 = vmatprep.subr.bf16.mxu1 %v13060_v38  ;;  %v14854_v29 = vld [vmem:[#allocation13 + $0x24] ss:$8 sps:$4 sm:$0xff]   ;;  %v14852_v34 = vld [vmem:[#allocation13 + $0x20] ss:$8 sps:$4 sm:$0xff]  }
 0x3ea   :  { %4103 = vmatpush1.bf16.msra.mxu0 %v13345_v40  ;;  %v13059_v40 = vcombine.low %v472_v35, %v480_v36  ;;  %v14857_v36 = vld [vmem:[#allocation13 + $0x34] ss:$8 sps:$4 sm:$0xff]   ;;  %v584_v38 = vld [vmem:[#allocation7 + $0x5b8] sm:$0xff] }
 0x3eb   :  { %4104 = vmatprep.subr.bf16.mxu0 %v13362_v43  ;;  %v14672_v43 = vadd.f32 %v17193_v0, %v924_v32  ;;  %v504_v0 = vld [vmem:[#allocation7 + $0x338] sm:$0xff] }
 0x3ec   :  { %4140 = vmatpush1.bf16.msra.mxu1 %v13059_v40  ;;  %v13092_v59 = vcombine.high %v504_v0, %v512_v57  ;;  %v13091_v62 = vcombine.low %v504_v0, %v512_v57  ;;  %v14866_v0 = vld [vmem:[#allocation13 + $0x64] ss:$8 sps:$4 sm:$0xff]  }
 0x3ed   :  { %v4214_v54 = vmax.f32 %v14672_v43, 0.0  ;;  %v14860_v43 = vld [vmem:[#allocation13 + $0x44] ss:$8 sps:$4 sm:$0xff]  }
 0x3ee   :  { %4105 = vmatpush1.bf16.msra.mxu0 %v13361_v48  ;;  %v13076_v48 = vcombine.high %v488_v45, %v496_v46  ;;  %v608_v45 = vld [vmem:[#allocation7 + $0x678] sm:$0xff] }
 0x3ef   :  { %4106 = vmatprep.subr.bf16.mxu0 %v13378_v52  ;;  %v13474_v52 = vcombine.high %v887_v42, %v895_v44  ;;  %v4314_v1 = vmul.f32 %v4240_v55, %v4214_v54  ;;  %v14861_v55 = vld [vmem:[#allocation13 + $0x50] ss:$8 sps:$4 sm:$0xff]   ;;  %v632_v57 = vld [vmem:[#allocation7 + $0x738] sm:$0xff] }
 0x3f0   :  { %4141 = vmatprep.subr.bf16.mxu1 %v13076_v48  ;;  %v14858_v48 = vld [vmem:[#allocation13 + $0x40] ss:$8 sps:$4 sm:$0xff]  }
 0x3f1   :  { %4142 = vmatpush1.bf16.msra.mxu1 %v13075_v51  ;;  %v14863_v51 = vld [vmem:[#allocation13 + $0x54] ss:$8 sps:$4 sm:$0xff]  }
 0x3f2   :  { %4107 = vmatpush1.bf16.msra.mxu0 %v13377_v58  ;;  %v17227_v58 = vld [vmem:[#allocation11] sm:$0xff]  ;;  %4143 = vmatprep.subr.bf16.mxu1 %v13092_v59  ;;  %v640_v59 = vld [vmem:[#allocation7 + $0x778] sm:$0xff] }
 0x3f3   :  { %4108 = vmatprep.subr.bf16.mxu0 %v13394_v60  ;;  %v13473_v60 = vcombine.low %v887_v42, %v895_v44  ;;  %v4340_v2 = vrot.slane %v17227_v58, %v17216_v20  ;;  %v600_v44 = vld [vmem:[#allocation7 + $0x638] sm:$0xff] }
 0x3f4   :  { %v13188_v46 = vcombine.high %v600_v44, %v608_v45 }
 0x3f5   :  { %4144 = vmatpush1.bf16.msra.mxu1 %v13091_v62  ;;  %v4414_v11 = vadd.f32 %v4340_v2, %v4314_v1  ;;  %v14864_v62 = vld [vmem:[#allocation13 + $0x60] ss:$8 sps:$4 sm:$0xff]   ;;  %v14869_v1 = vld [vmem:[#allocation13 + $0x74] ss:$8 sps:$4 sm:$0xff]  }
 0x3f6   :  { %4109 = vmatpush1.bf16.msra.mxu0 %v13393_v5  ;;  %v13108_v5 = vcombine.high %v520_v3, %v528_v4  ;;  %v648_v2 = vld [vmem:[#allocation7 + $0x7b8] sm:$0xff] }
 0x3f7   :  { %4110 = vmatprep.subr.bf16.mxu0 %v13410_v7  ;;  %v13107_v7 = vcombine.low %v520_v3, %v528_v4  ;;  %v4430_v18 = vpack.c.bf16 %v4414_v11, %v4414_v11  ;;  %v656_v3 = vld [vmem:[#allocation7 + $0x7f8] sm:$0xff] }
 0x3f8   :  { %4145 = vmatprep.subr.bf16.mxu1 %v13108_v5  ;;  %v13236_v4 = vcombine.high %v648_v2, %v656_v3  ;;  %v14867_v5 = vld [vmem:[#allocation13 + $0x70] ss:$8 sps:$4 sm:$0xff]   ;;  %v672_v11 = vld [vmem:[#allocation7 + $0x878] sm:$0xff] }
 0x3f9   :  { %4146 = vmatpush1.bf16.msra.mxu1 %v13107_v7  ;;  %v14872_v7 = vld [vmem:[#allocation13 + $0x84] ss:$8 sps:$4 sm:$0xff]  }
 0x3fa   :  { %4111 = vmatpush1.bf16.msra.mxu0 %v13409_v16  ;;  %v14846_v16 = vld [vmem:[#allocation13] ss:$8 sps:$4 sm:$0xff]   ;;  %4147 = vmatprep.subr.bf16.mxu1 %v13124_v15 }
 0x3fb   :  { %4112 = vmatprep.subr.bf16.mxu0 %v13426_v19  ;;  %v14851_v19 = vld [vmem:[#allocation13 + $0x14] ss:$8 sps:$4 sm:$0xff]  }
 0x3fd   :  { %4148 = vmatpush1.bf16.msra.mxu1 %v13123_v17  ;;  %v680_v17 = vld [vmem:[#allocation7 + $0x8b8] sm:$0xff] }
 0x3fe   :  { %4113 = vmatpush1.bf16.msra.mxu0 %v13425_v28  ;;  %v13139_v28 = vcombine.low %v552_v21, %v560_v24  ;;  %4149 = vmatprep.subr.bf16.mxu1 %v13140_v25  ;;  %v14873_v21 = vld [vmem:[#allocation13 + $0x90] ss:$8 sps:$4 sm:$0xff]   ;;  %v14878_v25 = vld [vmem:[#allocation13 + $0xa4] ss:$8 sps:$4 sm:$0xff]  }
 0x3ff   :  { %4114 = vmatprep.subr.bf16.mxu0 %v13442_v30  ;;  %v568_v30 = vld [vmem:[#allocation7 + $0x538] sm:$0xff] }
 0x400   :  { %v13156_v32 = vcombine.high %v568_v30, %v576_v31  ;;  %v13155_v35 = vcombine.low %v568_v30, %v576_v31  ;;  %v14876_v30 = vld [vmem:[#allocation13 + $0xa0] ss:$8 sps:$4 sm:$0xff]  }
 0x401   :  { %4150 = vmatpush1.bf16.msra.mxu1 %v13139_v28  ;;  %v704_v28 = vld [vmem:[#allocation7 + $0x978] sm:$0xff] }
 0x402   :  { %4115 = vmatpush1.bf16.msra.mxu0 %v13441_v39  ;;  %4151 = vmatprep.subr.bf16.mxu1 %v13156_v32  ;;  %v592_v39 = vld [vmem:[#allocation7 + $0x5f8] sm:$0xff]  ;;  %v14881_v32 = vld [vmem:[#allocation13 + $0xb4] ss:$8 sps:$4 sm:$0xff]  }
 0x403   :  { %4116 = vmatprep.subr.bf16.mxu0 %v13458_v41  ;;  %v13172_v40 = vcombine.high %v584_v38, %v592_v39  ;;  %v14855_v41 = vld [vmem:[#allocation13 + $0x30] ss:$8 sps:$4 sm:$0xff]   ;;  %v13171_v42 = vcombine.low %v584_v38, %v592_v39 }
 0x404   :  { %v14879_v38 = vld [vmem:[#allocation13 + $0xb0] ss:$8 sps:$4 sm:$0xff]  }
 0x405   :  { %4152 = vmatpush1.bf16.msra.mxu1 %v13155_v35  ;;  %v720_v35 = vld [vmem:[#allocation7 + $0x9f8] sm:$0xff] }
 0x406   :  { %4117 = vmatpush1.bf16.msra.mxu0 %v13457_v49  ;;  %4153 = vmatprep.subr.bf16.mxu1 %v13172_v40  ;;  %v13187_v49 = vcombine.low %v600_v44, %v608_v45  ;;  %v736_v44 = vld [vmem:[#allocation7 + $0xa78] sm:$0xff] }
 0x407   :  { %4118 = vmatprep.subr.bf16.mxu0 %v13474_v52  ;;  %v616_v52 = vld [vmem:[#allocation7 + $0x6b8] sm:$0xff] }
 0x408   :  { %v13204_v54 = vcombine.high %v616_v52, %v624_v53  ;;  %v13203_v56 = vcombine.low %v616_v52, %v624_v53  ;;  %v744_v53 = vld [vmem:[#allocation7 + $0xab8] sm:$0xff] }
 0x409   :  { %4154 = vmatpush1.bf16.msra.mxu1 %v13171_v42 }
 0x40a   :  { %4119 = vmatpush1.bf16.msra.mxu0 %v13473_v60  ;;  %4155 = vmatprep.subr.bf16.mxu1 %v13188_v46  ;;  %v13220_v60 = vcombine.high %v632_v57, %v640_v59  ;;  %v14882_v46 = vld [vmem:[#allocation13 + $0xc0] ss:$8 sps:$4 sm:$0xff]  }
 0x40b   :  { %4120 = vmatprep.subr.bf16.mxu0 %v13490_v63  ;;  %v13219_v63 = vcombine.low %v632_v57, %v640_v59 }
 0x40d   :  { %4156 = vmatpush1.bf16.msra.mxu1 %v13187_v49 }
 0x40e   :  { %4121 = vmatpush1.bf16.msra.mxu0 %v13489_v6  ;;  %4157 = vmatprep.subr.bf16.mxu1 %v13204_v54  ;;  %v13235_v6 = vcombine.low %v648_v2, %v656_v3  ;;  %v752_v54 = vld [vmem:[#allocation7 + $0xaf8] sm:$0xff] }
 0x40f   :  { %5993 = vmatprep.subr.bf16.mxu0 %v14848_v8  ;;  %v664_v8 = vld [vmem:[#allocation7 + $0x838] sm:$0xff] }
 0x410   :  { %v13252_v12 = vcombine.high %v664_v8, %v672_v11  ;;  %v13251_v15 = vcombine.low %v664_v8, %v672_v11  ;;  %v768_v2 = vld [vmem:[#allocation7 + $0xb78] sm:$0xff] }
 0x411   :  { %4123 = vmatmul.mubr.bf16.vlgmr.msra.gmra.mrb[12].mxu0 %v17175_v50  ;;  %4158 = vmatpush1.bf16.msra.mxu1 %v13203_v56  ;;  %v14885_v56 = vld [vmem:[#allocation13 + $0xd0] ss:$8 sps:$4 sm:$0xff]  }
 0x412   :  { %5994 = vmatpush1.bf16.msra.mxu0 %v14846_v16  ;;  %6025 = vmatprep.mubr.bf16.mxu0 %v4430_v18  ;;  %v14875_v16 = vld [vmem:[#allocation13 + $0x94] ss:$8 sps:$4 sm:$0xff]  }
 0x413   :  { %5995 = vmatprep.subr.bf16.mxu0 %v14851_v19  ;;  %4159 = vmatprep.subr.bf16.mxu1 %v13220_v60  ;;  %v688_v19 = vld [vmem:[#allocation7 + $0x8f8] sm:$0xff] }
 0x414   :  { %v13268_v18 = vcombine.high %v680_v17, %v688_v19  ;;  %v13267_v24 = vcombine.low %v680_v17, %v688_v19  ;;  %v14890_v60 = vld [vmem:[#allocation13 + $0xe4] ss:$8 sps:$4 sm:$0xff]  }
 0x415   :  { %4160 = vmatpush1.bf16.msra.mxu1 %v13219_v63  ;;  %v784_v17 = vld [vmem:[#allocation7 + $0xbf8] sm:$0xff] }
 0x416   :  { %5996 = vmatpush1.bf16.msra.mxu0 %v14849_v27  ;;  %4161 = vmatprep.subr.bf16.mxu1 %v13236_v4  ;;  %v696_v27 = vld [vmem:[#allocation7 + $0x938] sm:$0xff] }
 0x417   :  { %5997 = vmatprep.subr.bf16.mxu0 %v14854_v29  ;;  %v13284_v29 = vcombine.high %v696_v27, %v704_v28  ;;  %v13283_v31 = vcombine.low %v696_v27, %v704_v28  ;;  %v792_v28 = vld [vmem:[#allocation7 + $0xc38] sm:$0xff] }
 0x419   :  { %4162 = vmatpush1.bf16.msra.mxu1 %v13235_v6 }
 0x41a   :  { %5998 = vmatpush1.bf16.msra.mxu0 %v14852_v34  ;;  %4172 = vmatprep.subr.bf16.mxu1 %v13252_v12  ;;  %v712_v34 = vld [vmem:[#allocation7 + $0x9b8] sm:$0xff]  ;;  %v14893_v12 = vld [vmem:[#allocation13 + $0xf4] ss:$8 sps:$4 sm:$0xff]  }
 0x41b   :  { %5999 = vmatprep.subr.bf16.mxu0 %v14857_v36  ;;  %v13300_v36 = vcombine.high %v712_v34, %v720_v35  ;;  %v13299_v39 = vcombine.low %v712_v34, %v720_v35  ;;  %v14899_v35 = vld [vmem:[#allocation13 + $0x114] ss:$8 sps:$4 sm:$0xff]  }
 0x41c   :  { %4164 = vmatmul.mubr.bf16.vlgmr.msra.gmra.mrb[12].mxu1 %v17169_v9  ;;  %v17235_v9 = vsub.s32 0, %v17213_v10 }
 0x41d   :  { %4173 = vmatpush1.bf16.msra.mxu1 %v13251_v15  ;;  %4204 = vmatprep.mubr.bf16.mxu1 %v17171_v13  ;;  %v17238_v13 = vsub.s32 3, %v17213_v10 }
 0x41e   :  { %6000 = vmatpush1.bf16.msra.mxu0 %v14855_v41  ;;  %4174 = vmatprep.subr.bf16.mxu1 %v13268_v18  ;;  %v920_v40 = vrot.slane %v17218_v26, %v17235_v9  ;;  %v14884_v41 = vld [vmem:[#allocation13 + $0xc4] ss:$8 sps:$4 sm:$0xff]   ;;  %v4236_v59 = vrot.slane %v17223_v47, %v17235_v9  ;;  %v4336_v11 = vrot.slane %v17227_v58, %v17235_v9  ;;  %v14891_v18 = vld [vmem:[#allocation13 + $0xf0] ss:$8 sps:$4 sm:$0xff]  }
 0x41f   :  { %6001 = vmatprep.subr.bf16.mxu0 %v14860_v43  ;;  %v932_v42 = vrot.slane %v17218_v26, %v17238_v13  ;;  %v728_v43 = vld [vmem:[#allocation7 + $0xa38] sm:$0xff]  ;;  %v4348_v15 = vrot.slane %v17227_v58, %v17238_v13 }
 0x420   :  { %v13316_v45 = vcombine.high %v728_v43, %v736_v44  ;;  %v14671_v49 = vadd.f32 %v17191_v61, %v920_v40 }
 0x421   :  { %4175 = vmatpush1.bf16.msra.mxu1 %v13267_v24  ;;  %v14674_v52 = vadd.f32 %v17203_v23, %v932_v42  ;;  %v4248_v23 = vrot.slane %v17223_v47, %v17238_v13 }
 0x422   :  { %6002 = vmatpush1.bf16.msra.mxu0 %v14858_v48  ;;  %4176 = vmatprep.subr.bf16.mxu1 %v13284_v29  ;;  %v13315_v48 = vcombine.low %v728_v43, %v736_v44  ;;  %v4213_v57 = vmax.f32 %v14671_v49, 0.0  ;;  %v800_v29 = vld [vmem:[#allocation7 + $0xc78] sm:$0xff] }
 0x423   :  { %6003 = vmatprep.subr.bf16.mxu0 %v14863_v51  ;;  %v14887_v51 = vld [vmem:[#allocation13 + $0xd4] ss:$8 sps:$4 sm:$0xff]   ;;  %v4216_v61 = vmax.f32 %v14674_v52, 0.0  ;;  %v14902_v43 = vld [vmem:[#allocation13 + $0x124] ss:$8 sps:$4 sm:$0xff]  }
 0x424   :  { %v4313_v8 = vmul.f32 %v4236_v59, %v4213_v57  ;;  %v824_v44 = vld [vmem:[#allocation7 + $0xd38] sm:$0xff] }
 0x425   :  { %4177 = vmatpush1.bf16.msra.mxu1 %v13283_v31  ;;  %v14894_v31 = vld [vmem:[#allocation13 + $0x100] ss:$8 sps:$4 sm:$0xff]  }
 0x426   :  { %6004 = vmatpush1.bf16.msra.mxu0 %v14861_v55  ;;  %4178 = vmatprep.subr.bf16.mxu1 %v13300_v36  ;;  %v13332_v55 = vcombine.high %v744_v53, %v752_v54  ;;  %v4413_v24 = vadd.f32 %v4336_v11, %v4313_v8  ;;  %v840_v52 = vld [vmem:[#allocation7 + $0xdb8] sm:$0xff] }
 0x427   :  { %6005 = vmatprep.subr.bf16.mxu0 %v14866_v0  ;;  %v13331_v0 = vcombine.low %v744_v53, %v752_v54  ;;  %v848_v53 = vld [vmem:[#allocation7 + $0xdf8] sm:$0xff] }
 0x428   :  { %v4429_v34 = vpack.c.bf16 %v4413_v24, %v4413_v24  ;;  %v13428_v54 = vcombine.high %v840_v52, %v848_v53  ;;  %v856_v57 = vld [vmem:[#allocation7 + $0xe38] sm:$0xff] }
 0x429   :  { %4179 = vmatpush1.bf16.msra.mxu1 %v13299_v39  ;;  %v816_v39 = vld [vmem:[#allocation7 + $0xcf8] sm:$0xff] }
 0x42a   :  { %6006 = vmatpush1.bf16.msra.mxu0 %v14864_v62  ;;  %4180 = vmatprep.subr.bf16.mxu1 %v13316_v45  ;;  %v17248_v62 = vpop.f32.mrb[4].mxu1  ;;  %v832_v45 = vld [vmem:[#allocation7 + $0xd78] sm:$0xff] }
 0x42b   :  { %6007 = vmatprep.subr.bf16.mxu0 %v14869_v1  ;;  %v17252_v63 = vpop.f32.mrb[5].mxu1  ;;  %v760_v1 = vld [vmem:[#allocation7 + $0xb38] sm:$0xff]  ;;  %v13411_v49 = vcombine.low %v824_v44, %v832_v45 }
 0x42c   :  { %v3882_v3 = vpop.f32.mrb[6].mxu1  ;;  %v13348_v4 = vcombine.high %v760_v1, %v768_v2  ;;  %v864_v59 = vld [vmem:[#allocation7 + $0xe78] sm:$0xff] }
 0x42d   :  { %4181 = vmatpush1.bf16.msra.mxu1 %v13315_v48  ;;  %v3883_v6 = vpop.f32.mrb[7].mxu1  ;;  %v14900_v48 = vld [vmem:[#allocation13 + $0x120] ss:$8 sps:$4 sm:$0xff]  }
 0x42e   :  { %6008 = vmatpush1.bf16.msra.mxu0 %v14867_v5  ;;  %4182 = vmatprep.subr.bf16.mxu1 %v13332_v55  ;;  %v14888_v5 = vld [vmem:[#allocation13 + $0xe0] ss:$8 sps:$4 sm:$0xff]   ;;  %v14903_v55 = vld [vmem:[#allocation13 + $0x130] ss:$8 sps:$4 sm:$0xff]  }
 0x42f   :  { %6009 = vmatprep.subr.bf16.mxu0 %v14872_v7  ;;  %v13347_v7 = vcombine.low %v760_v1, %v768_v2  ;;  %v14911_v1 = vld [vmem:[#allocation13 + $0x154] ss:$8 sps:$4 sm:$0xff]   ;;  %v872_v2 = vld [vmem:[#allocation7 + $0xeb8] sm:$0xff] }
 0x430   :  { %v880_v3 = vld [vmem:[#allocation7 + $0xef8] sm:$0xff] }
 0x431   :  { %4183 = vmatpush1.bf16.msra.mxu1 %v13331_v0  ;;  %v14908_v0 = vld [vmem:[#allocation13 + $0x144] ss:$8 sps:$4 sm:$0xff]   ;;  %v13459_v6 = vcombine.low %v872_v2, %v880_v3 }
 0x432   :  { %6010 = vmatpush1.bf16.msra.mxu0 %v14870_v14  ;;  %4184 = vmatprep.subr.bf16.mxu1 %v13348_v4  ;;  %v4316_v14 = vmul.f32 %v4248_v23, %v4216_v61  ;;  %v14906_v61 = vld [vmem:[#allocation13 + $0x140] ss:$8 sps:$4 sm:$0xff]   ;;  %v13443_v23 = vcombine.low %v856_v57, %v864_v59  ;;  %v13460_v4 = vcombine.high %v872_v2, %v880_v3 }
 0x433   :  { %6011 = vmatprep.subr.bf16.mxu0 %v14875_v16  ;;  %v776_v16 = vld [vmem:[#allocation7 + $0xbb8] sm:$0xff] }
 0x434   :  { %v13364_v19 = vcombine.high %v776_v16, %v784_v17  ;;  %v4416_v27 = vadd.f32 %v4348_v15, %v4316_v14  ;;  %v888_v11 = vld [vmem:[#allocation7 + $0xf38] sm:$0xff] }
 0x435   :  { %4185 = vmatpush1.bf16.msra.mxu1 %v13347_v7  ;;  %v14914_v7 = vld [vmem:[#allocation13 + $0x164] ss:$8 sps:$4 sm:$0xff]   ;;  %v14942_v2 = vld [vmem:[#allocation13 + $0x200] ss:$8 sps:$4 sm:$0xff]  }
 0x436   :  { %6012 = vmatpush1.bf16.msra.mxu0 %v14873_v21  ;;  %v13363_v21 = vcombine.low %v776_v16, %v784_v17  ;;  %4186 = vmatprep.subr.bf16.mxu1 %v13364_v19  ;;  %v4432_v36 = vpack.c.bf16 %v4416_v27, %v4416_v27  ;;  %v14912_v17 = vld [vmem:[#allocation13 + $0x160] ss:$8 sps:$4 sm:$0xff]  }
 0x437   :  { %6013 = vmatprep.subr.bf16.mxu0 %v14878_v25  ;;  %v14896_v25 = vld [vmem:[#allocation13 + $0x104] ss:$8 sps:$4 sm:$0xff]  }
 0x438   :  { %v904_v24 = vld [vmem:[#allocation7 + $0xfb8] sm:$0xff] }
 0x439   :  { %4187 = vmatpush1.bf16.msra.mxu1 %v13363_v21  ;;  %v14917_v21 = vld [vmem:[#allocation13 + $0x174] ss:$8 sps:$4 sm:$0xff]  }
 0x43a   :  { %6014 = vmatpush1.bf16.msra.mxu0 %v14876_v30  ;;  %v13380_v30 = vcombine.high %v792_v28, %v800_v29 }
 0x43b   :  { %6015 = vmatprep.subr.bf16.mxu0 %v14881_v32  ;;  %v13379_v32 = vcombine.low %v792_v28, %v800_v29  ;;  %v14915_v28 = vld [vmem:[#allocation13 + $0x170] ss:$8 sps:$4 sm:$0xff]  }
 0x43c   :  { %4188 = vmatprep.subr.bf16.mxu1 %v13380_v30  ;;  %v14920_v30 = vld [vmem:[#allocation13 + $0x184] ss:$8 sps:$4 sm:$0xff]  }
 0x43d   :  { %4189 = vmatpush1.bf16.msra.mxu1 %v13379_v32  ;;  %v14923_v32 = vld [vmem:[#allocation13 + $0x194] ss:$8 sps:$4 sm:$0xff]  }
 0x43e   :  { %6016 = vmatpush1.bf16.msra.mxu0 %v14879_v38  ;;  %v808_v38 = vld [vmem:[#allocation7 + $0xcb8] sm:$0xff] }
 0x43f   :  { %6017 = vmatprep.subr.bf16.mxu0 %v14884_v41  ;;  %v13396_v40 = vcombine.high %v808_v38, %v816_v39  ;;  %v14897_v41 = vld [vmem:[#allocation13 + $0x110] ss:$8 sps:$4 sm:$0xff]   ;;  %v13395_v42 = vcombine.low %v808_v38, %v816_v39  ;;  %v17264_v38 = vsub.s32 2, %v17213_v10  ;;  %v14929_v39 = vld [vmem:[#allocation13 + $0x1b4] ss:$8 sps:$4 sm:$0xff]  }
 0x441   :  { %4190 = vmatprep.subr.bf16.mxu1 %v13396_v40  ;;  %v17267_v40 = vsub.s32 5, %v17213_v10 }
 0x442   :  { %6018 = vmatpush1.bf16.msra.mxu0 %v14882_v46  ;;  %4191 = vmatpush1.bf16.msra.mxu1 %v13395_v42  ;;  %v13412_v46 = vcombine.high %v824_v44, %v832_v45  ;;  %v928_v42 = vrot.slane %v17218_v26, %v17264_v38  ;;  %v14930_v44 = vld [vmem:[#allocation13 + $0x1c0] ss:$8 sps:$4 sm:$0xff]  }
 0x443   :  { %6019 = vmatprep.subr.bf16.mxu0 %v14887_v51  ;;  %v14905_v51 = vld [vmem:[#allocation13 + $0x134] ss:$8 sps:$4 sm:$0xff]  }
 0x444   :  { %4192 = vmatprep.subr.bf16.mxu1 %v13412_v46  ;;  %v14673_v45 = vadd.f32 %v17201_v22, %v928_v42  ;;  %v14935_v46 = vld [vmem:[#allocation13 + $0x1d4] ss:$8 sps:$4 sm:$0xff]   ;;  %v4344_v22 = vrot.slane %v17227_v58, %v17264_v38 }
 0x446   :  { %6020 = vmatpush1.bf16.msra.mxu0 %v14885_v56  ;;  %4193 = vmatpush1.bf16.msra.mxu1 %v13411_v49  ;;  %v13427_v56 = vcombine.low %v840_v52, %v848_v53  ;;  %v14933_v49 = vld [vmem:[#allocation13 + $0x1d0] ss:$8 sps:$4 sm:$0xff]   ;;  %v4244_v52 = vrot.slane %v17223_v47, %v17264_v38  ;;  %v14938_v53 = vld [vmem:[#allocation13 + $0x1e4] ss:$8 sps:$4 sm:$0xff]  }
 0x447   :  { %6021 = vmatprep.subr.bf16.mxu0 %v14890_v60  ;;  %4194 = vmatprep.subr.bf16.mxu1 %v13428_v54  ;;  %v13444_v60 = vcombine.high %v856_v57, %v864_v59  ;;  %v4356_v59 = vrot.slane %v17227_v58, %v17267_v40 }
 0x44a   :  { %6022 = vmatpush1.bf16.msra.mxu0 %v14888_v5  ;;  %4195 = vmatpush1.bf16.msra.mxu1 %v13427_v56  ;;  %v14909_v5 = vld [vmem:[#allocation13 + $0x150] ss:$8 sps:$4 sm:$0xff]   ;;  %v14936_v56 = vld [vmem:[#allocation13 + $0x1e0] ss:$8 sps:$4 sm:$0xff]  }
 0x44b   :  { %6023 = vmatprep.subr.bf16.mxu0 %v14893_v12  ;;  %4196 = vmatprep.subr.bf16.mxu1 %v13444_v60  ;;  %v896_v12 = vld [vmem:[#allocation7 + $0xf78] sm:$0xff]  ;;  %v14939_v60 = vld [vmem:[#allocation13 + $0x1f0] ss:$8 sps:$4 sm:$0xff]  }
 0x44c   :  { %v13476_v15 = vcombine.high %v888_v11, %v896_v12  ;;  %v13475_v19 = vcombine.low %v888_v11, %v896_v12  ;;  %v14948_v11 = vld [vmem:[#allocation13 + $0x220] ss:$8 sps:$4 sm:$0xff]   ;;  %v14953_v12 = vld [vmem:[#allocation13 + $0x234] ss:$8 sps:$4 sm:$0xff]  }
 0x44e   :  { %6024 = vmatpush1.bf16.msra.mxu0 %v14891_v18  ;;  %4197 = vmatpush1.bf16.msra.mxu1 %v13443_v23  ;;  %v14944_v23 = vld [vmem:[#allocation13 + $0x204] ss:$8 sps:$4 sm:$0xff]  }
 0x44f   :  { %6034 = vmatprep.subr.bf16.mxu0 %v14896_v25  ;;  %4198 = vmatprep.subr.bf16.mxu1 %v13460_v4  ;;  %v912_v25 = vld [vmem:[#allocation7 + $0xff8] sm:$0xff]  ;;  %v14947_v4 = vld [vmem:[#allocation13 + $0x214] ss:$8 sps:$4 sm:$0xff]  }
 0x450   :  { %v13492_v27 = vcombine.high %v904_v24, %v912_v25  ;;  %v13491_v29 = vcombine.low %v904_v24, %v912_v25  ;;  %v14960_v24 = vld [vmem:[#allocation13 + $0x260] ss:$8 sps:$4 sm:$0xff]   ;;  %v14965_v25 = vld [vmem:[#allocation13 + $0x274] ss:$8 sps:$4 sm:$0xff]  }
 0x451   :  { %6026 = vmatmul.mubr.bf16.vlgmr.msra.gmra.mrb[16].mxu0 %v4429_v34  ;;  %v14921_v34 = vld [vmem:[#allocation13 + $0x190] ss:$8 sps:$4 sm:$0xff]  }
 0x452   :  { %6035 = vmatpush1.bf16.msra.mxu0 %v14894_v31  ;;  %6066 = vmatprep.mubr.bf16.mxu0 %v4432_v36  ;;  %v14918_v31 = vld [vmem:[#allocation13 + $0x180] ss:$8 sps:$4 sm:$0xff]  }
 0x453   :  { %6036 = vmatprep.subr.bf16.mxu0 %v14899_v35  ;;  %4199 = vmatpush1.bf16.msra.mxu1 %v13459_v6  ;;  %v14926_v35 = vld [vmem:[#allocation13 + $0x1a4] ss:$8 sps:$4 sm:$0xff]   ;;  %v14924_v36 = vld [vmem:[#allocation13 + $0x1a0] ss:$8 sps:$4 sm:$0xff]   ;;  %v14945_v6 = vld [vmem:[#allocation13 + $0x210] ss:$8 sps:$4 sm:$0xff]  }
 0x454   :  { %4200 = vmatprep.subr.bf16.mxu1 %v13476_v15  ;;  %v14951_v15 = vld [vmem:[#allocation13 + $0x230] ss:$8 sps:$4 sm:$0xff]  }
 0x456   :  { %6037 = vmatpush1.bf16.msra.mxu0 %v14897_v41  ;;  %v14927_v41 = vld [vmem:[#allocation13 + $0x1b0] ss:$8 sps:$4 sm:$0xff]  }
 0x457   :  { %6038 = vmatprep.subr.bf16.mxu0 %v14902_v43  ;;  %4201 = vmatpush1.bf16.msra.mxu1 %v13475_v19  ;;  %v940_v43 = vrot.slane %v17218_v26, %v17267_v40  ;;  %v14959_v19 = vld [vmem:[#allocation13 + $0x254] ss:$8 sps:$4 sm:$0xff]  }
 0x458   :  { %4202 = vmatprep.subr.bf16.mxu1 %v13492_v27  ;;  %v14963_v27 = vld [vmem:[#allocation13 + $0x270] ss:$8 sps:$4 sm:$0xff]  }
 0x45a   :  { %6039 = vmatpush1.bf16.msra.mxu0 %v14900_v48  ;;  %v14676_v48 = vadd.f32 %v17209_v37, %v940_v43  ;;  %v14941_v37 = vld [vmem:[#allocation13 + $0x1f4] ss:$8 sps:$4 sm:$0xff]  }
 0x45b   :  { %6040 = vmatprep.subr.bf16.mxu0 %v14905_v51  ;;  %4203 = vmatpush1.bf16.msra.mxu1 %v13491_v29  ;;  %v4215_v51 = vmax.f32 %v14673_v45, 0.0  ;;  %v14966_v29 = vld [vmem:[#allocation13 + $0x280] ss:$8 sps:$4 sm:$0xff]  }
 0x45c   :  { %v4218_v54 = vmax.f32 %v14676_v48, 0.0 }
 0x45e   :  { %6041 = vmatpush1.bf16.msra.mxu0 %v14903_v55  ;;  %4205 = vmatmul.mubr.bf16.vlgmr.msra.gmra.mrb[12].mxu1 %v17175_v50  ;;  %v14932_v50 = vld [vmem:[#allocation13 + $0x1c4] ss:$8 sps:$4 sm:$0xff]   ;;  %v4256_v55 = vrot.slane %v17223_v47, %v17267_v40 }
 0x45f   :  { %6042 = vmatprep.subr.bf16.mxu0 %v14908_v0  ;;  %v4315_v0 = vmul.f32 %v4244_v52, %v4215_v51 }
 0x460   :  { %v4318_v57 = vmul.f32 %v4256_v55, %v4218_v54 }
 0x462   :  { %6043 = vmatpush1.bf16.msra.mxu0 %v14906_v61  ;;  %v4415_v61 = vadd.f32 %v4344_v22, %v4315_v0  ;;  %v14984_v0 = vld [vmem:[#allocation13 + $0x2e0] ss:$8 sps:$4 sm:$0xff]  }
 0x463   :  { %6044 = vmatprep.subr.bf16.mxu0 %v14911_v1  ;;  %v4418_v1 = vadd.f32 %v4356_v59, %v4318_v57  ;;  %v14989_v57 = vld [vmem:[#allocation13 + $0x2f4] ss:$8 sps:$4 sm:$0xff]  }
 0x464   :  { %v17258_v8 = vpop.f32.mrb[8].mxu0  ;;  %v4431_v3 = vpack.c.bf16 %v4415_v61, %v4415_v61  ;;  %v14987_v61 = vld [vmem:[#allocation13 + $0x2f0] ss:$8 sps:$4 sm:$0xff]  }
 0x465   :  { %v17260_v14 = vpop.f32.mrb[9].mxu0 }
 0x466   :  { %v3964_v16 = vpop.f32.mrb[10].mxu0  ;;  %6045 = vmatpush1.bf16.msra.mxu0 %v14909_v5  ;;  %v4434_v5 = vpack.c.bf16 %v4418_v1, %v4418_v1 }
 0x467   :  { %v3965_v18 = vpop.f32.mrb[11].mxu0  ;;  %6046 = vmatprep.subr.bf16.mxu0 %v14914_v7  ;;  %v14950_v7 = vld [vmem:[#allocation13 + $0x224] ss:$8 sps:$4 sm:$0xff]  }
 0x468   :  { %v14956_v16 = vld [vmem:[#allocation13 + $0x244] ss:$8 sps:$4 sm:$0xff]   ;;  %v14957_v18 = vld [vmem:[#allocation13 + $0x250] ss:$8 sps:$4 sm:$0xff]  }
 0x46a   :  { %6047 = vmatpush1.bf16.msra.mxu0 %v14912_v17  ;;  %v14954_v17 = vld [vmem:[#allocation13 + $0x240] ss:$8 sps:$4 sm:$0xff]  }
 0x46b   :  { %6048 = vmatprep.subr.bf16.mxu0 %v14917_v21  ;;  %v14962_v21 = vld [vmem:[#allocation13 + $0x264] ss:$8 sps:$4 sm:$0xff]  }
 0x46e   :  { %6049 = vmatpush1.bf16.msra.mxu0 %v14915_v28  ;;  %v14968_v28 = vld [vmem:[#allocation13 + $0x284] ss:$8 sps:$4 sm:$0xff]  }
 0x46f   :  { %6050 = vmatprep.subr.bf16.mxu0 %v14920_v30  ;;  %v14971_v30 = vld [vmem:[#allocation13 + $0x294] ss:$8 sps:$4 sm:$0xff]  }
 0x472   :  { %6051 = vmatpush1.bf16.msra.mxu0 %v14918_v31  ;;  %v14969_v31 = vld [vmem:[#allocation13 + $0x290] ss:$8 sps:$4 sm:$0xff]  }
 0x473   :  { %6052 = vmatprep.subr.bf16.mxu0 %v14923_v32  ;;  %v14974_v32 = vld [vmem:[#allocation13 + $0x2a4] ss:$8 sps:$4 sm:$0xff]  }
 0x476   :  { %6053 = vmatpush1.bf16.msra.mxu0 %v14921_v34  ;;  %v14972_v34 = vld [vmem:[#allocation13 + $0x2a0] ss:$8 sps:$4 sm:$0xff]  }
 0x477   :  { %6054 = vmatprep.subr.bf16.mxu0 %v14926_v35  ;;  %v17284_v35 = vsub.s32 4, %v17213_v10 }
 0x479   :  { %v936_v42 = vrot.slane %v17218_v26, %v17284_v35  ;;  %v4252_v52 = vrot.slane %v17223_v47, %v17284_v35 }
 0x47a   :  { %6055 = vmatpush1.bf16.msra.mxu0 %v14924_v36  ;;  %v14977_v36 = vld [vmem:[#allocation13 + $0x2b4] ss:$8 sps:$4 sm:$0xff]  }
 0x47b   :  { %6056 = vmatprep.subr.bf16.mxu0 %v14929_v39  ;;  %v17287_v39 = vsub.s32 7, %v17213_v10  ;;  %v14675_v45 = vadd.f32 %v17207_v33, %v936_v42  ;;  %v15020_v42 = vld [vmem:[#allocation13 + $0x3a0] ss:$8 sps:$4 sm:$0xff]  }
 0x47d   :  { %v948_v43 = vrot.slane %v17218_v26, %v17287_v39  ;;  %v4217_v51 = vmax.f32 %v14675_v45, 0.0  ;;  %v4264_v26 = vrot.slane %v17223_v47, %v17287_v39  ;;  %v14992_v47 = vld [vmem:[#allocation13 + $0x304] ss:$8 sps:$4 sm:$0xff]   ;;  %v15023_v45 = vld [vmem:[#allocation13 + $0x3b0] ss:$8 sps:$4 sm:$0xff]  }
 0x47e   :  { %6057 = vmatpush1.bf16.msra.mxu0 %v14927_v41  ;;  %v14975_v41 = vld [vmem:[#allocation13 + $0x2b0] ss:$8 sps:$4 sm:$0xff]  }
 0x47f   :  { %6058 = vmatprep.subr.bf16.mxu0 %v14932_v50  ;;  %v14980_v50 = vld [vmem:[#allocation13 + $0x2c4] ss:$8 sps:$4 sm:$0xff]   ;;  %v14678_v48 = vadd.f32 %v17252_v63, %v948_v43  ;;  %v4317_v22 = vmul.f32 %v4252_v52, %v4217_v51  ;;  %v15025_v43 = vld [vmem:[#allocation13 + $0x3b4] ss:$8 sps:$4 sm:$0xff]   ;;  %v15026_v52 = vld [vmem:[#allocation13 + $0x3c0] ss:$8 sps:$4 sm:$0xff]  }
 0x481   :  { %v4220_v55 = vmax.f32 %v14678_v48, 0.0 }
 0x482   :  { %6059 = vmatpush1.bf16.msra.mxu0 %v14930_v44  ;;  %v14978_v44 = vld [vmem:[#allocation13 + $0x2c0] ss:$8 sps:$4 sm:$0xff]  }
 0x483   :  { %6060 = vmatprep.subr.bf16.mxu0 %v14935_v46  ;;  %v14983_v46 = vld [vmem:[#allocation13 + $0x2d4] ss:$8 sps:$4 sm:$0xff]   ;;  %v4320_v59 = vmul.f32 %v4264_v26, %v4220_v55  ;;  %v17321_v26 = vld [vmem:[#allocation10 + $0x8] sm:$0xff] }
 0x486   :  { %6061 = vmatpush1.bf16.msra.mxu0 %v14933_v49  ;;  %v14981_v49 = vld [vmem:[#allocation13 + $0x2d0] ss:$8 sps:$4 sm:$0xff]  }
 0x487   :  { %6062 = vmatprep.subr.bf16.mxu0 %v14938_v53  ;;  %v14986_v53 = vld [vmem:[#allocation13 + $0x2e4] ss:$8 sps:$4 sm:$0xff]  }
 0x48a   :  { %6063 = vmatpush1.bf16.msra.mxu0 %v14936_v56 }
 0x48b   :  { %6064 = vmatprep.subr.bf16.mxu0 %v14941_v37  ;;  %v4352_v37 = vrot.slane %v17227_v58, %v17284_v35 }
 0x48e   :  { %6065 = vmatpush1.bf16.msra.mxu0 %v14939_v60  ;;  %v4364_v60 = vrot.slane %v17227_v58, %v17287_v39  ;;  %v14996_v58 = vld [vmem:[#allocation13 + $0x320] ss:$8 sps:$4 sm:$0xff]  }
 0x48f   :  { %6075 = vmatprep.subr.bf16.mxu0 %v14944_v23  ;;  %v4417_v23 = vadd.f32 %v4352_v37, %v4317_v22  ;;  %v15034_v37 = vld [vmem:[#allocation13 + $0x3e4] ss:$8 sps:$4 sm:$0xff]  }
 0x490   :  { %v4420_v1 = vadd.f32 %v4364_v60, %v4320_v59  ;;  %v4272_v59 = vrot.slane %v17321_v26, %v17216_v20  ;;  %v17326_v60 = vld [vmem:[#allocation11 + $0x8] sm:$0xff] }
 0x491   :  { %6067 = vmatmul.mubr.bf16.vlgmr.msra.gmra.mrb[16].mxu0 %v4431_v3  ;;  %v4433_v3 = vpack.c.bf16 %v4417_v23, %v4417_v23 }
 0x492   :  { %6076 = vmatpush1.bf16.msra.mxu0 %v14942_v2  ;;  %6107 = vmatprep.mubr.bf16.mxu0 %v4434_v5  ;;  %v14990_v2 = vld [vmem:[#allocation13 + $0x300] ss:$8 sps:$4 sm:$0xff]   ;;  %v4436_v5 = vpack.c.bf16 %v4420_v1, %v4420_v1 }
 0x493   :  { %6077 = vmatprep.subr.bf16.mxu0 %v14947_v4  ;;  %v14995_v4 = vld [vmem:[#allocation13 + $0x314] ss:$8 sps:$4 sm:$0xff]  }
 0x496   :  { %6078 = vmatpush1.bf16.msra.mxu0 %v14945_v6  ;;  %v14993_v6 = vld [vmem:[#allocation13 + $0x310] ss:$8 sps:$4 sm:$0xff]  }
 0x497   :  { %6079 = vmatprep.subr.bf16.mxu0 %v14950_v7  ;;  %v14998_v7 = vld [vmem:[#allocation13 + $0x324] ss:$8 sps:$4 sm:$0xff]  }
 0x49a   :  { %6080 = vmatpush1.bf16.msra.mxu0 %v14948_v11  ;;  %v15001_v11 = vld [vmem:[#allocation13 + $0x334] ss:$8 sps:$4 sm:$0xff]  }
 0x49b   :  { %6081 = vmatprep.subr.bf16.mxu0 %v14953_v12  ;;  %v14999_v12 = vld [vmem:[#allocation13 + $0x330] ss:$8 sps:$4 sm:$0xff]  }
 0x49e   :  { %6082 = vmatpush1.bf16.msra.mxu0 %v14951_v15  ;;  %v15004_v15 = vld [vmem:[#allocation13 + $0x344] ss:$8 sps:$4 sm:$0xff]  }
 0x49f   :  { %6083 = vmatprep.subr.bf16.mxu0 %v14956_v16  ;;  %v15002_v16 = vld [vmem:[#allocation13 + $0x340] ss:$8 sps:$4 sm:$0xff]  }
 0x4a2   :  { %6084 = vmatpush1.bf16.msra.mxu0 %v14954_v17  ;;  %v15007_v17 = vld [vmem:[#allocation13 + $0x354] ss:$8 sps:$4 sm:$0xff]  }
 0x4a3   :  { %6085 = vmatprep.subr.bf16.mxu0 %v14959_v19  ;;  %v15005_v19 = vld [vmem:[#allocation13 + $0x350] ss:$8 sps:$4 sm:$0xff]  }
 0x4a6   :  { %6086 = vmatpush1.bf16.msra.mxu0 %v14957_v18  ;;  %v15010_v18 = vld [vmem:[#allocation13 + $0x364] ss:$8 sps:$4 sm:$0xff]  }
 0x4a7   :  { %6087 = vmatprep.subr.bf16.mxu0 %v14962_v21 }
 0x4aa   :  { %6088 = vmatpush1.bf16.msra.mxu0 %v14960_v24 }
 0x4ab   :  { %6089 = vmatprep.subr.bf16.mxu0 %v14965_v25 }
 0x4ae   :  { %6090 = vmatpush1.bf16.msra.mxu0 %v14963_v27  ;;  %v17297_v54 = vpop.f32.mrb[8].mxu1  ;;  %v15008_v27 = vld [vmem:[#allocation13 + $0x360] ss:$8 sps:$4 sm:$0xff]  }
 0x4af   :  { %6091 = vmatprep.subr.bf16.mxu0 %v14968_v28  ;;  %v17301_v56 = vpop.f32.mrb[9].mxu1 }
 0x4b0   :  { %v4046_v33 = vpop.f32.mrb[10].mxu1 }
 0x4b1   :  { %v4047_v63 = vpop.f32.mrb[11].mxu1  ;;  %v15029_v33 = vld [vmem:[#allocation13 + $0x3d0] ss:$8 sps:$4 sm:$0xff]  }
 0x4b2   :  { %6092 = vmatpush1.bf16.msra.mxu0 %v14966_v29  ;;  %v15013_v29 = vld [vmem:[#allocation13 + $0x374] ss:$8 sps:$4 sm:$0xff]   ;;  %v16059_v63 = vld [vmem:[#allocation10] sm:$0xff] }
 0x4b3   :  { %6093 = vmatprep.subr.bf16.mxu0 %v14971_v30  ;;  %v15011_v30 = vld [vmem:[#allocation13 + $0x370] ss:$8 sps:$4 sm:$0xff]  }
 0x4b6   :  { %6094 = vmatpush1.bf16.msra.mxu0 %v14969_v31  ;;  %v15016_v31 = vld [vmem:[#allocation13 + $0x384] ss:$8 sps:$4 sm:$0xff]  }
 0x4b7   :  { %6095 = vmatprep.subr.bf16.mxu0 %v14974_v32  ;;  %v15014_v32 = vld [vmem:[#allocation13 + $0x380] ss:$8 sps:$4 sm:$0xff]  }
 0x4ba   :  { %6096 = vmatpush1.bf16.msra.mxu0 %v14972_v34  ;;  %v15019_v34 = vld [vmem:[#allocation13 + $0x394] ss:$8 sps:$4 sm:$0xff]  }
 0x4bb   :  { %6097 = vmatprep.subr.bf16.mxu0 %v14977_v36  ;;  %v15017_v36 = vld [vmem:[#allocation13 + $0x390] ss:$8 sps:$4 sm:$0xff]  }
 0x4be   :  { %6098 = vmatpush1.bf16.msra.mxu0 %v14975_v41  ;;  %v15022_v41 = vld [vmem:[#allocation13 + $0x3a4] ss:$8 sps:$4 sm:$0xff]  }
 0x4bf   :  { %6099 = vmatprep.subr.bf16.mxu0 %v14980_v50  ;;  %v17312_v50 = vsub.s32 6, %v17213_v10  ;;  %v15031_v10 = vld [vmem:[#allocation13 + $0x3d4] ss:$8 sps:$4 sm:$0xff]  }
 0x4c1   :  { %v4260_v22 = vrot.slane %v16059_v63, %v17312_v50  ;;  %v15077_v63 = vld [vmem:[#allocation13 + $0x4d0] ss:$8 sps:$4 sm:$0xff]  }
 0x4c2   :  { %6100 = vmatpush1.bf16.msra.mxu0 %v14978_v44  ;;  %v17314_v44 = vld [vmem:[#allocation8 + $0x8] sm:$0xff] }
 0x4c3   :  { %6101 = vmatprep.subr.bf16.mxu0 %v14983_v46  ;;  %v16058_v46 = vld [vmem:[#allocation8] sm:$0xff]  ;;  %v956_v51 = vrot.slane %v17314_v44, %v17216_v20 }
 0x4c4   :  { %v944_v48 = vrot.slane %v16058_v46, %v17312_v50  ;;  %v15068_v46 = vld [vmem:[#allocation13 + $0x4a0] ss:$8 sps:$4 sm:$0xff]  }
 0x4c5   :  { %v14680_v55 = vadd.f32 %v17260_v14, %v956_v51  ;;  %v16060_v14 = vld [vmem:[#allocation11] sm:$0xff]  ;;  %v952_v51 = vrot.slane %v17314_v44, %v17235_v9 }
 0x4c6   :  { %6102 = vmatpush1.bf16.msra.mxu0 %v14981_v49  ;;  %v15028_v49 = vld [vmem:[#allocation13 + $0x3c4] ss:$8 sps:$4 sm:$0xff]   ;;  %v4360_v23 = vrot.slane %v16060_v14, %v17312_v50 }
 0x4c7   :  { %6103 = vmatprep.subr.bf16.mxu0 %v14986_v53  ;;  %v14677_v53 = vadd.f32 %v17248_v62, %v944_v48  ;;  %v15032_v62 = vld [vmem:[#allocation13 + $0x3e0] ss:$8 sps:$4 sm:$0xff]   ;;  %v15073_v48 = vld [vmem:[#allocation13 + $0x4b4] ss:$8 sps:$4 sm:$0xff]  }
 0x4ca   :  { %6104 = vmatpush1.bf16.msra.mxu0 %v14984_v0  ;;  %v4219_v0 = vmax.f32 %v14677_v53, 0.0  ;;  %v964_v53 = vrot.slane %v17314_v44, %v17238_v13 }
 0x4cb   :  { %6105 = vmatprep.subr.bf16.mxu0 %v14989_v57  ;;  %v4222_v57 = vmax.f32 %v14680_v55, 0.0  ;;  %v14679_v55 = vadd.f32 %v17258_v8, %v952_v51  ;;  %v15121_v51 = vld [vmem:[#allocation13 + $0x5b4] ss:$8 sps:$4 sm:$0xff]  }
 0x4cd   :  { %v4322_v1 = vmul.f32 %v4272_v59, %v4222_v57  ;;  %v15082_v57 = vld [vmem:[#allocation13 + $0x4e4] ss:$8 sps:$4 sm:$0xff]  }
 0x4ce   :  { %6106 = vmatpush1.bf16.msra.mxu0 %v14987_v61  ;;  %v4319_v61 = vmul.f32 %v4260_v22, %v4219_v0  ;;  %v14682_v0 = vadd.f32 %v17301_v56, %v964_v53  ;;  %v4221_v22 = vmax.f32 %v14679_v55, 0.0  ;;  %v960_v53 = vrot.slane %v17314_v44, %v17264_v38 }
 0x4cf   :  { %6116 = vmatprep.subr.bf16.mxu0 %v14992_v47  ;;  %v15037_v47 = vld [vmem:[#allocation13 + $0x3f4] ss:$8 sps:$4 sm:$0xff]   ;;  %v972_v55 = vrot.slane %v17314_v44, %v17267_v40 }
 0x4d1   :  { %6108 = vmatmul.mubr.bf16.vlgmr.msra.gmra.mrb[16].mxu0 %v4433_v3  ;;  %v15035_v3 = vld [vmem:[#allocation13 + $0x3f0] ss:$8 sps:$4 sm:$0xff]  }
 0x4d2   :  { %6117 = vmatpush1.bf16.msra.mxu0 %v14990_v2  ;;  %6148 = vmatprep.mubr.bf16.mxu0 %v4436_v5  ;;  %v4372_v2 = vrot.slane %v17326_v60, %v17216_v20  ;;  %v15040_v5 = vld [vmem:[#allocation13 + $0x404] ss:$8 sps:$4 sm:$0xff]  }
 0x4d3   :  { %6118 = vmatprep.subr.bf16.mxu0 %v14995_v4  ;;  %v4419_v4 = vadd.f32 %v4360_v23, %v4319_v61  ;;  %v4280_v61 = vrot.slane %v17321_v26, %v17238_v13  ;;  %v15080_v23 = vld [vmem:[#allocation13 + $0x4e0] ss:$8 sps:$4 sm:$0xff]  }
 0x4d6   :  { %6119 = vmatpush1.bf16.msra.mxu0 %v14993_v6  ;;  %v4422_v6 = vadd.f32 %v4372_v2, %v4322_v1  ;;  %v4368_v1 = vrot.slane %v17326_v60, %v17235_v9  ;;  %v15085_v2 = vld [vmem:[#allocation13 + $0x4f4] ss:$8 sps:$4 sm:$0xff]  }
 0x4d7   :  { %6120 = vmatprep.subr.bf16.mxu0 %v14998_v7  ;;  %v15038_v7 = vld [vmem:[#allocation13 + $0x400] ss:$8 sps:$4 sm:$0xff]  }
 0x4da   :  { %6121 = vmatpush1.bf16.msra.mxu0 %v14996_v58  ;;  %v4435_v58 = vpack.c.bf16 %v4419_v4, %v4419_v4  ;;  %v4380_v4 = vrot.slane %v17326_v60, %v17238_v13 }
 0x4db   :  { %6122 = vmatprep.subr.bf16.mxu0 %v15001_v11  ;;  %v15043_v11 = vld [vmem:[#allocation13 + $0x414] ss:$8 sps:$4 sm:$0xff]  }
 0x4de   :  { %6123 = vmatpush1.bf16.msra.mxu0 %v14999_v12  ;;  %v4438_v12 = vpack.c.bf16 %v4422_v6, %v4422_v6 }
 0x4df   :  { %6124 = vmatprep.subr.bf16.mxu0 %v15004_v15  ;;  %v15041_v15 = vld [vmem:[#allocation13 + $0x410] ss:$8 sps:$4 sm:$0xff]  }
 0x4e2   :  { %6125 = vmatpush1.bf16.msra.mxu0 %v15002_v16  ;;  %v15046_v16 = vld [vmem:[#allocation13 + $0x424] ss:$8 sps:$4 sm:$0xff]  }
 0x4e3   :  { %6126 = vmatprep.subr.bf16.mxu0 %v15007_v17  ;;  %v15044_v17 = vld [vmem:[#allocation13 + $0x420] ss:$8 sps:$4 sm:$0xff]  }
 0x4e4   :  { %v17307_v21 = vpop.f32.mrb[12].mxu0 }
 0x4e5   :  { %v17309_v24 = vpop.f32.mrb[13].mxu0 }
 0x4e6   :  { %v4128_v25 = vpop.f32.mrb[14].mxu0  ;;  %6127 = vmatpush1.bf16.msra.mxu0 %v15005_v19  ;;  %v15049_v19 = vld [vmem:[#allocation13 + $0x434] ss:$8 sps:$4 sm:$0xff]  }
 0x4e7   :  { %v4129_v28 = vpop.f32.mrb[15].mxu0  ;;  %6128 = vmatprep.subr.bf16.mxu0 %v15010_v18  ;;  %v15047_v18 = vld [vmem:[#allocation13 + $0x430] ss:$8 sps:$4 sm:$0xff]   ;;  %v15052_v25 = vld [vmem:[#allocation13 + $0x444] ss:$8 sps:$4 sm:$0xff]  }
 0x4e8   :  { %v15055_v28 = vld [vmem:[#allocation13 + $0x454] ss:$8 sps:$4 sm:$0xff]  }
 0x4ea   :  { %6129 = vmatpush1.bf16.msra.mxu0 %v15008_v27  ;;  %v15050_v27 = vld [vmem:[#allocation13 + $0x440] ss:$8 sps:$4 sm:$0xff]  }
 0x4eb   :  { %6130 = vmatprep.subr.bf16.mxu0 %v15013_v29  ;;  %v15053_v29 = vld [vmem:[#allocation13 + $0x450] ss:$8 sps:$4 sm:$0xff]  }
 0x4ee   :  { %6131 = vmatpush1.bf16.msra.mxu0 %v15011_v30  ;;  %v15058_v30 = vld [vmem:[#allocation13 + $0x464] ss:$8 sps:$4 sm:$0xff]  }
 0x4ef   :  { %6132 = vmatprep.subr.bf16.mxu0 %v15016_v31  ;;  %v15056_v31 = vld [vmem:[#allocation13 + $0x460] ss:$8 sps:$4 sm:$0xff]  }
 0x4f2   :  { %6133 = vmatpush1.bf16.msra.mxu0 %v15014_v32  ;;  %v15061_v32 = vld [vmem:[#allocation13 + $0x474] ss:$8 sps:$4 sm:$0xff]  }
 0x4f3   :  { %6134 = vmatprep.subr.bf16.mxu0 %v15019_v34  ;;  %v15059_v34 = vld [vmem:[#allocation13 + $0x470] ss:$8 sps:$4 sm:$0xff]  }
 0x4f6   :  { %6135 = vmatpush1.bf16.msra.mxu0 %v15017_v36  ;;  %v15064_v36 = vld [vmem:[#allocation13 + $0x484] ss:$8 sps:$4 sm:$0xff]  }
 0x4f7   :  { %6136 = vmatprep.subr.bf16.mxu0 %v15022_v41  ;;  %v15062_v41 = vld [vmem:[#allocation13 + $0x480] ss:$8 sps:$4 sm:$0xff]  }
 0x4fa   :  { %6137 = vmatpush1.bf16.msra.mxu0 %v15020_v42  ;;  %v15067_v42 = vld [vmem:[#allocation13 + $0x494] ss:$8 sps:$4 sm:$0xff]  }
 0x4fb   :  { %6138 = vmatprep.subr.bf16.mxu0 %v15025_v43  ;;  %v15065_v43 = vld [vmem:[#allocation13 + $0x490] ss:$8 sps:$4 sm:$0xff]  }
 0x4fe   :  { %6139 = vmatpush1.bf16.msra.mxu0 %v15023_v45  ;;  %v15070_v45 = vld [vmem:[#allocation13 + $0x4a4] ss:$8 sps:$4 sm:$0xff]  }
 0x4ff   :  { %6140 = vmatprep.subr.bf16.mxu0 %v15028_v49  ;;  %v15071_v49 = vld [vmem:[#allocation13 + $0x4b0] ss:$8 sps:$4 sm:$0xff]  }
 0x502   :  { %6141 = vmatpush1.bf16.msra.mxu0 %v15026_v52  ;;  %v15076_v52 = vld [vmem:[#allocation13 + $0x4c4] ss:$8 sps:$4 sm:$0xff]  }
 0x503   :  { %6142 = vmatprep.subr.bf16.mxu0 %v15031_v10  ;;  %v15074_v10 = vld [vmem:[#allocation13 + $0x4c0] ss:$8 sps:$4 sm:$0xff]  }
 0x506   :  { %6143 = vmatpush1.bf16.msra.mxu0 %v15029_v33  ;;  %v15079_v33 = vld [vmem:[#allocation13 + $0x4d4] ss:$8 sps:$4 sm:$0xff]  }
 0x507   :  { %6144 = vmatprep.subr.bf16.mxu0 %v15034_v37  ;;  %v4268_v37 = vrot.slane %v17321_v26, %v17235_v9 }
 0x50a   :  { %6145 = vmatpush1.bf16.msra.mxu0 %v15032_v62  ;;  %v4224_v62 = vmax.f32 %v14682_v0, 0.0  ;;  %v14681_v0 = vadd.f32 %v17297_v54, %v960_v53  ;;  %v4376_v54 = vrot.slane %v17326_v60, %v17264_v38  ;;  %v15157_v53 = vld [vmem:[#allocation13 + $0x674] ss:$8 sps:$4 sm:$0xff]  }
 0x50b   :  { %6146 = vmatprep.subr.bf16.mxu0 %v15037_v47  ;;  %v4321_v47 = vmul.f32 %v4268_v37, %v4221_v22  ;;  %v14684_v22 = vadd.f32 %v17309_v24, %v972_v55  ;;  %v15125_v37 = vld [vmem:[#allocation13 + $0x5d0] ss:$8 sps:$4 sm:$0xff]   ;;  %v15133_v24 = vld [vmem:[#allocation13 + $0x5f4] ss:$8 sps:$4 sm:$0xff]   ;;  %v15160_v55 = vld [vmem:[#allocation13 + $0x684] ss:$8 sps:$4 sm:$0xff]  }
 0x50d   :  { %v4421_v6 = vadd.f32 %v4368_v1, %v4321_v47 }
 0x50e   :  { %6147 = vmatpush1.bf16.msra.mxu0 %v15035_v3  ;;  %v4324_v3 = vmul.f32 %v4280_v61, %v4224_v62  ;;  %v4276_v62 = vrot.slane %v17321_v26, %v17264_v38  ;;  %v15130_v61 = vld [vmem:[#allocation13 + $0x5e4] ss:$8 sps:$4 sm:$0xff]  }
 0x50f   :  { %6157 = vmatprep.subr.bf16.mxu0 %v15040_v5  ;;  %v15083_v5 = vld [vmem:[#allocation13 + $0x4f0] ss:$8 sps:$4 sm:$0xff]  }
 0x511   :  { %6149 = vmatmul.mubr.bf16.vlgmr.msra.gmra.mrb[16].mxu0 %v4435_v58  ;;  %v4424_v58 = vadd.f32 %v4380_v4, %v4324_v3  ;;  %v15131_v3 = vld [vmem:[#allocation13 + $0x5f0] ss:$8 sps:$4 sm:$0xff]  }
 0x512   :  { %6158 = vmatpush1.bf16.msra.mxu0 %v15038_v7  ;;  %6189 = vmatprep.mubr.bf16.mxu0 %v4438_v12  ;;  %v15088_v7 = vld [vmem:[#allocation13 + $0x504] ss:$8 sps:$4 sm:$0xff]   ;;  %v4437_v12 = vpack.c.bf16 %v4421_v6, %v4421_v6 }
 0x513   :  { %6159 = vmatprep.subr.bf16.mxu0 %v15043_v11  ;;  %v15086_v11 = vld [vmem:[#allocation13 + $0x500] ss:$8 sps:$4 sm:$0xff]  }
 0x516   :  { %6160 = vmatpush1.bf16.msra.mxu0 %v15041_v15  ;;  %v15091_v15 = vld [vmem:[#allocation13 + $0x514] ss:$8 sps:$4 sm:$0xff]  }
 0x517   :  { %6161 = vmatprep.subr.bf16.mxu0 %v15046_v16  ;;  %v4440_v16 = vpack.c.bf16 %v4424_v58, %v4424_v58 }
 0x51a   :  { %6162 = vmatpush1.bf16.msra.mxu0 %v15044_v17  ;;  %v15089_v17 = vld [vmem:[#allocation13 + $0x510] ss:$8 sps:$4 sm:$0xff]  }
 0x51b   :  { %6163 = vmatprep.subr.bf16.mxu0 %v15049_v19  ;;  %v15094_v19 = vld [vmem:[#allocation13 + $0x524] ss:$8 sps:$4 sm:$0xff]  }
 0x51e   :  { %6164 = vmatpush1.bf16.msra.mxu0 %v15047_v18  ;;  %v15092_v18 = vld [vmem:[#allocation13 + $0x520] ss:$8 sps:$4 sm:$0xff]  }
 0x51f   :  { %6165 = vmatprep.subr.bf16.mxu0 %v15052_v25  ;;  %v15097_v25 = vld [vmem:[#allocation13 + $0x534] ss:$8 sps:$4 sm:$0xff]  }
 0x522   :  { %6166 = vmatpush1.bf16.msra.mxu0 %v15050_v27  ;;  %v15095_v27 = vld [vmem:[#allocation13 + $0x530] ss:$8 sps:$4 sm:$0xff]  }
 0x523   :  { %6167 = vmatprep.subr.bf16.mxu0 %v15055_v28  ;;  %v15100_v28 = vld [vmem:[#allocation13 + $0x544] ss:$8 sps:$4 sm:$0xff]  }
 0x526   :  { %6168 = vmatpush1.bf16.msra.mxu0 %v15053_v29  ;;  %v15098_v29 = vld [vmem:[#allocation13 + $0x540] ss:$8 sps:$4 sm:$0xff]  }
 0x527   :  { %6169 = vmatprep.subr.bf16.mxu0 %v15058_v30  ;;  %v15103_v30 = vld [vmem:[#allocation13 + $0x554] ss:$8 sps:$4 sm:$0xff]  }
 0x52a   :  { %6170 = vmatpush1.bf16.msra.mxu0 %v15056_v31  ;;  %v15101_v31 = vld [vmem:[#allocation13 + $0x550] ss:$8 sps:$4 sm:$0xff]  }
 0x52b   :  { %6171 = vmatprep.subr.bf16.mxu0 %v15061_v32  ;;  %v15106_v32 = vld [vmem:[#allocation13 + $0x564] ss:$8 sps:$4 sm:$0xff]  }
 0x52e   :  { %6172 = vmatpush1.bf16.msra.mxu0 %v15059_v34  ;;  %v15104_v34 = vld [vmem:[#allocation13 + $0x560] ss:$8 sps:$4 sm:$0xff]  }
 0x52f   :  { %6173 = vmatprep.subr.bf16.mxu0 %v15064_v36  ;;  %v15109_v36 = vld [vmem:[#allocation13 + $0x574] ss:$8 sps:$4 sm:$0xff]  }
 0x531   :  { %v17339_v59 = vpop.f32.mrb[12].mxu1 }
 0x532   :  { %6174 = vmatpush1.bf16.msra.mxu0 %v15062_v41  ;;  %v17343_v14 = vpop.f32.mrb[13].mxu1  ;;  %v15107_v41 = vld [vmem:[#allocation13 + $0x570] ss:$8 sps:$4 sm:$0xff]  }
 0x533   :  { %6175 = vmatprep.subr.bf16.mxu0 %v15067_v42  ;;  %v4210_v8 = vpop.f32.mrb[14].mxu1  ;;  %v15112_v42 = vld [vmem:[#allocation13 + $0x584] ss:$8 sps:$4 sm:$0xff]  }
 0x534   :  { %v4211_v56 = vpop.f32.mrb[15].mxu1  ;;  %v4226_v8 = vmax.f32 %v14684_v22, 0.0  ;;  %v15166_v22 = vld [vmem:[#allocation13 + $0x6a4] ss:$8 sps:$4 sm:$0xff]  }
 0x535   :  { %v15128_v56 = vld [vmem:[#allocation13 + $0x5e0] ss:$8 sps:$4 sm:$0xff]  }
 0x536   :  { %6176 = vmatpush1.bf16.msra.mxu0 %v15065_v43  ;;  %v15110_v43 = vld [vmem:[#allocation13 + $0x580] ss:$8 sps:$4 sm:$0xff]  }
 0x537   :  { %6177 = vmatprep.subr.bf16.mxu0 %v15070_v45  ;;  %v15115_v45 = vld [vmem:[#allocation13 + $0x594] ss:$8 sps:$4 sm:$0xff]  }
 0x53a   :  { %6178 = vmatpush1.bf16.msra.mxu0 %v15068_v46  ;;  %v15113_v46 = vld [vmem:[#allocation13 + $0x590] ss:$8 sps:$4 sm:$0xff]  }
 0x53b   :  { %6179 = vmatprep.subr.bf16.mxu0 %v15073_v48  ;;  %v15118_v48 = vld [vmem:[#allocation13 + $0x5a4] ss:$8 sps:$4 sm:$0xff]  }
 0x53e   :  { %6180 = vmatpush1.bf16.msra.mxu0 %v15071_v49  ;;  %v15116_v49 = vld [vmem:[#allocation13 + $0x5a0] ss:$8 sps:$4 sm:$0xff]  }
 0x53f   :  { %6181 = vmatprep.subr.bf16.mxu0 %v15076_v52  ;;  %v15119_v52 = vld [vmem:[#allocation13 + $0x5b0] ss:$8 sps:$4 sm:$0xff]  }
 0x542   :  { %6182 = vmatpush1.bf16.msra.mxu0 %v15074_v10  ;;  %v15124_v10 = vld [vmem:[#allocation13 + $0x5c4] ss:$8 sps:$4 sm:$0xff]  }
 0x543   :  { %6183 = vmatprep.subr.bf16.mxu0 %v15079_v33  ;;  %v15122_v33 = vld [vmem:[#allocation13 + $0x5c0] ss:$8 sps:$4 sm:$0xff]  }
 0x546   :  { %6184 = vmatpush1.bf16.msra.mxu0 %v15077_v63  ;;  %v15127_v63 = vld [vmem:[#allocation13 + $0x5d4] ss:$8 sps:$4 sm:$0xff]  }
 0x547   :  { %6185 = vmatprep.subr.bf16.mxu0 %v15082_v57  ;;  %v4223_v57 = vmax.f32 %v14681_v0, 0.0  ;;  %v15163_v0 = vld [vmem:[#allocation13 + $0x694] ss:$8 sps:$4 sm:$0xff]  }
 0x549   :  { %v4323_v47 = vmul.f32 %v4276_v62, %v4223_v57  ;;  %v15169_v57 = vld [vmem:[#allocation13 + $0x6b4] ss:$8 sps:$4 sm:$0xff]   ;;  %v15167_v62 = vld [vmem:[#allocation13 + $0x6b0] ss:$8 sps:$4 sm:$0xff]  }
 0x54a   :  { %6186 = vmatpush1.bf16.msra.mxu0 %v15080_v23  ;;  %v4288_v23 = vrot.slane %v17321_v26, %v17267_v40 }
 0x54b   :  { %6187 = vmatprep.subr.bf16.mxu0 %v15085_v2  ;;  %v4388_v2 = vrot.slane %v17326_v60, %v17267_v40  ;;  %v4423_v4 = vadd.f32 %v4376_v54, %v4323_v47  ;;  %v15175_v54 = vld [vmem:[#allocation13 + $0x6d4] ss:$8 sps:$4 sm:$0xff]  }
 0x54c   :  { %v4326_v1 = vmul.f32 %v4288_v23, %v4226_v8  ;;  %v15172_v8 = vld [vmem:[#allocation13 + $0x6c4] ss:$8 sps:$4 sm:$0xff]   ;;  %v980_v23 = vrot.slane %v17314_v44, %v17287_v39 }
 0x54d   :  { %v4439_v58 = vpack.c.bf16 %v4423_v4, %v4423_v4  ;;  %v15178_v4 = vld [vmem:[#allocation13 + $0x6e4] ss:$8 sps:$4 sm:$0xff]  }
 0x54e   :  { %6188 = vmatpush1.bf16.msra.mxu0 %v15083_v5  ;;  %v15136_v5 = vld [vmem:[#allocation13 + $0x604] ss:$8 sps:$4 sm:$0xff]   ;;  %v4426_v6 = vadd.f32 %v4388_v2, %v4326_v1  ;;  %v15173_v1 = vld [vmem:[#allocation13 + $0x6d0] ss:$8 sps:$4 sm:$0xff]  }
 0x54f   :  { %6198 = vmatprep.subr.bf16.mxu0 %v15088_v7  ;;  %v15134_v7 = vld [vmem:[#allocation13 + $0x600] ss:$8 sps:$4 sm:$0xff]  }
 0x551   :  { %6190 = vmatmul.mubr.bf16.vlgmr.msra.gmra.mrb[16].mxu0 %v4437_v12  ;;  %v4442_v12 = vpack.c.bf16 %v4426_v6, %v4426_v6  ;;  %v4296_v6 = vrot.slane %v17321_v26, %v17287_v39 }
 0x552   :  { %6199 = vmatpush1.bf16.msra.mxu0 %v15086_v11  ;;  %6230 = vmatprep.mubr.bf16.mxu0 %v4440_v16  ;;  %v15139_v11 = vld [vmem:[#allocation13 + $0x614] ss:$8 sps:$4 sm:$0xff]   ;;  %v15231_v16 = vld [vmem:[#allocation16] sm:$0xff]  }
 0x553   :  { %6200 = vmatprep.subr.bf16.mxu0 %v15091_v15  ;;  %v15230_v15 = vld [vmem:[#allocation16 + $0x40] sm:$0xff]  }
 0x554   :  { %14575 = vmatprep.subr.bf16.mxu1 %v15230_v15  ;;  %v15179_v15 = vld [vmem:[#allocation13 + $0x6f0] ss:$8 sps:$4 sm:$0xff]  }
 0x555   :  { %14576 = vmatpush3.bf16.msra.mxu1 %v15231_v16 }
 0x556   :  { %6201 = vmatpush1.bf16.msra.mxu0 %v15089_v17  ;;  %v15232_v17 = vld [vmem:[#allocation16 + $0x48] sm:$0xff]  }
 0x557   :  { %6202 = vmatprep.subr.bf16.mxu0 %v15094_v19  ;;  %v15137_v19 = vld [vmem:[#allocation13 + $0x610] ss:$8 sps:$4 sm:$0xff]   ;;  %14577 = vmatprep.subr.bf16.mxu1 %v15232_v17  ;;  %v15184_v17 = vld [vmem:[#allocation13 + $0x704] ss:$8 sps:$4 sm:$0xff]  }
 0x55a   :  { %6203 = vmatpush1.bf16.msra.mxu0 %v15092_v18  ;;  %v15142_v18 = vld [vmem:[#allocation13 + $0x624] ss:$8 sps:$4 sm:$0xff]  }
 0x55b   :  { %6204 = vmatprep.subr.bf16.mxu0 %v15097_v25  ;;  %v15233_v25 = vld [vmem:[#allocation16 + $0x8] sm:$0xff]  }
 0x55c   :  { %14578 = vmatpush3.bf16.msra.mxu1 %v15233_v25 }
 0x55e   :  { %6205 = vmatpush1.bf16.msra.mxu0 %v15095_v27  ;;  %v15234_v27 = vld [vmem:[#allocation16 + $0x50] sm:$0xff]  }
 0x55f   :  { %6206 = vmatprep.subr.bf16.mxu0 %v15100_v28  ;;  %v15140_v28 = vld [vmem:[#allocation13 + $0x620] ss:$8 sps:$4 sm:$0xff]   ;;  %14579 = vmatprep.subr.bf16.mxu1 %v15234_v27  ;;  %v15187_v27 = vld [vmem:[#allocation13 + $0x714] ss:$8 sps:$4 sm:$0xff]  }
 0x562   :  { %6207 = vmatpush1.bf16.msra.mxu0 %v15098_v29  ;;  %v15145_v29 = vld [vmem:[#allocation13 + $0x634] ss:$8 sps:$4 sm:$0xff]  }
 0x563   :  { %6208 = vmatprep.subr.bf16.mxu0 %v15103_v30  ;;  %v15235_v30 = vld [vmem:[#allocation16 + $0x10] sm:$0xff]  }
 0x564   :  { %14580 = vmatpush3.bf16.msra.mxu1 %v15235_v30  ;;  %v15190_v30 = vld [vmem:[#allocation13 + $0x724] ss:$8 sps:$4 sm:$0xff]  }
 0x566   :  { %6209 = vmatpush1.bf16.msra.mxu0 %v15101_v31  ;;  %v15236_v31 = vld [vmem:[#allocation16 + $0x58] sm:$0xff]  }
 0x567   :  { %6210 = vmatprep.subr.bf16.mxu0 %v15106_v32  ;;  %v15143_v32 = vld [vmem:[#allocation13 + $0x630] ss:$8 sps:$4 sm:$0xff]   ;;  %14581 = vmatprep.subr.bf16.mxu1 %v15236_v31  ;;  %v15188_v31 = vld [vmem:[#allocation13 + $0x720] ss:$8 sps:$4 sm:$0xff]  }
 0x56a   :  { %6211 = vmatpush1.bf16.msra.mxu0 %v15104_v34  ;;  %v15148_v34 = vld [vmem:[#allocation13 + $0x644] ss:$8 sps:$4 sm:$0xff]  }
 0x56b   :  { %6212 = vmatprep.subr.bf16.mxu0 %v15109_v36  ;;  %v15237_v36 = vld [vmem:[#allocation16 + $0x18] sm:$0xff]  }
 0x56c   :  { %14582 = vmatpush3.bf16.msra.mxu1 %v15237_v36  ;;  %v15196_v36 = vld [vmem:[#allocation13 + $0x744] ss:$8 sps:$4 sm:$0xff]  }
 0x56e   :  { %6213 = vmatpush1.bf16.msra.mxu0 %v15107_v41  ;;  %v15238_v41 = vld [vmem:[#allocation16 + $0x60] sm:$0xff]  }
 0x56f   :  { %6214 = vmatprep.subr.bf16.mxu0 %v15112_v42  ;;  %v15146_v42 = vld [vmem:[#allocation13 + $0x640] ss:$8 sps:$4 sm:$0xff]   ;;  %14583 = vmatprep.subr.bf16.mxu1 %v15238_v41 }
 0x570   :  { %v15194_v41 = vld [vmem:[#allocation13 + $0x740] ss:$8 sps:$4 sm:$0xff]  }
 0x572   :  { %6215 = vmatpush1.bf16.msra.mxu0 %v15110_v43  ;;  %v15151_v43 = vld [vmem:[#allocation13 + $0x654] ss:$8 sps:$4 sm:$0xff]  }
 0x573   :  { %6216 = vmatprep.subr.bf16.mxu0 %v15115_v45  ;;  %v15239_v45 = vld [vmem:[#allocation16 + $0x20] sm:$0xff]  }
 0x574   :  { %14584 = vmatpush3.bf16.msra.mxu1 %v15239_v45  ;;  %v15202_v45 = vld [vmem:[#allocation13 + $0x764] ss:$8 sps:$4 sm:$0xff]  }
 0x576   :  { %6217 = vmatpush1.bf16.msra.mxu0 %v15113_v46  ;;  %v15240_v46 = vld [vmem:[#allocation16 + $0x68] sm:$0xff]  }
 0x577   :  { %6218 = vmatprep.subr.bf16.mxu0 %v15118_v48  ;;  %v15149_v48 = vld [vmem:[#allocation13 + $0x650] ss:$8 sps:$4 sm:$0xff]   ;;  %14585 = vmatprep.subr.bf16.mxu1 %v15240_v46  ;;  %v15200_v46 = vld [vmem:[#allocation13 + $0x760] ss:$8 sps:$4 sm:$0xff]  }
 0x57a   :  { %6219 = vmatpush1.bf16.msra.mxu0 %v15116_v49  ;;  %v15154_v49 = vld [vmem:[#allocation13 + $0x664] ss:$8 sps:$4 sm:$0xff]  }
 0x57b   :  { %6220 = vmatprep.subr.bf16.mxu0 %v15121_v51  ;;  %v15241_v51 = vld [vmem:[#allocation16 + $0x28] sm:$0xff]  }
 0x57c   :  { %14586 = vmatpush3.bf16.msra.mxu1 %v15241_v51  ;;  %v15208_v51 = vld [vmem:[#allocation13 + $0x784] ss:$8 sps:$4 sm:$0xff]  }
 0x57e   :  { %6221 = vmatpush1.bf16.msra.mxu0 %v15119_v52  ;;  %v15152_v52 = vld [vmem:[#allocation13 + $0x660] ss:$8 sps:$4 sm:$0xff]  }
 0x57f   :  { %6222 = vmatprep.subr.bf16.mxu0 %v15124_v10  ;;  %v15155_v10 = vld [vmem:[#allocation13 + $0x670] ss:$8 sps:$4 sm:$0xff]  }
 0x582   :  { %6223 = vmatpush1.bf16.msra.mxu0 %v15122_v33  ;;  %v15158_v33 = vld [vmem:[#allocation13 + $0x680] ss:$8 sps:$4 sm:$0xff]  }
 0x583   :  { %6224 = vmatprep.subr.bf16.mxu0 %v15127_v63  ;;  %v15161_v63 = vld [vmem:[#allocation13 + $0x690] ss:$8 sps:$4 sm:$0xff]  }
 0x586   :  { %6225 = vmatpush1.bf16.msra.mxu0 %v15125_v37  ;;  %v15164_v37 = vld [vmem:[#allocation13 + $0x6a0] ss:$8 sps:$4 sm:$0xff]  }
 0x587   :  { %6226 = vmatprep.subr.bf16.mxu0 %v15130_v61  ;;  %v968_v61 = vrot.slane %v17314_v44, %v17284_v35 }
 0x589   :  { %v14683_v47 = vadd.f32 %v17307_v21, %v968_v61  ;;  %v4384_v21 = vrot.slane %v17326_v60, %v17284_v35  ;;  %v15223_v61 = vld [vmem:[#allocation13 + $0x7d4] ss:$8 sps:$4 sm:$0xff]  }
 0x58a   :  { %6227 = vmatpush1.bf16.msra.mxu0 %v15128_v56  ;;  %v15170_v56 = vld [vmem:[#allocation13 + $0x6c0] ss:$8 sps:$4 sm:$0xff]  }
 0x58b   :  { %6228 = vmatprep.subr.bf16.mxu0 %v15133_v24  ;;  %v14686_v24 = vadd.f32 %v17343_v14, %v980_v23  ;;  %v4225_v2 = vmax.f32 %v14683_v47, 0.0  ;;  %v15181_v14 = vld [vmem:[#allocation13 + $0x6f4] ss:$8 sps:$4 sm:$0xff]   ;;  %v15226_v47 = vld [vmem:[#allocation13 + $0x7e4] ss:$8 sps:$4 sm:$0xff]  }
 0x58e   :  { %6229 = vmatpush1.bf16.msra.mxu0 %v15131_v3  ;;  %v4284_v3 = vrot.slane %v17321_v26, %v17284_v35 }
 0x58f   :  { %6239 = vmatprep.subr.bf16.mxu0 %v15136_v5  ;;  %v4228_v5 = vmax.f32 %v14686_v24, 0.0 }
 0x591   :  { %6231 = vmatmul.mubr.bf16.vlgmr.msra.gmra.mrb[16].mxu0 %v4439_v58  ;;  %v4325_v58 = vmul.f32 %v4284_v3, %v4225_v2 }
 0x592   :  { %6240 = vmatpush1.bf16.msra.mxu0 %v15134_v7  ;;  %6271 = vmatprep.mubr.bf16.mxu0 %v4442_v12  ;;  %v15176_v7 = vld [vmem:[#allocation13 + $0x6e0] ss:$8 sps:$4 sm:$0xff]   ;;  %v4396_v12 = vrot.slane %v17326_v60, %v17287_v39 }
 0x593   :  { %6241 = vmatprep.subr.bf16.mxu0 %v15139_v11  ;;  %v4328_v11 = vmul.f32 %v4296_v6, %v4228_v5  ;;  %v4425_v16 = vadd.f32 %v4384_v21, %v4325_v58  ;;  %v15243_v5 = vld [vmem:[#allocation16 + $0x30] sm:$0xff]   ;;  %v15245_v6 = vld [vmem:[#allocation16 + $0x38] sm:$0xff]  }
 0x595   :  { %v4441_v25 = vpack.c.bf16 %v4425_v16, %v4425_v16 }
 0x596   :  { %6242 = vmatpush1.bf16.msra.mxu0 %v15137_v19  ;;  %v4428_v19 = vadd.f32 %v4396_v12, %v4328_v11 }
 0x597   :  { %6243 = vmatprep.subr.bf16.mxu0 %v15142_v18  ;;  %v15182_v18 = vld [vmem:[#allocation13 + $0x700] ss:$8 sps:$4 sm:$0xff]  }
 0x59a   :  { %6244 = vmatpush1.bf16.msra.mxu0 %v15140_v28  ;;  %v4444_v28 = vpack.c.bf16 %v4428_v19, %v4428_v19 }
 0x59b   :  { %6245 = vmatprep.subr.bf16.mxu0 %v15145_v29  ;;  %v15185_v29 = vld [vmem:[#allocation13 + $0x710] ss:$8 sps:$4 sm:$0xff]  }
 0x59e   :  { %6246 = vmatpush1.bf16.msra.mxu0 %v15143_v32  ;;  %v15193_v32 = vld [vmem:[#allocation13 + $0x734] ss:$8 sps:$4 sm:$0xff]  }
 0x59f   :  { %6247 = vmatprep.subr.bf16.mxu0 %v15148_v34  ;;  %v15191_v34 = vld [vmem:[#allocation13 + $0x730] ss:$8 sps:$4 sm:$0xff]  }
 0x5a2   :  { %6248 = vmatpush1.bf16.msra.mxu0 %v15146_v42  ;;  %v15199_v42 = vld [vmem:[#allocation13 + $0x754] ss:$8 sps:$4 sm:$0xff]  }
 0x5a3   :  { %6249 = vmatprep.subr.bf16.mxu0 %v15151_v43  ;;  %v15197_v43 = vld [vmem:[#allocation13 + $0x750] ss:$8 sps:$4 sm:$0xff]  }
 0x5a6   :  { %6250 = vmatpush1.bf16.msra.mxu0 %v15149_v48  ;;  %v15205_v48 = vld [vmem:[#allocation13 + $0x774] ss:$8 sps:$4 sm:$0xff]  }
 0x5a7   :  { %6251 = vmatprep.subr.bf16.mxu0 %v15154_v49  ;;  %v15203_v49 = vld [vmem:[#allocation13 + $0x770] ss:$8 sps:$4 sm:$0xff]  }
 0x5aa   :  { %6252 = vmatpush1.bf16.msra.mxu0 %v15152_v52  ;;  %v15206_v52 = vld [vmem:[#allocation13 + $0x780] ss:$8 sps:$4 sm:$0xff]  }
 0x5ab   :  { %6253 = vmatprep.subr.bf16.mxu0 %v15157_v53  ;;  %v15211_v53 = vld [vmem:[#allocation13 + $0x794] ss:$8 sps:$4 sm:$0xff]  }
 0x5ae   :  { %6254 = vmatpush1.bf16.msra.mxu0 %v15155_v10  ;;  %v15209_v10 = vld [vmem:[#allocation13 + $0x790] ss:$8 sps:$4 sm:$0xff]  }
 0x5af   :  { %6255 = vmatprep.subr.bf16.mxu0 %v15160_v55  ;;  %v15214_v55 = vld [vmem:[#allocation13 + $0x7a4] ss:$8 sps:$4 sm:$0xff]  }
 0x5b2   :  { %6256 = vmatpush1.bf16.msra.mxu0 %v15158_v33  ;;  %v15212_v33 = vld [vmem:[#allocation13 + $0x7a0] ss:$8 sps:$4 sm:$0xff]  }
 0x5b3   :  { %6257 = vmatprep.subr.bf16.mxu0 %v15163_v0  ;;  %v15217_v0 = vld [vmem:[#allocation13 + $0x7b4] ss:$8 sps:$4 sm:$0xff]  }
 0x5b6   :  { %6258 = vmatpush1.bf16.msra.mxu0 %v15161_v63  ;;  %v15215_v63 = vld [vmem:[#allocation13 + $0x7b0] ss:$8 sps:$4 sm:$0xff]  }
 0x5b7   :  { %6259 = vmatprep.subr.bf16.mxu0 %v15166_v22  ;;  %v976_v22 = vrot.slane %v17314_v44, %v17312_v50  ;;  %v4392_v44 = vrot.slane %v17326_v60, %v17312_v50  ;;  %v4701_v60 = vld [vmem:[#allocation14] sm:$0x3] }
 0x5b8   :  { %v4706_v58 = vrot.slane %v4701_v60, %v17235_v9  ;;  %v4710_v21 = vrot.slane %v4701_v60, %v17216_v20 }
 0x5ba   :  { %6260 = vmatpush1.bf16.msra.mxu0 %v15164_v37  ;;  %v15220_v37 = vld [vmem:[#allocation13 + $0x7c4] ss:$8 sps:$4 sm:$0xff]  }
 0x5bb   :  { %6261 = vmatprep.subr.bf16.mxu0 %v15169_v57  ;;  %v15218_v57 = vld [vmem:[#allocation13 + $0x7c0] ss:$8 sps:$4 sm:$0xff]  }
 0x5be   :  { %6262 = vmatpush1.bf16.msra.mxu0 %v15167_v62  ;;  %v14685_v62 = vadd.f32 %v17339_v59, %v976_v22  ;;  %v15227_v59 = vld [vmem:[#allocation13 + $0x7f0] ss:$8 sps:$4 sm:$0xff]  }
 0x5bf   :  { %6263 = vmatprep.subr.bf16.mxu0 %v15172_v8  ;;  %v15221_v8 = vld [vmem:[#allocation13 + $0x7d0] ss:$8 sps:$4 sm:$0xff]  }
 0x5c0   :  { %v4227_v23 = vmax.f32 %v14685_v62, 0.0 }
 0x5c2   :  { %6264 = vmatpush1.bf16.msra.mxu0 %v15170_v56  ;;  %v4292_v56 = vrot.slane %v17321_v26, %v17312_v50  ;;  %v15244_v26 = vld [vmem:[#allocation16 + $0x78] sm:$0xff]  }
 0x5c3   :  { %6265 = vmatprep.subr.bf16.mxu0 %v15175_v54  ;;  %v15224_v54 = vld [vmem:[#allocation13 + $0x7e0] ss:$8 sps:$4 sm:$0xff]  }
 0x5c4   :  { %v4327_v24 = vmul.f32 %v4292_v56, %v4227_v23  ;;  %v15258_v56 = vld [vmem:[#allocation23] sm:$0xff]  }
 0x5c6   :  { %6266 = vmatpush1.bf16.msra.mxu0 %v15173_v1  ;;  %v15229_v1 = vld [vmem:[#allocation13 + $0x7f4] ss:$8 sps:$4 sm:$0xff]   ;;  %v4427_v2 = vadd.f32 %v4392_v44, %v4327_v24 }
 0x5c7   :  { %6267 = vmatprep.subr.bf16.mxu0 %v15178_v4  ;;  %v15242_v4 = vld [vmem:[#allocation16 + $0x70] sm:$0xff]  }
 0x5c8   :  { %v4443_v3 = vpack.c.bf16 %v4427_v2, %v4427_v2  ;;  %14587 = vmatprep.subr.bf16.mxu1 %v15242_v4  ;;  %v15259_v4 = vld [vmem:[#allocation23 + $0x8] sm:$0xff]  }
 0x5c9   :  { %14588 = vmatpush3.bf16.msra.mxu1 %v15243_v5 }
 0x5ca   :  { %6268 = vmatpush1.bf16.msra.mxu0 %v15176_v7  ;;  %14589 = vmatprep.subr.bf16.mxu1 %v15244_v26  ;;  %v16696_v7 = vmov 0.0   ;;  %v6699_v26 = vld [vmem:[#allocation5] sm:$0xff] }
 0x5cb   :  { %6269 = vmatprep.subr.bf16.mxu0 %v15181_v14 }
 0x5cd   :  { %14590 = vmatpush3.bf16.msra.mxu1 %v15245_v6 }
 0x5ce   :  { %6270 = vmatpush1.bf16.msra.mxu0 %v15179_v15  ;;  %14619 = vmatprep.subr.bf16.mxu1 %v16696_v7 }
 0x5cf   :  { %6280 = vmatprep.subr.bf16.mxu0 %v15184_v17 }
 0x5d1   :  { %6272 = vmatmul.mubr.bf16.vlgmr.msra.gmra.mrb[16].mxu0 %v4441_v25 }
 0x5d2   :  { %6281 = vmatpush1.bf16.msra.mxu0 %v15182_v18  ;;  %6312 = vmatprep.mubr.bf16.mxu0 %v4444_v28 }
 0x5d3   :  { %6282 = vmatprep.subr.bf16.mxu0 %v15187_v27  ;;  %v15246_v27 = vld [vmem:[%s17731_s4] sm:$0xff]  }
 0x5d6   :  { %6283 = vmatpush1.bf16.msra.mxu0 %v15185_v29  ;;  %v15247_v29 = vld [vmem:[%s17731_s4 + $0x8] sm:$0xff]  }
 0x5d7   :  { %6284 = vmatprep.subr.bf16.mxu0 %v15190_v30  ;;  %v15248_v30 = vld [vmem:[%s17731_s4 + $0x10] sm:$0xff]  }
 0x5da   :  { %6285 = vmatpush1.bf16.msra.mxu0 %v15188_v31  ;;  %v15249_v31 = vld [vmem:[%s17731_s4 + $0x18] sm:$0xff]  }
 0x5db   :  { %6286 = vmatprep.subr.bf16.mxu0 %v15193_v32  ;;  %v15250_v32 = vld [vmem:[%s17731_s4 + $0x20] sm:$0xff]  }
 0x5de   :  { %6287 = vmatpush1.bf16.msra.mxu0 %v15191_v34  ;;  %v15251_v34 = vld [vmem:[%s17731_s4 + $0x28] sm:$0xff]  }
 0x5df   :  { %6288 = vmatprep.subr.bf16.mxu0 %v15196_v36  ;;  %v15252_v36 = vld [vmem:[%s17731_s4 + $0x30] sm:$0xff]  }
 0x5e2   :  { %6289 = vmatpush1.bf16.msra.mxu0 %v15194_v41  ;;  %v15253_v41 = vld [vmem:[%s17731_s4 + $0x38] sm:$0xff]  }
 0x5e3   :  { %6290 = vmatprep.subr.bf16.mxu0 %v15199_v42 }
 0x5e6   :  { %6291 = vmatpush1.bf16.msra.mxu0 %v15197_v43  ;;  %v13749_v43 = vld [vmem:[#allocation17] ss:$0 sm:$0xff] }
 0x5e7   :  { %6292 = vmatprep.subr.bf16.mxu0 %v15202_v45 }
 0x5ea   :  { %6293 = vmatpush1.bf16.msra.mxu0 %v15200_v46 }
 0x5eb   :  { %6294 = vmatprep.subr.bf16.mxu0 %v15205_v48 }
 0x5ee   :  { %6295 = vmatpush1.bf16.msra.mxu0 %v15203_v49 }
 0x5ef   :  { %6296 = vmatprep.subr.bf16.mxu0 %v15208_v51 }
 0x5f2   :  { %6297 = vmatpush1.bf16.msra.mxu0 %v15206_v52 }
 0x5f3   :  { %6298 = vmatprep.subr.bf16.mxu0 %v15211_v53  ;;  %v15254_v53 = vld [vmem:[#allocation20] sm:$0xff]  }
 0x5f6   :  { %6299 = vmatpush1.bf16.msra.mxu0 %v15209_v10 }
 0x5f7   :  { %6300 = vmatprep.subr.bf16.mxu0 %v15214_v55  ;;  %v15255_v55 = vld [vmem:[#allocation20 + $0x8] sm:$0xff]  }
 0x5fa   :  { %6301 = vmatpush1.bf16.msra.mxu0 %v15212_v33  ;;  %v15256_v33 = vld [vmem:[#allocation20 + $0x10] sm:$0xff]  }
 0x5fb   :  { %6302 = vmatprep.subr.bf16.mxu0 %v15217_v0  ;;  %v15257_v0 = vld [vmem:[#allocation20 + $0x18] sm:$0xff]  }
 0x5fe   :  { %6303 = vmatpush1.bf16.msra.mxu0 %v15215_v63  ;;  %v13766_v63 = vld [vmem:[#allocation19] ss:$0 sm:$0xff] }
 0x5ff   :  { %6304 = vmatprep.subr.bf16.mxu0 %v15220_v37 }
 0x602   :  { %6305 = vmatpush1.bf16.msra.mxu0 %v15218_v57 }
 0x603   :  { %6306 = vmatprep.subr.bf16.mxu0 %v15223_v61 }
 0x606   :  { %6307 = vmatpush1.bf16.msra.mxu0 %v15221_v8 }
 0x607   :  { %6308 = vmatprep.subr.bf16.mxu0 %v15226_v47  ;;  %v13775_v47 = vld [vmem:[#allocation22] ss:$0 sm:$0xff] }
 0x60a   :  { %6309 = vmatpush1.bf16.msra.mxu0 %v15224_v54 }
 0x60b   :  { %6310 = vmatprep.subr.bf16.mxu0 %v15229_v1 }
 0x60e   :  { %6311 = vmatpush1.bf16.msra.mxu0 %v15227_v59 }
 0x611   :  { %6313 = vmatmul.mubr.bf16.vlgmr.msra.gmra.mrb[16].mxu0 %v4443_v3 }
 0x6e4   :  { %v6314_v14 = vpop.f32.mrb[16].mxu0 }
 0x6e5   :  { %v14687_v11 = vadd.f32 %v6314_v14, %v4706_v58  ;;  %v6316_v12 = vpop.f32.mrb[17].mxu0 }
 0x6e6   :  { %v14688_v15 = vadd.f32 %v6316_v12, %v4710_v21  ;;  %v6318_v16 = vpop.f32.mrb[18].mxu0  ;;  %v15260_v21 = vld [vmem:[#allocation26] sm:$0xff]   ;;  %v15262_v12 = vld [vmem:[#allocation26 + $0x10] sm:$0xff]  }
 0x6e7   :  { %v6321_v17 = vmax.f32 %v14687_v11, 0.0  ;;  %v6319_v19 = vpop.f32.mrb[19].mxu0  ;;  %v15261_v11 = vld [vmem:[#allocation26 + $0x8] sm:$0xff]  }
 0x6e8   :  { %v6322_v18 = vmax.f32 %v14688_v15, 0.0  ;;  %v15263_v15 = vld [vmem:[#allocation26 + $0x18] sm:$0xff]   ;;  %v15266_v16 = vld [vmem:[#allocation29 + $0x4] ss:$8 sps:$4 sm:$0xff]  }
 0x6e9   :  { %v6323_v28 = vpack.c.bf16 %v6321_v17, %v6321_v17  ;;  %v13781_v17 = vld [vmem:[#allocation25] ss:$0 sm:$0xff] }
 0x6ea   :  { %v6324_v25 = vpack.c.bf16 %v6322_v18, %v6322_v18 }
 0x6ec   :  { %6492 = vmatprep.mubr.bf16.mxu1 %v6324_v25 }
 0x6ed   :  { %6493 = vmatmul.mubr.bf16.vlgmr.msra.gmra.mrb[16].mxu1 %v6323_v28 }
 0x6ee   :  { %14620 = vmatpush3.bf16.msra.mxu1 %v15246_v27  ;;  %14635 = vmatprep.mubr.msk.bf16.mxu1 %vm16697_vm0, %v16696_v7 }
 0x6ef   :  { %14621 = vmatprep.subr.bf16.mxu1 %v16696_v7 }
 0x6f2   :  { %14622 = vmatpush3.bf16.msra.mxu1 %v15247_v29 }
 0x6f3   :  { %14623 = vmatprep.subr.bf16.mxu1 %v16696_v7 }
 0x6f6   :  { %14624 = vmatpush3.bf16.msra.mxu1 %v15248_v30  ;;  %v15264_v30 = vld [vmem:[#allocation29] ss:$8 sps:$4 sm:$0xff]  }
 0x6f7   :  { %14625 = vmatprep.subr.bf16.mxu1 %v16696_v7 }
 0x6fa   :  { %14626 = vmatpush3.bf16.msra.mxu1 %v15249_v31 }
 0x6fb   :  { %14627 = vmatprep.subr.bf16.mxu1 %v16696_v7 }
 0x6fe   :  { %14628 = vmatpush3.bf16.msra.mxu1 %v15250_v32  ;;  %v15269_v32 = vld [vmem:[#allocation29 + $0x14] ss:$8 sps:$4 sm:$0xff]  }
 0x6ff   :  { %14629 = vmatprep.subr.bf16.mxu1 %v16696_v7 }
 0x702   :  { %14630 = vmatpush3.bf16.msra.mxu1 %v15251_v34  ;;  %v15267_v34 = vld [vmem:[#allocation29 + $0x10] ss:$8 sps:$4 sm:$0xff]  }
 0x703   :  { %14631 = vmatprep.subr.bf16.mxu1 %v16696_v7 }
 0x706   :  { %14632 = vmatpush3.bf16.msra.mxu1 %v15252_v36  ;;  %v15270_v36 = vld [vmem:[#allocation29 + $0x20] ss:$8 sps:$4 sm:$0xff]  }
 0x707   :  { %14633 = vmatprep.subr.bf16.mxu1 %v16696_v7 }
 0x70a   :  { %14634 = vmatpush3.bf16.msra.mxu1 %v15253_v41  ;;  %v15275_v41 = vld [vmem:[#allocation29 + $0x34] ss:$8 sps:$4 sm:$0xff]  }
 0x70b   :  { %14639 = vmatprep.subr.bf16.mxu1 %v16696_v7 }
 0x7c0   :  { %v14591_v42 = vpop.f32.mrb[16].mxu1 }
 0x7c1   :  { %v14592_v45 = vpop.f32.mrb[17].mxu1 }
 0x7c2   :  { %v14593_v46 = vadd.f32 %v14592_v45, %v14591_v42  ;;  %v14594_v48 = vpop.f32.mrb[18].mxu1  ;;  %v15273_v42 = vld [vmem:[#allocation29 + $0x30] ss:$8 sps:$4 sm:$0xff]   ;;  %v15276_v45 = vld [vmem:[#allocation29 + $0x40] ss:$8 sps:$4 sm:$0xff]  }
 0x7c3   :  { %v14595_v49 = vpop.f32.mrb[19].mxu1  ;;  %v15279_v48 = vld [vmem:[#allocation29 + $0x50] ss:$8 sps:$4 sm:$0xff]  }
 0x7c4   :  { %v6495_v51 = vadd.f32 %v14593_v46, %v13749_v43  ;;  %v15278_v43 = vld [vmem:[#allocation29 + $0x44] ss:$8 sps:$4 sm:$0xff]   ;;  %v15281_v46 = vld [vmem:[#allocation29 + $0x54] ss:$8 sps:$4 sm:$0xff]  }
 0x7c5   :  { %v15284_v49 = vld [vmem:[#allocation29 + $0x64] ss:$8 sps:$4 sm:$0xff]  }
 0x7c6   :  { %v6500_v52 = vmax.f32 %v6495_v51, 0.0  ;;  %v15282_v51 = vld [vmem:[#allocation29 + $0x60] ss:$8 sps:$4 sm:$0xff]  }
 0x7c8   :  { %v6501_v10 = vpack.c.bf16 %v6500_v52, %v6500_v52  ;;  %v15287_v52 = vld [vmem:[#allocation29 + $0x74] ss:$8 sps:$4 sm:$0xff]  }
 0x7ca   :  { %14636 = vmatmul.mubr.bf16.vlgmr.msra.gmra.mrb[20].mxu1 %v6501_v10  ;;  %v16699_v10 = vmov 0  }
 0x7cb   :  { %14640 = vmatpush3.bf16.msra.mxu1 %v15254_v53  ;;  %14647 = vmatprep.mubr.msk.bf16.mxu1 %vm16697_vm0, %v16696_v7  ;;  %v15285_v53 = vld [vmem:[#allocation29 + $0x70] ss:$8 sps:$4 sm:$0xff]  }
 0x7cc   :  { %14641 = vmatprep.subr.bf16.mxu1 %v16696_v7 }
 0x7cf   :  { %14642 = vmatpush3.bf16.msra.mxu1 %v15255_v55  ;;  %v17442_v55 = vld [vmem:[#allocation32] sm:$0xff] }
 0x7d0   :  { %14643 = vmatprep.subr.bf16.mxu1 %v16696_v7 }
 0x7d3   :  { %14644 = vmatpush3.bf16.msra.mxu1 %v15256_v33  ;;  %v17444_v33 = vld [vmem:[#allocation32 + $0x40] sm:$0xff] }
 0x7d4   :  { %14645 = vmatprep.subr.bf16.mxu1 %v16696_v7 }
 0x7d7   :  { %14646 = vmatpush3.bf16.msra.mxu1 %v15257_v0  ;;  %v13807_v0 = vcombine.low %v17442_v55, %v17444_v33 }
 0x7d8   :  { %14651 = vmatprep.subr.bf16.mxu1 %v16696_v7 }
 0x89d   :  { %v6607_v22 = vpop.f32.mrb[20].mxu1 }
 0x89e   :  { %v6608_v37 = vadd.f32 %v13766_v63, %v6607_v22  ;;  %v14637_v57 = vpop.f32.mrb[21].mxu1  ;;  %v13808_v63 = vcombine.high %v17442_v55, %v17444_v33  ;;  %v7022_v22 = vld [vmem:[#allocation32 + $0x30] sm:$0xff] }
 0x89f   :  { %v6610_v62 = vpop.f32.mrb[22].mxu1 }
 0x8a0   :  { %v6613_v61 = vmax.f32 %v6608_v37, 0.0  ;;  %v14638_v8 = vpop.f32.mrb[23].mxu1  ;;  %v7030_v37 = vld [vmem:[#allocation32 + $0x70] sm:$0xff] }
 0x8a1   :  { %v13819_v57 = vcombine.low %v7022_v22, %v7030_v37  ;;  %v13820_v62 = vcombine.high %v7022_v22, %v7030_v37  ;;  %v7046_v8 = vld [vmem:[#allocation32 + $0xf0] sm:$0xff] }
 0x8a2   :  { %v6614_v23 = vpack.c.bf16 %v6613_v61, %v6613_v61  ;;  %v7038_v61 = vld [vmem:[#allocation32 + $0xb0] sm:$0xff] }
 0x8a3   :  { %8882 = vmatprep.subr.bf16.mxu0 %v13820_v62  ;;  %v7238_v22 = vld [vmem:[#allocation32 + $0x6f0] sm:$0xff]  ;;  %v13785_v62 = vld [vmem:[#allocation28] ss:$0 sm:$0xff] }
 0x8a4   :  { %14648 = vmatmul.mubr.msk.bf16.vlgmr.msra.gmra.mrb[24].mxu1 %vm6654_vm1, %v6614_v23  ;;  %8883 = vmatpush1.bf16.msra.mxu0 %v13819_v57  ;;  %v13835_v23 = vcombine.low %v7038_v61, %v7046_v8 }
 0x8a5   :  { %14655 = vmatprep.mubr.msk.bf16.mxu1 %vm16697_vm0, %v16696_v7  ;;  %14652 = vmatpush3.bf16.msra.mxu1 %v15258_v56  ;;  %v13836_v56 = vcombine.high %v7038_v61, %v7046_v8 }
 0x8a6   :  { %14653 = vmatprep.subr.bf16.mxu1 %v16696_v7 }
 0x8a7   :  { %8884 = vmatprep.subr.bf16.mxu0 %v13836_v56 }
 0x8a8   :  { %8885 = vmatpush1.bf16.msra.mxu0 %v13835_v23 }
 0x8a9   :  { %14654 = vmatpush3.bf16.msra.mxu1 %v15259_v4  ;;  %v7086_v4 = vld [vmem:[#allocation32 + $0x230] sm:$0xff] }
 0x8aa   :  { %14659 = vmatprep.subr.bf16.mxu1 %v16696_v7 }
 0x977   :  { %v6692_v54 = vpop.f32.mrb[24].mxu1 }
 0x978   :  { %v6693_v24 = vadd.f32 %v13775_v47, %v6692_v54  ;;  %v14649_v44 = vpop.f32.mrb[25].mxu1  ;;  %v7054_v47 = vld [vmem:[#allocation32 + $0x130] sm:$0xff] }
 0x979   :  { %v6695_v1 = vpop.f32.mrb[26].mxu1  ;;  %v7062_v54 = vld [vmem:[#allocation32 + $0x170] sm:$0xff] }
 0x97a   :  { %6698 = vst.msk [vmem:[%s17693_s27] sm:$0xff] %vm6654_vm1, %v6693_v24  ;;  %v6700_v59 = vmul.f32 0.5, %v6693_v24  ;;  %v14650_v2 = vpop.f32.mrb[27].mxu1  ;;  %v13852_v44 = vcombine.high %v7054_v47, %v7062_v54  ;;  %v7070_v1 = vld [vmem:[#allocation32 + $0x1b0] sm:$0xff]  ;;  %s16700_s27 = smov [#allocation41]  }
 0x97b   :  { %s12956_s17 = sshll.u32 %s16700_s27, 4  ;;  %s12957_s17 = int_to_ptr.vmem [resolvable:$true] %s12956_s17 }
 0x97c   :  { %v6701_v3 = vmul.f32 1.442695, %v6700_v59  ;;  %8886 = vmatprep.subr.bf16.mxu0 %v13852_v44  ;;  %v7078_v59 = vld [vmem:[#allocation32 + $0x1f0] sm:$0xff]  ;;  %s16614_s13 = scalar_lea.vmem %s12957_s17, 512  ;;  %p16619_p5 = scmp.lt.s32.totalorder %s12957_s17, %s12957_s17 }
 0x97d   :  { %v13867_v2 = vcombine.low %v7070_v1, %v7078_v59  ;;  %p16615_p4 = scmp.ne.s32.totalorder %s12957_s17, %s16614_s13  ;;  %p16620_p6 = scmp.lt.s32.totalorder %s16614_s13, %s16614_s13 }
 0x97e   :  { %16056 = vpow2.f32 %v6701_v3  ;;  %v13868_v3 = vcombine.high %v7070_v1, %v7078_v59 }
 0x97f   :  { %p16621_p7 = por %p16620_p6, %p16619_p5 }
 0x981   :  { %p16622_p8 = pnand %p16621_p7, %p16615_p4 }
 0x988   :  { %v16057_v5 = vpop.eup %16056 }
 0x989   :  { %6704 = vrot.lane.b32.xlu0 %v16057_v5, %s16698_s10  ;;  %v7094_v5 = vld [vmem:[#allocation32 + $0x270] sm:$0xff] }
 0x9fb   :  { %v6705_v6 = vpop.permute.xlu0 %6704 }
 0x9fc   :  { %v6707_v60 = vmul.f32 %v6705_v6, %v6699_v26  ;;  %v13883_v26 = vcombine.low %v7086_v4, %v7094_v5  ;;  %v13884_v6 = vcombine.high %v7086_v4, %v7094_v5 }
 0x9fe   :  { %v6708_v58 = vadd.f32 %v6707_v60, %v6693_v24  ;;  %v13851_v24 = vcombine.low %v7054_v47, %v7062_v54  ;;  %v7102_v60 = vld [vmem:[#allocation32 + $0x2b0] sm:$0xff]  ;;  %v7032_v47 = vld [vmem:[#allocation32 + $0x80] sm:$0xff] }
 0x9ff   :  { %v7040_v54 = vld [vmem:[#allocation32 + $0xc0] sm:$0xff] }
 0xa00   :  { %v6709_v14 = vpack.c.bf16 %v6708_v58, %v6708_v58  ;;  %8887 = vmatpush1.bf16.msra.mxu0 %v13851_v24  ;;  %v7110_v58 = vld [vmem:[#allocation32 + $0x2f0] sm:$0xff]  ;;  %v13824_v59 = vcombine.high %v7032_v47, %v7040_v54  ;;  %v13823_v4 = vcombine.low %v7032_v47, %v7040_v54  ;;  %v7248_v47 = vld [vmem:[#allocation32 + $0x740] sm:$0xff] }
 0xa01   :  { %8888 = vmatprep.subr.bf16.mxu0 %v13868_v3  ;;  %v7056_v3 = vld [vmem:[#allocation32 + $0x140] sm:$0xff] }
 0xa02   :  { %14656 = vmatmul.mubr.msk.bf16.vlgmr.msra.gmra.mrb[28].mxu1 %vm6733_vm2, %v6709_v14  ;;  %v13900_v14 = vcombine.high %v7102_v60, %v7110_v58 }
 0xa03   :  { %14660 = vmatpush3.bf16.msra.mxu1 %v15260_v21  ;;  %14667 = vmatprep.mubr.msk.bf16.mxu1 %vm16697_vm0, %v16696_v7  ;;  %v13899_v21 = vcombine.low %v7102_v60, %v7110_v58 }
 0xa04   :  { %14661 = vmatprep.subr.bf16.mxu1 %v16696_v7  ;;  %8889 = vmatpush1.bf16.msra.mxu0 %v13867_v2  ;;  %v7048_v2 = vld [vmem:[#allocation32 + $0x100] sm:$0xff] }
 0xa05   :  { %8890 = vmatprep.subr.bf16.mxu0 %v13884_v6  ;;  %v13840_v5 = vcombine.high %v7048_v2, %v7056_v3  ;;  %v7072_v6 = vld [vmem:[#allocation32 + $0x1c0] sm:$0xff]  ;;  %v13839_v60 = vcombine.low %v7048_v2, %v7056_v3 }
 0xa06   :  { %v7256_v3 = vld [vmem:[#allocation32 + $0x780] sm:$0xff] }
 0xa07   :  { %14662 = vmatpush3.bf16.msra.mxu1 %v15261_v11  ;;  %v7118_v11 = vld [vmem:[#allocation32 + $0x330] sm:$0xff] }
 0xa08   :  { %14663 = vmatprep.subr.bf16.mxu1 %v16696_v7  ;;  %8891 = vmatpush1.bf16.msra.mxu0 %v13883_v26  ;;  %v7064_v26 = vld [vmem:[#allocation32 + $0x180] sm:$0xff] }
 0xa09   :  { %8892 = vmatprep.subr.bf16.mxu0 %v13900_v14  ;;  %v13856_v58 = vcombine.high %v7064_v26, %v7072_v6  ;;  %v7088_v14 = vld [vmem:[#allocation32 + $0x240] sm:$0xff] }
 0xa0b   :  { %14664 = vmatpush3.bf16.msra.mxu1 %v15262_v12  ;;  %v7126_v12 = vld [vmem:[#allocation32 + $0x370] sm:$0xff] }
 0xa0c   :  { %14665 = vmatprep.subr.bf16.mxu1 %v16696_v7  ;;  %v15272_v7 = vld [vmem:[#allocation29 + $0x24] ss:$8 sps:$4 sm:$0xff]   ;;  %8893 = vmatpush1.bf16.msra.mxu0 %v13899_v21 }
 0xa0d   :  { %v7080_v21 = vld [vmem:[#allocation32 + $0x200] sm:$0xff] }
 0xa0e   :  { %v13871_v55 = vcombine.low %v7080_v21, %v7088_v14 }
 0xa0f   :  { %14666 = vmatpush3.bf16.msra.mxu1 %v15263_v15  ;;  %v13915_v15 = vcombine.low %v7118_v11, %v7126_v12 }
 0xa10   :  { %6971 = vmatprep.subr.bf16.mxu1 %v15266_v16  ;;  %v13916_v16 = vcombine.high %v7118_v11, %v7126_v12  ;;  %v13855_v11 = vcombine.low %v7064_v26, %v7072_v6  ;;  %v13872_v12 = vcombine.high %v7080_v21, %v7088_v14  ;;  %v7262_v26 = vld [vmem:[#allocation32 + $0x7b0] sm:$0xff]  ;;  %v7017_v14 = vld [vmem:[#allocation32 + $0x8] sm:$0xff] }
 0xa11   :  { %v7270_v6 = vld [vmem:[#allocation32 + $0x7f0] sm:$0xff] }
 0xa12   :  { %8894 = vmatprep.subr.bf16.mxu0 %v13916_v16  ;;  %v7104_v16 = vld [vmem:[#allocation32 + $0x2c0] sm:$0xff]  ;;  %v14059_v21 = vcombine.low %v7262_v26, %v7270_v6 }
 0xa13   :  { %8895 = vmatpush1.bf16.msra.mxu0 %v13915_v15  ;;  %v7096_v15 = vld [vmem:[#allocation32 + $0x280] sm:$0xff] }
 0xa14   :  { %v13888_v33 = vcombine.high %v7096_v15, %v7104_v16 }
 0xad5   :  { %v6771_v19 = vpop.f32.mrb[28].mxu1 }
 0xad6   :  { %v6772_v18 = vadd.f32 %v13781_v17, %v6771_v19  ;;  %v14657_v25 = vpop.f32.mrb[29].mxu1  ;;  %v7134_v17 = vld [vmem:[#allocation32 + $0x3b0] sm:$0xff] }
 0xad7   :  { %v6774_v27 = vpop.f32.mrb[30].mxu1  ;;  %v7142_v19 = vld [vmem:[#allocation32 + $0x3f0] sm:$0xff] }
 0xad8   :  { %v6777_v28 = vmax.f32 %v6772_v18, 0.0  ;;  %v14658_v29 = vpop.f32.mrb[31].mxu1  ;;  %v13931_v18 = vcombine.low %v7134_v17, %v7142_v19  ;;  %v13932_v25 = vcombine.high %v7134_v17, %v7142_v19  ;;  %v7150_v27 = vld [vmem:[#allocation32 + $0x430] sm:$0xff]  ;;  %v7120_v17 = vld [vmem:[#allocation32 + $0x340] sm:$0xff]  ;;  %v13887_v19 = vcombine.low %v7096_v15, %v7104_v16  ;;  %v6879_v16 = vld [vmem:[#allocation31] sm:$0x3] }
 0xada   :  { %v6778_v31 = vpack.c.bf16 %v6777_v28, %v6777_v28  ;;  %8896 = vmatprep.subr.bf16.mxu0 %v13932_v25  ;;  %v7158_v28 = vld [vmem:[#allocation32 + $0x470] sm:$0xff]  ;;  %v7128_v25 = vld [vmem:[#allocation32 + $0x380] sm:$0xff] }
 0xadb   :  { %8897 = vmatpush1.bf16.msra.mxu0 %v13931_v18  ;;  %v13947_v29 = vcombine.low %v7150_v27, %v7158_v28 }
 0xadc   :  { %14668 = vmatmul.mubr.msk.bf16.vlgmr.msra.gmra.mrb[32].mxu1 %vm6654_vm1, %v6778_v31  ;;  %v7166_v31 = vld [vmem:[#allocation32 + $0x4b0] sm:$0xff] }
 0xadd   :  { %6972 = vmatpush1.bf16.msra.mxu1 %v15264_v30  ;;  %7003 = vmatprep.mubr.bf16.mxu1 %v16699_v10  ;;  %v13948_v30 = vcombine.high %v7150_v27, %v7158_v28  ;;  %v7136_v27 = vld [vmem:[#allocation32 + $0x3c0] sm:$0xff] }
 0xade   :  { %6973 = vmatprep.subr.bf16.mxu1 %v15269_v32  ;;  %v7174_v32 = vld [vmem:[#allocation32 + $0x4f0] sm:$0xff] }
 0xadf   :  { %8898 = vmatprep.subr.bf16.mxu0 %v13948_v30  ;;  %v7144_v30 = vld [vmem:[#allocation32 + $0x400] sm:$0xff] }
 0xae0   :  { %8899 = vmatpush1.bf16.msra.mxu0 %v13947_v29  ;;  %v13920_v29 = vcombine.high %v7128_v25, %v7136_v27 }
 0xae1   :  { %6974 = vmatpush1.bf16.msra.mxu1 %v15267_v34  ;;  %v13963_v34 = vcombine.low %v7166_v31, %v7174_v32 }
 0xae2   :  { %6975 = vmatprep.subr.bf16.mxu1 %v15272_v7  ;;  %v13964_v7 = vcombine.high %v7166_v31, %v7174_v32  ;;  %v7152_v31 = vld [vmem:[#allocation32 + $0x440] sm:$0xff]  ;;  %v13919_v32 = vcombine.low %v7128_v25, %v7136_v27 }
 0xae4   :  { %8900 = vmatprep.subr.bf16.mxu0 %v13964_v7  ;;  %v7160_v7 = vld [vmem:[#allocation32 + $0x480] sm:$0xff] }
 0xae5   :  { %6976 = vmatpush1.bf16.msra.mxu1 %v15270_v36  ;;  %8901 = vmatpush1.bf16.msra.mxu0 %v13963_v34  ;;  %v7182_v36 = vld [vmem:[#allocation32 + $0x530] sm:$0xff]  ;;  %v13936_v34 = vcombine.high %v7144_v30, %v7152_v31 }
 0xae6   :  { %6977 = vmatprep.subr.bf16.mxu1 %v15275_v41  ;;  %v7190_v41 = vld [vmem:[#allocation32 + $0x570] sm:$0xff] }
 0xae9   :  { %6978 = vmatpush1.bf16.msra.mxu1 %v15273_v42  ;;  %v13979_v42 = vcombine.low %v7182_v36, %v7190_v41 }
 0xaea   :  { %6979 = vmatprep.subr.bf16.mxu1 %v15278_v43  ;;  %v13980_v43 = vcombine.high %v7182_v36, %v7190_v41  ;;  %v7168_v36 = vld [vmem:[#allocation32 + $0x4c0] sm:$0xff]  ;;  %v13935_v41 = vcombine.low %v7144_v30, %v7152_v31  ;;  %v7033_v30 = vld [vmem:[#allocation32 + $0x88] sm:$0xff] }
 0xaeb   :  { %v7041_v31 = vld [vmem:[#allocation32 + $0xc8] sm:$0xff] }
 0xaec   :  { %8902 = vmatprep.subr.bf16.mxu0 %v13980_v43  ;;  %v7176_v43 = vld [vmem:[#allocation32 + $0x500] sm:$0xff] }
 0xaed   :  { %6980 = vmatpush1.bf16.msra.mxu1 %v15276_v45  ;;  %8903 = vmatpush1.bf16.msra.mxu0 %v13979_v42  ;;  %v7198_v45 = vld [vmem:[#allocation32 + $0x5b0] sm:$0xff]  ;;  %v13952_v42 = vcombine.high %v7160_v7, %v7168_v36 }
 0xaee   :  { %6981 = vmatprep.subr.bf16.mxu1 %v15281_v46  ;;  %v7206_v46 = vld [vmem:[#allocation32 + $0x5f0] sm:$0xff] }
 0xaf1   :  { %6982 = vmatpush1.bf16.msra.mxu1 %v15279_v48  ;;  %v13995_v48 = vcombine.low %v7198_v45, %v7206_v46 }
 0xaf2   :  { %6983 = vmatprep.subr.bf16.mxu1 %v15284_v49  ;;  %v13996_v49 = vcombine.high %v7198_v45, %v7206_v46  ;;  %v7184_v45 = vld [vmem:[#allocation32 + $0x540] sm:$0xff]  ;;  %v13951_v46 = vcombine.low %v7160_v7, %v7168_v36  ;;  %v13826_v7 = vcombine.high %v7033_v30, %v7041_v31  ;;  %v7049_v36 = vld [vmem:[#allocation32 + $0x108] sm:$0xff] }
 0xaf4   :  { %8904 = vmatprep.subr.bf16.mxu0 %v13996_v49  ;;  %v7192_v49 = vld [vmem:[#allocation32 + $0x580] sm:$0xff] }
 0xaf5   :  { %6984 = vmatpush1.bf16.msra.mxu1 %v15282_v51  ;;  %8905 = vmatpush1.bf16.msra.mxu0 %v13995_v48  ;;  %v7214_v51 = vld [vmem:[#allocation32 + $0x630] sm:$0xff]  ;;  %v13968_v48 = vcombine.high %v7176_v43, %v7184_v45 }
 0xaf6   :  { %6985 = vmatprep.subr.bf16.mxu1 %v15287_v52  ;;  %v7222_v52 = vld [vmem:[#allocation32 + $0x670] sm:$0xff] }
 0xaf7   :  { %v14012_v10 = vcombine.high %v7214_v51, %v7222_v52 }
 0xaf9   :  { %6986 = vmatpush1.bf16.msra.mxu1 %v15285_v53  ;;  %v14011_v53 = vcombine.low %v7214_v51, %v7222_v52  ;;  %8906 = vmatprep.subr.bf16.mxu0 %v14012_v10  ;;  %v7200_v51 = vld [vmem:[#allocation32 + $0x5c0] sm:$0xff]  ;;  %v13967_v52 = vcombine.low %v7176_v43, %v7184_v45  ;;  %v7065_v45 = vld [vmem:[#allocation32 + $0x188] sm:$0xff] }
 0xafa   :  { %8636 = vmatprep.subr.bf16.mxu1 %v13808_v63  ;;  %v7230_v63 = vld [vmem:[#allocation32 + $0x6b0] sm:$0xff]  ;;  %v7208_v10 = vld [vmem:[#allocation32 + $0x600] sm:$0xff] }
 0xafb   :  { %8907 = vmatpush1.bf16.msra.mxu0 %v14011_v53  ;;  %v14027_v37 = vcombine.low %v7230_v63, %v7238_v22  ;;  %v14028_v57 = vcombine.high %v7230_v63, %v7238_v22  ;;  %v13984_v53 = vcombine.high %v7192_v49, %v7200_v51  ;;  %v7216_v63 = vld [vmem:[#allocation32 + $0x640] sm:$0xff]  ;;  %v13983_v22 = vcombine.low %v7192_v49, %v7200_v51  ;;  %v7081_v51 = vld [vmem:[#allocation32 + $0x208] sm:$0xff] }
 0xafd   :  { %8908 = vmatprep.subr.bf16.mxu0 %v14028_v57  ;;  %v7224_v57 = vld [vmem:[#allocation32 + $0x680] sm:$0xff] }
 0xaff   :  { %8909 = vmatpush1.bf16.msra.mxu0 %v14027_v37  ;;  %v14000_v37 = vcombine.high %v7208_v10, %v7216_v63 }
 0xbaf   :  { %v6855_v61 = vpop.f32.mrb[32].mxu1 }
 0xbb0   :  { %v6856_v8 = vadd.f32 %v13785_v62, %v6855_v61  ;;  %v14669_v23 = vpop.f32.mrb[33].mxu1  ;;  %v7232_v62 = vld [vmem:[#allocation32 + $0x6c0] sm:$0xff]  ;;  %v13999_v61 = vcombine.low %v7208_v10, %v7216_v63  ;;  %v7097_v63 = vld [vmem:[#allocation32 + $0x288] sm:$0xff] }
 0xbb1   :  { %v6858_v56 = vpop.f32.mrb[34].mxu1  ;;  %v14015_v23 = vcombine.low %v7224_v57, %v7232_v62 }
 0xbb2   :  { %v6861_v24 = vmax.f32 %v6856_v8, 0.0  ;;  %v14670_v44 = vpop.f32.mrb[35].mxu1  ;;  %v14016_v8 = vcombine.high %v7224_v57, %v7232_v62  ;;  %v7240_v56 = vld [vmem:[#allocation32 + $0x700] sm:$0xff]  ;;  %v7113_v62 = vld [vmem:[#allocation32 + $0x308] sm:$0xff] }
 0xbb3   :  { %v14032_v54 = vcombine.high %v7240_v56, %v7248_v47  ;;  %v7254_v44 = vld [vmem:[#allocation32 + $0x770] sm:$0xff] }
 0xbb4   :  { %v6862_v1 = vpack.c.bf16 %v6861_v24, %v6861_v24  ;;  %v7246_v24 = vld [vmem:[#allocation32 + $0x730] sm:$0xff] }
 0xbb5   :  { %v14043_v2 = vcombine.low %v7246_v24, %v7254_v44 }
 0xbb6   :  { %7004 = vmatmul.mubr.bf16.vlgmr.msra.gmra.mrb[36].mxu1 %v6862_v1  ;;  %v14031_v1 = vcombine.low %v7240_v56, %v7248_v47  ;;  %v7129_v56 = vld [vmem:[#allocation32 + $0x388] sm:$0xff] }
 0xbb7   :  { %8637 = vmatpush1.bf16.msra.mxu1 %v13807_v0  ;;  %v7112_v0 = vld [vmem:[#allocation32 + $0x300] sm:$0xff]  ;;  %v7137_v47 = vld [vmem:[#allocation32 + $0x3c8] sm:$0xff] }
 0xbb8   :  { %8638 = vmatprep.subr.bf16.mxu1 %v13824_v59  ;;  %v13904_v18 = vcombine.high %v7112_v0, %v7120_v17  ;;  %v13903_v28 = vcombine.low %v7112_v0, %v7120_v17  ;;  %v14044_v59 = vcombine.high %v7246_v24, %v7254_v44  ;;  %v13922_v24 = vcombine.high %v7129_v56, %v7137_v47  ;;  %v7145_v44 = vld [vmem:[#allocation32 + $0x408] sm:$0xff] }
 0xbba   :  { %8910 = vmatprep.subr.bf16.mxu0 %v14044_v59  ;;  %v13921_v59 = vcombine.low %v7129_v56, %v7137_v47  ;;  %v15309_v56 = vld [vmem:[#allocation38 + $0xe0] ss:$16 sps:$4 sm:$0xff]   ;;  %v15311_v47 = vld [vmem:[#allocation38 + $0xe4] ss:$16 sps:$4 sm:$0xff]  }
 0xbbb   :  { %8639 = vmatpush1.bf16.msra.mxu1 %v13823_v4  ;;  %v7264_v4 = vld [vmem:[#allocation32 + $0x7c0] sm:$0xff]  ;;  %8911 = vmatpush1.bf16.msra.mxu0 %v14043_v2 }
 0xbbc   :  { %8640 = vmatprep.subr.bf16.mxu1 %v13840_v5  ;;  %v14048_v5 = vcombine.high %v7256_v3, %v7264_v4 }
 0xbbf   :  { %8641 = vmatpush1.bf16.msra.mxu1 %v13839_v60  ;;  %v14047_v60 = vcombine.low %v7256_v3, %v7264_v4  ;;  %v7161_v3 = vld [vmem:[#allocation32 + $0x488] sm:$0xff] }
 0xbc0   :  { %8642 = vmatprep.subr.bf16.mxu1 %v13856_v58  ;;  %v14060_v58 = vcombine.high %v7262_v26, %v7270_v6  ;;  %v7169_v4 = vld [vmem:[#allocation32 + $0x4c8] sm:$0xff]  ;;  %v15288_v6 = vld [vmem:[#allocation38] ss:$16 sps:$4 sm:$0xff]  }
 0xbc1   :  { %v13954_v26 = vcombine.high %v7161_v3, %v7169_v4 }
 0xbc2   :  { %8912 = vmatprep.subr.bf16.mxu0 %v14060_v58  ;;  %v7177_v58 = vld [vmem:[#allocation32 + $0x508] sm:$0xff] }
 0xbc3   :  { %8643 = vmatpush1.bf16.msra.mxu1 %v13855_v11  ;;  %v7025_v11 = vld [vmem:[#allocation32 + $0x48] sm:$0xff]  ;;  %8913 = vmatpush1.bf16.msra.mxu0 %v14059_v21 }
 0xbc4   :  { %8644 = vmatprep.subr.bf16.mxu1 %v13872_v12  ;;  %v13810_v12 = vcombine.high %v7017_v14, %v7025_v11  ;;  %v13809_v15 = vcombine.low %v7017_v14, %v7025_v11  ;;  %v7185_v21 = vld [vmem:[#allocation32 + $0x548] sm:$0xff]  ;;  %v13953_v14 = vcombine.low %v7161_v3, %v7169_v4  ;;  %v7058_v3 = vld [vmem:[#allocation32 + $0x150] sm:$0xff] }
 0xbc5   :  { %v13970_v11 = vcombine.high %v7177_v58, %v7185_v21  ;;  %v15312_v4 = vld [vmem:[#allocation38 + $0x100] ss:$16 sps:$4 sm:$0xff]  }
 0xbc7   :  { %8645 = vmatpush1.bf16.msra.mxu1 %v13871_v55  ;;  %v6884_v55 = vrot.slane %v6879_v16, %v17235_v9 }
 0xbc8   :  { %8646 = vmatprep.subr.bf16.mxu1 %v13888_v33  ;;  %v6888_v33 = vrot.slane %v6879_v16, %v17216_v20  ;;  %v7193_v16 = vld [vmem:[#allocation32 + $0x588] sm:$0xff] }
 0xbcb   :  { %8647 = vmatpush1.bf16.msra.mxu1 %v13887_v19 }
 0xbcc   :  { %8648 = vmatprep.subr.bf16.mxu1 %v13904_v18 }
 0xbcf   :  { %8649 = vmatpush1.bf16.msra.mxu1 %v13903_v28 }
 0xbd0   :  { %8650 = vmatprep.subr.bf16.mxu1 %v13920_v29 }
 0xbd3   :  { %8651 = vmatpush1.bf16.msra.mxu1 %v13919_v32 }
 0xbd4   :  { %8652 = vmatprep.subr.bf16.mxu1 %v13936_v34 }
 0xbd7   :  { %8653 = vmatpush1.bf16.msra.mxu1 %v13935_v41  ;;  %v7057_v41 = vld [vmem:[#allocation32 + $0x148] sm:$0xff] }
 0xbd8   :  { %8654 = vmatprep.subr.bf16.mxu1 %v13952_v42  ;;  %v13825_v42 = vcombine.low %v7033_v30, %v7041_v31  ;;  %v13842_v43 = vcombine.high %v7049_v36, %v7057_v41  ;;  %v15299_v30 = vld [vmem:[#allocation38 + $0x64] ss:$16 sps:$4 sm:$0xff]   ;;  %v7225_v31 = vld [vmem:[#allocation32 + $0x688] sm:$0xff] }
 0xbdb   :  { %8655 = vmatpush1.bf16.msra.mxu1 %v13951_v46  ;;  %v7073_v46 = vld [vmem:[#allocation32 + $0x1c8] sm:$0xff] }
 0xbdc   :  { %8656 = vmatprep.subr.bf16.mxu1 %v13968_v48  ;;  %v13841_v48 = vcombine.low %v7049_v36, %v7057_v41  ;;  %v13858_v49 = vcombine.high %v7065_v45, %v7073_v46 }
 0xbdf   :  { %8657 = vmatpush1.bf16.msra.mxu1 %v13967_v52  ;;  %v7089_v52 = vld [vmem:[#allocation32 + $0x248] sm:$0xff] }
 0xbe0   :  { %8658 = vmatprep.subr.bf16.mxu1 %v13984_v53  ;;  %v13857_v53 = vcombine.low %v7065_v45, %v7073_v46  ;;  %v13874_v10 = vcombine.high %v7081_v51, %v7089_v52  ;;  %v7241_v45 = vld [vmem:[#allocation32 + $0x708] sm:$0xff] }
 0xbe1   :  { %v7249_v46 = vld [vmem:[#allocation32 + $0x748] sm:$0xff] }
 0xbe3   :  { %8659 = vmatpush1.bf16.msra.mxu1 %v13983_v22  ;;  %v7105_v22 = vld [vmem:[#allocation32 + $0x2c8] sm:$0xff] }
 0xbe4   :  { %8660 = vmatprep.subr.bf16.mxu1 %v14000_v37  ;;  %v13873_v37 = vcombine.low %v7081_v51, %v7089_v52  ;;  %v13890_v57 = vcombine.high %v7097_v63, %v7105_v22  ;;  %v15303_v51 = vld [vmem:[#allocation38 + $0xa0] ss:$16 sps:$4 sm:$0xff]   ;;  %v15305_v52 = vld [vmem:[#allocation38 + $0xa4] ss:$16 sps:$4 sm:$0xff]  }
 0xbe7   :  { %8661 = vmatpush1.bf16.msra.mxu1 %v13999_v61  ;;  %v7121_v61 = vld [vmem:[#allocation32 + $0x348] sm:$0xff] }
 0xbe8   :  { %8662 = vmatprep.subr.bf16.mxu1 %v14016_v8  ;;  %v13889_v8 = vcombine.low %v7097_v63, %v7105_v22  ;;  %v14033_v63 = vcombine.low %v7241_v45, %v7249_v46 }
 0xbeb   :  { %8663 = vmatpush1.bf16.msra.mxu1 %v14015_v23  ;;  %v13906_v23 = vcombine.high %v7113_v62, %v7121_v61 }
 0xbec   :  { %8664 = vmatprep.subr.bf16.mxu1 %v14032_v54  ;;  %v13905_v54 = vcombine.low %v7113_v62, %v7121_v61  ;;  %v7018_v62 = vld [vmem:[#allocation32 + $0x10] sm:$0xff] }
 0xbed   :  { %v7026_v61 = vld [vmem:[#allocation32 + $0x50] sm:$0xff] }
 0xbef   :  { %8665 = vmatpush1.bf16.msra.mxu1 %v14031_v1  ;;  %v7153_v1 = vld [vmem:[#allocation32 + $0x448] sm:$0xff] }
 0xbf0   :  { %8666 = vmatprep.subr.bf16.mxu1 %v14048_v5  ;;  %v13938_v2 = vcombine.high %v7145_v44, %v7153_v1  ;;  %v13937_v5 = vcombine.low %v7145_v44, %v7153_v1  ;;  %v13811_v44 = vcombine.low %v7018_v62, %v7026_v61 }
 0xbf3   :  { %8667 = vmatpush1.bf16.msra.mxu1 %v14047_v60  ;;  %v15290_v60 = vld [vmem:[#allocation38 + $0x4] ss:$16 sps:$4 sm:$0xff]  }
 0xbf4   :  { %8677 = vmatprep.subr.bf16.mxu1 %v13810_v12  ;;  %12290 = vmatprep.subr.bf16.mxu0 %v15290_v60  ;;  %v15291_v12 = vld [vmem:[#allocation38 + $0x20] ss:$16 sps:$4 sm:$0xff]   ;;  %v15317_v60 = vld [vmem:[#allocation38 + $0x124] ss:$16 sps:$4 sm:$0xff]  }
 0xc89   :  { %v7005_v0 = vpop.f32.mrb[36].mxu1 }
 0xc8a   :  { %v7006_v17 = vadd.f32 %v7005_v0, %v6884_v55  ;;  %v7007_v19 = vpop.f32.mrb[37].mxu1  ;;  %v7201_v55 = vld [vmem:[#allocation32 + $0x5c8] sm:$0xff] }
 0xc8b   :  { %v7008_v18 = vadd.f32 %v7007_v19, %v6888_v33  ;;  %v7009_v25 = vpop.f32.mrb[38].mxu1  ;;  %v13969_v33 = vcombine.low %v7177_v58, %v7185_v21  ;;  %v13986_v0 = vcombine.high %v7193_v16, %v7201_v55  ;;  %v15296_v19 = vld [vmem:[#allocation38 + $0x44] ss:$16 sps:$4 sm:$0xff]  }
 0xc8c   :  { %v7012_v27 = vmax.f32 %v7006_v17, 0.0  ;;  %v7010_v28 = vpop.f32.mrb[39].mxu1  ;;  %v15294_v17 = vld [vmem:[#allocation38 + $0x40] ss:$16 sps:$4 sm:$0xff]   ;;  %v7217_v25 = vld [vmem:[#allocation32 + $0x648] sm:$0xff] }
 0xc8d   :  { %v7013_v29 = vmax.f32 %v7008_v18, 0.0  ;;  %v7209_v18 = vld [vmem:[#allocation32 + $0x608] sm:$0xff]  ;;  %v7066_v58 = vld [vmem:[#allocation32 + $0x190] sm:$0xff] }
 0xc8e   :  { %v17457_v34 = vpack.c.bf16 %v7012_v27, %v7012_v27  ;;  %v13985_v27 = vcombine.low %v7193_v16, %v7201_v55  ;;  %v14002_v28 = vcombine.high %v7209_v18, %v7217_v25  ;;  %v14001_v36 = vcombine.low %v7209_v18, %v7217_v25  ;;  %v7074_v21 = vld [vmem:[#allocation32 + $0x1d0] sm:$0xff] }
 0xc8f   :  { %v17455_v32 = vpack.c.bf16 %v7013_v29, %v7013_v29  ;;  %v15297_v29 = vld [vmem:[#allocation38 + $0x60] ss:$16 sps:$4 sm:$0xff]  }
 0xc90   :  { %v7082_v16 = vld [vmem:[#allocation32 + $0x210] sm:$0xff] }
 0xc91   :  { %8668 = vmatprep.mubr.bf16.mxu1 %v17455_v32  ;;  %8914 = vmatprep.mubr.bf16.mxu0 %v17455_v32  ;;  %v7090_v55 = vld [vmem:[#allocation32 + $0x250] sm:$0xff] }
 0xc92   :  { %8669 = vmatmul.mubr.bf16.vlgmr.msra.gmra.mrb[40].mxu1 %v17457_v34  ;;  %8915 = vmatmul.mubr.bf16.vlgmr.msra.gmra.mrb[20].mxu0 %v17457_v34  ;;  %v7098_v18 = vld [vmem:[#allocation32 + $0x290] sm:$0xff] }
 0xc93   :  { %8678 = vmatpush1.bf16.msra.mxu1 %v13809_v15  ;;  %8709 = vmatprep.mubr.bf16.mxu1 %v17455_v32  ;;  %v15293_v15 = vld [vmem:[#allocation38 + $0x24] ss:$16 sps:$4 sm:$0xff]  }
 0xc94   :  { %8679 = vmatprep.subr.bf16.mxu1 %v13826_v7  ;;  %12291 = vmatpush1.bf16.msra.mxu0 %v15288_v6  ;;  %v7233_v7 = vld [vmem:[#allocation32 + $0x6c8] sm:$0xff]  ;;  %v15315_v6 = vld [vmem:[#allocation38 + $0x120] ss:$16 sps:$4 sm:$0xff]  }
 0xc95   :  { %12292 = vmatprep.subr.bf16.mxu0 %v15293_v15  ;;  %v14018_v41 = vcombine.high %v7225_v31, %v7233_v7  ;;  %v15320_v15 = vld [vmem:[#allocation38 + $0x144] ss:$16 sps:$4 sm:$0xff]  }
 0xc96   :  { %v7106_v25 = vld [vmem:[#allocation32 + $0x2d0] sm:$0xff] }
 0xc97   :  { %8680 = vmatpush1.bf16.msra.mxu1 %v13825_v42  ;;  %v15300_v42 = vld [vmem:[#allocation38 + $0x80] ss:$16 sps:$4 sm:$0xff]  }
 0xc98   :  { %8681 = vmatprep.subr.bf16.mxu1 %v13842_v43  ;;  %12293 = vmatpush1.bf16.msra.mxu0 %v15291_v12  ;;  %v15302_v43 = vld [vmem:[#allocation38 + $0x84] ss:$16 sps:$4 sm:$0xff]   ;;  %v15318_v12 = vld [vmem:[#allocation38 + $0x140] ss:$16 sps:$4 sm:$0xff]  }
 0xc99   :  { %12294 = vmatprep.subr.bf16.mxu0 %v15296_v19  ;;  %v15323_v19 = vld [vmem:[#allocation38 + $0x164] ss:$16 sps:$4 sm:$0xff]  }
 0xc9b   :  { %8682 = vmatpush1.bf16.msra.mxu1 %v13841_v48  ;;  %v14017_v48 = vcombine.low %v7225_v31, %v7233_v7  ;;  %v7114_v31 = vld [vmem:[#allocation32 + $0x310] sm:$0xff] }
 0xc9c   :  { %8683 = vmatprep.subr.bf16.mxu1 %v13858_v49  ;;  %12295 = vmatpush1.bf16.msra.mxu0 %v15294_v17  ;;  %v14034_v49 = vcombine.high %v7241_v45, %v7249_v46  ;;  %v15321_v17 = vld [vmem:[#allocation38 + $0x160] ss:$16 sps:$4 sm:$0xff]  }
 0xc9d   :  { %12296 = vmatprep.subr.bf16.mxu0 %v15299_v30  ;;  %v15326_v30 = vld [vmem:[#allocation38 + $0x184] ss:$16 sps:$4 sm:$0xff]   ;;  %v15327_v46 = vld [vmem:[#allocation38 + $0x1a0] ss:$16 sps:$4 sm:$0xff]  }
 0xc9e   :  { %v7122_v7 = vld [vmem:[#allocation32 + $0x350] sm:$0xff] }
 0xc9f   :  { %8684 = vmatpush1.bf16.msra.mxu1 %v13857_v53  ;;  %v7257_v53 = vld [vmem:[#allocation32 + $0x788] sm:$0xff]  ;;  %v7138_v45 = vld [vmem:[#allocation32 + $0x3d0] sm:$0xff] }
 0xca0   :  { %8685 = vmatprep.subr.bf16.mxu1 %v13874_v10  ;;  %12297 = vmatpush1.bf16.msra.mxu0 %v15297_v29  ;;  %v7265_v10 = vld [vmem:[#allocation32 + $0x7c8] sm:$0xff]  ;;  %v15324_v29 = vld [vmem:[#allocation38 + $0x180] ss:$16 sps:$4 sm:$0xff]  }
 0xca1   :  { %12298 = vmatprep.subr.bf16.mxu0 %v15302_v43  ;;  %v14050_v22 = vcombine.high %v7257_v53, %v7265_v10  ;;  %v7130_v43 = vld [vmem:[#allocation32 + $0x390] sm:$0xff] }
 0xca3   :  { %8686 = vmatpush1.bf16.msra.mxu1 %v13873_v37  ;;  %v15306_v37 = vld [vmem:[#allocation38 + $0xc0] ss:$16 sps:$4 sm:$0xff]  }
 0xca4   :  { %8687 = vmatprep.subr.bf16.mxu1 %v13890_v57  ;;  %12299 = vmatpush1.bf16.msra.mxu0 %v15300_v42  ;;  %v15308_v57 = vld [vmem:[#allocation38 + $0xc4] ss:$16 sps:$4 sm:$0xff]  }
 0xca5   :  { %12300 = vmatprep.subr.bf16.mxu0 %v15305_v52  ;;  %v15329_v42 = vld [vmem:[#allocation38 + $0x1a4] ss:$16 sps:$4 sm:$0xff]  }
 0xca6   :  { %v7146_v52 = vld [vmem:[#allocation32 + $0x410] sm:$0xff] }
 0xca7   :  { %8688 = vmatpush1.bf16.msra.mxu1 %v13889_v8  ;;  %v14049_v8 = vcombine.low %v7257_v53, %v7265_v10  ;;  %v7154_v53 = vld [vmem:[#allocation32 + $0x450] sm:$0xff] }
 0xca8   :  { %8689 = vmatprep.subr.bf16.mxu1 %v13906_v23  ;;  %12301 = vmatpush1.bf16.msra.mxu0 %v15303_v51  ;;  %v13812_v23 = vcombine.high %v7018_v62, %v7026_v61  ;;  %v15332_v51 = vld [vmem:[#allocation38 + $0x1c4] ss:$16 sps:$4 sm:$0xff]   ;;  %v15330_v10 = vld [vmem:[#allocation38 + $0x1c0] ss:$16 sps:$4 sm:$0xff]  }
 0xca9   :  { %12302 = vmatprep.subr.bf16.mxu0 %v15308_v57  ;;  %v7162_v57 = vld [vmem:[#allocation32 + $0x490] sm:$0xff] }
 0xcaa   :  { %v7170_v62 = vld [vmem:[#allocation32 + $0x4d0] sm:$0xff] }
 0xcab   :  { %8690 = vmatpush1.bf16.msra.mxu1 %v13905_v54  ;;  %v7034_v54 = vld [vmem:[#allocation32 + $0x90] sm:$0xff] }
 0xcac   :  { %8691 = vmatprep.subr.bf16.mxu1 %v13922_v24  ;;  %12303 = vmatpush1.bf16.msra.mxu0 %v15306_v37  ;;  %v7042_v24 = vld [vmem:[#allocation32 + $0xd0] sm:$0xff] }
 0xcad   :  { %12304 = vmatprep.subr.bf16.mxu0 %v15311_v47  ;;  %v13828_v1 = vcombine.high %v7034_v54, %v7042_v24  ;;  %v15335_v37 = vld [vmem:[#allocation38 + $0x1e4] ss:$16 sps:$4 sm:$0xff]   ;;  %v15333_v61 = vld [vmem:[#allocation38 + $0x1e0] ss:$16 sps:$4 sm:$0xff]  }
 0xcae   :  { %v7178_v47 = vld [vmem:[#allocation32 + $0x510] sm:$0xff] }
 0xcaf   :  { %8692 = vmatpush1.bf16.msra.mxu1 %v13921_v59  ;;  %v15314_v59 = vld [vmem:[#allocation38 + $0x104] ss:$16 sps:$4 sm:$0xff]  }
 0xcb0   :  { %8693 = vmatprep.subr.bf16.mxu1 %v13938_v2  ;;  %12305 = vmatpush1.bf16.msra.mxu0 %v15309_v56  ;;  %v7050_v2 = vld [vmem:[#allocation32 + $0x110] sm:$0xff] }
 0xcb1   :  { %12306 = vmatprep.subr.bf16.mxu0 %v15314_v59  ;;  %v15338_v56 = vld [vmem:[#allocation38 + $0x204] ss:$16 sps:$4 sm:$0xff]  }
 0xcb2   :  { %v7202_v59 = vld [vmem:[#allocation32 + $0x5d0] sm:$0xff] }
 0xcb3   :  { %8694 = vmatpush1.bf16.msra.mxu1 %v13937_v5  ;;  %v13827_v5 = vcombine.low %v7034_v54, %v7042_v24  ;;  %v7186_v54 = vld [vmem:[#allocation32 + $0x550] sm:$0xff]  ;;  %v13955_v24 = vcombine.low %v7162_v57, %v7170_v62 }
 0xcb4   :  { %8695 = vmatprep.subr.bf16.mxu1 %v13954_v26  ;;  %v13844_v26 = vcombine.high %v7050_v2, %v7058_v3  ;;  %12307 = vmatpush1.bf16.msra.mxu0 %v15312_v4  ;;  %v7210_v4 = vld [vmem:[#allocation32 + $0x610] sm:$0xff] }
 0xcb5   :  { %12308 = vmatprep.subr.bf16.mxu0 %v15317_v60  ;;  %v7226_v60 = vld [vmem:[#allocation32 + $0x690] sm:$0xff] }
 0xcb7   :  { %8696 = vmatpush1.bf16.msra.mxu1 %v13953_v14  ;;  %v13843_v14 = vcombine.low %v7050_v2, %v7058_v3  ;;  %v13971_v2 = vcombine.low %v7178_v47, %v7186_v54 }
 0xcb8   :  { %8697 = vmatprep.subr.bf16.mxu1 %v13970_v11  ;;  %v13860_v11 = vcombine.high %v7066_v58, %v7074_v21  ;;  %12309 = vmatpush1.bf16.msra.mxu0 %v15315_v6 }
 0xcb9   :  { %12310 = vmatprep.subr.bf16.mxu0 %v15320_v15 }
 0xcbb   :  { %8698 = vmatpush1.bf16.msra.mxu1 %v13969_v33  ;;  %v13859_v33 = vcombine.low %v7066_v58, %v7074_v21  ;;  %v7234_v58 = vld [vmem:[#allocation32 + $0x6d0] sm:$0xff] }
 0xcbc   :  { %8699 = vmatprep.subr.bf16.mxu1 %v13986_v0  ;;  %v13876_v0 = vcombine.high %v7082_v16, %v7090_v55  ;;  %12311 = vmatpush1.bf16.msra.mxu0 %v15318_v12  ;;  %v7250_v12 = vld [vmem:[#allocation32 + $0x750] sm:$0xff]  ;;  %v14019_v15 = vcombine.low %v7226_v60, %v7234_v58 }
 0xcbd   :  { %12312 = vmatprep.subr.bf16.mxu0 %v15323_v19  ;;  %v7019_v19 = vld [vmem:[#allocation32 + $0x18] sm:$0xff] }
 0xcbf   :  { %8700 = vmatpush1.bf16.msra.mxu1 %v13985_v27  ;;  %v13875_v27 = vcombine.low %v7082_v16, %v7090_v55  ;;  %v7258_v55 = vld [vmem:[#allocation32 + $0x790] sm:$0xff] }
 0xcc0   :  { %8701 = vmatprep.subr.bf16.mxu1 %v14002_v28  ;;  %v13892_v28 = vcombine.high %v7098_v18, %v7106_v25  ;;  %12313 = vmatpush1.bf16.msra.mxu0 %v15321_v17 }
 0xcc1   :  { %12314 = vmatprep.subr.bf16.mxu0 %v15326_v30 }
 0xcc3   :  { %8702 = vmatpush1.bf16.msra.mxu1 %v14001_v36  ;;  %v13891_v36 = vcombine.low %v7098_v18, %v7106_v25  ;;  %v7027_v18 = vld [vmem:[#allocation32 + $0x58] sm:$0xff] }
 0xcc4   :  { %8703 = vmatprep.subr.bf16.mxu1 %v14018_v41  ;;  %v13908_v41 = vcombine.high %v7114_v31, %v7122_v7  ;;  %12315 = vmatpush1.bf16.msra.mxu0 %v15324_v29  ;;  %v7043_v29 = vld [vmem:[#allocation32 + $0xd8] sm:$0xff]  ;;  %v13813_v30 = vcombine.low %v7019_v19, %v7027_v18 }
 0xcc5   :  { %12316 = vmatprep.subr.bf16.mxu0 %v15329_v42 }
 0xcc7   :  { %8704 = vmatpush1.bf16.msra.mxu1 %v14017_v48  ;;  %v13907_v48 = vcombine.low %v7114_v31, %v7122_v7  ;;  %v7051_v7 = vld [vmem:[#allocation32 + $0x118] sm:$0xff] }
 0xcc8   :  { %8705 = vmatprep.subr.bf16.mxu1 %v14034_v49  ;;  %v13924_v49 = vcombine.high %v7130_v43, %v7138_v45  ;;  %12317 = vmatpush1.bf16.msra.mxu0 %v15327_v46 }
 0xcc9   :  { %12318 = vmatprep.subr.bf16.mxu0 %v15332_v51  ;;  %v7091_v51 = vld [vmem:[#allocation32 + $0x258] sm:$0xff] }
 0xccb   :  { %8706 = vmatpush1.bf16.msra.mxu1 %v14033_v63  ;;  %v13923_v63 = vcombine.low %v7130_v43, %v7138_v45  ;;  %v7067_v43 = vld [vmem:[#allocation32 + $0x198] sm:$0xff] }
 0xccc   :  { %8707 = vmatprep.subr.bf16.mxu1 %v14050_v22  ;;  %v13940_v22 = vcombine.high %v7146_v52, %v7154_v53  ;;  %12319 = vmatpush1.bf16.msra.mxu0 %v15330_v10  ;;  %v7075_v45 = vld [vmem:[#allocation32 + $0x1d8] sm:$0xff] }
 0xccd   :  { %12320 = vmatprep.subr.bf16.mxu0 %v15335_v37  ;;  %v7099_v10 = vld [vmem:[#allocation32 + $0x298] sm:$0xff] }
 0xccf   :  { %8708 = vmatpush1.bf16.msra.mxu1 %v14049_v8  ;;  %v13939_v8 = vcombine.low %v7146_v52, %v7154_v53  ;;  %v13861_v52 = vcombine.low %v7067_v43, %v7075_v45 }
 0xcd0   :  { %8718 = vmatprep.subr.bf16.mxu1 %v13812_v23  ;;  %v13956_v23 = vcombine.high %v7162_v57, %v7170_v62  ;;  %12321 = vmatpush1.bf16.msra.mxu0 %v15333_v61  ;;  %v7115_v57 = vld [vmem:[#allocation32 + $0x318] sm:$0xff] }
 0xcd1   :  { %12331 = vmatprep.subr.bf16.mxu0 %v15338_v56  ;;  %v7123_v62 = vld [vmem:[#allocation32 + $0x358] sm:$0xff] }
 0xcd2   :  { %8710 = vmatmul.mubr.bf16.vlgmr.msra.gmra.mrb[44].mxu1 %v17457_v34  ;;  %v7139_v56 = vld [vmem:[#allocation32 + $0x3d8] sm:$0xff] }
 0xcd3   :  { %8719 = vmatpush1.bf16.msra.mxu1 %v13811_v44  ;;  %8750 = vmatprep.mubr.bf16.mxu1 %v17455_v32  ;;  %v13972_v44 = vcombine.high %v7178_v47, %v7186_v54  ;;  %v13909_v47 = vcombine.low %v7115_v57, %v7123_v62 }
 0xcd4   :  { %8720 = vmatprep.subr.bf16.mxu1 %v13828_v1  ;;  %v7194_v1 = vld [vmem:[#allocation32 + $0x590] sm:$0xff] }
 0xcd5   :  { %v13988_v3 = vcombine.high %v7194_v1, %v7202_v59 }
 0xcd7   :  { %8721 = vmatpush1.bf16.msra.mxu1 %v13827_v5  ;;  %v7218_v5 = vld [vmem:[#allocation32 + $0x650] sm:$0xff] }
 0xcd8   :  { %8722 = vmatprep.subr.bf16.mxu1 %v13844_v26  ;;  %v13987_v26 = vcombine.low %v7194_v1, %v7202_v59  ;;  %v14004_v6 = vcombine.high %v7210_v4, %v7218_v5  ;;  %v14003_v21 = vcombine.low %v7210_v4, %v7218_v5 }
 0xcdb   :  { %8723 = vmatpush1.bf16.msra.mxu1 %v13843_v14  ;;  %v14020_v14 = vcombine.high %v7226_v60, %v7234_v58 }
 0xcdc   :  { %8724 = vmatprep.subr.bf16.mxu1 %v13860_v11  ;;  %v7242_v11 = vld [vmem:[#allocation32 + $0x710] sm:$0xff] }
 0xcdd   :  { %v14036_v16 = vcombine.high %v7242_v11, %v7250_v12 }
 0xcdf   :  { %8725 = vmatpush1.bf16.msra.mxu1 %v13859_v33  ;;  %v7266_v33 = vld [vmem:[#allocation32 + $0x7d0] sm:$0xff] }
 0xce0   :  { %8726 = vmatprep.subr.bf16.mxu1 %v13876_v0  ;;  %v14035_v0 = vcombine.low %v7242_v11, %v7250_v12  ;;  %v14052_v17 = vcombine.high %v7258_v55, %v7266_v33  ;;  %v14051_v25 = vcombine.low %v7258_v55, %v7266_v33 }
 0xce3   :  { %8727 = vmatpush1.bf16.msra.mxu1 %v13875_v27  ;;  %v13814_v27 = vcombine.high %v7019_v19, %v7027_v18 }
 0xce4   :  { %8728 = vmatprep.subr.bf16.mxu1 %v13892_v28  ;;  %v7035_v28 = vld [vmem:[#allocation32 + $0x98] sm:$0xff] }
 0xce5   :  { %v13830_v31 = vcombine.high %v7035_v28, %v7043_v29 }
 0xce7   :  { %8729 = vmatpush1.bf16.msra.mxu1 %v13891_v36  ;;  %v7059_v36 = vld [vmem:[#allocation32 + $0x158] sm:$0xff] }
 0xce8   :  { %8730 = vmatprep.subr.bf16.mxu1 %v13908_v41  ;;  %v13829_v41 = vcombine.low %v7035_v28, %v7043_v29  ;;  %v13846_v42 = vcombine.high %v7051_v7, %v7059_v36  ;;  %v13845_v46 = vcombine.low %v7051_v7, %v7059_v36 }
 0xceb   :  { %8731 = vmatpush1.bf16.msra.mxu1 %v13907_v48  ;;  %v13862_v48 = vcombine.high %v7067_v43, %v7075_v45 }
 0xcec   :  { %8732 = vmatprep.subr.bf16.mxu1 %v13924_v49  ;;  %v7083_v49 = vld [vmem:[#allocation32 + $0x218] sm:$0xff] }
 0xced   :  { %v13878_v53 = vcombine.high %v7083_v49, %v7091_v51 }
 0xcef   :  { %8733 = vmatpush1.bf16.msra.mxu1 %v13923_v63  ;;  %v7107_v63 = vld [vmem:[#allocation32 + $0x2d8] sm:$0xff] }
 0xcf0   :  { %8734 = vmatprep.subr.bf16.mxu1 %v13940_v22  ;;  %v13877_v22 = vcombine.low %v7083_v49, %v7091_v51  ;;  %v13894_v37 = vcombine.high %v7099_v10, %v7107_v63  ;;  %v13893_v61 = vcombine.low %v7099_v10, %v7107_v63 }
 0xcf3   :  { %8735 = vmatpush1.bf16.msra.mxu1 %v13939_v8  ;;  %v13910_v8 = vcombine.high %v7115_v57, %v7123_v62 }
 0xcf4   :  { %8736 = vmatprep.subr.bf16.mxu1 %v13956_v23  ;;  %v7131_v23 = vld [vmem:[#allocation32 + $0x398] sm:$0xff] }
 0xcf5   :  { %v13926_v54 = vcombine.high %v7131_v23, %v7139_v56  ;;  %v13925_v1 = vcombine.low %v7131_v23, %v7139_v56 }
 0xcf7   :  { %8737 = vmatpush1.bf16.msra.mxu1 %v13955_v24  ;;  %v7147_v24 = vld [vmem:[#allocation32 + $0x418] sm:$0xff] }
 0xcf8   :  { %8738 = vmatprep.subr.bf16.mxu1 %v13972_v44  ;;  %v7155_v44 = vld [vmem:[#allocation32 + $0x458] sm:$0xff] }
 0xcf9   :  { %v13942_v59 = vcombine.high %v7147_v24, %v7155_v44  ;;  %v13941_v4 = vcombine.low %v7147_v24, %v7155_v44  ;;  %v17470_v44 = vld [vmem:[#allocation34] sm:$0xff] }
 0xcfb   :  { %8739 = vmatpush1.bf16.msra.mxu1 %v13971_v2  ;;  %v7163_v2 = vld [vmem:[#allocation32 + $0x498] sm:$0xff] }
 0xcfc   :  { %8740 = vmatprep.subr.bf16.mxu1 %v13988_v3  ;;  %v7171_v3 = vld [vmem:[#allocation32 + $0x4d8] sm:$0xff] }
 0xcfd   :  { %v13958_v5 = vcombine.high %v7163_v2, %v7171_v3  ;;  %v13957_v60 = vcombine.low %v7163_v2, %v7171_v3  ;;  %v7124_v2 = vld [vmem:[#allocation32 + $0x360] sm:$0xff]  ;;  %v7279_v3 = vrot.slane %v17470_v44, %v17235_v9 }
 0xcff   :  { %8741 = vmatpush1.bf16.msra.mxu1 %v13987_v26  ;;  %v7179_v26 = vld [vmem:[#allocation32 + $0x518] sm:$0xff] }
 0xd00   :  { %8742 = vmatprep.subr.bf16.mxu1 %v14004_v6  ;;  %v7187_v6 = vld [vmem:[#allocation32 + $0x558] sm:$0xff] }
 0xd01   :  { %v13974_v58 = vcombine.high %v7179_v26, %v7187_v6  ;;  %v13973_v11 = vcombine.low %v7179_v26, %v7187_v6  ;;  %v7283_v26 = vrot.slane %v17470_v44, %v17216_v20 }
 0xd03   :  { %8743 = vmatpush1.bf16.msra.mxu1 %v14003_v21  ;;  %v7195_v21 = vld [vmem:[#allocation32 + $0x598] sm:$0xff] }
 0xd04   :  { %8744 = vmatprep.subr.bf16.mxu1 %v14020_v14  ;;  %v7203_v14 = vld [vmem:[#allocation32 + $0x5d8] sm:$0xff] }
 0xd05   :  { %v13990_v12 = vcombine.high %v7195_v21, %v7203_v14  ;;  %v13989_v55 = vcombine.low %v7195_v21, %v7203_v14  ;;  %v7132_v14 = vld [vmem:[#allocation32 + $0x3a0] sm:$0xff] }
 0xd07   :  { %8745 = vmatpush1.bf16.msra.mxu1 %v14019_v15  ;;  %v7211_v15 = vld [vmem:[#allocation32 + $0x618] sm:$0xff] }
 0xd08   :  { %8746 = vmatprep.subr.bf16.mxu1 %v14036_v16  ;;  %v7219_v16 = vld [vmem:[#allocation32 + $0x658] sm:$0xff] }
 0xd09   :  { %v14006_v33 = vcombine.high %v7211_v15, %v7219_v16  ;;  %v14005_v19 = vcombine.low %v7211_v15, %v7219_v16 }
 0xd0b   :  { %8747 = vmatpush1.bf16.msra.mxu1 %v14035_v0  ;;  %v7227_v0 = vld [vmem:[#allocation32 + $0x698] sm:$0xff] }
 0xd0c   :  { %8748 = vmatprep.subr.bf16.mxu1 %v14052_v17  ;;  %v7235_v17 = vld [vmem:[#allocation32 + $0x6d8] sm:$0xff] }
 0xd0d   :  { %v14022_v18 = vcombine.high %v7227_v0, %v7235_v17  ;;  %v14021_v28 = vcombine.low %v7227_v0, %v7235_v17 }
 0xd0f   :  { %8749 = vmatpush1.bf16.msra.mxu1 %v14051_v25  ;;  %v7243_v25 = vld [vmem:[#allocation32 + $0x718] sm:$0xff] }
 0xd10   :  { %8759 = vmatprep.subr.bf16.mxu1 %v13814_v27  ;;  %v7251_v27 = vld [vmem:[#allocation32 + $0x758] sm:$0xff] }
 0xd11   :  { %v14038_v29 = vcombine.high %v7243_v25, %v7251_v27  ;;  %v14037_v7 = vcombine.low %v7243_v25, %v7251_v27 }
 0xd12   :  { %8751 = vmatmul.mubr.bf16.vlgmr.msra.gmra.mrb[48].mxu1 %v17457_v34 }
 0xd13   :  { %8760 = vmatpush1.bf16.msra.mxu1 %v13813_v30  ;;  %8791 = vmatprep.mubr.bf16.mxu1 %v17455_v32  ;;  %v7259_v30 = vld [vmem:[#allocation32 + $0x798] sm:$0xff] }
 0xd14   :  { %8761 = vmatprep.subr.bf16.mxu1 %v13830_v31  ;;  %v7267_v31 = vld [vmem:[#allocation32 + $0x7d8] sm:$0xff] }
 0xd15   :  { %v14054_v36 = vcombine.high %v7259_v30, %v7267_v31  ;;  %v14053_v43 = vcombine.low %v7259_v30, %v7267_v31 }
 0xd17   :  { %8762 = vmatpush1.bf16.msra.mxu1 %v13829_v41  ;;  %v7020_v41 = vld [vmem:[#allocation32 + $0x20] sm:$0xff] }
 0xd18   :  { %8763 = vmatprep.subr.bf16.mxu1 %v13846_v42  ;;  %v7028_v42 = vld [vmem:[#allocation32 + $0x60] sm:$0xff] }
 0xd19   :  { %v13816_v45 = vcombine.high %v7020_v41, %v7028_v42  ;;  %v13815_v49 = vcombine.low %v7020_v41, %v7028_v42 }
 0xd1b   :  { %8764 = vmatpush1.bf16.msra.mxu1 %v13845_v46  ;;  %v7036_v46 = vld [vmem:[#allocation32 + $0xa0] sm:$0xff] }
 0xd1c   :  { %8765 = vmatprep.subr.bf16.mxu1 %v13862_v48  ;;  %v7044_v48 = vld [vmem:[#allocation32 + $0xe0] sm:$0xff] }
 0xd1d   :  { %v13832_v51 = vcombine.high %v7036_v46, %v7044_v48  ;;  %v13831_v10 = vcombine.low %v7036_v46, %v7044_v48 }
 0xd1f   :  { %8766 = vmatpush1.bf16.msra.mxu1 %v13861_v52  ;;  %v7052_v52 = vld [vmem:[#allocation32 + $0x120] sm:$0xff] }
 0xd20   :  { %8767 = vmatprep.subr.bf16.mxu1 %v13878_v53  ;;  %v7060_v53 = vld [vmem:[#allocation32 + $0x160] sm:$0xff] }
 0xd21   :  { %v13848_v63 = vcombine.high %v7052_v52, %v7060_v53  ;;  %v13847_v57 = vcombine.low %v7052_v52, %v7060_v53  ;;  %v7172_v52 = vld [vmem:[#allocation32 + $0x4e0] sm:$0xff] }
 0xd23   :  { %8768 = vmatpush1.bf16.msra.mxu1 %v13877_v22  ;;  %v7068_v22 = vld [vmem:[#allocation32 + $0x1a0] sm:$0xff] }
 0xd24   :  { %8769 = vmatprep.subr.bf16.mxu1 %v13894_v37  ;;  %v7076_v37 = vld [vmem:[#allocation32 + $0x1e0] sm:$0xff] }
 0xd25   :  { %v13864_v62 = vcombine.high %v7068_v22, %v7076_v37  ;;  %v13863_v23 = vcombine.low %v7068_v22, %v7076_v37 }
 0xd27   :  { %8770 = vmatpush1.bf16.msra.mxu1 %v13893_v61  ;;  %v7084_v61 = vld [vmem:[#allocation32 + $0x220] sm:$0xff] }
 0xd28   :  { %8771 = vmatprep.subr.bf16.mxu1 %v13910_v8  ;;  %v7092_v8 = vld [vmem:[#allocation32 + $0x260] sm:$0xff] }
 0xd29   :  { %v13880_v56 = vcombine.high %v7084_v61, %v7092_v8  ;;  %v13879_v24 = vcombine.low %v7084_v61, %v7092_v8  ;;  %v7188_v61 = vld [vmem:[#allocation32 + $0x560] sm:$0xff] }
 0xd2b   :  { %8772 = vmatpush1.bf16.msra.mxu1 %v13909_v47  ;;  %v7100_v47 = vld [vmem:[#allocation32 + $0x2a0] sm:$0xff] }
 0xd2c   :  { %8773 = vmatprep.subr.bf16.mxu1 %v13926_v54  ;;  %v7108_v54 = vld [vmem:[#allocation32 + $0x2e0] sm:$0xff] }
 0xd2f   :  { %8774 = vmatpush1.bf16.msra.mxu1 %v13925_v1  ;;  %v13896_v1 = vcombine.high %v7100_v47, %v7108_v54 }
 0xd30   :  { %8775 = vmatprep.subr.bf16.mxu1 %v13942_v59  ;;  %v7116_v59 = vld [vmem:[#allocation32 + $0x320] sm:$0xff] }
 0xd31   :  { %v13912_v6 = vcombine.high %v7116_v59, %v7124_v2 }
 0xd33   :  { %8776 = vmatpush1.bf16.msra.mxu1 %v13941_v4  ;;  %v17474_v4 = vld [vmem:[#allocation35] sm:$0xff] }
 0xd34   :  { %8777 = vmatprep.subr.bf16.mxu1 %v13958_v5  ;;  %v13895_v5 = vcombine.low %v7100_v47, %v7108_v54  ;;  %v8987_v15 = vrot.slane %v17474_v4, %v17235_v9  ;;  %v8991_v0 = vrot.slane %v17474_v4, %v17216_v20  ;;  %v15344_v47 = vld [vmem:[#allocation38 + $0x244] ss:$16 sps:$4 sm:$0xff]  }
 0xd35   :  { %v7196_v54 = vld [vmem:[#allocation32 + $0x5a0] sm:$0xff] }
 0xd37   :  { %8778 = vmatpush1.bf16.msra.mxu1 %v13957_v60 }
 0xd38   :  { %8779 = vmatprep.subr.bf16.mxu1 %v13974_v58  ;;  %v17478_v58 = vld [vmem:[#allocation37] sm:$0xff] }
 0xd39   :  { %v9087_v27 = vrot.slane %v17478_v58, %v17235_v9  ;;  %v9091_v41 = vrot.slane %v17478_v58, %v17216_v20 }
 0xd3b   :  { %8780 = vmatpush1.bf16.msra.mxu1 %v13973_v11  ;;  %v7140_v11 = vld [vmem:[#allocation32 + $0x3e0] sm:$0xff] }
 0xd3c   :  { %8781 = vmatprep.subr.bf16.mxu1 %v13990_v12  ;;  %v13928_v30 = vcombine.high %v7132_v14, %v7140_v11 }
 0xd3f   :  { %8782 = vmatpush1.bf16.msra.mxu1 %v13989_v55 }
 0xd40   :  { %8783 = vmatprep.subr.bf16.mxu1 %v14006_v33 }
 0xd43   :  { %8784 = vmatpush1.bf16.msra.mxu1 %v14005_v19 }
 0xd44   :  { %8785 = vmatprep.subr.bf16.mxu1 %v14022_v18  ;;  %v13911_v18 = vcombine.low %v7116_v59, %v7124_v2  ;;  %v15342_v59 = vld [vmem:[#allocation38 + $0x240] ss:$16 sps:$4 sm:$0xff]  }
 0xd47   :  { %8786 = vmatpush1.bf16.msra.mxu1 %v14021_v28 }
 0xd48   :  { %8787 = vmatprep.subr.bf16.mxu1 %v14038_v29 }
 0xd4b   :  { %8788 = vmatpush1.bf16.msra.mxu1 %v14037_v7  ;;  %v7148_v7 = vld [vmem:[#allocation32 + $0x420] sm:$0xff] }
 0xd4c   :  { %8789 = vmatprep.subr.bf16.mxu1 %v14054_v36  ;;  %v7156_v36 = vld [vmem:[#allocation32 + $0x460] sm:$0xff] }
 0xd4d   :  { %v13944_v48 = vcombine.high %v7148_v7, %v7156_v36  ;;  %v13943_v53 = vcombine.low %v7148_v7, %v7156_v36  ;;  %v15354_v36 = vld [vmem:[#allocation38 + $0x2c0] ss:$16 sps:$4 sm:$0xff]  }
 0xd4f   :  { %8790 = vmatpush1.bf16.msra.mxu1 %v14053_v43 }
 0xd50   :  { %8800 = vmatprep.subr.bf16.mxu1 %v13816_v45  ;;  %v13927_v45 = vcombine.low %v7132_v14, %v7140_v11  ;;  %v15350_v11 = vld [vmem:[#allocation38 + $0x284] ss:$16 sps:$4 sm:$0xff]  }
 0xd52   :  { %8792 = vmatmul.mubr.bf16.vlgmr.msra.gmra.mrb[52].mxu1 %v17457_v34 }
 0xd53   :  { %8801 = vmatpush1.bf16.msra.mxu1 %v13815_v49  ;;  %8832 = vmatprep.mubr.bf16.mxu1 %v17455_v32 }
 0xd54   :  { %8802 = vmatprep.subr.bf16.mxu1 %v13832_v51  ;;  %v7164_v51 = vld [vmem:[#allocation32 + $0x4a0] sm:$0xff] }
 0xd55   :  { %v13960_v37 = vcombine.high %v7164_v51, %v7172_v52  ;;  %v13959_v8 = vcombine.low %v7164_v51, %v7172_v52  ;;  %v15362_v51 = vld [vmem:[#allocation38 + $0x304] ss:$16 sps:$4 sm:$0xff]   ;;  %v7037_v52 = vld [vmem:[#allocation32 + $0xa8] sm:$0xff] }
 0xd57   :  { %8803 = vmatpush1.bf16.msra.mxu1 %v13831_v10 }
 0xd58   :  { %8804 = vmatprep.subr.bf16.mxu1 %v13848_v63  ;;  %v15336_v63 = vld [vmem:[#allocation38 + $0x200] ss:$16 sps:$4 sm:$0xff]  }
 0xd5b   :  { %8805 = vmatpush1.bf16.msra.mxu1 %v13847_v57  ;;  %v15341_v57 = vld [vmem:[#allocation38 + $0x224] ss:$16 sps:$4 sm:$0xff]  }
 0xd5c   :  { %8806 = vmatprep.subr.bf16.mxu1 %v13864_v62  ;;  %v7180_v62 = vld [vmem:[#allocation32 + $0x520] sm:$0xff] }
 0xd5f   :  { %8807 = vmatpush1.bf16.msra.mxu1 %v13863_v23  ;;  %v15339_v23 = vld [vmem:[#allocation38 + $0x220] ss:$16 sps:$4 sm:$0xff]  }
 0xd60   :  { %8808 = vmatprep.subr.bf16.mxu1 %v13880_v56  ;;  %v13976_v56 = vcombine.high %v7180_v62, %v7188_v61 }
 0xd63   :  { %8809 = vmatpush1.bf16.msra.mxu1 %v13879_v24  ;;  %v7204_v24 = vld [vmem:[#allocation32 + $0x5e0] sm:$0xff] }
 0xd64   :  { %8810 = vmatprep.subr.bf16.mxu1 %v13896_v1  ;;  %v13975_v1 = vcombine.low %v7180_v62, %v7188_v61  ;;  %v13992_v2 = vcombine.high %v7196_v54, %v7204_v24  ;;  %v15365_v62 = vld [vmem:[#allocation38 + $0x324] ss:$16 sps:$4 sm:$0xff]   ;;  %v7053_v61 = vld [vmem:[#allocation32 + $0x128] sm:$0xff] }
 0xd65   :  { %v8670_v60 = vpop.f32.mrb[40].mxu1  ;;  %v17480_v21 = vpop.f32.mrb[20].mxu0 }
 0xd66   :  { %v8671_v12 = vadd.f32 %v8670_v60, %v7279_v3  ;;  %v8672_v16 = vpop.f32.mrb[41].mxu1  ;;  %v17484_v55 = vpop.f32.mrb[21].mxu0  ;;  %v15347_v3 = vld [vmem:[#allocation38 + $0x264] ss:$16 sps:$4 sm:$0xff]   ;;  %v15345_v60 = vld [vmem:[#allocation38 + $0x260] ss:$16 sps:$4 sm:$0xff]  }
 0xd67   :  { %v8673_v33 = vadd.f32 %v8672_v16, %v7283_v26  ;;  %8811 = vmatpush1.bf16.msra.mxu1 %v13895_v5  ;;  %v8674_v17 = vpop.f32.mrb[42].mxu1  ;;  %v8920_v19 = vpop.f32.mrb[22].mxu0  ;;  %v7212_v5 = vld [vmem:[#allocation32 + $0x620] sm:$0xff] }
 0xd68   :  { %v8964_v25 = vmax.f32 %v8671_v12, 0.0  ;;  %v8675_v28 = vpop.f32.mrb[43].mxu1  ;;  %v8921_v29 = vpop.f32.mrb[23].mxu0  ;;  %8812 = vmatprep.subr.bf16.mxu1 %v13912_v6  ;;  %v7220_v26 = vld [vmem:[#allocation32 + $0x660] sm:$0xff]  ;;  %v13991_v6 = vcombine.low %v7196_v54, %v7204_v24  ;;  %v7069_v24 = vld [vmem:[#allocation32 + $0x1a8] sm:$0xff] }
 0xd69   :  { %v8965_v31 = vmax.f32 %v8673_v33, 0.0  ;;  %v14008_v14 = vcombine.high %v7212_v5, %v7220_v26  ;;  %v7228_v12 = vld [vmem:[#allocation32 + $0x6a0] sm:$0xff]  ;;  %v14007_v16 = vcombine.low %v7212_v5, %v7220_v26  ;;  %v7085_v26 = vld [vmem:[#allocation32 + $0x228] sm:$0xff] }
 0xd6a   :  { %v9064_v42 = vmul.f32 %v8987_v15, %v8964_v25  ;;  %v7236_v15 = vld [vmem:[#allocation32 + $0x6e0] sm:$0xff] }
 0xd6b   :  { %v9065_v43 = vmul.f32 %v8991_v0, %v8965_v31  ;;  %8813 = vmatpush1.bf16.msra.mxu1 %v13911_v18  ;;  %v15348_v33 = vld [vmem:[#allocation38 + $0x280] ss:$16 sps:$4 sm:$0xff]   ;;  %v14024_v0 = vcombine.high %v7228_v12, %v7236_v15  ;;  %v15353_v17 = vld [vmem:[#allocation38 + $0x2a4] ss:$16 sps:$4 sm:$0xff]   ;;  %v14023_v25 = vcombine.low %v7228_v12, %v7236_v15  ;;  %v7101_v15 = vld [vmem:[#allocation32 + $0x2a8] sm:$0xff] }
 0xd6c   :  { %v9164_v46 = vadd.f32 %v9087_v27, %v9064_v42  ;;  %8814 = vmatprep.subr.bf16.mxu1 %v13928_v30  ;;  %v7244_v19 = vld [vmem:[#allocation32 + $0x720] sm:$0xff] }
 0xd6d   :  { %v9165_v49 = vadd.f32 %v9091_v41, %v9065_v43  ;;  %v7252_v18 = vld [vmem:[#allocation32 + $0x760] sm:$0xff]  ;;  %v7021_v43 = vld [vmem:[#allocation32 + $0x28] sm:$0xff] }
 0xd6e   :  { %v17494_v22 = vpack.c.bf16 %v9164_v46, %v9164_v46  ;;  %v15351_v27 = vld [vmem:[#allocation38 + $0x2a0] ss:$16 sps:$4 sm:$0xff]   ;;  %v14040_v28 = vcombine.high %v7244_v19, %v7252_v18  ;;  %v15356_v29 = vld [vmem:[#allocation38 + $0x2c4] ss:$16 sps:$4 sm:$0xff]   ;;  %v14039_v7 = vcombine.low %v7244_v19, %v7252_v18  ;;  %v7117_v18 = vld [vmem:[#allocation32 + $0x328] sm:$0xff] }
 0xd6f   :  { %8815 = vmatpush1.bf16.msra.mxu1 %v13927_v45  ;;  %v17492_v10 = vpack.c.bf16 %v9165_v49, %v9165_v49  ;;  %v7260_v30 = vld [vmem:[#allocation32 + $0x7a0] sm:$0xff]  ;;  %v7029_v45 = vld [vmem:[#allocation32 + $0x68] sm:$0xff] }
 0xd70   :  { %8816 = vmatprep.subr.bf16.mxu1 %v13944_v48  ;;  %v7268_v31 = vld [vmem:[#allocation32 + $0x7e0] sm:$0xff]  ;;  %v13818_v49 = vcombine.high %v7021_v43, %v7029_v45 }
 0xd71   :  { %12322 = vmatprep.mubr.bf16.mxu0 %v17492_v10  ;;  %v14056_v41 = vcombine.high %v7260_v30, %v7268_v31  ;;  %v15359_v42 = vld [vmem:[#allocation38 + $0x2e4] ss:$16 sps:$4 sm:$0xff]   ;;  %v14055_v46 = vcombine.low %v7260_v30, %v7268_v31  ;;  %v15357_v48 = vld [vmem:[#allocation38 + $0x2e0] ss:$16 sps:$4 sm:$0xff]  }
 0xd72   :  { %12323 = vmatmul.mubr.bf16.vlgmr.msra.gmra.mrb[24].mxu0 %v17494_v22  ;;  %v15368_v54 = vld [vmem:[#allocation38 + $0x344] ss:$16 sps:$4 sm:$0xff]   ;;  %v15375_v30 = vld [vmem:[#allocation38 + $0x3a0] ss:$16 sps:$4 sm:$0xff]  }
 0xd73   :  { %8817 = vmatpush1.bf16.msra.mxu1 %v13943_v53  ;;  %12332 = vmatpush1.bf16.msra.mxu0 %v15336_v63  ;;  %v7045_v53 = vld [vmem:[#allocation32 + $0xe8] sm:$0xff]  ;;  %v13817_v63 = vcombine.low %v7021_v43, %v7029_v45  ;;  %v15371_v5 = vld [vmem:[#allocation38 + $0x364] ss:$16 sps:$4 sm:$0xff]   ;;  %v8995_v45 = vrot.slane %v17474_v4, %v17264_v38 }
 0xd74   :  { %8818 = vmatprep.subr.bf16.mxu1 %v13960_v37  ;;  %12333 = vmatprep.subr.bf16.mxu0 %v15341_v57  ;;  %v15360_v37 = vld [vmem:[#allocation38 + $0x300] ss:$16 sps:$4 sm:$0xff]   ;;  %v13834_v57 = vcombine.high %v7037_v52, %v7045_v53  ;;  %v15374_v12 = vld [vmem:[#allocation38 + $0x384] ss:$16 sps:$4 sm:$0xff]  }
 0xd75   :  { %v15377_v19 = vld [vmem:[#allocation38 + $0x3a4] ss:$16 sps:$4 sm:$0xff]  }
 0xd77   :  { %8819 = vmatpush1.bf16.msra.mxu1 %v13959_v8  ;;  %12334 = vmatpush1.bf16.msra.mxu0 %v15339_v23  ;;  %v7061_v8 = vld [vmem:[#allocation32 + $0x168] sm:$0xff]  ;;  %v13833_v23 = vcombine.low %v7037_v52, %v7045_v53 }
 0xd78   :  { %8820 = vmatprep.subr.bf16.mxu1 %v13976_v56  ;;  %12335 = vmatprep.subr.bf16.mxu0 %v15344_v47  ;;  %v15363_v56 = vld [vmem:[#allocation38 + $0x320] ss:$16 sps:$4 sm:$0xff]   ;;  %v13850_v47 = vcombine.high %v7053_v61, %v7061_v8 }
 0xd7b   :  { %8821 = vmatpush1.bf16.msra.mxu1 %v13975_v1  ;;  %12336 = vmatpush1.bf16.msra.mxu0 %v15342_v59  ;;  %v7077_v1 = vld [vmem:[#allocation32 + $0x1e8] sm:$0xff]  ;;  %v13849_v59 = vcombine.low %v7053_v61, %v7061_v8  ;;  %v15383_v8 = vld [vmem:[#allocation38 + $0x3e4] ss:$16 sps:$4 sm:$0xff]  }
 0xd7c   :  { %8822 = vmatprep.subr.bf16.mxu1 %v13992_v2  ;;  %12337 = vmatprep.subr.bf16.mxu0 %v15347_v3  ;;  %v15366_v2 = vld [vmem:[#allocation38 + $0x340] ss:$16 sps:$4 sm:$0xff]   ;;  %v13866_v3 = vcombine.high %v7069_v24, %v7077_v1 }
 0xd7f   :  { %8823 = vmatpush1.bf16.msra.mxu1 %v13991_v6  ;;  %12338 = vmatpush1.bf16.msra.mxu0 %v15345_v60  ;;  %v7093_v6 = vld [vmem:[#allocation32 + $0x268] sm:$0xff]  ;;  %v13865_v60 = vcombine.low %v7069_v24, %v7077_v1 }
 0xd80   :  { %8824 = vmatprep.subr.bf16.mxu1 %v14008_v14  ;;  %12339 = vmatprep.subr.bf16.mxu0 %v15350_v11  ;;  %v15369_v14 = vld [vmem:[#allocation38 + $0x360] ss:$16 sps:$4 sm:$0xff]   ;;  %v13882_v11 = vcombine.high %v7085_v26, %v7093_v6 }
 0xd83   :  { %8825 = vmatpush1.bf16.msra.mxu1 %v14007_v16  ;;  %12340 = vmatpush1.bf16.msra.mxu0 %v15348_v33  ;;  %v7109_v16 = vld [vmem:[#allocation32 + $0x2e8] sm:$0xff]  ;;  %v13881_v33 = vcombine.low %v7085_v26, %v7093_v6  ;;  %v15386_v26 = vld [vmem:[#allocation38 + $0x404] ss:$16 sps:$4 sm:$0xff]  }
 0xd84   :  { %8826 = vmatprep.subr.bf16.mxu1 %v14024_v0  ;;  %12341 = vmatprep.subr.bf16.mxu0 %v15353_v17  ;;  %v15372_v0 = vld [vmem:[#allocation38 + $0x380] ss:$16 sps:$4 sm:$0xff]   ;;  %v13898_v17 = vcombine.high %v7101_v15, %v7109_v16  ;;  %v7165_v6 = vld [vmem:[#allocation32 + $0x4a8] sm:$0xff] }
 0xd87   :  { %8827 = vmatpush1.bf16.msra.mxu1 %v14023_v25  ;;  %12342 = vmatpush1.bf16.msra.mxu0 %v15351_v27  ;;  %v7125_v25 = vld [vmem:[#allocation32 + $0x368] sm:$0xff]  ;;  %v7287_v27 = vrot.slane %v17470_v44, %v17264_v38 }
 0xd88   :  { %8828 = vmatprep.subr.bf16.mxu1 %v14040_v28  ;;  %12343 = vmatprep.subr.bf16.mxu0 %v15356_v29  ;;  %v7291_v28 = vrot.slane %v17470_v44, %v17238_v13  ;;  %v13897_v29 = vcombine.low %v7101_v15, %v7109_v16  ;;  %v13914_v31 = vcombine.high %v7117_v18, %v7125_v25 }
 0xd89   :  { %v13913_v52 = vcombine.low %v7117_v18, %v7125_v25  ;;  %v15387_v18 = vld [vmem:[#allocation38 + $0x420] ss:$16 sps:$4 sm:$0xff]  }
 0xd8b   :  { %8829 = vmatpush1.bf16.msra.mxu1 %v14039_v7  ;;  %12344 = vmatpush1.bf16.msra.mxu0 %v15354_v36  ;;  %v15380_v36 = vld [vmem:[#allocation38 + $0x3c4] ss:$16 sps:$4 sm:$0xff]  }
 0xd8c   :  { %8830 = vmatprep.subr.bf16.mxu1 %v14056_v41  ;;  %12345 = vmatprep.subr.bf16.mxu0 %v15359_v42  ;;  %v7133_v41 = vld [vmem:[#allocation32 + $0x3a8] sm:$0xff] }
 0xd8d   :  { %v7141_v42 = vld [vmem:[#allocation32 + $0x3e8] sm:$0xff] }
 0xd8e   :  { %v13929_v1 = vcombine.low %v7133_v41, %v7141_v42 }
 0xd8f   :  { %8831 = vmatpush1.bf16.msra.mxu1 %v14055_v46  ;;  %12346 = vmatpush1.bf16.msra.mxu0 %v15357_v48 }
 0xd90   :  { %8841 = vmatprep.subr.bf16.mxu1 %v13818_v49  ;;  %12347 = vmatprep.subr.bf16.mxu0 %v15362_v51  ;;  %v8999_v49 = vrot.slane %v17474_v4, %v17238_v13 }
 0xd92   :  { %8833 = vmatmul.mubr.bf16.vlgmr.msra.gmra.mrb[56].mxu1 %v17457_v34 }
 0xd93   :  { %8842 = vmatpush1.bf16.msra.mxu1 %v13817_v63  ;;  %8873 = vmatprep.mubr.bf16.mxu1 %v17455_v32 }
 0xd94   :  { %12348 = vmatpush1.bf16.msra.mxu0 %v15360_v37  ;;  %8843 = vmatprep.subr.bf16.mxu1 %v13834_v57  ;;  %v15378_v37 = vld [vmem:[#allocation38 + $0x3c0] ss:$16 sps:$4 sm:$0xff]   ;;  %v13930_v57 = vcombine.high %v7133_v41, %v7141_v42  ;;  %v7213_v41 = vld [vmem:[#allocation32 + $0x628] sm:$0xff] }
 0xd95   :  { %12349 = vmatprep.subr.bf16.mxu0 %v15365_v62  ;;  %v9095_v62 = vrot.slane %v17478_v58, %v17264_v38  ;;  %v7221_v42 = vld [vmem:[#allocation32 + $0x668] sm:$0xff] }
 0xd97   :  { %8844 = vmatpush1.bf16.msra.mxu1 %v13833_v23  ;;  %v9099_v23 = vrot.slane %v17478_v58, %v17238_v13 }
 0xd98   :  { %12350 = vmatpush1.bf16.msra.mxu0 %v15363_v56  ;;  %8845 = vmatprep.subr.bf16.mxu1 %v13850_v47  ;;  %v7149_v56 = vld [vmem:[#allocation32 + $0x428] sm:$0xff] }
 0xd99   :  { %12351 = vmatprep.subr.bf16.mxu0 %v15368_v54  ;;  %v7157_v47 = vld [vmem:[#allocation32 + $0x468] sm:$0xff] }
 0xd9b   :  { %8846 = vmatpush1.bf16.msra.mxu1 %v13849_v59  ;;  %v15381_v59 = vld [vmem:[#allocation38 + $0x3e0] ss:$16 sps:$4 sm:$0xff]  }
 0xd9c   :  { %12352 = vmatpush1.bf16.msra.mxu0 %v15366_v2  ;;  %8847 = vmatprep.subr.bf16.mxu1 %v13866_v3  ;;  %v13946_v2 = vcombine.high %v7149_v56, %v7157_v47 }
 0xd9d   :  { %12353 = vmatprep.subr.bf16.mxu0 %v15371_v5 }
 0xd9f   :  { %8848 = vmatpush1.bf16.msra.mxu1 %v13865_v60  ;;  %v7173_v60 = vld [vmem:[#allocation32 + $0x4e8] sm:$0xff] }
 0xda0   :  { %12354 = vmatpush1.bf16.msra.mxu0 %v15369_v14  ;;  %8849 = vmatprep.subr.bf16.mxu1 %v13882_v11  ;;  %v13945_v11 = vcombine.low %v7149_v56, %v7157_v47  ;;  %v13962_v15 = vcombine.high %v7165_v6, %v7173_v60  ;;  %v15404_v56 = vld [vmem:[#allocation38 + $0x4c4] ss:$16 sps:$4 sm:$0xff]   ;;  %v7261_v47 = vld [vmem:[#allocation32 + $0x7a8] sm:$0xff] }
 0xda1   :  { %12355 = vmatprep.subr.bf16.mxu0 %v15374_v12  ;;  %v15384_v12 = vld [vmem:[#allocation38 + $0x400] ss:$16 sps:$4 sm:$0xff]  }
 0xda3   :  { %8850 = vmatpush1.bf16.msra.mxu1 %v13881_v33  ;;  %v15389_v33 = vld [vmem:[#allocation38 + $0x424] ss:$16 sps:$4 sm:$0xff]  }
 0xda4   :  { %12356 = vmatpush1.bf16.msra.mxu0 %v15372_v0  ;;  %8851 = vmatprep.subr.bf16.mxu1 %v13898_v17  ;;  %v7181_v0 = vld [vmem:[#allocation32 + $0x528] sm:$0xff] }
 0xda5   :  { %v8711_v7 = vpop.f32.mrb[44].mxu1  ;;  %12357 = vmatprep.subr.bf16.mxu0 %v15377_v19  ;;  %v7189_v17 = vld [vmem:[#allocation32 + $0x568] sm:$0xff]  ;;  %v13961_v19 = vcombine.low %v7165_v6, %v7173_v60  ;;  %v15405_v6 = vld [vmem:[#allocation38 + $0x4e0] ss:$16 sps:$4 sm:$0xff]  }
 0xda6   :  { %v8712_v43 = vadd.f32 %v8711_v7, %v7287_v27  ;;  %v8713_v46 = vpop.f32.mrb[45].mxu1  ;;  %v13978_v25 = vcombine.high %v7181_v0, %v7189_v17  ;;  %v15392_v27 = vld [vmem:[#allocation38 + $0x444] ss:$16 sps:$4 sm:$0xff]  }
 0xda7   :  { %v8714_v48 = vadd.f32 %v8713_v46, %v7291_v28  ;;  %v8715_v51 = vpop.f32.mrb[46].mxu1  ;;  %8852 = vmatpush1.bf16.msra.mxu1 %v13897_v29  ;;  %v7197_v28 = vld [vmem:[#allocation32 + $0x5a8] sm:$0xff]  ;;  %v14010_v46 = vcombine.high %v7213_v41, %v7221_v42 }
 0xda8   :  { %v8966_v53 = vmax.f32 %v8712_v43, 0.0  ;;  %12358 = vmatpush1.bf16.msra.mxu0 %v15375_v30  ;;  %v8716_v63 = vpop.f32.mrb[47].mxu1  ;;  %8853 = vmatprep.subr.bf16.mxu1 %v13914_v31  ;;  %v7205_v29 = vld [vmem:[#allocation32 + $0x5e8] sm:$0xff]  ;;  %v13977_v30 = vcombine.low %v7181_v0, %v7189_v17  ;;  %v15390_v31 = vld [vmem:[#allocation38 + $0x440] ss:$16 sps:$4 sm:$0xff]  }
 0xda9   :  { %v8967_v61 = vmax.f32 %v8714_v48, 0.0  ;;  %12359 = vmatprep.subr.bf16.mxu0 %v15380_v36  ;;  %v13994_v7 = vcombine.high %v7197_v28, %v7205_v29  ;;  %v15395_v36 = vld [vmem:[#allocation38 + $0x464] ss:$16 sps:$4 sm:$0xff]   ;;  %v13993_v43 = vcombine.low %v7197_v28, %v7205_v29  ;;  %v7237_v51 = vld [vmem:[#allocation32 + $0x6e8] sm:$0xff]  ;;  %v15408_v0 = vld [vmem:[#allocation38 + $0x500] ss:$16 sps:$4 sm:$0xff]  }
 0xdaa   :  { %v9066_v54 = vmul.f32 %v8995_v45, %v8966_v53  ;;  %v15393_v45 = vld [vmem:[#allocation38 + $0x460] ss:$16 sps:$4 sm:$0xff]   ;;  %v15398_v48 = vld [vmem:[#allocation38 + $0x484] ss:$16 sps:$4 sm:$0xff]  }
 0xdab   :  { %v9067_v24 = vmul.f32 %v8999_v49, %v8967_v61  ;;  %8854 = vmatpush1.bf16.msra.mxu1 %v13913_v52  ;;  %v7229_v49 = vld [vmem:[#allocation32 + $0x6a8] sm:$0xff]  ;;  %v14009_v52 = vcombine.low %v7213_v41, %v7221_v42  ;;  %v15396_v53 = vld [vmem:[#allocation38 + $0x480] ss:$16 sps:$4 sm:$0xff]  }
 0xdac   :  { %12360 = vmatpush1.bf16.msra.mxu0 %v15378_v37  ;;  %8855 = vmatprep.subr.bf16.mxu1 %v13930_v57  ;;  %v9166_v3 = vadd.f32 %v9095_v62, %v9066_v54  ;;  %v14026_v63 = vcombine.high %v7229_v49, %v7237_v51  ;;  %v15401_v37 = vld [vmem:[#allocation38 + $0x4a4] ss:$16 sps:$4 sm:$0xff]   ;;  %v7245_v57 = vld [vmem:[#allocation32 + $0x728] sm:$0xff]  ;;  %v14025_v61 = vcombine.low %v7229_v49, %v7237_v51  ;;  %v15411_v28 = vld [vmem:[#allocation38 + $0x520] ss:$16 sps:$4 sm:$0xff]  }
 0xdad   :  { %12361 = vmatprep.subr.bf16.mxu0 %v15383_v8  ;;  %v9167_v5 = vadd.f32 %v9099_v23, %v9067_v24  ;;  %v7253_v62 = vld [vmem:[#allocation32 + $0x768] sm:$0xff]  ;;  %v15399_v8 = vld [vmem:[#allocation38 + $0x4a0] ss:$16 sps:$4 sm:$0xff]   ;;  %v15422_v51 = vld [vmem:[#allocation38 + $0x584] ss:$16 sps:$4 sm:$0xff]  }
 0xdae   :  { %v17514_v16 = vpack.c.bf16 %v9166_v3, %v9166_v3  ;;  %v14042_v23 = vcombine.high %v7245_v57, %v7253_v62  ;;  %v7269_v54 = vld [vmem:[#allocation32 + $0x7e8] sm:$0xff]  ;;  %v14041_v24 = vcombine.low %v7245_v57, %v7253_v62  ;;  %v7023_v3 = vld [vmem:[#allocation32 + $0x38] sm:$0xff]  ;;  %v15414_v41 = vld [vmem:[#allocation38 + $0x540] ss:$16 sps:$4 sm:$0xff]  }
 0xdaf   :  { %8856 = vmatpush1.bf16.msra.mxu1 %v13929_v1  ;;  %v17512_v14 = vpack.c.bf16 %v9167_v5, %v9167_v5  ;;  %v15402_v1 = vld [vmem:[#allocation38 + $0x4c0] ss:$16 sps:$4 sm:$0xff]   ;;  %v7031_v5 = vld [vmem:[#allocation32 + $0x78] sm:$0xff]  ;;  %v15425_v62 = vld [vmem:[#allocation38 + $0x5a4] ss:$16 sps:$4 sm:$0xff]  }
 0xdb0   :  { %12362 = vmatpush1.bf16.msra.mxu0 %v15381_v59  ;;  %8857 = vmatprep.subr.bf16.mxu1 %v13946_v2  ;;  %v14058_v59 = vcombine.high %v7261_v47, %v7269_v54  ;;  %v15407_v2 = vld [vmem:[#allocation38 + $0x4e4] ss:$16 sps:$4 sm:$0xff]   ;;  %v13822_v60 = vcombine.high %v7023_v3, %v7031_v5 }
 0xdb1   :  { %12363 = vmatprep.mubr.bf16.mxu0 %v17512_v14  ;;  %12372 = vmatprep.subr.bf16.mxu0 %v15386_v26  ;;  %v14057_v26 = vcombine.low %v7261_v47, %v7269_v54  ;;  %v15423_v54 = vld [vmem:[#allocation38 + $0x5a0] ss:$16 sps:$4 sm:$0xff]  }
 0xdb3   :  { %12364 = vmatmul.mubr.bf16.vlgmr.msra.gmra.mrb[24].mxu0 %v17514_v16  ;;  %8858 = vmatpush1.bf16.msra.mxu1 %v13945_v11  ;;  %v15410_v11 = vld [vmem:[#allocation38 + $0x504] ss:$16 sps:$4 sm:$0xff]  }
 0xdb4   :  { %12373 = vmatpush1.bf16.msra.mxu0 %v15384_v12  ;;  %8859 = vmatprep.subr.bf16.mxu1 %v13962_v15  ;;  %v7039_v12 = vld [vmem:[#allocation32 + $0xb8] sm:$0xff] }
 0xdb5   :  { %12374 = vmatprep.subr.bf16.mxu0 %v15389_v33  ;;  %v7047_v15 = vld [vmem:[#allocation32 + $0xf8] sm:$0xff]  ;;  %v13821_v33 = vcombine.low %v7023_v3, %v7031_v5 }
 0xdb6   :  { %v13838_v17 = vcombine.high %v7039_v12, %v7047_v15  ;;  %v7143_v3 = vld [vmem:[#allocation32 + $0x3f8] sm:$0xff] }
 0xdb7   :  { %8860 = vmatpush1.bf16.msra.mxu1 %v13961_v19  ;;  %v15413_v19 = vld [vmem:[#allocation38 + $0x524] ss:$16 sps:$4 sm:$0xff]  }
 0xdb8   :  { %12375 = vmatpush1.bf16.msra.mxu0 %v15387_v18  ;;  %8861 = vmatprep.subr.bf16.mxu1 %v13978_v25  ;;  %v7055_v18 = vld [vmem:[#allocation32 + $0x138] sm:$0xff] }
 0xdb9   :  { %12376 = vmatprep.subr.bf16.mxu0 %v15392_v27  ;;  %v7063_v25 = vld [vmem:[#allocation32 + $0x178] sm:$0xff]  ;;  %v13837_v27 = vcombine.low %v7039_v12, %v7047_v15 }
 0xdba   :  { %v13854_v29 = vcombine.high %v7055_v18, %v7063_v25 }
 0xdbb   :  { %8862 = vmatpush1.bf16.msra.mxu1 %v13977_v30  ;;  %v15416_v30 = vld [vmem:[#allocation38 + $0x544] ss:$16 sps:$4 sm:$0xff]  }
 0xdbc   :  { %12377 = vmatpush1.bf16.msra.mxu0 %v15390_v31  ;;  %8863 = vmatprep.subr.bf16.mxu1 %v13994_v7  ;;  %v7071_v31 = vld [vmem:[#allocation32 + $0x1b8] sm:$0xff] }
 0xdbd   :  { %12378 = vmatprep.subr.bf16.mxu0 %v15395_v36  ;;  %v7079_v7 = vld [vmem:[#allocation32 + $0x1f8] sm:$0xff]  ;;  %v13853_v36 = vcombine.low %v7055_v18, %v7063_v25  ;;  %v15431_v25 = vld [vmem:[#allocation38 + $0x5e4] ss:$16 sps:$4 sm:$0xff]  }
 0xdbe   :  { %v13870_v42 = vcombine.high %v7071_v31, %v7079_v7 }
 0xdbf   :  { %8864 = vmatpush1.bf16.msra.mxu1 %v13993_v43  ;;  %v15419_v43 = vld [vmem:[#allocation38 + $0x564] ss:$16 sps:$4 sm:$0xff]  }
 0xdc0   :  { %12379 = vmatpush1.bf16.msra.mxu0 %v15393_v45  ;;  %8865 = vmatprep.subr.bf16.mxu1 %v14010_v46  ;;  %v7087_v45 = vld [vmem:[#allocation32 + $0x238] sm:$0xff] }
 0xdc1   :  { %12380 = vmatprep.subr.bf16.mxu0 %v15398_v48  ;;  %v7095_v46 = vld [vmem:[#allocation32 + $0x278] sm:$0xff]  ;;  %v15417_v48 = vld [vmem:[#allocation38 + $0x560] ss:$16 sps:$4 sm:$0xff]  }
 0xdc2   :  { %v13886_v49 = vcombine.high %v7087_v45, %v7095_v46 }
 0xdc3   :  { %8866 = vmatpush1.bf16.msra.mxu1 %v14009_v52  ;;  %v7103_v52 = vld [vmem:[#allocation32 + $0x2b8] sm:$0xff] }
 0xdc4   :  { %12381 = vmatpush1.bf16.msra.mxu0 %v15396_v53  ;;  %8867 = vmatprep.subr.bf16.mxu1 %v14026_v63  ;;  %v7111_v53 = vld [vmem:[#allocation32 + $0x2f8] sm:$0xff]  ;;  %v13885_v63 = vcombine.low %v7087_v45, %v7095_v46 }
 0xdc5   :  { %12382 = vmatprep.subr.bf16.mxu0 %v15401_v37  ;;  %v15420_v37 = vld [vmem:[#allocation38 + $0x580] ss:$16 sps:$4 sm:$0xff]   ;;  %v13902_v57 = vcombine.high %v7103_v52, %v7111_v53  ;;  %v13901_v47 = vcombine.low %v7103_v52, %v7111_v53  ;;  %v7167_v45 = vld [vmem:[#allocation32 + $0x4b8] sm:$0xff]  ;;  %v15437_v52 = vld [vmem:[#allocation38 + $0x624] ss:$16 sps:$4 sm:$0xff]  }
 0xdc6   :  { %v7175_v46 = vld [vmem:[#allocation32 + $0x4f8] sm:$0xff] }
 0xdc7   :  { %8868 = vmatpush1.bf16.msra.mxu1 %v14025_v61  ;;  %v7119_v61 = vld [vmem:[#allocation32 + $0x338] sm:$0xff] }
 0xdc8   :  { %12383 = vmatpush1.bf16.msra.mxu0 %v15399_v8  ;;  %8869 = vmatprep.subr.bf16.mxu1 %v14042_v23  ;;  %v7127_v8 = vld [vmem:[#allocation32 + $0x378] sm:$0xff]  ;;  %v7295_v23 = vrot.slane %v17470_v44, %v17284_v35 }
 0xdc9   :  { %12384 = vmatprep.subr.bf16.mxu0 %v15404_v56  ;;  %v7299_v56 = vrot.slane %v17470_v44, %v17267_v40  ;;  %v13917_v12 = vcombine.low %v7119_v61, %v7127_v8  ;;  %v7183_v53 = vld [vmem:[#allocation32 + $0x538] sm:$0xff] }
 0xdcb   :  { %8870 = vmatpush1.bf16.msra.mxu1 %v14041_v24  ;;  %v13918_v24 = vcombine.high %v7119_v61, %v7127_v8  ;;  %v15440_v61 = vld [vmem:[#allocation38 + $0x644] ss:$16 sps:$4 sm:$0xff]   ;;  %v7199_v8 = vld [vmem:[#allocation32 + $0x5b8] sm:$0xff] }
 0xdcc   :  { %12385 = vmatpush1.bf16.msra.mxu0 %v15402_v1  ;;  %8871 = vmatprep.subr.bf16.mxu1 %v14058_v59  ;;  %v15428_v59 = vld [vmem:[#allocation38 + $0x5c4] ss:$16 sps:$4 sm:$0xff]  }
 0xdcd   :  { %12386 = vmatprep.subr.bf16.mxu0 %v15407_v2  ;;  %v7135_v2 = vld [vmem:[#allocation32 + $0x3b8] sm:$0xff] }
 0xdcf   :  { %8872 = vmatpush1.bf16.msra.mxu1 %v14057_v26  ;;  %v9003_v26 = vrot.slane %v17474_v4, %v17284_v35 }
 0xdd0   :  { %12387 = vmatpush1.bf16.msra.mxu0 %v15405_v6  ;;  %8923 = vmatprep.subr.bf16.mxu1 %v13822_v60 }
 0xdd1   :  { %12388 = vmatprep.subr.bf16.mxu0 %v15410_v11  ;;  %v9007_v11 = vrot.slane %v17474_v4, %v17267_v40  ;;  %v7159_v4 = vld [vmem:[#allocation32 + $0x478] sm:$0xff] }
 0xdd2   :  { %8874 = vmatmul.mubr.bf16.vlgmr.msra.gmra.mrb[60].mxu1 %v17457_v34 }
 0xdd3   :  { %8924 = vmatpush1.bf16.msra.mxu1 %v13821_v33  ;;  %8955 = vmatprep.mubr.bf16.mxu1 %v17455_v32  ;;  %v13869_v32 = vcombine.low %v7071_v31, %v7079_v7  ;;  %v13933_v31 = vcombine.low %v7135_v2, %v7143_v3  ;;  %v15429_v7 = vld [vmem:[#allocation38 + $0x5e0] ss:$16 sps:$4 sm:$0xff]  }
 0xdd4   :  { %12389 = vmatpush1.bf16.msra.mxu0 %v15408_v0  ;;  %8925 = vmatprep.subr.bf16.mxu1 %v13838_v17  ;;  %v15426_v0 = vld [vmem:[#allocation38 + $0x5c0] ss:$16 sps:$4 sm:$0xff]   ;;  %v13934_v17 = vcombine.high %v7135_v2, %v7143_v3 }
 0xdd5   :  { %12390 = vmatprep.subr.bf16.mxu0 %v15413_v19  ;;  %v9103_v19 = vrot.slane %v17478_v58, %v17284_v35  ;;  %v15441_v3 = vld [vmem:[#allocation38 + $0x660] ss:$16 sps:$4 sm:$0xff]  }
 0xdd7   :  { %8926 = vmatpush1.bf16.msra.mxu1 %v13837_v27  ;;  %v9107_v27 = vrot.slane %v17478_v58, %v17267_v40 }
 0xdd8   :  { %12391 = vmatpush1.bf16.msra.mxu0 %v15411_v28  ;;  %8927 = vmatprep.subr.bf16.mxu1 %v13854_v29  ;;  %v7151_v28 = vld [vmem:[#allocation32 + $0x438] sm:$0xff] }
 0xdd9   :  { %12392 = vmatprep.subr.bf16.mxu0 %v15416_v30  ;;  %v13949_v58 = vcombine.low %v7151_v28, %v7159_v4 }
 0xddb   :  { %8928 = vmatpush1.bf16.msra.mxu1 %v13853_v36  ;;  %v13950_v36 = vcombine.high %v7151_v28, %v7159_v4  ;;  %v7271_v28 = vld [vmem:[#allocation32 + $0x7f8] sm:$0xff] }
 0xddc   :  { %12393 = vmatpush1.bf16.msra.mxu0 %v15414_v41  ;;  %8929 = vmatprep.subr.bf16.mxu1 %v13870_v42 }
 0xddd   :  { %12394 = vmatprep.subr.bf16.mxu0 %v15419_v43  ;;  %v15434_v43 = vld [vmem:[#allocation38 + $0x604] ss:$16 sps:$4 sm:$0xff]  }
 0xddf   :  { %8930 = vmatpush1.bf16.msra.mxu1 %v13869_v32 }
 0xde0   :  { %12395 = vmatpush1.bf16.msra.mxu0 %v15417_v48  ;;  %8931 = vmatprep.subr.bf16.mxu1 %v13886_v49  ;;  %v15432_v48 = vld [vmem:[#allocation38 + $0x600] ss:$16 sps:$4 sm:$0xff]   ;;  %v13966_v49 = vcombine.high %v7167_v45, %v7175_v46 }
 0xde1   :  { %12396 = vmatprep.subr.bf16.mxu0 %v15422_v51 }
 0xde3   :  { %8932 = vmatpush1.bf16.msra.mxu1 %v13885_v63  ;;  %v7191_v63 = vld [vmem:[#allocation32 + $0x578] sm:$0xff] }
 0xde4   :  { %12397 = vmatpush1.bf16.msra.mxu0 %v15420_v37  ;;  %8933 = vmatprep.subr.bf16.mxu1 %v13902_v57  ;;  %v13965_v37 = vcombine.low %v7167_v45, %v7175_v46  ;;  %v15435_v57 = vld [vmem:[#allocation38 + $0x620] ss:$16 sps:$4 sm:$0xff]   ;;  %v15467_v46 = vld [vmem:[#allocation38 + $0x2c] ss:$16 sps:$4 sm:$0xff]  }
 0xde5   :  { %v8752_v1 = vpop.f32.mrb[48].mxu1  ;;  %12398 = vmatprep.subr.bf16.mxu0 %v15425_v62  ;;  %v13982_v62 = vcombine.high %v7183_v53, %v7191_v63  ;;  %v15456_v45 = vld [vmem:[#allocation38 + $0x700] ss:$16 sps:$4 sm:$0xff]  }
 0xde6   :  { %v8753_v5 = vadd.f32 %v8752_v1, %v7295_v23  ;;  %v8754_v6 = vpop.f32.mrb[49].mxu1  ;;  %v7207_v23 = vld [vmem:[#allocation32 + $0x5f8] sm:$0xff] }
 0xde7   :  { %v8755_v60 = vadd.f32 %v8754_v6, %v7299_v56  ;;  %v8756_v44 = vpop.f32.mrb[50].mxu1  ;;  %8934 = vmatpush1.bf16.msra.mxu1 %v13901_v47  ;;  %v13981_v56 = vcombine.low %v7183_v53, %v7191_v63  ;;  %v15438_v47 = vld [vmem:[#allocation38 + $0x640] ss:$16 sps:$4 sm:$0xff]   ;;  %v7215_v1 = vld [vmem:[#allocation32 + $0x638] sm:$0xff]  ;;  %v13997_v2 = vcombine.low %v7199_v8, %v7207_v23  ;;  %v15470_v53 = vld [vmem:[#allocation38 + $0x744] ss:$16 sps:$4 sm:$0xff]  }
 0xde8   :  { %v8968_v15 = vmax.f32 %v8753_v5, 0.0  ;;  %12399 = vmatpush1.bf16.msra.mxu0 %v15423_v54  ;;  %v8757_v33 = vpop.f32.mrb[51].mxu1  ;;  %8935 = vmatprep.subr.bf16.mxu1 %v13918_v24  ;;  %v13998_v54 = vcombine.high %v7199_v8, %v7207_v23  ;;  %v15443_v24 = vld [vmem:[#allocation38 + $0x664] ss:$16 sps:$4 sm:$0xff]   ;;  %v7231_v6 = vld [vmem:[#allocation32 + $0x6b8] sm:$0xff] }
 0xde9   :  { %v8969_v18 = vmax.f32 %v8755_v60, 0.0  ;;  %12400 = vmatprep.subr.bf16.mxu0 %v15428_v59  ;;  %v7223_v59 = vld [vmem:[#allocation32 + $0x678] sm:$0xff]  ;;  %v15444_v44 = vld [vmem:[#allocation38 + $0x680] ss:$16 sps:$4 sm:$0xff]   ;;  %v15482_v8 = vld [vmem:[#allocation38 + $0x784] ss:$16 sps:$4 sm:$0xff]  }
 0xdea   :  { %v9068_v29 = vmul.f32 %v9003_v26, %v8968_v15  ;;  %v14014_v5 = vcombine.high %v7215_v1, %v7223_v59  ;;  %v15446_v26 = vld [vmem:[#allocation38 + $0x684] ss:$16 sps:$4 sm:$0xff]   ;;  %v7239_v60 = vld [vmem:[#allocation32 + $0x6f8] sm:$0xff] }
 0xdeb   :  { %v9069_v30 = vmul.f32 %v9007_v11, %v8969_v18  ;;  %8936 = vmatpush1.bf16.msra.mxu1 %v13917_v12  ;;  %v14013_v11 = vcombine.low %v7215_v1, %v7223_v59  ;;  %v14030_v12 = vcombine.high %v7231_v6, %v7239_v60  ;;  %v15449_v15 = vld [vmem:[#allocation38 + $0x6a4] ss:$16 sps:$4 sm:$0xff]   ;;  %v7247_v33 = vld [vmem:[#allocation32 + $0x738] sm:$0xff] }
 0xdec   :  { %12401 = vmatpush1.bf16.msra.mxu0 %v15426_v0  ;;  %8937 = vmatprep.subr.bf16.mxu1 %v13934_v17  ;;  %v9168_v41 = vadd.f32 %v9103_v19, %v9068_v29  ;;  %v7255_v0 = vld [vmem:[#allocation32 + $0x778] sm:$0xff]  ;;  %v14029_v17 = vcombine.low %v7231_v6, %v7239_v60  ;;  %v15447_v19 = vld [vmem:[#allocation38 + $0x6a0] ss:$16 sps:$4 sm:$0xff]   ;;  %v15494_v6 = vld [vmem:[#allocation38 + $0x7c4] ss:$16 sps:$4 sm:$0xff]  }
 0xded   :  { %12402 = vmatprep.subr.bf16.mxu0 %v15431_v25  ;;  %v9169_v42 = vadd.f32 %v9107_v27, %v9069_v30  ;;  %v14046_v18 = vcombine.high %v7247_v33, %v7255_v0  ;;  %v15452_v25 = vld [vmem:[#allocation38 + $0x6c4] ss:$16 sps:$4 sm:$0xff]   ;;  %v7263_v27 = vld [vmem:[#allocation32 + $0x7b8] sm:$0xff]  ;;  %v14045_v4 = vcombine.low %v7247_v33, %v7255_v0  ;;  %v15450_v29 = vld [vmem:[#allocation38 + $0x6c0] ss:$16 sps:$4 sm:$0xff]  }
 0xdee   :  { %v17534_v51 = vpack.c.bf16 %v9168_v41, %v9168_v41  ;;  %v14062_v30 = vcombine.high %v7263_v27, %v7271_v28  ;;  %v15461_v41 = vld [vmem:[#allocation38 + $0xc] ss:$16 sps:$4 sm:$0xff]   ;;  %v15471_v63 = vld [vmem:[#allocation38 + $0x48] ss:$16 sps:$4 sm:$0xff]  }
 0xdef   :  { %8938 = vmatpush1.bf16.msra.mxu1 %v13933_v31  ;;  %v17532_v32 = vpack.c.bf16 %v9169_v42, %v9169_v42  ;;  %v15455_v31 = vld [vmem:[#allocation38 + $0x6e4] ss:$16 sps:$4 sm:$0xff]   ;;  %v15483_v23 = vld [vmem:[#allocation38 + $0x88] ss:$16 sps:$4 sm:$0xff]  }
 0xdf0   :  { %12403 = vmatpush1.bf16.msra.mxu0 %v15429_v7  ;;  %8939 = vmatprep.subr.bf16.mxu1 %v13950_v36  ;;  %v14061_v7 = vcombine.low %v7263_v27, %v7271_v28  ;;  %v15453_v36 = vld [vmem:[#allocation38 + $0x6e0] ss:$16 sps:$4 sm:$0xff]   ;;  %v15458_v42 = vld [vmem:[#allocation38 + $0x704] ss:$16 sps:$4 sm:$0xff]   ;;  %v15503_v27 = vld [vmem:[#allocation38 + $0xec] ss:$16 sps:$4 sm:$0xff]  }
 0xdf1   :  { %12404 = vmatprep.mubr.bf16.mxu0 %v17532_v32  ;;  %12413 = vmatprep.subr.bf16.mxu0 %v15434_v43  ;;  %v15459_v43 = vld [vmem:[#allocation38 + $0x8] ss:$16 sps:$4 sm:$0xff]   ;;  %v16063_v28 = vld [vmem:[#allocation37] sm:$0xff] }
 0xdf3   :  { %12405 = vmatmul.mubr.bf16.vlgmr.msra.gmra.mrb[24].mxu0 %v17534_v51  ;;  %8940 = vmatpush1.bf16.msra.mxu1 %v13949_v58  ;;  %v15464_v58 = vld [vmem:[#allocation38 + $0x724] ss:$16 sps:$4 sm:$0xff]  }
 0xdf4   :  { %12414 = vmatpush1.bf16.msra.mxu0 %v15432_v48  ;;  %8941 = vmatprep.subr.bf16.mxu1 %v13966_v49  ;;  %v15465_v48 = vld [vmem:[#allocation38 + $0x28] ss:$16 sps:$4 sm:$0xff]   ;;  %v15462_v49 = vld [vmem:[#allocation38 + $0x720] ss:$16 sps:$4 sm:$0xff]  }
 0xdf5   :  { %12415 = vmatprep.subr.bf16.mxu0 %v15437_v52  ;;  %v15473_v52 = vld [vmem:[#allocation38 + $0x4c] ss:$16 sps:$4 sm:$0xff]  }
 0xdf7   :  { %8942 = vmatpush1.bf16.msra.mxu1 %v13965_v37  ;;  %v15468_v37 = vld [vmem:[#allocation38 + $0x740] ss:$16 sps:$4 sm:$0xff]  }
 0xdf8   :  { %12416 = vmatpush1.bf16.msra.mxu0 %v15435_v57  ;;  %8943 = vmatprep.subr.bf16.mxu1 %v13982_v62  ;;  %v15479_v57 = vld [vmem:[#allocation38 + $0x6c] ss:$16 sps:$4 sm:$0xff]   ;;  %v15476_v62 = vld [vmem:[#allocation38 + $0x764] ss:$16 sps:$4 sm:$0xff]  }
 0xdf9   :  { %12417 = vmatprep.subr.bf16.mxu0 %v15440_v61  ;;  %v15474_v61 = vld [vmem:[#allocation38 + $0x760] ss:$16 sps:$4 sm:$0xff]  }
 0xdfb   :  { %8944 = vmatpush1.bf16.msra.mxu1 %v13981_v56  ;;  %v15480_v56 = vld [vmem:[#allocation38 + $0x780] ss:$16 sps:$4 sm:$0xff]  }
 0xdfc   :  { %12418 = vmatpush1.bf16.msra.mxu0 %v15438_v47  ;;  %8945 = vmatprep.subr.bf16.mxu1 %v13998_v54  ;;  %v15491_v47 = vld [vmem:[#allocation38 + $0xac] ss:$16 sps:$4 sm:$0xff]   ;;  %v15488_v54 = vld [vmem:[#allocation38 + $0x7a4] ss:$16 sps:$4 sm:$0xff]  }
 0xdfd   :  { %12419 = vmatprep.subr.bf16.mxu0 %v15443_v24  ;;  %v16061_v24 = vld [vmem:[#allocation34] sm:$0xff] }
 0xdfe   :  { %v7303_v1 = vrot.slane %v16061_v24, %v17312_v50  ;;  %v7307_v59 = vrot.slane %v16061_v24, %v17287_v39  ;;  %v15533_v24 = vld [vmem:[#allocation38 + $0x18c] ss:$16 sps:$4 sm:$0xff]  }
 0xdff   :  { %8946 = vmatpush1.bf16.msra.mxu1 %v13997_v2  ;;  %v15489_v2 = vld [vmem:[#allocation38 + $0xa8] ss:$16 sps:$4 sm:$0xff]  }
 0xe00   :  { %12420 = vmatpush1.bf16.msra.mxu0 %v15441_v3  ;;  %8947 = vmatprep.subr.bf16.mxu1 %v14014_v5  ;;  %v15486_v3 = vld [vmem:[#allocation38 + $0x7a0] ss:$16 sps:$4 sm:$0xff]   ;;  %v15497_v5 = vld [vmem:[#allocation38 + $0xcc] ss:$16 sps:$4 sm:$0xff]  }
 0xe01   :  { %12421 = vmatprep.subr.bf16.mxu0 %v15446_v26 }
 0xe03   :  { %8948 = vmatpush1.bf16.msra.mxu1 %v14013_v11  ;;  %v16062_v11 = vld [vmem:[#allocation35] sm:$0xff] }
 0xe04   :  { %12422 = vmatpush1.bf16.msra.mxu0 %v15444_v44  ;;  %8949 = vmatprep.subr.bf16.mxu1 %v14030_v12  ;;  %v9011_v44 = vrot.slane %v16062_v11, %v17312_v50  ;;  %v9015_v33 = vrot.slane %v16062_v11, %v17287_v39  ;;  %v15542_v11 = vld [vmem:[#allocation38 + $0x8c4] ss:$16 sps:$4 sm:$0xff]  }
 0xe05   :  { %12423 = vmatprep.subr.bf16.mxu0 %v15449_v15 }
 0xe07   :  { %8950 = vmatpush1.bf16.msra.mxu1 %v14029_v17  ;;  %v15495_v17 = vld [vmem:[#allocation38 + $0xc8] ss:$16 sps:$4 sm:$0xff]  }
 0xe08   :  { %12424 = vmatpush1.bf16.msra.mxu0 %v15447_v19  ;;  %8951 = vmatprep.subr.bf16.mxu1 %v14046_v18 }
 0xe09   :  { %12425 = vmatprep.subr.bf16.mxu0 %v15452_v25  ;;  %v15492_v25 = vld [vmem:[#allocation38 + $0x7c0] ss:$16 sps:$4 sm:$0xff]  }
 0xe0b   :  { %8952 = vmatpush1.bf16.msra.mxu1 %v14045_v4  ;;  %v9111_v4 = vrot.slane %v16063_v28, %v17312_v50 }
 0xe0c   :  { %12426 = vmatpush1.bf16.msra.mxu0 %v15450_v29  ;;  %8953 = vmatprep.subr.bf16.mxu1 %v14062_v30  ;;  %v15500_v30 = vld [vmem:[#allocation38 + $0x7e4] ss:$16 sps:$4 sm:$0xff]  }
 0xe0d   :  { %12427 = vmatprep.subr.bf16.mxu0 %v15455_v31  ;;  %v9115_v31 = vrot.slane %v16063_v28, %v17287_v39  ;;  %v15563_v28 = vld [vmem:[#allocation38 + $0x22c] ss:$16 sps:$4 sm:$0xff]  }
 0xe0f   :  { %8954 = vmatpush1.bf16.msra.mxu1 %v14061_v7 }
 0xe10   :  { %12428 = vmatpush1.bf16.msra.mxu0 %v15453_v36  ;;  %12618 = vmatprep.subr.bf16.mxu1 %v15461_v41  ;;  %v15501_v41 = vld [vmem:[#allocation38 + $0xe8] ss:$16 sps:$4 sm:$0xff]  }
 0xe11   :  { %12429 = vmatprep.subr.bf16.mxu0 %v15458_v42  ;;  %v15498_v42 = vld [vmem:[#allocation38 + $0x7e0] ss:$16 sps:$4 sm:$0xff]  }
 0xe12   :  { %8956 = vmatmul.mubr.bf16.vlgmr.msra.gmra.mrb[64].mxu1 %v17457_v34  ;;  %v15477_v34 = vld [vmem:[#allocation38 + $0x68] ss:$16 sps:$4 sm:$0xff]  }
 0xe13   :  { %12619 = vmatpush1.bf16.msra.mxu1 %v15459_v43  ;;  %12650 = vmatprep.mubr.bf16.mxu1 %v17492_v10  ;;  %v15485_v10 = vld [vmem:[#allocation38 + $0x8c] ss:$16 sps:$4 sm:$0xff]  }
 0xe14   :  { %12430 = vmatpush1.bf16.msra.mxu0 %v15456_v45  ;;  %12620 = vmatprep.subr.bf16.mxu1 %v15467_v46  ;;  %v15509_v43 = vld [vmem:[#allocation38 + $0x10c] ss:$16 sps:$4 sm:$0xff]  }
 0xe15   :  { %12431 = vmatprep.subr.bf16.mxu0 %v15464_v58  ;;  %v15506_v58 = vld [vmem:[#allocation38 + $0x804] ss:$16 sps:$4 sm:$0xff]  }
 0xe17   :  { %12621 = vmatpush1.bf16.msra.mxu1 %v15465_v48 }
 0xe18   :  { %12432 = vmatpush1.bf16.msra.mxu0 %v15462_v49  ;;  %12622 = vmatprep.subr.bf16.mxu1 %v15473_v52  ;;  %v15507_v49 = vld [vmem:[#allocation38 + $0x108] ss:$16 sps:$4 sm:$0xff]   ;;  %v15504_v52 = vld [vmem:[#allocation38 + $0x800] ss:$16 sps:$4 sm:$0xff]  }
 0xe19   :  { %12433 = vmatprep.subr.bf16.mxu0 %v15470_v53  ;;  %v15515_v53 = vld [vmem:[#allocation38 + $0x12c] ss:$16 sps:$4 sm:$0xff]  }
 0xe1b   :  { %12623 = vmatpush1.bf16.msra.mxu1 %v15471_v63 }
 0xe1c   :  { %12434 = vmatpush1.bf16.msra.mxu0 %v15468_v37  ;;  %12624 = vmatprep.subr.bf16.mxu1 %v15479_v57  ;;  %v15512_v37 = vld [vmem:[#allocation38 + $0x824] ss:$16 sps:$4 sm:$0xff]   ;;  %v15513_v57 = vld [vmem:[#allocation38 + $0x128] ss:$16 sps:$4 sm:$0xff]  }
 0xe1d   :  { %12435 = vmatprep.subr.bf16.mxu0 %v15476_v62  ;;  %v15510_v62 = vld [vmem:[#allocation38 + $0x820] ss:$16 sps:$4 sm:$0xff]  }
 0xe1f   :  { %12625 = vmatpush1.bf16.msra.mxu1 %v15477_v34  ;;  %v15521_v34 = vld [vmem:[#allocation38 + $0x14c] ss:$16 sps:$4 sm:$0xff]  }
 0xe20   :  { %12436 = vmatpush1.bf16.msra.mxu0 %v15474_v61  ;;  %12626 = vmatprep.subr.bf16.mxu1 %v15485_v10  ;;  %v15518_v61 = vld [vmem:[#allocation38 + $0x844] ss:$16 sps:$4 sm:$0xff]   ;;  %v15519_v10 = vld [vmem:[#allocation38 + $0x148] ss:$16 sps:$4 sm:$0xff]  }
 0xe21   :  { %12437 = vmatprep.subr.bf16.mxu0 %v15482_v8  ;;  %v15516_v8 = vld [vmem:[#allocation38 + $0x840] ss:$16 sps:$4 sm:$0xff]  }
 0xe23   :  { %12627 = vmatpush1.bf16.msra.mxu1 %v15483_v23  ;;  %v15527_v23 = vld [vmem:[#allocation38 + $0x16c] ss:$16 sps:$4 sm:$0xff]  }
 0xe24   :  { %12438 = vmatpush1.bf16.msra.mxu0 %v15480_v56  ;;  %12628 = vmatprep.subr.bf16.mxu1 %v15491_v47  ;;  %v15524_v56 = vld [vmem:[#allocation38 + $0x864] ss:$16 sps:$4 sm:$0xff]   ;;  %v15525_v47 = vld [vmem:[#allocation38 + $0x168] ss:$16 sps:$4 sm:$0xff]  }
 0xe25   :  { %v8793_v26 = vpop.f32.mrb[52].mxu1  ;;  %12439 = vmatprep.subr.bf16.mxu0 %v15488_v54  ;;  %v15522_v54 = vld [vmem:[#allocation38 + $0x860] ss:$16 sps:$4 sm:$0xff]  }
 0xe26   :  { %v8794_v60 = vadd.f32 %v8793_v26, %v7303_v1  ;;  %v8795_v12 = vpop.f32.mrb[53].mxu1  ;;  %v15530_v1 = vld [vmem:[#allocation38 + $0x884] ss:$16 sps:$4 sm:$0xff]   ;;  %v15537_v26 = vld [vmem:[#allocation38 + $0x1a8] ss:$16 sps:$4 sm:$0xff]  }
 0xe27   :  { %v8796_v15 = vadd.f32 %v8795_v12, %v7307_v59  ;;  %v8797_v0 = vpop.f32.mrb[54].mxu1  ;;  %12629 = vmatpush1.bf16.msra.mxu1 %v15489_v2  ;;  %v15531_v59 = vld [vmem:[#allocation38 + $0x188] ss:$16 sps:$4 sm:$0xff]   ;;  %v15528_v2 = vld [vmem:[#allocation38 + $0x880] ss:$16 sps:$4 sm:$0xff]  }
 0xe28   :  { %v8970_v19 = vmax.f32 %v8794_v60, 0.0  ;;  %12440 = vmatpush1.bf16.msra.mxu0 %v15486_v3  ;;  %v8798_v18 = vpop.f32.mrb[55].mxu1  ;;  %12630 = vmatprep.subr.bf16.mxu1 %v15497_v5  ;;  %v15539_v3 = vld [vmem:[#allocation38 + $0x1ac] ss:$16 sps:$4 sm:$0xff]   ;;  %v15536_v5 = vld [vmem:[#allocation38 + $0x8a4] ss:$16 sps:$4 sm:$0xff]  }
 0xe29   :  { %v8971_v29 = vmax.f32 %v8796_v15, 0.0  ;;  %12441 = vmatprep.subr.bf16.mxu0 %v15494_v6  ;;  %v15534_v6 = vld [vmem:[#allocation38 + $0x8a0] ss:$16 sps:$4 sm:$0xff]   ;;  %v15545_v60 = vld [vmem:[#allocation38 + $0x1cc] ss:$16 sps:$4 sm:$0xff]  }
 0xe2a   :  { %v9070_v7 = vmul.f32 %v9011_v44, %v8970_v19  ;;  %v15543_v44 = vld [vmem:[#allocation38 + $0x1c8] ss:$16 sps:$4 sm:$0xff]   ;;  %v15540_v12 = vld [vmem:[#allocation38 + $0x8c0] ss:$16 sps:$4 sm:$0xff]   ;;  %v15551_v15 = vld [vmem:[#allocation38 + $0x1ec] ss:$16 sps:$4 sm:$0xff]  }
 0xe2b   :  { %v9071_v36 = vmul.f32 %v9015_v33, %v8971_v29  ;;  %12631 = vmatpush1.bf16.msra.mxu1 %v15495_v17  ;;  %v15548_v33 = vld [vmem:[#allocation38 + $0x8e4] ss:$16 sps:$4 sm:$0xff]   ;;  %v15549_v0 = vld [vmem:[#allocation38 + $0x1e8] ss:$16 sps:$4 sm:$0xff]   ;;  %v15546_v17 = vld [vmem:[#allocation38 + $0x8e0] ss:$16 sps:$4 sm:$0xff]  }
 0xe2c   :  { %12442 = vmatpush1.bf16.msra.mxu0 %v15492_v25  ;;  %12632 = vmatprep.subr.bf16.mxu1 %v15503_v27  ;;  %v9170_v45 = vadd.f32 %v9111_v4, %v9070_v7  ;;  %v15557_v19 = vld [vmem:[#allocation38 + $0x20c] ss:$16 sps:$4 sm:$0xff]   ;;  %v15554_v18 = vld [vmem:[#allocation38 + $0x904] ss:$16 sps:$4 sm:$0xff]   ;;  %v15555_v25 = vld [vmem:[#allocation38 + $0x208] ss:$16 sps:$4 sm:$0xff]  }
 0xe2d   :  { %12443 = vmatprep.subr.bf16.mxu0 %v15500_v30  ;;  %v9171_v46 = vadd.f32 %v9115_v31, %v9071_v36  ;;  %v15552_v27 = vld [vmem:[#allocation38 + $0x900] ss:$16 sps:$4 sm:$0xff]   ;;  %v15560_v4 = vld [vmem:[#allocation38 + $0x924] ss:$16 sps:$4 sm:$0xff]   ;;  %v15561_v29 = vld [vmem:[#allocation38 + $0x228] ss:$16 sps:$4 sm:$0xff]  }
 0xe2e   :  { %v17548_v63 = vpack.c.bf16 %v9170_v45, %v9170_v45  ;;  %v15558_v30 = vld [vmem:[#allocation38 + $0x920] ss:$16 sps:$4 sm:$0xff]   ;;  %v15569_v31 = vld [vmem:[#allocation38 + $0x24c] ss:$16 sps:$4 sm:$0xff]   ;;  %v15566_v7 = vld [vmem:[#allocation38 + $0x944] ss:$16 sps:$4 sm:$0xff]  }
 0xe2f   :  { %12633 = vmatpush1.bf16.msra.mxu1 %v15501_v41  ;;  %v17546_v48 = vpack.c.bf16 %v9171_v46, %v9171_v46  ;;  %v15567_v36 = vld [vmem:[#allocation38 + $0x248] ss:$16 sps:$4 sm:$0xff]   ;;  %v15564_v41 = vld [vmem:[#allocation38 + $0x940] ss:$16 sps:$4 sm:$0xff]   ;;  %v15578_v46 = vld [vmem:[#allocation38 + $0x984] ss:$16 sps:$4 sm:$0xff]  }
 0xe30   :  { %12444 = vmatpush1.bf16.msra.mxu0 %v15498_v42  ;;  %12634 = vmatprep.subr.bf16.mxu1 %v15509_v43  ;;  %v15575_v42 = vld [vmem:[#allocation38 + $0x26c] ss:$16 sps:$4 sm:$0xff]   ;;  %v15572_v43 = vld [vmem:[#allocation38 + $0x964] ss:$16 sps:$4 sm:$0xff]   ;;  %v15570_v45 = vld [vmem:[#allocation38 + $0x960] ss:$16 sps:$4 sm:$0xff]  }
 0xe31   :  { %12445 = vmatprep.mubr.bf16.mxu0 %v17546_v48  ;;  %12454 = vmatprep.subr.bf16.mxu0 %v15506_v58  ;;  %v15579_v58 = vld [vmem:[#allocation38 + $0x288] ss:$16 sps:$4 sm:$0xff]  }
 0xe33   :  { %12446 = vmatmul.mubr.bf16.vlgmr.msra.gmra.mrb[24].mxu0 %v17548_v63  ;;  %12635 = vmatpush1.bf16.msra.mxu1 %v15507_v49  ;;  %v15576_v49 = vld [vmem:[#allocation38 + $0x980] ss:$16 sps:$4 sm:$0xff]  }
 0xe34   :  { %12455 = vmatpush1.bf16.msra.mxu0 %v15504_v52  ;;  %12636 = vmatprep.subr.bf16.mxu1 %v15515_v53  ;;  %v15587_v52 = vld [vmem:[#allocation38 + $0x2ac] ss:$16 sps:$4 sm:$0xff]  }
 0xe35   :  { %12456 = vmatprep.subr.bf16.mxu0 %v15512_v37  ;;  %v17554_v53 = vld [vmem:[#allocation34 + $0x8] sm:$0xff]  ;;  %v15584_v37 = vld [vmem:[#allocation38 + $0x9a4] ss:$16 sps:$4 sm:$0xff]  }
 0xe37   :  { %12637 = vmatpush1.bf16.msra.mxu1 %v15513_v57  ;;  %v7311_v57 = vrot.slane %v17554_v53, %v17235_v9 }
 0xe38   :  { %12457 = vmatpush1.bf16.msra.mxu0 %v15510_v62  ;;  %12638 = vmatprep.subr.bf16.mxu1 %v15521_v34  ;;  %v7315_v62 = vrot.slane %v17554_v53, %v17216_v20  ;;  %v15585_v34 = vld [vmem:[#allocation38 + $0x2a8] ss:$16 sps:$4 sm:$0xff]  }
 0xe39   :  { %12458 = vmatprep.subr.bf16.mxu0 %v15518_v61  ;;  %v15582_v61 = vld [vmem:[#allocation38 + $0x9a0] ss:$16 sps:$4 sm:$0xff]  }
 0xe3b   :  { %12639 = vmatpush1.bf16.msra.mxu1 %v15519_v10  ;;  %v15593_v10 = vld [vmem:[#allocation38 + $0x2cc] ss:$16 sps:$4 sm:$0xff]  }
 0xe3c   :  { %12459 = vmatpush1.bf16.msra.mxu0 %v15516_v8  ;;  %12640 = vmatprep.subr.bf16.mxu1 %v15527_v23  ;;  %v17560_v8 = vld [vmem:[#allocation35 + $0x8] sm:$0xff] }
 0xe3d   :  { %12460 = vmatprep.subr.bf16.mxu0 %v15524_v56  ;;  %v15590_v56 = vld [vmem:[#allocation38 + $0x9c4] ss:$16 sps:$4 sm:$0xff]  }
 0xe3f   :  { %12641 = vmatpush1.bf16.msra.mxu1 %v15525_v47 }
 0xe40   :  { %12461 = vmatpush1.bf16.msra.mxu0 %v15522_v54  ;;  %12642 = vmatprep.subr.bf16.mxu1 %v15533_v24  ;;  %v9019_v54 = vrot.slane %v17560_v8, %v17235_v9 }
 0xe41   :  { %12462 = vmatprep.subr.bf16.mxu0 %v15530_v1  ;;  %v17564_v1 = vld [vmem:[#allocation37 + $0x8] sm:$0xff] }
 0xe43   :  { %12643 = vmatpush1.bf16.msra.mxu1 %v15531_v59 }
 0xe44   :  { %12463 = vmatpush1.bf16.msra.mxu0 %v15528_v2  ;;  %12644 = vmatprep.subr.bf16.mxu1 %v15539_v3  ;;  %v9023_v2 = vrot.slane %v17560_v8, %v17216_v20 }
 0xe45   :  { %12464 = vmatprep.subr.bf16.mxu0 %v15536_v5  ;;  %v15591_v5 = vld [vmem:[#allocation38 + $0x2c8] ss:$16 sps:$4 sm:$0xff]  }
 0xe47   :  { %12645 = vmatpush1.bf16.msra.mxu1 %v15537_v26 }
 0xe48   :  { %12465 = vmatpush1.bf16.msra.mxu0 %v15534_v6  ;;  %12646 = vmatprep.subr.bf16.mxu1 %v15545_v60  ;;  %v15588_v60 = vld [vmem:[#allocation38 + $0x9c0] ss:$16 sps:$4 sm:$0xff]  }
 0xe49   :  { %12466 = vmatprep.subr.bf16.mxu0 %v15542_v11  ;;  %v15599_v11 = vld [vmem:[#allocation38 + $0x2ec] ss:$16 sps:$4 sm:$0xff]  }
 0xe4b   :  { %12647 = vmatpush1.bf16.msra.mxu1 %v15543_v44  ;;  %v9119_v44 = vrot.slane %v17564_v1, %v17235_v9 }
 0xe4c   :  { %12467 = vmatpush1.bf16.msra.mxu0 %v15540_v12  ;;  %12648 = vmatprep.subr.bf16.mxu1 %v15551_v15  ;;  %v15596_v15 = vld [vmem:[#allocation38 + $0x9e4] ss:$16 sps:$4 sm:$0xff]  }
 0xe4d   :  { %12468 = vmatprep.subr.bf16.mxu0 %v15548_v33  ;;  %v9123_v33 = vrot.slane %v17564_v1, %v17216_v20 }
 0xe4f   :  { %12649 = vmatpush1.bf16.msra.mxu1 %v15549_v0 }
 0xe50   :  { %12469 = vmatpush1.bf16.msra.mxu0 %v15546_v17  ;;  %12659 = vmatprep.subr.bf16.mxu1 %v15557_v19  ;;  %v15597_v19 = vld [vmem:[#allocation38 + $0x2e8] ss:$16 sps:$4 sm:$0xff]  }
 0xe51   :  { %12470 = vmatprep.subr.bf16.mxu0 %v15554_v18  ;;  %v15594_v18 = vld [vmem:[#allocation38 + $0x9e0] ss:$16 sps:$4 sm:$0xff]  }
 0xe52   :  { %12651 = vmatmul.mubr.bf16.vlgmr.msra.gmra.mrb[68].mxu1 %v17494_v22  ;;  %v15573_v22 = vld [vmem:[#allocation38 + $0x268] ss:$16 sps:$4 sm:$0xff]  }
 0xe53   :  { %12660 = vmatpush1.bf16.msra.mxu1 %v15555_v25  ;;  %12691 = vmatprep.mubr.bf16.mxu1 %v17512_v14  ;;  %v15581_v14 = vld [vmem:[#allocation38 + $0x28c] ss:$16 sps:$4 sm:$0xff]  }
 0xe54   :  { %12471 = vmatpush1.bf16.msra.mxu0 %v15552_v27  ;;  %12661 = vmatprep.subr.bf16.mxu1 %v15563_v28  ;;  %v15605_v25 = vld [vmem:[#allocation38 + $0x30c] ss:$16 sps:$4 sm:$0xff]  }
 0xe55   :  { %12472 = vmatprep.subr.bf16.mxu0 %v15560_v4  ;;  %v15602_v4 = vld [vmem:[#allocation38 + $0xa04] ss:$16 sps:$4 sm:$0xff]  }
 0xe57   :  { %12662 = vmatpush1.bf16.msra.mxu1 %v15561_v29 }
 0xe58   :  { %12473 = vmatpush1.bf16.msra.mxu0 %v15558_v30  ;;  %12663 = vmatprep.subr.bf16.mxu1 %v15569_v31  ;;  %v15603_v30 = vld [vmem:[#allocation38 + $0x308] ss:$16 sps:$4 sm:$0xff]   ;;  %v15600_v31 = vld [vmem:[#allocation38 + $0xa00] ss:$16 sps:$4 sm:$0xff]  }
 0xe59   :  { %12474 = vmatprep.subr.bf16.mxu0 %v15566_v7  ;;  %v15611_v7 = vld [vmem:[#allocation38 + $0x32c] ss:$16 sps:$4 sm:$0xff]  }
 0xe5b   :  { %12664 = vmatpush1.bf16.msra.mxu1 %v15567_v36 }
 0xe5c   :  { %12475 = vmatpush1.bf16.msra.mxu0 %v15564_v41  ;;  %12665 = vmatprep.subr.bf16.mxu1 %v15575_v42  ;;  %v15608_v41 = vld [vmem:[#allocation38 + $0xa24] ss:$16 sps:$4 sm:$0xff]   ;;  %v15609_v42 = vld [vmem:[#allocation38 + $0x328] ss:$16 sps:$4 sm:$0xff]  }
 0xe5d   :  { %12476 = vmatprep.subr.bf16.mxu0 %v15572_v43  ;;  %v15606_v43 = vld [vmem:[#allocation38 + $0xa20] ss:$16 sps:$4 sm:$0xff]  }
 0xe5f   :  { %12666 = vmatpush1.bf16.msra.mxu1 %v15573_v22  ;;  %v15617_v22 = vld [vmem:[#allocation38 + $0x34c] ss:$16 sps:$4 sm:$0xff]  }
 0xe60   :  { %12477 = vmatpush1.bf16.msra.mxu0 %v15570_v45  ;;  %12667 = vmatprep.subr.bf16.mxu1 %v15581_v14  ;;  %v15614_v45 = vld [vmem:[#allocation38 + $0xa44] ss:$16 sps:$4 sm:$0xff]   ;;  %v15615_v14 = vld [vmem:[#allocation38 + $0x348] ss:$16 sps:$4 sm:$0xff]  }
 0xe61   :  { %12478 = vmatprep.subr.bf16.mxu0 %v15578_v46  ;;  %v15612_v46 = vld [vmem:[#allocation38 + $0xa40] ss:$16 sps:$4 sm:$0xff]  }
 0xe63   :  { %12668 = vmatpush1.bf16.msra.mxu1 %v15579_v58  ;;  %v15623_v58 = vld [vmem:[#allocation38 + $0x36c] ss:$16 sps:$4 sm:$0xff]  }
 0xe64   :  { %12479 = vmatpush1.bf16.msra.mxu0 %v15576_v49  ;;  %12669 = vmatprep.subr.bf16.mxu1 %v15587_v52  ;;  %v15620_v49 = vld [vmem:[#allocation38 + $0xa64] ss:$16 sps:$4 sm:$0xff]   ;;  %v15621_v52 = vld [vmem:[#allocation38 + $0x368] ss:$16 sps:$4 sm:$0xff]  }
 0xe65   :  { %v8834_v23 = vpop.f32.mrb[56].mxu1  ;;  %12480 = vmatprep.subr.bf16.mxu0 %v15584_v37  ;;  %v15618_v37 = vld [vmem:[#allocation38 + $0xa60] ss:$16 sps:$4 sm:$0xff]  }
 0xe66   :  { %v8835_v47 = vadd.f32 %v8834_v23, %v7311_v57  ;;  %v8836_v24 = vpop.f32.mrb[57].mxu1  ;;  %v15629_v57 = vld [vmem:[#allocation38 + $0x38c] ss:$16 sps:$4 sm:$0xff]   ;;  %v15632_v23 = vld [vmem:[#allocation38 + $0xaa4] ss:$16 sps:$4 sm:$0xff]  }
 0xe67   :  { %v8837_v59 = vadd.f32 %v8836_v24, %v7315_v62  ;;  %v8838_v3 = vpop.f32.mrb[58].mxu1  ;;  %12670 = vmatpush1.bf16.msra.mxu1 %v15585_v34  ;;  %v15626_v62 = vld [vmem:[#allocation38 + $0xa84] ss:$16 sps:$4 sm:$0xff]   ;;  %v15627_v34 = vld [vmem:[#allocation38 + $0x388] ss:$16 sps:$4 sm:$0xff]  }
 0xe68   :  { %v8972_v26 = vmax.f32 %v8835_v47, 0.0  ;;  %12481 = vmatpush1.bf16.msra.mxu0 %v15582_v61  ;;  %v8839_v6 = vpop.f32.mrb[59].mxu1  ;;  %12671 = vmatprep.subr.bf16.mxu1 %v15593_v10  ;;  %v15624_v61 = vld [vmem:[#allocation38 + $0xa80] ss:$16 sps:$4 sm:$0xff]   ;;  %v15635_v10 = vld [vmem:[#allocation38 + $0x3ac] ss:$16 sps:$4 sm:$0xff]  }
 0xe69   :  { %v8973_v12 = vmax.f32 %v8837_v59, 0.0  ;;  %12482 = vmatprep.subr.bf16.mxu0 %v15590_v56  ;;  %v15633_v56 = vld [vmem:[#allocation38 + $0x3a8] ss:$16 sps:$4 sm:$0xff]   ;;  %v15630_v47 = vld [vmem:[#allocation38 + $0xaa0] ss:$16 sps:$4 sm:$0xff]  }
 0xe6a   :  { %v9072_v0 = vmul.f32 %v9019_v54, %v8972_v26  ;;  %v15641_v54 = vld [vmem:[#allocation38 + $0x3cc] ss:$16 sps:$4 sm:$0xff]   ;;  %v15638_v24 = vld [vmem:[#allocation38 + $0xac4] ss:$16 sps:$4 sm:$0xff]   ;;  %v15639_v59 = vld [vmem:[#allocation38 + $0x3c8] ss:$16 sps:$4 sm:$0xff]  }
 0xe6b   :  { %v9073_v17 = vmul.f32 %v9023_v2, %v8973_v12  ;;  %12672 = vmatpush1.bf16.msra.mxu1 %v15591_v5  ;;  %v15636_v2 = vld [vmem:[#allocation38 + $0xac0] ss:$16 sps:$4 sm:$0xff]   ;;  %v15647_v3 = vld [vmem:[#allocation38 + $0x3ec] ss:$16 sps:$4 sm:$0xff]   ;;  %v15644_v5 = vld [vmem:[#allocation38 + $0xae4] ss:$16 sps:$4 sm:$0xff]  }
 0xe6c   :  { %12483 = vmatpush1.bf16.msra.mxu0 %v15588_v60  ;;  %12673 = vmatprep.subr.bf16.mxu1 %v15599_v11  ;;  %v9172_v27 = vadd.f32 %v9119_v44, %v9072_v0  ;;  %v15645_v26 = vld [vmem:[#allocation38 + $0x3e8] ss:$16 sps:$4 sm:$0xff]   ;;  %v15642_v6 = vld [vmem:[#allocation38 + $0xae0] ss:$16 sps:$4 sm:$0xff]   ;;  %v15653_v60 = vld [vmem:[#allocation38 + $0x40c] ss:$16 sps:$4 sm:$0xff]  }
 0xe6d   :  { %12484 = vmatprep.subr.bf16.mxu0 %v15596_v15  ;;  %v9173_v28 = vadd.f32 %v9123_v33, %v9073_v17  ;;  %v15650_v11 = vld [vmem:[#allocation38 + $0xb04] ss:$16 sps:$4 sm:$0xff]   ;;  %v15651_v44 = vld [vmem:[#allocation38 + $0x408] ss:$16 sps:$4 sm:$0xff]   ;;  %v15648_v12 = vld [vmem:[#allocation38 + $0xb00] ss:$16 sps:$4 sm:$0xff]  }
 0xe6e   :  { %v17574_v36 = vpack.c.bf16 %v9172_v27, %v9172_v27  ;;  %v15659_v15 = vld [vmem:[#allocation38 + $0x42c] ss:$16 sps:$4 sm:$0xff]   ;;  %v15656_v33 = vld [vmem:[#allocation38 + $0xb24] ss:$16 sps:$4 sm:$0xff]   ;;  %v15657_v0 = vld [vmem:[#allocation38 + $0x428] ss:$16 sps:$4 sm:$0xff]  }
 0xe6f   :  { %12674 = vmatpush1.bf16.msra.mxu1 %v15597_v19  ;;  %v17572_v29 = vpack.c.bf16 %v9173_v28, %v9173_v28  ;;  %v15654_v17 = vld [vmem:[#allocation38 + $0xb20] ss:$16 sps:$4 sm:$0xff]   ;;  %v15665_v19 = vld [vmem:[#allocation38 + $0x44c] ss:$16 sps:$4 sm:$0xff]  }
 0xe70   :  { %12485 = vmatpush1.bf16.msra.mxu0 %v15594_v18  ;;  %12675 = vmatprep.subr.bf16.mxu1 %v15605_v25  ;;  %v15662_v18 = vld [vmem:[#allocation38 + $0xb44] ss:$16 sps:$4 sm:$0xff]   ;;  %v15663_v25 = vld [vmem:[#allocation38 + $0x448] ss:$16 sps:$4 sm:$0xff]   ;;  %v15660_v27 = vld [vmem:[#allocation38 + $0xb40] ss:$16 sps:$4 sm:$0xff]  }
 0xe71   :  { %12486 = vmatprep.mubr.bf16.mxu0 %v17572_v29  ;;  %12495 = vmatprep.subr.bf16.mxu0 %v15602_v4  ;;  %v15671_v28 = vld [vmem:[#allocation38 + $0x46c] ss:$16 sps:$4 sm:$0xff]   ;;  %v15668_v4 = vld [vmem:[#allocation38 + $0xb64] ss:$16 sps:$4 sm:$0xff]  }
 0xe73   :  { %12487 = vmatmul.mubr.bf16.vlgmr.msra.gmra.mrb[24].mxu0 %v17574_v36  ;;  %12676 = vmatpush1.bf16.msra.mxu1 %v15603_v30  ;;  %v15666_v30 = vld [vmem:[#allocation38 + $0xb60] ss:$16 sps:$4 sm:$0xff]  }
 0xe74   :  { %12496 = vmatpush1.bf16.msra.mxu0 %v15600_v31  ;;  %12677 = vmatprep.subr.bf16.mxu1 %v15611_v7  ;;  %v15674_v31 = vld [vmem:[#allocation38 + $0xb84] ss:$16 sps:$4 sm:$0xff]   ;;  %v7331_v7 = vrot.slane %v17554_v53, %v17267_v40 }
 0xe75   :  { %12497 = vmatprep.subr.bf16.mxu0 %v15608_v41  ;;  %v15675_v41 = vld [vmem:[#allocation38 + $0x488] ss:$16 sps:$4 sm:$0xff]  }
 0xe77   :  { %12678 = vmatpush1.bf16.msra.mxu1 %v15609_v42  ;;  %v15672_v42 = vld [vmem:[#allocation38 + $0xb80] ss:$16 sps:$4 sm:$0xff]  }
 0xe78   :  { %12498 = vmatpush1.bf16.msra.mxu0 %v15606_v43  ;;  %12679 = vmatprep.subr.bf16.mxu1 %v15617_v22  ;;  %v15683_v43 = vld [vmem:[#allocation38 + $0x4ac] ss:$16 sps:$4 sm:$0xff]   ;;  %v15680_v22 = vld [vmem:[#allocation38 + $0xba4] ss:$16 sps:$4 sm:$0xff]  }
 0xe79   :  { %12499 = vmatprep.subr.bf16.mxu0 %v15614_v45  ;;  %v8919_v45 = vadd.f32 %v17484_v55, %v7331_v7  ;;  %v15705_v7 = vld [vmem:[#allocation38 + $0x528] ss:$16 sps:$4 sm:$0xff]  }
 0xe7b   :  { %12680 = vmatpush1.bf16.msra.mxu1 %v15615_v14  ;;  %v7319_v14 = vrot.slane %v17554_v53, %v17264_v38 }
 0xe7c   :  { %12500 = vmatpush1.bf16.msra.mxu0 %v15612_v46  ;;  %12681 = vmatprep.subr.bf16.mxu1 %v15623_v58  ;;  %v7323_v46 = vrot.slane %v17554_v53, %v17238_v13  ;;  %v15681_v58 = vld [vmem:[#allocation38 + $0x4a8] ss:$16 sps:$4 sm:$0xff]  }
 0xe7d   :  { %12501 = vmatprep.subr.bf16.mxu0 %v15620_v49  ;;  %v15678_v49 = vld [vmem:[#allocation38 + $0xba0] ss:$16 sps:$4 sm:$0xff]  }
 0xe7f   :  { %12682 = vmatpush1.bf16.msra.mxu1 %v15621_v52  ;;  %v15689_v52 = vld [vmem:[#allocation38 + $0x4cc] ss:$16 sps:$4 sm:$0xff]  }
 0xe80   :  { %12502 = vmatpush1.bf16.msra.mxu0 %v15618_v37  ;;  %12683 = vmatprep.subr.bf16.mxu1 %v15629_v57  ;;  %v15686_v57 = vld [vmem:[#allocation38 + $0xbc4] ss:$16 sps:$4 sm:$0xff]  }
 0xe81   :  { %12503 = vmatprep.subr.bf16.mxu0 %v15626_v62  ;;  %v8977_v62 = vmax.f32 %v8919_v45, 0.0  ;;  %v15708_v45 = vld [vmem:[#allocation38 + $0xc40] ss:$16 sps:$4 sm:$0xff]  }
 0xe83   :  { %12684 = vmatpush1.bf16.msra.mxu1 %v15627_v34  ;;  %v9039_v34 = vrot.slane %v17560_v8, %v17267_v40 }
 0xe84   :  { %12504 = vmatpush1.bf16.msra.mxu0 %v15624_v61  ;;  %12685 = vmatprep.subr.bf16.mxu1 %v15635_v10  ;;  %v9027_v61 = vrot.slane %v17560_v8, %v17264_v38 }
 0xe85   :  { %12505 = vmatprep.subr.bf16.mxu0 %v15632_v23 }
 0xe87   :  { %12686 = vmatpush1.bf16.msra.mxu1 %v15633_v56  ;;  %v9031_v56 = vrot.slane %v17560_v8, %v17238_v13 }
 0xe88   :  { %12506 = vmatpush1.bf16.msra.mxu0 %v15630_v47  ;;  %12687 = vmatprep.subr.bf16.mxu1 %v15641_v54  ;;  %v15687_v54 = vld [vmem:[#allocation38 + $0x4c8] ss:$16 sps:$4 sm:$0xff]  }
 0xe89   :  { %12507 = vmatprep.subr.bf16.mxu0 %v15638_v24 }
 0xe8b   :  { %12688 = vmatpush1.bf16.msra.mxu1 %v15639_v59 }
 0xe8c   :  { %12508 = vmatpush1.bf16.msra.mxu0 %v15636_v2  ;;  %12689 = vmatprep.subr.bf16.mxu1 %v15647_v3  ;;  %v15684_v2 = vld [vmem:[#allocation38 + $0xbc0] ss:$16 sps:$4 sm:$0xff]   ;;  %v15695_v3 = vld [vmem:[#allocation38 + $0x4ec] ss:$16 sps:$4 sm:$0xff]  }
 0xe8d   :  { %12509 = vmatprep.subr.bf16.mxu0 %v15644_v5  ;;  %v9127_v5 = vrot.slane %v17564_v1, %v17264_v38 }
 0xe8f   :  { %12690 = vmatpush1.bf16.msra.mxu1 %v15645_v26 }
 0xe90   :  { %12510 = vmatpush1.bf16.msra.mxu0 %v15642_v6  ;;  %12700 = vmatprep.subr.bf16.mxu1 %v15653_v60  ;;  %v15692_v6 = vld [vmem:[#allocation38 + $0xbe4] ss:$16 sps:$4 sm:$0xff]   ;;  %v9131_v60 = vrot.slane %v17564_v1, %v17238_v13 }
 0xe91   :  { %12511 = vmatprep.subr.bf16.mxu0 %v15650_v11  ;;  %v9077_v11 = vmul.f32 %v9039_v34, %v8977_v62  ;;  %v15720_v62 = vld [vmem:[#allocation38 + $0xc80] ss:$16 sps:$4 sm:$0xff]   ;;  %v15731_v34 = vld [vmem:[#allocation38 + $0x5ac] ss:$16 sps:$4 sm:$0xff]  }
 0xe92   :  { %12692 = vmatmul.mubr.bf16.vlgmr.msra.gmra.mrb[68].mxu1 %v17514_v16  ;;  %v15669_v16 = vld [vmem:[#allocation38 + $0x468] ss:$16 sps:$4 sm:$0xff]  }
 0xe93   :  { %12701 = vmatpush1.bf16.msra.mxu1 %v15651_v44  ;;  %12732 = vmatprep.mubr.bf16.mxu1 %v17532_v32  ;;  %v15677_v32 = vld [vmem:[#allocation38 + $0x48c] ss:$16 sps:$4 sm:$0xff]  }
 0xe94   :  { %12512 = vmatpush1.bf16.msra.mxu0 %v15648_v12  ;;  %12702 = vmatprep.subr.bf16.mxu1 %v15659_v15  ;;  %v9139_v12 = vrot.slane %v17564_v1, %v17267_v40 }
 0xe95   :  { %12513 = vmatprep.subr.bf16.mxu0 %v15656_v33  ;;  %v15693_v33 = vld [vmem:[#allocation38 + $0x4e8] ss:$16 sps:$4 sm:$0xff]  }
 0xe97   :  { %12703 = vmatpush1.bf16.msra.mxu1 %v15657_v0  ;;  %v15690_v0 = vld [vmem:[#allocation38 + $0xbe0] ss:$16 sps:$4 sm:$0xff]  }
 0xe98   :  { %12514 = vmatpush1.bf16.msra.mxu0 %v15654_v17  ;;  %12704 = vmatprep.subr.bf16.mxu1 %v15665_v19  ;;  %v15701_v17 = vld [vmem:[#allocation38 + $0x50c] ss:$16 sps:$4 sm:$0xff]  }
 0xe99   :  { %12515 = vmatprep.subr.bf16.mxu0 %v15662_v18 }
 0xe9b   :  { %12705 = vmatpush1.bf16.msra.mxu1 %v15663_v25  ;;  %v15698_v25 = vld [vmem:[#allocation38 + $0xc04] ss:$16 sps:$4 sm:$0xff]  }
 0xe9c   :  { %12516 = vmatpush1.bf16.msra.mxu0 %v15660_v27  ;;  %12706 = vmatprep.subr.bf16.mxu1 %v15671_v28  ;;  %v9177_v27 = vadd.f32 %v9139_v12, %v9077_v11  ;;  %v15755_v11 = vld [vmem:[#allocation38 + $0x62c] ss:$16 sps:$4 sm:$0xff]   ;;  %v15753_v12 = vld [vmem:[#allocation38 + $0x628] ss:$16 sps:$4 sm:$0xff]  }
 0xe9d   :  { %12517 = vmatprep.subr.bf16.mxu0 %v15668_v4  ;;  %v15699_v4 = vld [vmem:[#allocation38 + $0x508] ss:$16 sps:$4 sm:$0xff]  }
 0xe9f   :  { %12707 = vmatpush1.bf16.msra.mxu1 %v15669_v16  ;;  %v15696_v16 = vld [vmem:[#allocation38 + $0xc00] ss:$16 sps:$4 sm:$0xff]  }
 0xea0   :  { %12518 = vmatpush1.bf16.msra.mxu0 %v15666_v30  ;;  %12708 = vmatprep.subr.bf16.mxu1 %v15677_v32  ;;  %v15704_v30 = vld [vmem:[#allocation38 + $0xc24] ss:$16 sps:$4 sm:$0xff]   ;;  %v15707_v32 = vld [vmem:[#allocation38 + $0x52c] ss:$16 sps:$4 sm:$0xff]  }
 0xea1   :  { %12519 = vmatprep.subr.bf16.mxu0 %v15674_v31  ;;  %v17604_v31 = vpack.c.bf16 %v9177_v27, %v9177_v27  ;;  %v15762_v27 = vld [vmem:[#allocation38 + $0xd60] ss:$16 sps:$4 sm:$0xff]  }
 0xea3   :  { %12709 = vmatpush1.bf16.msra.mxu1 %v15675_v41  ;;  %v15702_v41 = vld [vmem:[#allocation38 + $0xc20] ss:$16 sps:$4 sm:$0xff]  }
 0xea4   :  { %12520 = vmatpush1.bf16.msra.mxu0 %v15672_v42  ;;  %12710 = vmatprep.subr.bf16.mxu1 %v15683_v43  ;;  %v15713_v42 = vld [vmem:[#allocation38 + $0x54c] ss:$16 sps:$4 sm:$0xff]   ;;  %v15710_v43 = vld [vmem:[#allocation38 + $0xc44] ss:$16 sps:$4 sm:$0xff]  }
 0xea5   :  { %v8875_v37 = vpop.f32.mrb[60].mxu1  ;;  %12521 = vmatprep.subr.bf16.mxu0 %v15680_v22  ;;  %v15711_v22 = vld [vmem:[#allocation38 + $0x548] ss:$16 sps:$4 sm:$0xff]  }
 0xea6   :  { %v8876_v55 = vadd.f32 %v8875_v37, %v7319_v14  ;;  %v8877_v10 = vpop.f32.mrb[61].mxu1  ;;  %v15719_v14 = vld [vmem:[#allocation38 + $0x56c] ss:$16 sps:$4 sm:$0xff]   ;;  %v15722_v37 = vld [vmem:[#allocation38 + $0xc84] ss:$16 sps:$4 sm:$0xff]  }
 0xea7   :  { %v8878_v23 = vadd.f32 %v8877_v10, %v7323_v46  ;;  %v8879_v47 = vpop.f32.mrb[62].mxu1  ;;  %12711 = vmatpush1.bf16.msra.mxu1 %v15681_v58  ;;  %v15716_v46 = vld [vmem:[#allocation38 + $0xc64] ss:$16 sps:$4 sm:$0xff]   ;;  %v15717_v58 = vld [vmem:[#allocation38 + $0x568] ss:$16 sps:$4 sm:$0xff]  }
 0xea8   :  { %v8974_v24 = vmax.f32 %v8876_v55, 0.0  ;;  %12522 = vmatpush1.bf16.msra.mxu0 %v15678_v49  ;;  %v8880_v59 = vpop.f32.mrb[63].mxu1  ;;  %12712 = vmatprep.subr.bf16.mxu1 %v15689_v52  ;;  %v15714_v49 = vld [vmem:[#allocation38 + $0xc60] ss:$16 sps:$4 sm:$0xff]   ;;  %v15725_v52 = vld [vmem:[#allocation38 + $0x58c] ss:$16 sps:$4 sm:$0xff]  }
 0xea9   :  { %v8975_v26 = vmax.f32 %v8878_v23, 0.0  ;;  %12523 = vmatprep.subr.bf16.mxu0 %v15686_v57  ;;  %v15723_v57 = vld [vmem:[#allocation38 + $0x588] ss:$16 sps:$4 sm:$0xff]   ;;  %v15728_v55 = vld [vmem:[#allocation38 + $0xca4] ss:$16 sps:$4 sm:$0xff]  }
 0xeaa   :  { %v9074_v44 = vmul.f32 %v9027_v61, %v8974_v24  ;;  %v15729_v61 = vld [vmem:[#allocation38 + $0x5a8] ss:$16 sps:$4 sm:$0xff]   ;;  %v15726_v10 = vld [vmem:[#allocation38 + $0xca0] ss:$16 sps:$4 sm:$0xff]   ;;  %v15737_v23 = vld [vmem:[#allocation38 + $0x5cc] ss:$16 sps:$4 sm:$0xff]  }
 0xeab   :  { %v9075_v15 = vmul.f32 %v9031_v56, %v8975_v26  ;;  %12713 = vmatpush1.bf16.msra.mxu1 %v15687_v54  ;;  %v15734_v56 = vld [vmem:[#allocation38 + $0xcc4] ss:$16 sps:$4 sm:$0xff]   ;;  %v15735_v47 = vld [vmem:[#allocation38 + $0x5c8] ss:$16 sps:$4 sm:$0xff]   ;;  %v15732_v54 = vld [vmem:[#allocation38 + $0xcc0] ss:$16 sps:$4 sm:$0xff]  }
 0xeac   :  { %12524 = vmatpush1.bf16.msra.mxu0 %v15684_v2  ;;  %12714 = vmatprep.subr.bf16.mxu1 %v15695_v3  ;;  %v9174_v19 = vadd.f32 %v9127_v5, %v9074_v44  ;;  %v15743_v24 = vld [vmem:[#allocation38 + $0x5ec] ss:$16 sps:$4 sm:$0xff]   ;;  %v15740_v59 = vld [vmem:[#allocation38 + $0xce4] ss:$16 sps:$4 sm:$0xff]   ;;  %v15741_v2 = vld [vmem:[#allocation38 + $0x5e8] ss:$16 sps:$4 sm:$0xff]  }
 0xead   :  { %12525 = vmatprep.subr.bf16.mxu0 %v15692_v6  ;;  %v9175_v18 = vadd.f32 %v9131_v60, %v9075_v15  ;;  %v15738_v3 = vld [vmem:[#allocation38 + $0xce0] ss:$16 sps:$4 sm:$0xff]   ;;  %v15749_v5 = vld [vmem:[#allocation38 + $0x60c] ss:$16 sps:$4 sm:$0xff]   ;;  %v15746_v26 = vld [vmem:[#allocation38 + $0xd04] ss:$16 sps:$4 sm:$0xff]  }
 0xeae   :  { %v17601_v40 = vpack.c.bf16 %v9174_v19, %v9174_v19  ;;  %v15747_v6 = vld [vmem:[#allocation38 + $0x608] ss:$16 sps:$4 sm:$0xff]   ;;  %v15744_v60 = vld [vmem:[#allocation38 + $0xd00] ss:$16 sps:$4 sm:$0xff]   ;;  %v15752_v44 = vld [vmem:[#allocation38 + $0xd24] ss:$16 sps:$4 sm:$0xff]  }
 0xeaf   :  { %12715 = vmatpush1.bf16.msra.mxu1 %v15693_v33  ;;  %v17599_v28 = vpack.c.bf16 %v9175_v18, %v9175_v18  ;;  %v15750_v15 = vld [vmem:[#allocation38 + $0xd20] ss:$16 sps:$4 sm:$0xff]   ;;  %v15761_v33 = vld [vmem:[#allocation38 + $0x64c] ss:$16 sps:$4 sm:$0xff]  }
 0xeb0   :  { %12526 = vmatpush1.bf16.msra.mxu0 %v15690_v0  ;;  %12716 = vmatprep.subr.bf16.mxu1 %v15701_v17  ;;  %v15758_v0 = vld [vmem:[#allocation38 + $0xd44] ss:$16 sps:$4 sm:$0xff]   ;;  %v15759_v17 = vld [vmem:[#allocation38 + $0x648] ss:$16 sps:$4 sm:$0xff]   ;;  %v15756_v19 = vld [vmem:[#allocation38 + $0xd40] ss:$16 sps:$4 sm:$0xff]  }
 0xeb1   :  { %12527 = vmatprep.mubr.bf16.mxu0 %v17599_v28  ;;  %12536 = vmatprep.subr.bf16.mxu0 %v15698_v25  ;;  %v15767_v18 = vld [vmem:[#allocation38 + $0x66c] ss:$16 sps:$4 sm:$0xff]   ;;  %v15764_v25 = vld [vmem:[#allocation38 + $0xd64] ss:$16 sps:$4 sm:$0xff]  }
 0xeb3   :  { %12528 = vmatmul.mubr.bf16.vlgmr.msra.gmra.mrb[24].mxu0 %v17601_v40  ;;  %12717 = vmatpush1.bf16.msra.mxu1 %v15699_v4  ;;  %v7327_v4 = vrot.slane %v17554_v53, %v17284_v35 }
 0xeb4   :  { %12537 = vmatpush1.bf16.msra.mxu0 %v15696_v16  ;;  %12568 = vmatprep.mubr.bf16.mxu0 %v17604_v31  ;;  %v15770_v16 = vld [vmem:[#allocation38 + $0xd84] ss:$16 sps:$4 sm:$0xff]  }
 0xeb5   :  { %12538 = vmatprep.subr.bf16.mxu0 %v15704_v30  ;;  %12718 = vmatprep.subr.bf16.mxu1 %v15707_v32  ;;  %v15771_v30 = vld [vmem:[#allocation38 + $0x688] ss:$16 sps:$4 sm:$0xff]   ;;  %v15768_v32 = vld [vmem:[#allocation38 + $0xd80] ss:$16 sps:$4 sm:$0xff]  }
 0xeb7   :  { %12719 = vmatpush1.bf16.msra.mxu1 %v15705_v7  ;;  %v15779_v7 = vld [vmem:[#allocation38 + $0x6ac] ss:$16 sps:$4 sm:$0xff]  }
 0xeb8   :  { %12539 = vmatpush1.bf16.msra.mxu0 %v15702_v41  ;;  %12720 = vmatprep.subr.bf16.mxu1 %v15713_v42  ;;  %v8917_v41 = vadd.f32 %v17480_v21, %v7327_v4  ;;  %v15776_v42 = vld [vmem:[#allocation38 + $0xda4] ss:$16 sps:$4 sm:$0xff]   ;;  %v15810_v4 = vld [vmem:[#allocation38 + $0xe60] ss:$16 sps:$4 sm:$0xff]  }
 0xeb9   :  { %12540 = vmatprep.subr.bf16.mxu0 %v15710_v43  ;;  %v7339_v43 = vrot.slane %v17554_v53, %v17287_v39 }
 0xebb   :  { %12721 = vmatpush1.bf16.msra.mxu1 %v15711_v22  ;;  %v15777_v22 = vld [vmem:[#allocation38 + $0x6a8] ss:$16 sps:$4 sm:$0xff]  }
 0xebc   :  { %12541 = vmatpush1.bf16.msra.mxu0 %v15708_v45  ;;  %12722 = vmatprep.subr.bf16.mxu1 %v15719_v14  ;;  %v15774_v45 = vld [vmem:[#allocation38 + $0xda0] ss:$16 sps:$4 sm:$0xff]   ;;  %v15785_v14 = vld [vmem:[#allocation38 + $0x6cc] ss:$16 sps:$4 sm:$0xff]  }
 0xebd   :  { %12542 = vmatprep.subr.bf16.mxu0 %v15716_v46  ;;  %v8976_v46 = vmax.f32 %v8917_v41, 0.0  ;;  %v15827_v41 = vld [vmem:[#allocation38 + $0x7ac] ss:$16 sps:$4 sm:$0xff]  }
 0xebf   :  { %12723 = vmatpush1.bf16.msra.mxu1 %v15717_v58  ;;  %v9035_v58 = vrot.slane %v17560_v8, %v17284_v35 }
 0xec0   :  { %12543 = vmatpush1.bf16.msra.mxu0 %v15714_v49  ;;  %12724 = vmatprep.subr.bf16.mxu1 %v15725_v52  ;;  %v15782_v52 = vld [vmem:[#allocation38 + $0xdc4] ss:$16 sps:$4 sm:$0xff]  }
 0xec1   :  { %12544 = vmatprep.subr.bf16.mxu0 %v15722_v37 }
 0xec3   :  { %12725 = vmatpush1.bf16.msra.mxu1 %v15723_v57  ;;  %v9047_v57 = vrot.slane %v17560_v8, %v17287_v39 }
 0xec4   :  { %12545 = vmatpush1.bf16.msra.mxu0 %v15720_v62  ;;  %12726 = vmatprep.subr.bf16.mxu1 %v15731_v34  ;;  %v15783_v34 = vld [vmem:[#allocation38 + $0x6c8] ss:$16 sps:$4 sm:$0xff]  }
 0xec5   :  { %12546 = vmatprep.subr.bf16.mxu0 %v15728_v55 }
 0xec7   :  { %12727 = vmatpush1.bf16.msra.mxu1 %v15729_v61  ;;  %v15780_v61 = vld [vmem:[#allocation38 + $0xdc0] ss:$16 sps:$4 sm:$0xff]  }
 0xec8   :  { %12547 = vmatpush1.bf16.msra.mxu0 %v15726_v10  ;;  %12728 = vmatprep.subr.bf16.mxu1 %v15737_v23  ;;  %v15791_v10 = vld [vmem:[#allocation38 + $0x6ec] ss:$16 sps:$4 sm:$0xff]   ;;  %v9076_v23 = vmul.f32 %v9035_v58, %v8976_v46  ;;  %v15831_v46 = vld [vmem:[#allocation38 + $0x7c8] ss:$16 sps:$4 sm:$0xff]   ;;  %v15828_v58 = vld [vmem:[#allocation38 + $0xec0] ss:$16 sps:$4 sm:$0xff]  }
 0xec9   :  { %12548 = vmatprep.subr.bf16.mxu0 %v15734_v56  ;;  %v9135_v56 = vrot.slane %v17564_v1, %v17284_v35  ;;  %v15792_v35 = vld [vmem:[#allocation38 + $0xe00] ss:$16 sps:$4 sm:$0xff]  }
 0xecb   :  { %12729 = vmatpush1.bf16.msra.mxu1 %v15735_v47 }
 0xecc   :  { %12549 = vmatpush1.bf16.msra.mxu0 %v15732_v54  ;;  %12730 = vmatprep.subr.bf16.mxu1 %v15743_v24  ;;  %v15788_v54 = vld [vmem:[#allocation38 + $0xde4] ss:$16 sps:$4 sm:$0xff]   ;;  %v9147_v24 = vrot.slane %v17564_v1, %v17287_v39 }
 0xecd   :  { %12550 = vmatprep.subr.bf16.mxu0 %v15740_v59  ;;  %v15800_v39 = vld [vmem:[#allocation38 + $0xe24] ss:$16 sps:$4 sm:$0xff]  }
 0xecf   :  { %12731 = vmatpush1.bf16.msra.mxu1 %v15741_v2  ;;  %v15789_v2 = vld [vmem:[#allocation38 + $0x6e8] ss:$16 sps:$4 sm:$0xff]  }
 0xed0   :  { %12551 = vmatpush1.bf16.msra.mxu0 %v15738_v3  ;;  %12741 = vmatprep.subr.bf16.mxu1 %v15749_v5  ;;  %v15786_v3 = vld [vmem:[#allocation38 + $0xde0] ss:$16 sps:$4 sm:$0xff]   ;;  %v15797_v5 = vld [vmem:[#allocation38 + $0x70c] ss:$16 sps:$4 sm:$0xff]  }
 0xed1   :  { %12552 = vmatprep.subr.bf16.mxu0 %v15746_v26  ;;  %v9176_v26 = vadd.f32 %v9135_v56, %v9076_v23  ;;  %v15848_v23 = vld [vmem:[#allocation38 + $0xf24] ss:$16 sps:$4 sm:$0xff]   ;;  %v15849_v56 = vld [vmem:[#allocation38 + $0x828] ss:$16 sps:$4 sm:$0xff]  }
 0xed2   :  { %12733 = vmatmul.mubr.bf16.vlgmr.msra.gmra.mrb[68].mxu1 %v17534_v51  ;;  %v15765_v51 = vld [vmem:[#allocation38 + $0x668] ss:$16 sps:$4 sm:$0xff]  }
 0xed3   :  { %12742 = vmatpush1.bf16.msra.mxu1 %v15747_v6  ;;  %12773 = vmatprep.mubr.bf16.mxu1 %v17546_v48  ;;  %v15773_v48 = vld [vmem:[#allocation38 + $0x68c] ss:$16 sps:$4 sm:$0xff]   ;;  %v15794_v6 = vld [vmem:[#allocation38 + $0xe04] ss:$16 sps:$4 sm:$0xff]  }
 0xed4   :  { %12553 = vmatpush1.bf16.msra.mxu0 %v15744_v60  ;;  %12743 = vmatprep.subr.bf16.mxu1 %v15755_v11  ;;  %v15795_v11 = vld [vmem:[#allocation38 + $0x708] ss:$16 sps:$4 sm:$0xff]  }
 0xed5   :  { %12554 = vmatprep.subr.bf16.mxu0 %v15752_v44  ;;  %v17625_v44 = vpack.c.bf16 %v9176_v26, %v9176_v26  ;;  %v15858_v26 = vld [vmem:[#allocation38 + $0xf60] ss:$16 sps:$4 sm:$0xff]  }
 0xed7   :  { %12744 = vmatpush1.bf16.msra.mxu1 %v15753_v12  ;;  %v15803_v12 = vld [vmem:[#allocation38 + $0x72c] ss:$16 sps:$4 sm:$0xff]  }
 0xed8   :  { %12555 = vmatpush1.bf16.msra.mxu0 %v15750_v15  ;;  %12745 = vmatprep.subr.bf16.mxu1 %v15761_v33  ;;  %v15801_v33 = vld [vmem:[#allocation38 + $0x728] ss:$16 sps:$4 sm:$0xff]  }
 0xed9   :  { %12556 = vmatprep.subr.bf16.mxu0 %v15758_v0  ;;  %v15798_v0 = vld [vmem:[#allocation38 + $0xe20] ss:$16 sps:$4 sm:$0xff]  }
 0xedb   :  { %12746 = vmatpush1.bf16.msra.mxu1 %v15759_v17  ;;  %v15809_v17 = vld [vmem:[#allocation38 + $0x74c] ss:$16 sps:$4 sm:$0xff]  }
 0xedc   :  { %12557 = vmatpush1.bf16.msra.mxu0 %v15756_v19  ;;  %12747 = vmatprep.subr.bf16.mxu1 %v15767_v18  ;;  %v15806_v19 = vld [vmem:[#allocation38 + $0xe44] ss:$16 sps:$4 sm:$0xff]   ;;  %v15807_v18 = vld [vmem:[#allocation38 + $0x748] ss:$16 sps:$4 sm:$0xff]  }
 0xedd   :  { %12558 = vmatprep.subr.bf16.mxu0 %v15764_v25  ;;  %v15804_v25 = vld [vmem:[#allocation38 + $0xe40] ss:$16 sps:$4 sm:$0xff]  }
 0xedf   :  { %12748 = vmatpush1.bf16.msra.mxu1 %v15765_v51  ;;  %v15815_v51 = vld [vmem:[#allocation38 + $0x76c] ss:$16 sps:$4 sm:$0xff]  }
 0xee0   :  { %12559 = vmatpush1.bf16.msra.mxu0 %v15762_v27  ;;  %12749 = vmatprep.subr.bf16.mxu1 %v15773_v48  ;;  %v15812_v27 = vld [vmem:[#allocation38 + $0xe64] ss:$16 sps:$4 sm:$0xff]   ;;  %v15813_v48 = vld [vmem:[#allocation38 + $0x768] ss:$16 sps:$4 sm:$0xff]  }
 0xee1   :  { %12560 = vmatprep.subr.bf16.mxu0 %v15770_v16  ;;  %v15821_v16 = vld [vmem:[#allocation38 + $0x78c] ss:$16 sps:$4 sm:$0xff]  }
 0xee3   :  { %12750 = vmatpush1.bf16.msra.mxu1 %v15771_v30  ;;  %v15818_v30 = vld [vmem:[#allocation38 + $0xe84] ss:$16 sps:$4 sm:$0xff]  }
 0xee4   :  { %12561 = vmatpush1.bf16.msra.mxu0 %v15768_v32  ;;  %12751 = vmatprep.subr.bf16.mxu1 %v15779_v7  ;;  %v15819_v32 = vld [vmem:[#allocation38 + $0x788] ss:$16 sps:$4 sm:$0xff]   ;;  %v15816_v7 = vld [vmem:[#allocation38 + $0xe80] ss:$16 sps:$4 sm:$0xff]  }
 0xee5   :  { %v17617_v49 = vpop.f32.mrb[64].mxu1  ;;  %12562 = vmatprep.subr.bf16.mxu0 %v15776_v42  ;;  %v15824_v42 = vld [vmem:[#allocation38 + $0xea4] ss:$16 sps:$4 sm:$0xff]  }
 0xee6   :  { %v8959_v21 = vpop.f32.mrb[65].mxu1 }
 0xee7   :  { %v8960_v37 = vadd.f32 %v8959_v21, %v7339_v43  ;;  %v8961_v62 = vpop.f32.mrb[66].mxu1  ;;  %12752 = vmatpush1.bf16.msra.mxu1 %v15777_v22  ;;  %v15825_v43 = vld [vmem:[#allocation38 + $0x7a8] ss:$16 sps:$4 sm:$0xff]   ;;  %v15822_v22 = vld [vmem:[#allocation38 + $0xea0] ss:$16 sps:$4 sm:$0xff]  }
 0xee8   :  { %12563 = vmatpush1.bf16.msra.mxu0 %v15774_v45  ;;  %v8962_v55 = vpop.f32.mrb[67].mxu1  ;;  %12753 = vmatprep.subr.bf16.mxu1 %v15785_v14  ;;  %v15833_v45 = vld [vmem:[#allocation38 + $0x7cc] ss:$16 sps:$4 sm:$0xff]   ;;  %v15830_v14 = vld [vmem:[#allocation38 + $0xec4] ss:$16 sps:$4 sm:$0xff]  }
 0xee9   :  { %v8979_v47 = vmax.f32 %v8960_v37, 0.0  ;;  %12564 = vmatprep.subr.bf16.mxu0 %v15782_v52  ;;  %v15839_v52 = vld [vmem:[#allocation38 + $0x7ec] ss:$16 sps:$4 sm:$0xff]   ;;  %v15836_v21 = vld [vmem:[#allocation38 + $0xee4] ss:$16 sps:$4 sm:$0xff]  }
 0xeea   :  { %v15837_v37 = vld [vmem:[#allocation38 + $0x7e8] ss:$16 sps:$4 sm:$0xff]   ;;  %v15845_v62 = vld [vmem:[#allocation38 + $0x80c] ss:$16 sps:$4 sm:$0xff]  }
 0xeeb   :  { %v9079_v59 = vmul.f32 %v9047_v57, %v8979_v47  ;;  %12754 = vmatpush1.bf16.msra.mxu1 %v15783_v34  ;;  %v15834_v57 = vld [vmem:[#allocation38 + $0xee0] ss:$16 sps:$4 sm:$0xff]   ;;  %v15842_v34 = vld [vmem:[#allocation38 + $0xf04] ss:$16 sps:$4 sm:$0xff]   ;;  %v15843_v55 = vld [vmem:[#allocation38 + $0x808] ss:$16 sps:$4 sm:$0xff]  }
 0xeec   :  { %12565 = vmatpush1.bf16.msra.mxu0 %v15780_v61  ;;  %12755 = vmatprep.subr.bf16.mxu1 %v15791_v10  ;;  %v15840_v61 = vld [vmem:[#allocation38 + $0xf00] ss:$16 sps:$4 sm:$0xff]   ;;  %v15851_v10 = vld [vmem:[#allocation38 + $0x82c] ss:$16 sps:$4 sm:$0xff]  }
 0xeed   :  { %12566 = vmatprep.subr.bf16.mxu0 %v15788_v54  ;;  %v9179_v60 = vadd.f32 %v9147_v24, %v9079_v59  ;;  %v15846_v47 = vld [vmem:[#allocation38 + $0xf20] ss:$16 sps:$4 sm:$0xff]   ;;  %v15857_v54 = vld [vmem:[#allocation38 + $0x84c] ss:$16 sps:$4 sm:$0xff]   ;;  %v15854_v24 = vld [vmem:[#allocation38 + $0xf44] ss:$16 sps:$4 sm:$0xff]  }
 0xeee   :  { %v15855_v59 = vld [vmem:[#allocation38 + $0x848] ss:$16 sps:$4 sm:$0xff]  }
 0xeef   :  { %12756 = vmatpush1.bf16.msra.mxu1 %v15789_v2  ;;  %v17627_v15 = vpack.c.bf16 %v9179_v60, %v9179_v60  ;;  %v15852_v2 = vld [vmem:[#allocation38 + $0xf40] ss:$16 sps:$4 sm:$0xff]   ;;  %v15866_v60 = vld [vmem:[#allocation38 + $0xf84] ss:$16 sps:$4 sm:$0xff]  }
 0xef0   :  { %12567 = vmatpush1.bf16.msra.mxu0 %v15786_v3  ;;  %12757 = vmatprep.subr.bf16.mxu1 %v15797_v5  ;;  %v15863_v3 = vld [vmem:[#allocation38 + $0x86c] ss:$16 sps:$4 sm:$0xff]   ;;  %v15860_v5 = vld [vmem:[#allocation38 + $0xf64] ss:$16 sps:$4 sm:$0xff]  }
 0xef1   :  { %12577 = vmatprep.subr.bf16.mxu0 %v15794_v6  ;;  %v7335_v6 = vrot.slane %v17554_v53, %v17312_v50  ;;  %v9043_v53 = vrot.slane %v17560_v8, %v17312_v50  ;;  %v15890_v8 = vld [vmem:[#allocation38 + $0x90c] ss:$16 sps:$4 sm:$0xff]  }
 0xef3   :  { %12569 = vmatmul.mubr.bf16.vlgmr.msra.gmra.mrb[24].mxu0 %v17625_v44  ;;  %12758 = vmatpush1.bf16.msra.mxu1 %v15795_v11  ;;  %v15867_v11 = vld [vmem:[#allocation38 + $0x888] ss:$16 sps:$4 sm:$0xff]  }
 0xef4   :  { %12578 = vmatpush1.bf16.msra.mxu0 %v15792_v35  ;;  %12609 = vmatprep.mubr.bf16.mxu0 %v17627_v15  ;;  %v15864_v35 = vld [vmem:[#allocation38 + $0xf80] ss:$16 sps:$4 sm:$0xff]  }
 0xef5   :  { %12579 = vmatprep.subr.bf16.mxu0 %v15800_v39  ;;  %12759 = vmatprep.subr.bf16.mxu1 %v15803_v12  ;;  %v15875_v39 = vld [vmem:[#allocation38 + $0x8ac] ss:$16 sps:$4 sm:$0xff]   ;;  %v8958_v12 = vadd.f32 %v17617_v49, %v7335_v6  ;;  %v15936_v6 = vld [vmem:[#allocation38 + $0xb08] ss:$16 sps:$4 sm:$0xff]  }
 0xef6   :  { %v15887_v49 = vld [vmem:[#allocation38 + $0x8ec] ss:$16 sps:$4 sm:$0xff]  }
 0xef7   :  { %12760 = vmatpush1.bf16.msra.mxu1 %v15801_v33  ;;  %v15872_v33 = vld [vmem:[#allocation38 + $0xfa4] ss:$16 sps:$4 sm:$0xff]  }
 0xef8   :  { %12580 = vmatpush1.bf16.msra.mxu0 %v15798_v0  ;;  %12761 = vmatprep.subr.bf16.mxu1 %v15809_v17  ;;  %v15873_v0 = vld [vmem:[#allocation38 + $0x8a8] ss:$16 sps:$4 sm:$0xff]   ;;  %v15870_v17 = vld [vmem:[#allocation38 + $0xfa0] ss:$16 sps:$4 sm:$0xff]  }
 0xef9   :  { %12581 = vmatprep.subr.bf16.mxu0 %v15806_v19  ;;  %v15881_v19 = vld [vmem:[#allocation38 + $0x8cc] ss:$16 sps:$4 sm:$0xff]  }
 0xefb   :  { %12762 = vmatpush1.bf16.msra.mxu1 %v15807_v18  ;;  %v8978_v18 = vmax.f32 %v8958_v12, 0.0  ;;  %v15947_v12 = vld [vmem:[#allocation38 + $0xb6c] ss:$16 sps:$4 sm:$0xff]  }
 0xefc   :  { %12582 = vmatpush1.bf16.msra.mxu0 %v15804_v25  ;;  %12763 = vmatprep.subr.bf16.mxu1 %v15815_v51  ;;  %v15878_v25 = vld [vmem:[#allocation38 + $0xfc4] ss:$16 sps:$4 sm:$0xff]   ;;  %v15879_v51 = vld [vmem:[#allocation38 + $0x8c8] ss:$16 sps:$4 sm:$0xff]  }
 0xefd   :  { %12583 = vmatprep.subr.bf16.mxu0 %v15812_v27  ;;  %v15876_v27 = vld [vmem:[#allocation38 + $0xfc0] ss:$16 sps:$4 sm:$0xff]  }
 0xeff   :  { %12764 = vmatpush1.bf16.msra.mxu1 %v15813_v48  ;;  %v9078_v48 = vmul.f32 %v9043_v53, %v8978_v18  ;;  %v15951_v18 = vld [vmem:[#allocation38 + $0xba8] ss:$16 sps:$4 sm:$0xff]   ;;  %v15956_v53 = vld [vmem:[#allocation38 + $0xbcc] ss:$16 sps:$4 sm:$0xff]  }
 0xf00   :  { %12584 = vmatpush1.bf16.msra.mxu0 %v15810_v4  ;;  %12765 = vmatprep.subr.bf16.mxu1 %v15821_v16  ;;  %v9143_v4 = vrot.slane %v17564_v1, %v17312_v50  ;;  %v15884_v16 = vld [vmem:[#allocation38 + $0xfe4] ss:$16 sps:$4 sm:$0xff]   ;;  %v15891_v50 = vld [vmem:[#allocation38 + $0x928] ss:$16 sps:$4 sm:$0xff]   ;;  %v15896_v1 = vld [vmem:[#allocation38 + $0x94c] ss:$16 sps:$4 sm:$0xff]  }
 0xf01   :  { %12585 = vmatprep.subr.bf16.mxu0 %v15818_v30  ;;  %v15885_v30 = vld [vmem:[#allocation38 + $0x8e8] ss:$16 sps:$4 sm:$0xff]  }
 0xf03   :  { %12766 = vmatpush1.bf16.msra.mxu1 %v15819_v32  ;;  %v15882_v32 = vld [vmem:[#allocation38 + $0xfe0] ss:$16 sps:$4 sm:$0xff]  }
 0xf04   :  { %12586 = vmatpush1.bf16.msra.mxu0 %v15816_v7  ;;  %12767 = vmatprep.subr.bf16.mxu1 %v15827_v41  ;;  %v9178_v7 = vadd.f32 %v9143_v4, %v9078_v48  ;;  %v15888_v41 = vld [vmem:[#allocation38 + $0x908] ss:$16 sps:$4 sm:$0xff]   ;;  %v15965_v4 = vld [vmem:[#allocation38 + $0xc2c] ss:$16 sps:$4 sm:$0xff]  }
 0xf05   :  { %12587 = vmatprep.subr.bf16.mxu0 %v15824_v42  ;;  %v15893_v42 = vld [vmem:[#allocation38 + $0x92c] ss:$16 sps:$4 sm:$0xff]   ;;  %v15960_v48 = vld [vmem:[#allocation38 + $0xc08] ss:$16 sps:$4 sm:$0xff]  }
 0xf07   :  { %12768 = vmatpush1.bf16.msra.mxu1 %v15825_v43  ;;  %v17640_v43 = vpack.c.bf16 %v9178_v7, %v9178_v7  ;;  %v15969_v7 = vld [vmem:[#allocation38 + $0xc68] ss:$16 sps:$4 sm:$0xff]  }
 0xf08   :  { %12588 = vmatpush1.bf16.msra.mxu0 %v15822_v22  ;;  %12769 = vmatprep.subr.bf16.mxu1 %v15833_v45  ;;  %v15894_v22 = vld [vmem:[#allocation38 + $0x948] ss:$16 sps:$4 sm:$0xff]   ;;  %v15899_v45 = vld [vmem:[#allocation38 + $0x96c] ss:$16 sps:$4 sm:$0xff]  }
 0xf09   :  { %12589 = vmatprep.subr.bf16.mxu0 %v15830_v14  ;;  %v15897_v14 = vld [vmem:[#allocation38 + $0x968] ss:$16 sps:$4 sm:$0xff]  }
 0xf0b   :  { %12770 = vmatpush1.bf16.msra.mxu1 %v15831_v46  ;;  %v15902_v46 = vld [vmem:[#allocation38 + $0x98c] ss:$16 sps:$4 sm:$0xff]  }
 0xf0c   :  { %12590 = vmatpush1.bf16.msra.mxu0 %v15828_v58  ;;  %12771 = vmatprep.subr.bf16.mxu1 %v15839_v52  ;;  %v15900_v58 = vld [vmem:[#allocation38 + $0x988] ss:$16 sps:$4 sm:$0xff]   ;;  %v15905_v52 = vld [vmem:[#allocation38 + $0x9ac] ss:$16 sps:$4 sm:$0xff]  }
 0xf0d   :  { %12591 = vmatprep.subr.bf16.mxu0 %v15836_v21  ;;  %v15903_v21 = vld [vmem:[#allocation38 + $0x9a8] ss:$16 sps:$4 sm:$0xff]  }
 0xf0f   :  { %12772 = vmatpush1.bf16.msra.mxu1 %v15837_v37  ;;  %v15908_v37 = vld [vmem:[#allocation38 + $0x9cc] ss:$16 sps:$4 sm:$0xff]  }
 0xf10   :  { %12592 = vmatpush1.bf16.msra.mxu0 %v15834_v57  ;;  %12782 = vmatprep.subr.bf16.mxu1 %v15845_v62  ;;  %v15906_v57 = vld [vmem:[#allocation38 + $0x9c8] ss:$16 sps:$4 sm:$0xff]   ;;  %v15911_v62 = vld [vmem:[#allocation38 + $0x9ec] ss:$16 sps:$4 sm:$0xff]  }
 0xf11   :  { %12593 = vmatprep.subr.bf16.mxu0 %v15842_v34  ;;  %v15909_v34 = vld [vmem:[#allocation38 + $0x9e8] ss:$16 sps:$4 sm:$0xff]  }
 0xf12   :  { %12774 = vmatmul.mubr.bf16.vlgmr.msra.gmra.mrb[68].mxu1 %v17548_v63  ;;  %v15861_v63 = vld [vmem:[#allocation38 + $0x868] ss:$16 sps:$4 sm:$0xff]  }
 0xf13   :  { %12783 = vmatpush1.bf16.msra.mxu1 %v15843_v55  ;;  %12814 = vmatprep.mubr.bf16.mxu1 %v17572_v29  ;;  %v15869_v29 = vld [vmem:[#allocation38 + $0x88c] ss:$16 sps:$4 sm:$0xff]  }
 0xf14   :  { %12594 = vmatpush1.bf16.msra.mxu0 %v15840_v61  ;;  %12784 = vmatprep.subr.bf16.mxu1 %v15851_v10  ;;  %v15914_v55 = vld [vmem:[#allocation38 + $0xa0c] ss:$16 sps:$4 sm:$0xff]   ;;  %v15912_v61 = vld [vmem:[#allocation38 + $0xa08] ss:$16 sps:$4 sm:$0xff]  }
 0xf15   :  { %12595 = vmatprep.subr.bf16.mxu0 %v15848_v23  ;;  %v15917_v10 = vld [vmem:[#allocation38 + $0xa2c] ss:$16 sps:$4 sm:$0xff]   ;;  %v15915_v23 = vld [vmem:[#allocation38 + $0xa28] ss:$16 sps:$4 sm:$0xff]  }
 0xf17   :  { %12785 = vmatpush1.bf16.msra.mxu1 %v15849_v56  ;;  %v15920_v56 = vld [vmem:[#allocation38 + $0xa4c] ss:$16 sps:$4 sm:$0xff]  }
 0xf18   :  { %12596 = vmatpush1.bf16.msra.mxu0 %v15846_v47  ;;  %12786 = vmatprep.subr.bf16.mxu1 %v15857_v54  ;;  %v15918_v47 = vld [vmem:[#allocation38 + $0xa48] ss:$16 sps:$4 sm:$0xff]   ;;  %v15923_v54 = vld [vmem:[#allocation38 + $0xa6c] ss:$16 sps:$4 sm:$0xff]  }
 0xf19   :  { %12597 = vmatprep.subr.bf16.mxu0 %v15854_v24  ;;  %v15921_v24 = vld [vmem:[#allocation38 + $0xa68] ss:$16 sps:$4 sm:$0xff]  }
 0xf1b   :  { %12787 = vmatpush1.bf16.msra.mxu1 %v15855_v59  ;;  %v15926_v59 = vld [vmem:[#allocation38 + $0xa8c] ss:$16 sps:$4 sm:$0xff]  }
 0xf1c   :  { %12598 = vmatpush1.bf16.msra.mxu0 %v15852_v2  ;;  %12788 = vmatprep.subr.bf16.mxu1 %v15863_v3  ;;  %v15924_v2 = vld [vmem:[#allocation38 + $0xa88] ss:$16 sps:$4 sm:$0xff]   ;;  %v15929_v3 = vld [vmem:[#allocation38 + $0xaac] ss:$16 sps:$4 sm:$0xff]  }
 0xf1d   :  { %12599 = vmatprep.subr.bf16.mxu0 %v15860_v5  ;;  %v15932_v5 = vld [vmem:[#allocation38 + $0xacc] ss:$16 sps:$4 sm:$0xff]  }
 0xf1f   :  { %12789 = vmatpush1.bf16.msra.mxu1 %v15861_v63  ;;  %v15935_v63 = vld [vmem:[#allocation38 + $0xaec] ss:$16 sps:$4 sm:$0xff]  }
 0xf20   :  { %12600 = vmatpush1.bf16.msra.mxu0 %v15858_v26  ;;  %12790 = vmatprep.subr.bf16.mxu1 %v15869_v29  ;;  %v15933_v26 = vld [vmem:[#allocation38 + $0xae8] ss:$16 sps:$4 sm:$0xff]   ;;  %v15938_v29 = vld [vmem:[#allocation38 + $0xb0c] ss:$16 sps:$4 sm:$0xff]  }
 0xf21   :  { %12601 = vmatprep.subr.bf16.mxu0 %v15866_v60  ;;  %v15941_v60 = vld [vmem:[#allocation38 + $0xb2c] ss:$16 sps:$4 sm:$0xff]  }
 0xf23   :  { %12791 = vmatpush1.bf16.msra.mxu1 %v15867_v11  ;;  %v15939_v11 = vld [vmem:[#allocation38 + $0xb28] ss:$16 sps:$4 sm:$0xff]  }
 0xf24   :  { %12602 = vmatpush1.bf16.msra.mxu0 %v15864_v35  ;;  %12792 = vmatprep.subr.bf16.mxu1 %v15875_v39  ;;  %v15944_v35 = vld [vmem:[#allocation38 + $0xb4c] ss:$16 sps:$4 sm:$0xff]   ;;  %v15942_v39 = vld [vmem:[#allocation38 + $0xb48] ss:$16 sps:$4 sm:$0xff]  }
 0xf25   :  { %12603 = vmatprep.subr.bf16.mxu0 %v15872_v33  ;;  %v15945_v33 = vld [vmem:[#allocation38 + $0xb68] ss:$16 sps:$4 sm:$0xff]  }
 0xf27   :  { %12793 = vmatpush1.bf16.msra.mxu1 %v15873_v0  ;;  %v15950_v0 = vld [vmem:[#allocation38 + $0xb8c] ss:$16 sps:$4 sm:$0xff]  }
 0xf28   :  { %12604 = vmatpush1.bf16.msra.mxu0 %v15870_v17  ;;  %12794 = vmatprep.subr.bf16.mxu1 %v15881_v19  ;;  %v15948_v17 = vld [vmem:[#allocation38 + $0xb88] ss:$16 sps:$4 sm:$0xff]   ;;  %v15953_v19 = vld [vmem:[#allocation38 + $0xbac] ss:$16 sps:$4 sm:$0xff]  }
 0xf29   :  { %12605 = vmatprep.subr.bf16.mxu0 %v15878_v25  ;;  %v15954_v25 = vld [vmem:[#allocation38 + $0xbc8] ss:$16 sps:$4 sm:$0xff]  }
 0xf2b   :  { %12795 = vmatpush1.bf16.msra.mxu1 %v15879_v51  ;;  %v15959_v51 = vld [vmem:[#allocation38 + $0xbec] ss:$16 sps:$4 sm:$0xff]  }
 0xf2c   :  { %12606 = vmatpush1.bf16.msra.mxu0 %v15876_v27  ;;  %12796 = vmatprep.subr.bf16.mxu1 %v15887_v49  ;;  %v15957_v27 = vld [vmem:[#allocation38 + $0xbe8] ss:$16 sps:$4 sm:$0xff]   ;;  %v15962_v49 = vld [vmem:[#allocation38 + $0xc0c] ss:$16 sps:$4 sm:$0xff]  }
 0xf2d   :  { %12607 = vmatprep.subr.bf16.mxu0 %v15884_v16  ;;  %v15963_v16 = vld [vmem:[#allocation38 + $0xc28] ss:$16 sps:$4 sm:$0xff]  }
 0xf2f   :  { %12797 = vmatpush1.bf16.msra.mxu1 %v15885_v30  ;;  %v15968_v30 = vld [vmem:[#allocation38 + $0xc4c] ss:$16 sps:$4 sm:$0xff]  }
 0xf30   :  { %12608 = vmatpush1.bf16.msra.mxu0 %v15882_v32  ;;  %12798 = vmatprep.subr.bf16.mxu1 %v15890_v8  ;;  %v15966_v32 = vld [vmem:[#allocation38 + $0xc48] ss:$16 sps:$4 sm:$0xff]   ;;  %v15971_v8 = vld [vmem:[#allocation38 + $0xc6c] ss:$16 sps:$4 sm:$0xff]  }
 0xf33   :  { %12610 = vmatmul.mubr.bf16.vlgmr.msra.gmra.mrb[24].mxu0 %v17640_v43  ;;  %12799 = vmatpush1.bf16.msra.mxu1 %v15888_v41  ;;  %v15974_v41 = vld [vmem:[#allocation38 + $0xc8c] ss:$16 sps:$4 sm:$0xff]  }
 0xf34   :  { %12800 = vmatprep.subr.bf16.mxu1 %v15893_v42  ;;  %v15972_v42 = vld [vmem:[#allocation38 + $0xc88] ss:$16 sps:$4 sm:$0xff]  }
 0xf37   :  { %12801 = vmatpush1.bf16.msra.mxu1 %v15891_v50  ;;  %v15977_v50 = vld [vmem:[#allocation38 + $0xcac] ss:$16 sps:$4 sm:$0xff]  }
 0xf38   :  { %12802 = vmatprep.subr.bf16.mxu1 %v15896_v1  ;;  %v15980_v1 = vld [vmem:[#allocation38 + $0xccc] ss:$16 sps:$4 sm:$0xff]  }
 0xf3b   :  { %12803 = vmatpush1.bf16.msra.mxu1 %v15894_v22  ;;  %v15983_v22 = vld [vmem:[#allocation38 + $0xcec] ss:$16 sps:$4 sm:$0xff]  }
 0xf3c   :  { %12804 = vmatprep.subr.bf16.mxu1 %v15899_v45  ;;  %v15981_v45 = vld [vmem:[#allocation38 + $0xce8] ss:$16 sps:$4 sm:$0xff]  }
 0xf3f   :  { %12805 = vmatpush1.bf16.msra.mxu1 %v15897_v14  ;;  %v15986_v14 = vld [vmem:[#allocation38 + $0xd0c] ss:$16 sps:$4 sm:$0xff]  }
 0xf40   :  { %12806 = vmatprep.subr.bf16.mxu1 %v15902_v46  ;;  %v15984_v46 = vld [vmem:[#allocation38 + $0xd08] ss:$16 sps:$4 sm:$0xff]  }
 0xf43   :  { %12807 = vmatpush1.bf16.msra.mxu1 %v15900_v58  ;;  %v15989_v58 = vld [vmem:[#allocation38 + $0xd2c] ss:$16 sps:$4 sm:$0xff]  }
 0xf44   :  { %12808 = vmatprep.subr.bf16.mxu1 %v15905_v52  ;;  %v15987_v52 = vld [vmem:[#allocation38 + $0xd28] ss:$16 sps:$4 sm:$0xff]  }
 0xf47   :  { %12809 = vmatpush1.bf16.msra.mxu1 %v15903_v21  ;;  %v15992_v21 = vld [vmem:[#allocation38 + $0xd4c] ss:$16 sps:$4 sm:$0xff]  }
 0xf48   :  { %12810 = vmatprep.subr.bf16.mxu1 %v15908_v37  ;;  %v15990_v37 = vld [vmem:[#allocation38 + $0xd48] ss:$16 sps:$4 sm:$0xff]  }
 0xf4b   :  { %12811 = vmatpush1.bf16.msra.mxu1 %v15906_v57  ;;  %v15995_v57 = vld [vmem:[#allocation38 + $0xd6c] ss:$16 sps:$4 sm:$0xff]  }
 0xf4c   :  { %12812 = vmatprep.subr.bf16.mxu1 %v15911_v62  ;;  %v15993_v62 = vld [vmem:[#allocation38 + $0xd68] ss:$16 sps:$4 sm:$0xff]  }
 0xf4f   :  { %12813 = vmatpush1.bf16.msra.mxu1 %v15909_v34  ;;  %v15998_v34 = vld [vmem:[#allocation38 + $0xd8c] ss:$16 sps:$4 sm:$0xff]  }
 0xf50   :  { %12823 = vmatprep.subr.bf16.mxu1 %v15914_v55  ;;  %v15996_v55 = vld [vmem:[#allocation38 + $0xd88] ss:$16 sps:$4 sm:$0xff]  }
 0xf52   :  { %12815 = vmatmul.mubr.bf16.vlgmr.msra.gmra.mrb[68].mxu1 %v17574_v36  ;;  %v15927_v36 = vld [vmem:[#allocation38 + $0xaa8] ss:$16 sps:$4 sm:$0xff]  }
 0xf53   :  { %12824 = vmatpush1.bf16.msra.mxu1 %v15912_v61  ;;  %12855 = vmatprep.mubr.bf16.mxu1 %v17599_v28  ;;  %v15930_v28 = vld [vmem:[#allocation38 + $0xac8] ss:$16 sps:$4 sm:$0xff]   ;;  %v16001_v61 = vld [vmem:[#allocation38 + $0xdac] ss:$16 sps:$4 sm:$0xff]  }
 0xf54   :  { %12825 = vmatprep.subr.bf16.mxu1 %v15917_v10  ;;  %v15999_v10 = vld [vmem:[#allocation38 + $0xda8] ss:$16 sps:$4 sm:$0xff]  }
 0xf57   :  { %12826 = vmatpush1.bf16.msra.mxu1 %v15915_v23  ;;  %v16004_v23 = vld [vmem:[#allocation38 + $0xdcc] ss:$16 sps:$4 sm:$0xff]  }
 0xf58   :  { %12827 = vmatprep.subr.bf16.mxu1 %v15920_v56  ;;  %v16002_v56 = vld [vmem:[#allocation38 + $0xdc8] ss:$16 sps:$4 sm:$0xff]  }
 0xf5b   :  { %12828 = vmatpush1.bf16.msra.mxu1 %v15918_v47  ;;  %v16007_v47 = vld [vmem:[#allocation38 + $0xdec] ss:$16 sps:$4 sm:$0xff]  }
 0xf5c   :  { %12829 = vmatprep.subr.bf16.mxu1 %v15923_v54  ;;  %v16005_v54 = vld [vmem:[#allocation38 + $0xde8] ss:$16 sps:$4 sm:$0xff]  }
 0xf5f   :  { %12830 = vmatpush1.bf16.msra.mxu1 %v15921_v24  ;;  %v16010_v24 = vld [vmem:[#allocation38 + $0xe0c] ss:$16 sps:$4 sm:$0xff]  }
 0xf60   :  { %12831 = vmatprep.subr.bf16.mxu1 %v15926_v59  ;;  %v16008_v59 = vld [vmem:[#allocation38 + $0xe08] ss:$16 sps:$4 sm:$0xff]  }
 0xf63   :  { %12832 = vmatpush1.bf16.msra.mxu1 %v15924_v2  ;;  %v16013_v2 = vld [vmem:[#allocation38 + $0xe2c] ss:$16 sps:$4 sm:$0xff]  }
 0xf64   :  { %12833 = vmatprep.subr.bf16.mxu1 %v15929_v3  ;;  %v16011_v3 = vld [vmem:[#allocation38 + $0xe28] ss:$16 sps:$4 sm:$0xff]  }
 0xf67   :  { %12834 = vmatpush1.bf16.msra.mxu1 %v15927_v36  ;;  %v16016_v36 = vld [vmem:[#allocation38 + $0xe4c] ss:$16 sps:$4 sm:$0xff]  }
 0xf68   :  { %12835 = vmatprep.subr.bf16.mxu1 %v15932_v5  ;;  %v16014_v5 = vld [vmem:[#allocation38 + $0xe48] ss:$16 sps:$4 sm:$0xff]  }
 0xf6b   :  { %12836 = vmatpush1.bf16.msra.mxu1 %v15930_v28  ;;  %v16019_v28 = vld [vmem:[#allocation38 + $0xe6c] ss:$16 sps:$4 sm:$0xff]  }
 0xf6c   :  { %12837 = vmatprep.subr.bf16.mxu1 %v15935_v63  ;;  %v16017_v63 = vld [vmem:[#allocation38 + $0xe68] ss:$16 sps:$4 sm:$0xff]  }
 0xf6f   :  { %12838 = vmatpush1.bf16.msra.mxu1 %v15933_v26  ;;  %v16022_v26 = vld [vmem:[#allocation38 + $0xe8c] ss:$16 sps:$4 sm:$0xff]  }
 0xf70   :  { %12839 = vmatprep.subr.bf16.mxu1 %v15938_v29  ;;  %v16020_v29 = vld [vmem:[#allocation38 + $0xe88] ss:$16 sps:$4 sm:$0xff]  }
 0xf73   :  { %12840 = vmatpush1.bf16.msra.mxu1 %v15936_v6  ;;  %v16025_v6 = vld [vmem:[#allocation38 + $0xeac] ss:$16 sps:$4 sm:$0xff]  }
 0xf74   :  { %12841 = vmatprep.subr.bf16.mxu1 %v15941_v60  ;;  %v16028_v60 = vld [vmem:[#allocation38 + $0xecc] ss:$16 sps:$4 sm:$0xff]  }
 0xf77   :  { %12842 = vmatpush1.bf16.msra.mxu1 %v15939_v11  ;;  %v16031_v11 = vld [vmem:[#allocation38 + $0xeec] ss:$16 sps:$4 sm:$0xff]  }
 0xf78   :  { %12843 = vmatprep.subr.bf16.mxu1 %v15944_v35  ;;  %v16029_v35 = vld [vmem:[#allocation38 + $0xee8] ss:$16 sps:$4 sm:$0xff]  }
 0xf7b   :  { %12844 = vmatpush1.bf16.msra.mxu1 %v15942_v39  ;;  %v16034_v39 = vld [vmem:[#allocation38 + $0xf0c] ss:$16 sps:$4 sm:$0xff]  }
 0xf7c   :  { %12845 = vmatprep.subr.bf16.mxu1 %v15947_v12  ;;  %v16032_v12 = vld [vmem:[#allocation38 + $0xf08] ss:$16 sps:$4 sm:$0xff]  }
 0xf7f   :  { %12846 = vmatpush1.bf16.msra.mxu1 %v15945_v33  ;;  %v16037_v33 = vld [vmem:[#allocation38 + $0xf2c] ss:$16 sps:$4 sm:$0xff]  }
 0xf80   :  { %12847 = vmatprep.subr.bf16.mxu1 %v15950_v0  ;;  %v16035_v0 = vld [vmem:[#allocation38 + $0xf28] ss:$16 sps:$4 sm:$0xff]  }
 0xf83   :  { %12848 = vmatpush1.bf16.msra.mxu1 %v15948_v17  ;;  %v16040_v17 = vld [vmem:[#allocation38 + $0xf4c] ss:$16 sps:$4 sm:$0xff]  }
 0xf84   :  { %12849 = vmatprep.subr.bf16.mxu1 %v15953_v19  ;;  %v16038_v19 = vld [vmem:[#allocation38 + $0xf48] ss:$16 sps:$4 sm:$0xff]  }
 0xf87   :  { %12850 = vmatpush1.bf16.msra.mxu1 %v15951_v18  ;;  %v16043_v18 = vld [vmem:[#allocation38 + $0xf6c] ss:$16 sps:$4 sm:$0xff]  }
 0xf88   :  { %12851 = vmatprep.subr.bf16.mxu1 %v15956_v53  ;;  %v16041_v53 = vld [vmem:[#allocation38 + $0xf68] ss:$16 sps:$4 sm:$0xff]  }
 0xf8b   :  { %12852 = vmatpush1.bf16.msra.mxu1 %v15954_v25  ;;  %v16046_v25 = vld [vmem:[#allocation38 + $0xf8c] ss:$16 sps:$4 sm:$0xff]  }
 0xf8c   :  { %12853 = vmatprep.subr.bf16.mxu1 %v15959_v51  ;;  %v16044_v51 = vld [vmem:[#allocation38 + $0xf88] ss:$16 sps:$4 sm:$0xff]  }
 0xf8f   :  { %12854 = vmatpush1.bf16.msra.mxu1 %v15957_v27  ;;  %v9708_v27 = vld [vmem:[#allocation40] sm:$0xf] }
 0xf90   :  { %12864 = vmatprep.subr.bf16.mxu1 %v15962_v49  ;;  %v16049_v49 = vld [vmem:[#allocation38 + $0xfac] ss:$16 sps:$4 sm:$0xff]  }
 0xf92   :  { %12856 = vmatmul.mubr.bf16.vlgmr.msra.gmra.mrb[68].mxu1 %v17601_v40  ;;  %v15975_v40 = vld [vmem:[#allocation38 + $0xca8] ss:$16 sps:$4 sm:$0xff]  }
 0xf93   :  { %12865 = vmatpush1.bf16.msra.mxu1 %v15960_v48  ;;  %12896 = vmatprep.mubr.bf16.mxu1 %v17604_v31  ;;  %v15978_v31 = vld [vmem:[#allocation38 + $0xcc8] ss:$16 sps:$4 sm:$0xff]   ;;  %v9713_v48 = vrot.slane %v9708_v27, %v17235_v9  ;;  %v9725_v9 = vrot.slane %v9708_v27, %v17238_v13 }
 0xf94   :  { %12866 = vmatprep.subr.bf16.mxu1 %v15965_v4  ;;  %v16047_v4 = vld [vmem:[#allocation38 + $0xfa8] ss:$16 sps:$4 sm:$0xff]  }
 0xf97   :  { %12867 = vmatpush1.bf16.msra.mxu1 %v15963_v16  ;;  %v9717_v16 = vrot.slane %v9708_v27, %v17216_v20  ;;  %v9721_v20 = vrot.slane %v9708_v27, %v17264_v38 }
 0xf98   :  { %12868 = vmatprep.subr.bf16.mxu1 %v15968_v30  ;;  %v16052_v30 = vld [vmem:[#allocation38 + $0xfcc] ss:$16 sps:$4 sm:$0xff]  }
 0xf9b   :  { %12869 = vmatpush1.bf16.msra.mxu1 %v15966_v32 }
 0xf9c   :  { %12870 = vmatprep.subr.bf16.mxu1 %v15971_v8 }
 0xf9f   :  { %12871 = vmatpush1.bf16.msra.mxu1 %v15969_v7 }
 0xfa0   :  { %12872 = vmatprep.subr.bf16.mxu1 %v15974_v41  ;;  %v16050_v41 = vld [vmem:[#allocation38 + $0xfc8] ss:$16 sps:$4 sm:$0xff]  }
 0xfa3   :  { %12873 = vmatpush1.bf16.msra.mxu1 %v15972_v42 }
 0xfa4   :  { %12874 = vmatprep.subr.bf16.mxu1 %v15977_v50 }
 0xfa7   :  { %12875 = vmatpush1.bf16.msra.mxu1 %v15975_v40  ;;  %v16055_v40 = vld [vmem:[#allocation38 + $0xfec] ss:$16 sps:$4 sm:$0xff]  }
 0xfa8   :  { %12876 = vmatprep.subr.bf16.mxu1 %v15980_v1 }
 0xfab   :  { %12877 = vmatpush1.bf16.msra.mxu1 %v15978_v31  ;;  %v16053_v31 = vld [vmem:[#allocation38 + $0xfe8] ss:$16 sps:$4 sm:$0xff]  }
 0xfac   :  { %12878 = vmatprep.subr.bf16.mxu1 %v15983_v22 }
 0xfaf   :  { %12879 = vmatpush1.bf16.msra.mxu1 %v15981_v45 }
 0xfb0   :  { %12880 = vmatprep.subr.bf16.mxu1 %v15986_v14 }
 0xfb3   :  { %12881 = vmatpush1.bf16.msra.mxu1 %v15984_v46 }
 0xfb4   :  { %12882 = vmatprep.subr.bf16.mxu1 %v15989_v58 }
 0xfb7   :  { %12883 = vmatpush1.bf16.msra.mxu1 %v15987_v52 }
 0xfb8   :  { %12884 = vmatprep.subr.bf16.mxu1 %v15992_v21 }
 0xfbb   :  { %12885 = vmatpush1.bf16.msra.mxu1 %v15990_v37 }
 0xfbc   :  { %12886 = vmatprep.subr.bf16.mxu1 %v15995_v57 }
 0xfbf   :  { %12887 = vmatpush1.bf16.msra.mxu1 %v15993_v62 }
 0xfc0   :  { %12888 = vmatprep.subr.bf16.mxu1 %v15998_v34 }
 0xfc3   :  { %12889 = vmatpush1.bf16.msra.mxu1 %v15996_v55 }
 0xfc4   :  { %12890 = vmatprep.subr.bf16.mxu1 %v16001_v61 }
 0xfc7   :  { %12891 = vmatpush1.bf16.msra.mxu1 %v15999_v10 }
 0xfc8   :  { %12892 = vmatprep.subr.bf16.mxu1 %v16004_v23 }
 0xfcb   :  { %12893 = vmatpush1.bf16.msra.mxu1 %v16002_v56 }
 0xfcc   :  { %12894 = vmatprep.subr.bf16.mxu1 %v16007_v47 }
 0xfcf   :  { %12895 = vmatpush1.bf16.msra.mxu1 %v16005_v54 }
 0xfd0   :  { %12905 = vmatprep.subr.bf16.mxu1 %v16010_v24 }
 0xfd2   :  { %12897 = vmatmul.mubr.bf16.vlgmr.msra.gmra.mrb[68].mxu1 %v17625_v44  ;;  %v16023_v44 = vld [vmem:[#allocation38 + $0xea8] ss:$16 sps:$4 sm:$0xff]  }
 0xfd3   :  { %12906 = vmatpush1.bf16.msra.mxu1 %v16008_v59  ;;  %12937 = vmatprep.mubr.bf16.mxu1 %v17627_v15  ;;  %v16026_v15 = vld [vmem:[#allocation38 + $0xec8] ss:$16 sps:$4 sm:$0xff]  }
 0xfd4   :  { %12907 = vmatprep.subr.bf16.mxu1 %v16013_v2 }
 0xfd7   :  { %12908 = vmatpush1.bf16.msra.mxu1 %v16011_v3 }
 0xfd8   :  { %12909 = vmatprep.subr.bf16.mxu1 %v16016_v36 }
 0xfdb   :  { %12910 = vmatpush1.bf16.msra.mxu1 %v16014_v5 }
 0xfdc   :  { %12911 = vmatprep.subr.bf16.mxu1 %v16019_v28 }
 0xfdf   :  { %12912 = vmatpush1.bf16.msra.mxu1 %v16017_v63 }
 0xfe0   :  { %12913 = vmatprep.subr.bf16.mxu1 %v16022_v26 }
 0xfe3   :  { %12914 = vmatpush1.bf16.msra.mxu1 %v16020_v29 }
 0xfe4   :  { %12915 = vmatprep.subr.bf16.mxu1 %v16025_v6 }
 0xfe7   :  { %12916 = vmatpush1.bf16.msra.mxu1 %v16023_v44 }
 0xfe8   :  { %12917 = vmatprep.subr.bf16.mxu1 %v16028_v60 }
 0xfeb   :  { %12918 = vmatpush1.bf16.msra.mxu1 %v16026_v15 }
 0xfec   :  { %12919 = vmatprep.subr.bf16.mxu1 %v16031_v11 }
 0xfef   :  { %12920 = vmatpush1.bf16.msra.mxu1 %v16029_v35 }
 0xff0   :  { %12921 = vmatprep.subr.bf16.mxu1 %v16034_v39 }
 0xff3   :  { %12922 = vmatpush1.bf16.msra.mxu1 %v16032_v12 }
 0xff4   :  { %12923 = vmatprep.subr.bf16.mxu1 %v16037_v33 }
 0xff7   :  { %12924 = vmatpush1.bf16.msra.mxu1 %v16035_v0 }
 0xff8   :  { %12925 = vmatprep.subr.bf16.mxu1 %v16040_v17 }
 0xffb   :  { %12926 = vmatpush1.bf16.msra.mxu1 %v16038_v19 }
 0xffc   :  { %12927 = vmatprep.subr.bf16.mxu1 %v16043_v18 }
 0xfff   :  { %12928 = vmatpush1.bf16.msra.mxu1 %v16041_v53 }
0x1000   :  { %12929 = vmatprep.subr.bf16.mxu1 %v16046_v25 }
0x1003   :  { %12930 = vmatpush1.bf16.msra.mxu1 %v16044_v51 }
0x1004   :  { %12931 = vmatprep.subr.bf16.mxu1 %v16049_v49 }
0x1006   :  { %v12611_v32 = vpop.f32.mrb[24].mxu0 }
0x1007   :  { %v14689_v8 = vadd.f32 %v12611_v32, %v9713_v48  ;;  %v12613_v7 = vpop.f32.mrb[25].mxu0  ;;  %12932 = vmatpush1.bf16.msra.mxu1 %v16047_v4 }
0x1008   :  { %v14690_v42 = vadd.f32 %v12613_v7, %v9717_v16  ;;  %v12615_v50 = vpop.f32.mrb[26].mxu0  ;;  %12933 = vmatprep.subr.bf16.mxu1 %v16052_v30 }
0x1009   :  { %12946 = vst [vmem:[#allocation41] sm:$0xff] %v14689_v8  ;;  %v12616_v1 = vpop.f32.mrb[27].mxu0 }
0x100a   :  { %12947 = vst [vmem:[#allocation41 + $0x8] sm:$0xff] %v14690_v42 }
0x100b   :  { %12934 = vmatpush1.bf16.msra.mxu1 %v16050_v41 }
0x100c   :  { %12935 = vmatprep.subr.bf16.mxu1 %v16055_v40 }
0x100f   :  { %12936 = vmatpush1.bf16.msra.mxu1 %v16053_v31 }
0x1012   :  { %12938 = vmatmul.mubr.bf16.vlgmr.msra.gmra.mrb[68].mxu1 %v17640_v43 }
0x10e5   :  { %v12939_v22 = vpop.f32.mrb[68].mxu1 }
0x10e6   :  { %v14691_v45 = vadd.f32 %v12939_v22, %v9721_v20  ;;  %v12941_v14 = vpop.f32.mrb[69].mxu1 }
0x10e7   :  { %v14692_v46 = vadd.f32 %v12941_v14, %v9725_v9  ;;  %v12943_v58 = vpop.f32.mrb[70].mxu1 }
0x10e8   :  { %12948 = vst [vmem:[#allocation41 + $0x10] sm:$0xff] %v14691_v45  ;;  %v12944_v52 = vpop.f32.mrb[71].mxu1 }
0x10e9   :  { %12949 = vst [vmem:[#allocation41 + $0x18] sm:$0xff] %v14692_v46 }
0x10ea   :  { %16625 = shalt.err (!%p16622_p8)
}
0x10eb   :  { %s17732_s11 = sld [smem:[#allocation68_spill]] }
0x10f1   :  { %s16626_s30 = scalar_lea.hbm %s17732_s11, 512 }
0x10f2   :  { %p16627_p9 = scmp.ne.s32.totalorder %s17732_s11, %s16626_s30  ;;  %p16630_p10 = scmp.lt.u32.totalorder %s16626_s30, %s17732_s11 }
0x10f4   :  { %p16632_p11 = pnand %p16630_p10, %p16627_p9 }
0x10f6   :  { %16635 = shalt.err (!%p16632_p11)
}
0x10f7   :  { %12959 = dma.vmem_to_hbm [thread:$0]  %s12957_s17, 512, %s17732_s11, [#allocation4]  }
0x10f8   :  { %16662 = dma.done.wait [#allocation4], 512  }
0x10f9   :  { %16663 = vsyncadd [#allocation4], 4294966784 }
0x10fa   :  { %12967 = vsyncpa [#allocation3], 1 }
0x10fb   :  { %12968 = vsyncpa [#allocation6], 1 }
0x10fc   :  { %12969 = vsyncpa [#allocation9], 1 }
0x10fd   :  { %12970 = vsyncpa [#allocation12], 1 }
0x10fe   :  { %12971 = vsyncpa [#allocation15], 1 }
0x10ff   :  { %12972 = vsyncpa [#allocation18], 1 }
0x1100   :  { %12973 = vsyncpa [#allocation21], 1 }
0x1101   :  { %12974 = vsyncpa [#allocation24], 1 }
0x1102   :  { %12975 = vsyncpa [#allocation27], 1 }
0x1103   :  { %12976 = vsyncpa [#allocation30], 1 }
0x1104   :  { %12977 = vsyncpa [#allocation33], 1 }
0x1105   :  { %12978 = vsyncpa [#allocation36], 1 }
0x1106   :  { %12979 = vsyncpa [#allocation39], 1 }
0x1107   :  { %12980 = vsyncpa [#allocation4], 1 }

</bundles_post_ra>
